<compile_context>
chip_gen: v7x
topology: tpu7x:2x2x1
jax: 0.10.0
libtpu: 0.0.40
codegen_flags: <defaults>
</compile_context>

<pallas_src>
import functools
import math

import jax
import jax.numpy as jnp
from jax.experimental import pallas as pl
from jax.experimental.pallas import tpu as pltpu

BN_EPS = 1e-5  # PyTorch nn.BatchNorm2d default


# ----------------------------- fused kernel -----------------------------

def _residual_block_kernel(xpad_ref, x_ref, w1_ref, s1_ref, b1_ref,
                           w2_ref, s2_ref, b2_ref, o_ref, midpad_ref,
                           *, H, W, C):
    """One grid step = one batch element, NHWC (channels on the lane axis).

    conv3x3(pad=1) -> folded BN1 -> ReLU -> conv3x3(pad=1) -> folded BN2 -> + x
    Each conv = 9 shifted-window (H*W, C) x (C, C) bf16 MXU matmuls, fp32 accumulate.
    """
    HW = H * W

    # ---- conv1 + BN1 + ReLU ----
    acc = jnp.zeros((HW, C), jnp.float32)
    for k in range(9):
        dy, dx = k // 3, k % 3
        win = xpad_ref[0, dy:dy + H, dx:dx + W, :].reshape(HW, C)
        acc = acc + jnp.dot(win, w1_ref[k], preferred_element_type=jnp.float32)
    hid = jnp.maximum(acc * s1_ref[...] + b1_ref[...], 0.0)

    # zero-padded intermediate (bf16) kept in VMEM for the second 3x3 stencil
    midpad_ref[...] = jnp.zeros_like(midpad_ref)
    midpad_ref[1:H + 1, 1:W + 1, :] = hid.reshape(H, W, C).astype(jnp.bfloat16)

    # ---- conv2 + BN2 ----
    acc2 = jnp.zeros((HW, C), jnp.float32)
    for k in range(9):
        dy, dx = k // 3, k % 3
        win = midpad_ref[dy:dy + H, dx:dx + W, :].reshape(HW, C)
        acc2 = acc2 + jnp.dot(win, w2_ref[k], preferred_element_type=jnp.float32)
    y = acc2 * s2_ref[...] + b2_ref[...]

    # ---- residual add (fp32) ----
    o_ref[0] = x_ref[0] + y.reshape(H, W, C)


# ----------------------------- wrapper -----------------------------

def _fold_conv_bn(conv_w, conv_b, bn_g, bn_b, bn_m, bn_v, eps=BN_EPS):
    """Fold eval-mode BN (and conv bias) into per-channel scale/shift; repack
    the (Cout, Cin, 3, 3) conv weight as (9, Cin, Cout) bf16 tap matrices."""
    cout, cin = conv_w.shape[0], conv_w.shape[1]
    scale = bn_g / jnp.sqrt(bn_v + eps)
    shift = bn_b + (conv_b - bn_m) * scale
    w = jnp.transpose(conv_w, (2, 3, 1, 0)).reshape(9, cin, cout)  # k = ky*3 + kx
    return (w.astype(jnp.bfloat16),
            scale.reshape(1, cout).astype(jnp.float32),
            shift.reshape(1, cout).astype(jnp.float32))


def residual_block(x_nchw, params):
    """x: (B, C, H, W) fp32  ->  (B, C, H, W) fp32 (matches PyTorch ResidualBlock.forward)."""
    B, C, H, W = x_nchw.shape
    x_nhwc = jnp.transpose(x_nchw, (0, 2, 3, 1)).astype(jnp.float32)
    xpad = jnp.pad(x_nhwc.astype(jnp.bfloat16), ((0, 0), (1, 1), (1, 1), (0, 0)))

    w1, s1, b1 = _fold_conv_bn(params["conv1_w"], params["conv1_b"],
                               params["bn1_g"], params["bn1_b"],
                               params["bn1_m"], params["bn1_v"])
    w2, s2, b2 = _fold_conv_bn(params["conv2_w"], params["conv2_b"],
                               params["bn2_g"], params["bn2_b"],
                               params["bn2_m"], params["bn2_v"])

    out_nhwc = pl.pallas_call(
        functools.partial(_residual_block_kernel, H=H, W=W, C=C),
        out_shape=jax.ShapeDtypeStruct((B, H, W, C), jnp.float32),
        grid=(B,),
        in_specs=[
            pl.BlockSpec((1, H + 2, W + 2, C), lambda b: (b, 0, 0, 0)),  # padded x (bf16)
            pl.BlockSpec((1, H, W, C), lambda b: (b, 0, 0, 0)),          # residual x (fp32)
            pl.BlockSpec((9, C, C), lambda b: (0, 0, 0)),                # conv1 taps
            pl.BlockSpec((1, C), lambda b: (0, 0)),                      # BN1 scale
            pl.BlockSpec((1, C), lambda b: (0, 0)),                      # BN1 shift
            pl.BlockSpec((9, C, C), lambda b: (0, 0, 0)),                # conv2 taps
            pl.BlockSpec((1, C), lambda b: (0, 0)),                      # BN2 scale
            pl.BlockSpec((1, C), lambda b: (0, 0)),                      # BN2 shift
        ],
        out_specs=pl.BlockSpec((1, H, W, C), lambda b: (b, 0, 0, 0)),
        scratch_shapes=[pltpu.VMEM((H + 2, W + 2, C), jnp.bfloat16)],
        compiler_params=pltpu.CompilerParams(dimension_semantics=("parallel",)),
    )(xpad, x_nhwc, w1, s1, b1, w2, s2, b2)

    return jnp.transpose(out_nhwc, (0, 3, 1, 2))


# ----------------------------- reference & setup -----------------------------

def residual_block_reference(x, p, eps=BN_EPS):
    def conv(h, w, b):
        y = jax.lax.conv_general_dilated(
            h, w, window_strides=(1, 1), padding="SAME",
            dimension_numbers=("NCHW", "OIHW", "NCHW"))
        return y + b[None, :, None, None]

    def bn(h, g, bta, m, v):
        s = g / jnp.sqrt(v + eps)
        return (h - m[None, :, None, None]) * s[None, :, None, None] + bta[None, :, None, None]

    h = conv(x, p["conv1_w"], p["conv1_b"])
    h = jnp.maximum(bn(h, p["bn1_g"], p["bn1_b"], p["bn1_m"], p["bn1_v"]), 0.0)
    h = conv(h, p["conv2_w"], p["conv2_b"])
    h = bn(h, p["bn2_g"], p["bn2_b"], p["bn2_m"], p["bn2_v"])
    return x + h


def init_params(key, channels):
    ks = jax.random.split(key, 12)
    s = 1.0 / math.sqrt(channels * 9)
    return {
        "conv1_w": jax.random.normal(ks[0], (channels, channels, 3, 3), jnp.float32) * s,
        "conv1_b": 0.1 * jax.random.normal(ks[1], (channels,), jnp.float32),
        "bn1_g": 1.0 + 0.1 * jax.random.normal(ks[2], (channels,), jnp.float32),
        "bn1_b": 0.1 * jax.random.normal(ks[3], (channels,), jnp.float32),
        "bn1_m": 0.1 * jax.random.normal(ks[4], (channels,), jnp.float32),
        "bn1_v": 1.0 + 0.1 * jnp.abs(jax.random.normal(ks[5], (channels,), jnp.float32)),
        "conv2_w": jax.random.normal(ks[6], (channels, channels, 3, 3), jnp.float32) * s,
        "conv2_b": 0.1 * jax.random.normal(ks[7], (channels,), jnp.float32),
        "bn2_g": 1.0 + 0.1 * jax.random.normal(ks[8], (channels,), jnp.float32),
        "bn2_b": 0.1 * jax.random.normal(ks[9], (channels,), jnp.float32),
        "bn2_m": 0.1 * jax.random.normal(ks[10], (channels,), jnp.float32),
        "bn2_v": 1.0 + 0.1 * jnp.abs(jax.random.normal(ks[11], (channels,), jnp.float32)),
    }


if __name__ == "__main__":
    key = jax.random.PRNGKey(0)
    pkey, xkey = jax.random.split(key)

    # channels=128 keeps the channel (lane) axis dense; batch=2, 16x16 spatial.
    B, C, H, W = 2, 128, 16, 16
    params = init_params(pkey, C)
    x = jax.random.normal(xkey, (B, C, H, W), jnp.float32)

    out = jax.jit(residual_block)(x, params)
    jax.block_until_ready(out)

    assert out.shape == (B, C, H, W), out.shape
    assert bool(jnp.all(jnp.isfinite(out)))

    ref = residual_block_reference(x, params)
    err = float(jnp.max(jnp.abs(out - ref)) / (jnp.max(jnp.abs(ref)) + 1e-6))
    assert err < 5e-2, f"max error (rel to max |ref|) = {err}"

    print("KERNEL_OK")
</pallas_src>

<mosaic_0001>
module attributes {stable_mosaic.version = 11 : i64} {
  func.func @_residual_block_kernel(%arg0: i32, %arg1: memref<1x18x18x128xbf16, #tpu.memory_space<vmem>>, %arg2: memref<1x16x16x128xf32, #tpu.memory_space<vmem>>, %arg3: memref<9x128x128xbf16, #tpu.memory_space<vmem>>, %arg4: memref<1x128xf32, #tpu.memory_space<vmem>>, %arg5: memref<1x128xf32, #tpu.memory_space<vmem>>, %arg6: memref<9x128x128xbf16, #tpu.memory_space<vmem>>, %arg7: memref<1x128xf32, #tpu.memory_space<vmem>>, %arg8: memref<1x128xf32, #tpu.memory_space<vmem>>, %arg9: memref<1x16x16x128xf32, #tpu.memory_space<vmem>>, %arg10: memref<18x18x128xbf16, #tpu.memory_space<vmem>>) attributes {dimension_semantics = [#tpu.dimension_semantics<parallel>], iteration_bounds = array<i64: 2>, scalar_prefetch = 0 : i64, scratch_operands = 1 : i64, tpu.core_type = #tpu.core_type<tc>, window_params = [{transform_indices = @transform_0, window_bounds = array<i64: 1, 18, 18, 128>}, {transform_indices = @transform_1, window_bounds = array<i64: 1, 16, 16, 128>}, {pipeline_mode = #tpu.pipeline_mode<synchronous>, transform_indices = @transform_2, window_bounds = array<i64: 9, 128, 128>}, {pipeline_mode = #tpu.pipeline_mode<synchronous>, transform_indices = @transform_3, window_bounds = array<i64: 1, 128>}, {pipeline_mode = #tpu.pipeline_mode<synchronous>, transform_indices = @transform_4, window_bounds = array<i64: 1, 128>}, {pipeline_mode = #tpu.pipeline_mode<synchronous>, transform_indices = @transform_5, window_bounds = array<i64: 9, 128, 128>}, {pipeline_mode = #tpu.pipeline_mode<synchronous>, transform_indices = @transform_6, window_bounds = array<i64: 1, 128>}, {pipeline_mode = #tpu.pipeline_mode<synchronous>, transform_indices = @transform_7, window_bounds = array<i64: 1, 128>}, {transform_indices = @transform_8, window_bounds = array<i64: 1, 16, 16, 128>}]} {
    %cst = arith.constant 0.000000e+00 : f32
    %0 = vector.broadcast %cst : f32 to vector<256x128xf32>
    %c0 = arith.constant 0 : index
    %c0_0 = arith.constant 0 : index
    %c0_1 = arith.constant 0 : index
    %c0_2 = arith.constant 0 : index
    %1 = vector.load %arg1[%c0, %c0_0, %c0_1, %c0_2] : memref<1x18x18x128xbf16, #tpu.memory_space<vmem>>, vector<1x16x16x128xbf16>
    %2 = vector.shape_cast %1 : vector<1x16x16x128xbf16> to vector<16x16x128xbf16>
    %3 = vector.shape_cast %2 : vector<16x16x128xbf16> to vector<256x128xbf16>
    %c0_3 = arith.constant 0 : index
    %c0_4 = arith.constant 0 : index
    %c0_5 = arith.constant 0 : index
    %4 = vector.load %arg3[%c0_3, %c0_4, %c0_5] : memref<9x128x128xbf16, #tpu.memory_space<vmem>>, vector<1x128x128xbf16>
    %5 = vector.shape_cast %4 : vector<1x128x128xbf16> to vector<128x128xbf16>
    %cst_6 = arith.constant dense<0.000000e+00> : vector<256x128xf32>
    %6 = tpu.matmul %3, %5, %cst_6 {dimension_numbers = #tpu.dot_dimension_numbers<[1], [0], [0], [1], [0, 0, 1, 1], [], []>} : vector<256x128xbf16>, vector<128x128xbf16>, vector<256x128xf32> -> vector<256x128xf32>
    %7 = arith.addf %0, %6 : vector<256x128xf32>
    %c0_7 = arith.constant 0 : index
    %c0_8 = arith.constant 0 : index
    %c1 = arith.constant 1 : index
    %c0_9 = arith.constant 0 : index
    %8 = vector.load %arg1[%c0_7, %c0_8, %c1, %c0_9] : memref<1x18x18x128xbf16, #tpu.memory_space<vmem>>, vector<1x16x16x128xbf16>
    %9 = vector.shape_cast %8 : vector<1x16x16x128xbf16> to vector<16x16x128xbf16>
    %10 = vector.shape_cast %9 : vector<16x16x128xbf16> to vector<256x128xbf16>
    %c1_10 = arith.constant 1 : index
    %c0_11 = arith.constant 0 : index
    %c0_12 = arith.constant 0 : index
    %11 = vector.load %arg3[%c1_10, %c0_11, %c0_12] : memref<9x128x128xbf16, #tpu.memory_space<vmem>>, vector<1x128x128xbf16>
    %12 = vector.shape_cast %11 : vector<1x128x128xbf16> to vector<128x128xbf16>
    %cst_13 = arith.constant dense<0.000000e+00> : vector<256x128xf32>
    %13 = tpu.matmul %10, %12, %cst_13 {dimension_numbers = #tpu.dot_dimension_numbers<[1], [0], [0], [1], [0, 0, 1, 1], [], []>} : vector<256x128xbf16>, vector<128x128xbf16>, vector<256x128xf32> -> vector<256x128xf32>
    %14 = arith.addf %7, %13 : vector<256x128xf32>
    %c0_14 = arith.constant 0 : index
    %c0_15 = arith.constant 0 : index
    %c2 = arith.constant 2 : index
    %c0_16 = arith.constant 0 : index
    %15 = vector.load %arg1[%c0_14, %c0_15, %c2, %c0_16] : memref<1x18x18x128xbf16, #tpu.memory_space<vmem>>, vector<1x16x16x128xbf16>
    %16 = vector.shape_cast %15 : vector<1x16x16x128xbf16> to vector<16x16x128xbf16>
    %17 = vector.shape_cast %16 : vector<16x16x128xbf16> to vector<256x128xbf16>
    %c2_17 = arith.constant 2 : index
    %c0_18 = arith.constant 0 : index
    %c0_19 = arith.constant 0 : index
    %18 = vector.load %arg3[%c2_17, %c0_18, %c0_19] : memref<9x128x128xbf16, #tpu.memory_space<vmem>>, vector<1x128x128xbf16>
    %19 = vector.shape_cast %18 : vector<1x128x128xbf16> to vector<128x128xbf16>
    %cst_20 = arith.constant dense<0.000000e+00> : vector<256x128xf32>
    %20 = tpu.matmul %17, %19, %cst_20 {dimension_numbers = #tpu.dot_dimension_numbers<[1], [0], [0], [1], [0, 0, 1, 1], [], []>} : vector<256x128xbf16>, vector<128x128xbf16>, vector<256x128xf32> -> vector<256x128xf32>
    %21 = arith.addf %14, %20 : vector<256x128xf32>
    %c0_21 = arith.constant 0 : index
    %c1_22 = arith.constant 1 : index
    %c0_23 = arith.constant 0 : index
    %c0_24 = arith.constant 0 : index
    %22 = vector.load %arg1[%c0_21, %c1_22, %c0_23, %c0_24] : memref<1x18x18x128xbf16, #tpu.memory_space<vmem>>, vector<1x16x16x128xbf16>
    %23 = vector.shape_cast %22 : vector<1x16x16x128xbf16> to vector<16x16x128xbf16>
    %24 = vector.shape_cast %23 : vector<16x16x128xbf16> to vector<256x128xbf16>
    %c3 = arith.constant 3 : index
    %c0_25 = arith.constant 0 : index
    %c0_26 = arith.constant 0 : index
    %25 = vector.load %arg3[%c3, %c0_25, %c0_26] : memref<9x128x128xbf16, #tpu.memory_space<vmem>>, vector<1x128x128xbf16>
    %26 = vector.shape_cast %25 : vector<1x128x128xbf16> to vector<128x128xbf16>
    %cst_27 = arith.constant dense<0.000000e+00> : vector<256x128xf32>
    %27 = tpu.matmul %24, %26, %cst_27 {dimension_numbers = #tpu.dot_dimension_numbers<[1], [0], [0], [1], [0, 0, 1, 1], [], []>} : vector<256x128xbf16>, vector<128x128xbf16>, vector<256x128xf32> -> vector<256x128xf32>
    %28 = arith.addf %21, %27 : vector<256x128xf32>
    %c0_28 = arith.constant 0 : index
    %c1_29 = arith.constant 1 : index
    %c1_30 = arith.constant 1 : index
    %c0_31 = arith.constant 0 : index
    %29 = vector.load %arg1[%c0_28, %c1_29, %c1_30, %c0_31] : memref<1x18x18x128xbf16, #tpu.memory_space<vmem>>, vector<1x16x16x128xbf16>
    %30 = vector.shape_cast %29 : vector<1x16x16x128xbf16> to vector<16x16x128xbf16>
    %31 = vector.shape_cast %30 : vector<16x16x128xbf16> to vector<256x128xbf16>
    %c4 = arith.constant 4 : index
    %c0_32 = arith.constant 0 : index
    %c0_33 = arith.constant 0 : index
    %32 = vector.load %arg3[%c4, %c0_32, %c0_33] : memref<9x128x128xbf16, #tpu.memory_space<vmem>>, vector<1x128x128xbf16>
    %33 = vector.shape_cast %32 : vector<1x128x128xbf16> to vector<128x128xbf16>
    %cst_34 = arith.constant dense<0.000000e+00> : vector<256x128xf32>
    %34 = tpu.matmul %31, %33, %cst_34 {dimension_numbers = #tpu.dot_dimension_numbers<[1], [0], [0], [1], [0, 0, 1, 1], [], []>} : vector<256x128xbf16>, vector<128x128xbf16>, vector<256x128xf32> -> vector<256x128xf32>
    %35 = arith.addf %28, %34 : vector<256x128xf32>
    %c0_35 = arith.constant 0 : index
    %c1_36 = arith.constant 1 : index
    %c2_37 = arith.constant 2 : index
    %c0_38 = arith.constant 0 : index
    %36 = vector.load %arg1[%c0_35, %c1_36, %c2_37, %c0_38] : memref<1x18x18x128xbf16, #tpu.memory_space<vmem>>, vector<1x16x16x128xbf16>
    %37 = vector.shape_cast %36 : vector<1x16x16x128xbf16> to vector<16x16x128xbf16>
    %38 = vector.shape_cast %37 : vector<16x16x128xbf16> to vector<256x128xbf16>
    %c5 = arith.constant 5 : index
    %c0_39 = arith.constant 0 : index
    %c0_40 = arith.constant 0 : index
    %39 = vector.load %arg3[%c5, %c0_39, %c0_40] : memref<9x128x128xbf16, #tpu.memory_space<vmem>>, vector<1x128x128xbf16>
    %40 = vector.shape_cast %39 : vector<1x128x128xbf16> to vector<128x128xbf16>
    %cst_41 = arith.constant dense<0.000000e+00> : vector<256x128xf32>
    %41 = tpu.matmul %38, %40, %cst_41 {dimension_numbers = #tpu.dot_dimension_numbers<[1], [0], [0], [1], [0, 0, 1, 1], [], []>} : vector<256x128xbf16>, vector<128x128xbf16>, vector<256x128xf32> -> vector<256x128xf32>
    %42 = arith.addf %35, %41 : vector<256x128xf32>
    %c0_42 = arith.constant 0 : index
    %c2_43 = arith.constant 2 : index
    %c0_44 = arith.constant 0 : index
    %c0_45 = arith.constant 0 : index
    %43 = vector.load %arg1[%c0_42, %c2_43, %c0_44, %c0_45] : memref<1x18x18x128xbf16, #tpu.memory_space<vmem>>, vector<1x16x16x128xbf16>
    %44 = vector.shape_cast %43 : vector<1x16x16x128xbf16> to vector<16x16x128xbf16>
    %45 = vector.shape_cast %44 : vector<16x16x128xbf16> to vector<256x128xbf16>
    %c6 = arith.constant 6 : index
    %c0_46 = arith.constant 0 : index
    %c0_47 = arith.constant 0 : index
    %46 = vector.load %arg3[%c6, %c0_46, %c0_47] : memref<9x128x128xbf16, #tpu.memory_space<vmem>>, vector<1x128x128xbf16>
    %47 = vector.shape_cast %46 : vector<1x128x128xbf16> to vector<128x128xbf16>
    %cst_48 = arith.constant dense<0.000000e+00> : vector<256x128xf32>
    %48 = tpu.matmul %45, %47, %cst_48 {dimension_numbers = #tpu.dot_dimension_numbers<[1], [0], [0], [1], [0, 0, 1, 1], [], []>} : vector<256x128xbf16>, vector<128x128xbf16>, vector<256x128xf32> -> vector<256x128xf32>
    %49 = arith.addf %42, %48 : vector<256x128xf32>
    %c0_49 = arith.constant 0 : index
    %c2_50 = arith.constant 2 : index
    %c1_51 = arith.constant 1 : index
    %c0_52 = arith.constant 0 : index
    %50 = vector.load %arg1[%c0_49, %c2_50, %c1_51, %c0_52] : memref<1x18x18x128xbf16, #tpu.memory_space<vmem>>, vector<1x16x16x128xbf16>
    %51 = vector.shape_cast %50 : vector<1x16x16x128xbf16> to vector<16x16x128xbf16>
    %52 = vector.shape_cast %51 : vector<16x16x128xbf16> to vector<256x128xbf16>
    %c7 = arith.constant 7 : index
    %c0_53 = arith.constant 0 : index
    %c0_54 = arith.constant 0 : index
    %53 = vector.load %arg3[%c7, %c0_53, %c0_54] : memref<9x128x128xbf16, #tpu.memory_space<vmem>>, vector<1x128x128xbf16>
    %54 = vector.shape_cast %53 : vector<1x128x128xbf16> to vector<128x128xbf16>
    %cst_55 = arith.constant dense<0.000000e+00> : vector<256x128xf32>
    %55 = tpu.matmul %52, %54, %cst_55 {dimension_numbers = #tpu.dot_dimension_numbers<[1], [0], [0], [1], [0, 0, 1, 1], [], []>} : vector<256x128xbf16>, vector<128x128xbf16>, vector<256x128xf32> -> vector<256x128xf32>
    %56 = arith.addf %49, %55 : vector<256x128xf32>
    %c0_56 = arith.constant 0 : index
    %c2_57 = arith.constant 2 : index
    %c2_58 = arith.constant 2 : index
    %c0_59 = arith.constant 0 : index
    %57 = vector.load %arg1[%c0_56, %c2_57, %c2_58, %c0_59] : memref<1x18x18x128xbf16, #tpu.memory_space<vmem>>, vector<1x16x16x128xbf16>
    %58 = vector.shape_cast %57 : vector<1x16x16x128xbf16> to vector<16x16x128xbf16>
    %59 = vector.shape_cast %58 : vector<16x16x128xbf16> to vector<256x128xbf16>
    %c8 = arith.constant 8 : index
    %c0_60 = arith.constant 0 : index
    %c0_61 = arith.constant 0 : index
    %60 = vector.load %arg3[%c8, %c0_60, %c0_61] : memref<9x128x128xbf16, #tpu.memory_space<vmem>>, vector<1x128x128xbf16>
    %61 = vector.shape_cast %60 : vector<1x128x128xbf16> to vector<128x128xbf16>
    %cst_62 = arith.constant dense<0.000000e+00> : vector<256x128xf32>
    %62 = tpu.matmul %59, %61, %cst_62 {dimension_numbers = #tpu.dot_dimension_numbers<[1], [0], [0], [1], [0, 0, 1, 1], [], []>} : vector<256x128xbf16>, vector<128x128xbf16>, vector<256x128xf32> -> vector<256x128xf32>
    %63 = arith.addf %56, %62 : vector<256x128xf32>
    %c0_63 = arith.constant 0 : index
    %c0_64 = arith.constant 0 : index
    %64 = vector.load %arg4[%c0_63, %c0_64] : memref<1x128xf32, #tpu.memory_space<vmem>>, vector<1x128xf32>
    %65 = vector.broadcast %64 : vector<1x128xf32> to vector<256x128xf32>
    %66 = arith.mulf %63, %65 : vector<256x128xf32>
    %c0_65 = arith.constant 0 : index
    %c0_66 = arith.constant 0 : index
    %67 = vector.load %arg5[%c0_65, %c0_66] : memref<1x128xf32, #tpu.memory_space<vmem>>, vector<1x128xf32>
    %68 = vector.broadcast %67 : vector<1x128xf32> to vector<256x128xf32>
    %69 = arith.addf %66, %68 : vector<256x128xf32>
    %cst_67 = arith.constant 0.000000e+00 : f32
    %70 = vector.broadcast %cst_67 : f32 to vector<256x128xf32>
    %71 = arith.maximumf %69, %70 : vector<256x128xf32>
    %cst_68 = arith.constant 0.000000e+00 : bf16
    %72 = vector.broadcast %cst_68 : bf16 to vector<18x18x128xbf16>
    %c0_69 = arith.constant 0 : index
    %c0_70 = arith.constant 0 : index
    %c0_71 = arith.constant 0 : index
    %73 = vector.load %arg10[%c0_69, %c0_70, %c0_71] : memref<18x18x128xbf16, #tpu.memory_space<vmem>>, vector<18x18x128xbf16>
    tpu.vector_store %arg10[%c0_69, %c0_70, %c0_71], %72 {strides = array<i32>} : memref<18x18x128xbf16, #tpu.memory_space<vmem>>, vector<18x18x128xbf16>,
    %74 = vector.shape_cast %71 : vector<256x128xf32> to vector<16x16x128xf32>
    %75 = arith.truncf %74 : vector<16x16x128xf32> to vector<16x16x128xbf16>
    %c1_72 = arith.constant 1 : index
    %c1_73 = arith.constant 1 : index
    %c0_74 = arith.constant 0 : index
    %76 = vector.load %arg10[%c1_72, %c1_73, %c0_74] : memref<18x18x128xbf16, #tpu.memory_space<vmem>>, vector<16x16x128xbf16>
    tpu.vector_store %arg10[%c1_72, %c1_73, %c0_74], %75 {strides = array<i32>} : memref<18x18x128xbf16, #tpu.memory_space<vmem>>, vector<16x16x128xbf16>,
    %cst_75 = arith.constant 0.000000e+00 : f32
    %77 = vector.broadcast %cst_75 : f32 to vector<256x128xf32>
    %c0_76 = arith.constant 0 : index
    %c0_77 = arith.constant 0 : index
    %c0_78 = arith.constant 0 : index
    %78 = vector.load %arg10[%c0_76, %c0_77, %c0_78] : memref<18x18x128xbf16, #tpu.memory_space<vmem>>, vector<16x16x128xbf16>
    %79 = vector.shape_cast %78 : vector<16x16x128xbf16> to vector<256x128xbf16>
    %c0_79 = arith.constant 0 : index
    %c0_80 = arith.constant 0 : index
    %c0_81 = arith.constant 0 : index
    %80 = vector.load %arg6[%c0_79, %c0_80, %c0_81] : memref<9x128x128xbf16, #tpu.memory_space<vmem>>, vector<1x128x128xbf16>
    %81 = vector.shape_cast %80 : vector<1x128x128xbf16> to vector<128x128xbf16>
    %cst_82 = arith.constant dense<0.000000e+00> : vector<256x128xf32>
    %82 = tpu.matmul %79, %81, %cst_82 {dimension_numbers = #tpu.dot_dimension_numbers<[1], [0], [0], [1], [0, 0, 1, 1], [], []>} : vector<256x128xbf16>, vector<128x128xbf16>, vector<256x128xf32> -> vector<256x128xf32>
    %83 = arith.addf %77, %82 : vector<256x128xf32>
    %c0_83 = arith.constant 0 : index
    %c1_84 = arith.constant 1 : index
    %c0_85 = arith.constant 0 : index
    %84 = vector.load %arg10[%c0_83, %c1_84, %c0_85] : memref<18x18x128xbf16, #tpu.memory_space<vmem>>, vector<16x16x128xbf16>
    %85 = vector.shape_cast %84 : vector<16x16x128xbf16> to vector<256x128xbf16>
    %c1_86 = arith.constant 1 : index
    %c0_87 = arith.constant 0 : index
    %c0_88 = arith.constant 0 : index
    %86 = vector.load %arg6[%c1_86, %c0_87, %c0_88] : memref<9x128x128xbf16, #tpu.memory_space<vmem>>, vector<1x128x128xbf16>
    %87 = vector.shape_cast %86 : vector<1x128x128xbf16> to vector<128x128xbf16>
    %cst_89 = arith.constant dense<0.000000e+00> : vector<256x128xf32>
    %88 = tpu.matmul %85, %87, %cst_89 {dimension_numbers = #tpu.dot_dimension_numbers<[1], [0], [0], [1], [0, 0, 1, 1], [], []>} : vector<256x128xbf16>, vector<128x128xbf16>, vector<256x128xf32> -> vector<256x128xf32>
    %89 = arith.addf %83, %88 : vector<256x128xf32>
    %c0_90 = arith.constant 0 : index
    %c2_91 = arith.constant 2 : index
    %c0_92 = arith.constant 0 : index
    %90 = vector.load %arg10[%c0_90, %c2_91, %c0_92] : memref<18x18x128xbf16, #tpu.memory_space<vmem>>, vector<16x16x128xbf16>
    %91 = vector.shape_cast %90 : vector<16x16x128xbf16> to vector<256x128xbf16>
    %c2_93 = arith.constant 2 : index
    %c0_94 = arith.constant 0 : index
    %c0_95 = arith.constant 0 : index
    %92 = vector.load %arg6[%c2_93, %c0_94, %c0_95] : memref<9x128x128xbf16, #tpu.memory_space<vmem>>, vector<1x128x128xbf16>
    %93 = vector.shape_cast %92 : vector<1x128x128xbf16> to vector<128x128xbf16>
    %cst_96 = arith.constant dense<0.000000e+00> : vector<256x128xf32>
    %94 = tpu.matmul %91, %93, %cst_96 {dimension_numbers = #tpu.dot_dimension_numbers<[1], [0], [0], [1], [0, 0, 1, 1], [], []>} : vector<256x128xbf16>, vector<128x128xbf16>, vector<256x128xf32> -> vector<256x128xf32>
    %95 = arith.addf %89, %94 : vector<256x128xf32>
    %c1_97 = arith.constant 1 : index
    %c0_98 = arith.constant 0 : index
    %c0_99 = arith.constant 0 : index
    %96 = vector.load %arg10[%c1_97, %c0_98, %c0_99] : memref<18x18x128xbf16, #tpu.memory_space<vmem>>, vector<16x16x128xbf16>
    %97 = vector.shape_cast %96 : vector<16x16x128xbf16> to vector<256x128xbf16>
    %c3_100 = arith.constant 3 : index
    %c0_101 = arith.constant 0 : index
    %c0_102 = arith.constant 0 : index
    %98 = vector.load %arg6[%c3_100, %c0_101, %c0_102] : memref<9x128x128xbf16, #tpu.memory_space<vmem>>, vector<1x128x128xbf16>
    %99 = vector.shape_cast %98 : vector<1x128x128xbf16> to vector<128x128xbf16>
    %cst_103 = arith.constant dense<0.000000e+00> : vector<256x128xf32>
    %100 = tpu.matmul %97, %99, %cst_103 {dimension_numbers = #tpu.dot_dimension_numbers<[1], [0], [0], [1], [0, 0, 1, 1], [], []>} : vector<256x128xbf16>, vector<128x128xbf16>, vector<256x128xf32> -> vector<256x128xf32>
    %101 = arith.addf %95, %100 : vector<256x128xf32>
    %c1_104 = arith.constant 1 : index
    %c1_105 = arith.constant 1 : index
    %c0_106 = arith.constant 0 : index
    %102 = vector.load %arg10[%c1_104, %c1_105, %c0_106] : memref<18x18x128xbf16, #tpu.memory_space<vmem>>, vector<16x16x128xbf16>
    %103 = vector.shape_cast %102 : vector<16x16x128xbf16> to vector<256x128xbf16>
    %c4_107 = arith.constant 4 : index
    %c0_108 = arith.constant 0 : index
    %c0_109 = arith.constant 0 : index
    %104 = vector.load %arg6[%c4_107, %c0_108, %c0_109] : memref<9x128x128xbf16, #tpu.memory_space<vmem>>, vector<1x128x128xbf16>
    %105 = vector.shape_cast %104 : vector<1x128x128xbf16> to vector<128x128xbf16>
    %cst_110 = arith.constant dense<0.000000e+00> : vector<256x128xf32>
    %106 = tpu.matmul %103, %105, %cst_110 {dimension_numbers = #tpu.dot_dimension_numbers<[1], [0], [0], [1], [0, 0, 1, 1], [], []>} : vector<256x128xbf16>, vector<128x128xbf16>, vector<256x128xf32> -> vector<256x128xf32>
    %107 = arith.addf %101, %106 : vector<256x128xf32>
    %c1_111 = arith.constant 1 : index
    %c2_112 = arith.constant 2 : index
    %c0_113 = arith.constant 0 : index
    %108 = vector.load %arg10[%c1_111, %c2_112, %c0_113] : memref<18x18x128xbf16, #tpu.memory_space<vmem>>, vector<16x16x128xbf16>
    %109 = vector.shape_cast %108 : vector<16x16x128xbf16> to vector<256x128xbf16>
    %c5_114 = arith.constant 5 : index
    %c0_115 = arith.constant 0 : index
    %c0_116 = arith.constant 0 : index
    %110 = vector.load %arg6[%c5_114, %c0_115, %c0_116] : memref<9x128x128xbf16, #tpu.memory_space<vmem>>, vector<1x128x128xbf16>
    %111 = vector.shape_cast %110 : vector<1x128x128xbf16> to vector<128x128xbf16>
    %cst_117 = arith.constant dense<0.000000e+00> : vector<256x128xf32>
    %112 = tpu.matmul %109, %111, %cst_117 {dimension_numbers = #tpu.dot_dimension_numbers<[1], [0], [0], [1], [0, 0, 1, 1], [], []>} : vector<256x128xbf16>, vector<128x128xbf16>, vector<256x128xf32> -> vector<256x128xf32>
    %113 = arith.addf %107, %112 : vector<256x128xf32>
    %c2_118 = arith.constant 2 : index
    %c0_119 = arith.constant 0 : index
    %c0_120 = arith.constant 0 : index
    %114 = vector.load %arg10[%c2_118, %c0_119, %c0_120] : memref<18x18x128xbf16, #tpu.memory_space<vmem>>, vector<16x16x128xbf16>
    %115 = vector.shape_cast %114 : vector<16x16x128xbf16> to vector<256x128xbf16>
    %c6_121 = arith.constant 6 : index
    %c0_122 = arith.constant 0 : index
    %c0_123 = arith.constant 0 : index
    %116 = vector.load %arg6[%c6_121, %c0_122, %c0_123] : memref<9x128x128xbf16, #tpu.memory_space<vmem>>, vector<1x128x128xbf16>
    %117 = vector.shape_cast %116 : vector<1x128x128xbf16> to vector<128x128xbf16>
    %cst_124 = arith.constant dense<0.000000e+00> : vector<256x128xf32>
    %118 = tpu.matmul %115, %117, %cst_124 {dimension_numbers = #tpu.dot_dimension_numbers<[1], [0], [0], [1], [0, 0, 1, 1], [], []>} : vector<256x128xbf16>, vector<128x128xbf16>, vector<256x128xf32> -> vector<256x128xf32>
    %119 = arith.addf %113, %118 : vector<256x128xf32>
    %c2_125 = arith.constant 2 : index
    %c1_126 = arith.constant 1 : index
    %c0_127 = arith.constant 0 : index
    %120 = vector.load %arg10[%c2_125, %c1_126, %c0_127] : memref<18x18x128xbf16, #tpu.memory_space<vmem>>, vector<16x16x128xbf16>
    %121 = vector.shape_cast %120 : vector<16x16x128xbf16> to vector<256x128xbf16>
    %c7_128 = arith.constant 7 : index
    %c0_129 = arith.constant 0 : index
    %c0_130 = arith.constant 0 : index
    %122 = vector.load %arg6[%c7_128, %c0_129, %c0_130] : memref<9x128x128xbf16, #tpu.memory_space<vmem>>, vector<1x128x128xbf16>
    %123 = vector.shape_cast %122 : vector<1x128x128xbf16> to vector<128x128xbf16>
    %cst_131 = arith.constant dense<0.000000e+00> : vector<256x128xf32>
    %124 = tpu.matmul %121, %123, %cst_131 {dimension_numbers = #tpu.dot_dimension_numbers<[1], [0], [0], [1], [0, 0, 1, 1], [], []>} : vector<256x128xbf16>, vector<128x128xbf16>, vector<256x128xf32> -> vector<256x128xf32>
    %125 = arith.addf %119, %124 : vector<256x128xf32>
    %c2_132 = arith.constant 2 : index
    %c2_133 = arith.constant 2 : index
    %c0_134 = arith.constant 0 : index
    %126 = vector.load %arg10[%c2_132, %c2_133, %c0_134] : memref<18x18x128xbf16, #tpu.memory_space<vmem>>, vector<16x16x128xbf16>
    %127 = vector.shape_cast %126 : vector<16x16x128xbf16> to vector<256x128xbf16>
    %c8_135 = arith.constant 8 : index
    %c0_136 = arith.constant 0 : index
    %c0_137 = arith.constant 0 : index
    %128 = vector.load %arg6[%c8_135, %c0_136, %c0_137] : memref<9x128x128xbf16, #tpu.memory_space<vmem>>, vector<1x128x128xbf16>
    %129 = vector.shape_cast %128 : vector<1x128x128xbf16> to vector<128x128xbf16>
    %cst_138 = arith.constant dense<0.000000e+00> : vector<256x128xf32>
    %130 = tpu.matmul %127, %129, %cst_138 {dimension_numbers = #tpu.dot_dimension_numbers<[1], [0], [0], [1], [0, 0, 1, 1], [], []>} : vector<256x128xbf16>, vector<128x128xbf16>, vector<256x128xf32> -> vector<256x128xf32>
    %131 = arith.addf %125, %130 : vector<256x128xf32>
    %c0_139 = arith.constant 0 : index
    %c0_140 = arith.constant 0 : index
    %132 = vector.load %arg7[%c0_139, %c0_140] : memref<1x128xf32, #tpu.memory_space<vmem>>, vector<1x128xf32>
    %133 = vector.broadcast %132 : vector<1x128xf32> to vector<256x128xf32>
    %134 = arith.mulf %131, %133 : vector<256x128xf32>
    %c0_141 = arith.constant 0 : index
    %c0_142 = arith.constant 0 : index
    %135 = vector.load %arg8[%c0_141, %c0_142] : memref<1x128xf32, #tpu.memory_space<vmem>>, vector<1x128xf32>
    %136 = vector.broadcast %135 : vector<1x128xf32> to vector<256x128xf32>
    %137 = arith.addf %134, %136 : vector<256x128xf32>
    %c0_143 = arith.constant 0 : index
    %c0_144 = arith.constant 0 : index
    %c0_145 = arith.constant 0 : index
    %c0_146 = arith.constant 0 : index
    %138 = vector.load %arg2[%c0_143, %c0_144, %c0_145, %c0_146] : memref<1x16x16x128xf32, #tpu.memory_space<vmem>>, vector<1x16x16x128xf32>
    %139 = vector.shape_cast %138 : vector<1x16x16x128xf32> to vector<16x16x128xf32>
    %140 = vector.shape_cast %137 : vector<256x128xf32> to vector<16x16x128xf32>
    %141 = arith.addf %139, %140 : vector<16x16x128xf32>
    %c0_147 = arith.constant 0 : index
    %c0_148 = arith.constant 0 : index
    %c0_149 = arith.constant 0 : index
    %c0_150 = arith.constant 0 : index
    %142 = vector.load %arg9[%c0_147, %c0_148, %c0_149, %c0_150] : memref<1x16x16x128xf32, #tpu.memory_space<vmem>>, vector<1x16x16x128xf32>
    %143 = vector.shape_cast %142 : vector<1x16x16x128xf32> to vector<16x16x128xf32>
    %144 = vector.shape_cast %141 : vector<16x16x128xf32> to vector<1x16x16x128xf32>
    tpu.vector_store %arg9[%c0_147, %c0_148, %c0_149, %c0_150], %144 {strides = array<i32>} : memref<1x16x16x128xf32, #tpu.memory_space<vmem>>, vector<1x16x16x128xf32>,
    return
  }
  func.func @transform_0(%arg0: i32) -> (i32, i32, i32, i32) {
    %c0_i32 = arith.constant 0 : i32
    %c0_i32_0 = arith.constant 0 : i32
    %c0_i32_1 = arith.constant 0 : i32
    %c0_i32_2 = arith.constant 0 : i32
    return %arg0, %c0_i32, %c0_i32_0, %c0_i32_1 : i32, i32, i32, i32
  }
  func.func @transform_1(%arg0: i32) -> (i32, i32, i32, i32) {
    %c0_i32 = arith.constant 0 : i32
    %c0_i32_0 = arith.constant 0 : i32
    %c0_i32_1 = arith.constant 0 : i32
    %c0_i32_2 = arith.constant 0 : i32
    return %arg0, %c0_i32, %c0_i32_0, %c0_i32_1 : i32, i32, i32, i32
  }
  func.func @transform_2(%arg0: i32) -> (i32, i32, i32) {
    %c0_i32 = arith.constant 0 : i32
    %c0_i32_0 = arith.constant 0 : i32
    %c0_i32_1 = arith.constant 0 : i32
    %c0_i32_2 = arith.constant 0 : i32
    return %c0_i32, %c0_i32_0, %c0_i32_1 : i32, i32, i32
  }
  func.func @transform_3(%arg0: i32) -> (i32, i32) {
    %c0_i32 = arith.constant 0 : i32
    %c0_i32_0 = arith.constant 0 : i32
    %c0_i32_1 = arith.constant 0 : i32
    return %c0_i32, %c0_i32_0 : i32, i32
  }
  func.func @transform_4(%arg0: i32) -> (i32, i32) {
    %c0_i32 = arith.constant 0 : i32
    %c0_i32_0 = arith.constant 0 : i32
    %c0_i32_1 = arith.constant 0 : i32
    return %c0_i32, %c0_i32_0 : i32, i32
  }
  func.func @transform_5(%arg0: i32) -> (i32, i32, i32) {
    %c0_i32 = arith.constant 0 : i32
    %c0_i32_0 = arith.constant 0 : i32
    %c0_i32_1 = arith.constant 0 : i32
    %c0_i32_2 = arith.constant 0 : i32
    return %c0_i32, %c0_i32_0, %c0_i32_1 : i32, i32, i32
  }
  func.func @transform_6(%arg0: i32) -> (i32, i32) {
    %c0_i32 = arith.constant 0 : i32
    %c0_i32_0 = arith.constant 0 : i32
    %c0_i32_1 = arith.constant 0 : i32
    return %c0_i32, %c0_i32_0 : i32, i32
  }
  func.func @transform_7(%arg0: i32) -> (i32, i32) {
    %c0_i32 = arith.constant 0 : i32
    %c0_i32_0 = arith.constant 0 : i32
    %c0_i32_1 = arith.constant 0 : i32
    return %c0_i32, %c0_i32_0 : i32, i32
  }
  func.func @transform_8(%arg0: i32) -> (i32, i32, i32, i32) {
    %c0_i32 = arith.constant 0 : i32
    %c0_i32_0 = arith.constant 0 : i32
    %c0_i32_1 = arith.constant 0 : i32
    %c0_i32_2 = arith.constant 0 : i32
    return %arg0, %c0_i32, %c0_i32_0, %c0_i32_1 : i32, i32, i32, i32
  }
}

</mosaic_0001>

<bundles_post_ra>
// kernel: residual_block.1
= control target key start
LH: loop header
LB: loop body
LE: loop exit
PB: predicated region body
PF: predicated region fallthrough
CT: control target
= control target key end

     0   :  { %13 = vsyncpa [#allocation4], 0  ;;  %s18153_s0 = inlined_call_operand.vmem [shape: bf16[2,18,18,128], index: 0, kind: input, shape index: {}]   ;;  %s18154_s1 = inlined_call_operand.vmem [shape: f32[2,16,16,128], index: 1, kind: input, shape index: {}]   ;;  %s18155_s2 = inlined_call_operand.vmem [shape: bf16[9,128,128], index: 2, kind: input, shape index: {}]   ;;  %s18156_s3 = inlined_call_operand.vmem [shape: f32[1,128], index: 3, kind: input, shape index: {}]   ;;  %s18157_s4 = inlined_call_operand.vmem [shape: f32[1,128], index: 4, kind: input, shape index: {}]   ;;  %s18158_s5 = inlined_call_operand.vmem [shape: bf16[9,128,128], index: 5, kind: input, shape index: {}]   ;;  %s18159_s6 = inlined_call_operand.vmem [shape: f32[1,128], index: 6, kind: input, shape index: {}]   ;;  %s18160_s7 = inlined_call_operand.vmem [shape: f32[1,128], index: 7, kind: input, shape index: {}]   ;;  %s18161_s8 = inlined_call_operand.hbm [shape: f32[2,16,16,128], index: 8, kind: output, shape index: {}]  }
   0x1   :  { %15 = vsyncpa [#allocation4 + $0x1], 0  ;;  %s14219_s27 = smov 0   ;;  %s14221_s28 = smov 0  }
   0x2   :  { %s14223_s29 = smov 0   ;;  %s14225_s30 = smov 0  }
   0x3 LB: > { %s14240_s9 = sadd.s32 4294967295, %s14168_s30   ;;  %s10899_s10 = sadd.s32 4294967294, %s14168_s30   ;;  %s14168_s30 = sphi %s14225_s30, %s18575_s30   ;;  %s14164_s29 = sphi %s14223_s29, %s18574_s29   ;;  %s14160_s28 = sphi %s14221_s28, %s18573_s28   ;;  %s14156_s27 = sphi %s14219_s27, %s18572_s27  }
   0x4   : > { %s14244_s11 = sadd.s32 1, %s14168_s30   ;;  %s206_s12 = sadd.s32 1, %s14164_s29 }
   0x5   : > { %s203_s13 = ssub.s32 %s14168_s30, %s14244_s11  ;;  %p216_p0 = scmp.ne.s32.totalorder %s14164_s29, %s14160_s28 }
   0x6   : > { %p204_p1 = scmp.eq.s32.totalorder %s203_s13, 0  ;;  %p217_p2 = scmp.eq.s32.totalorder %s14240_s9, 1 }
   0x7   : > { %p222_p3 = scmp.ne.s32.totalorder %s14160_s28, %s14156_s27  ;;  %p223_p4 = scmp.eq.s32.totalorder %s10899_s10, 1 }
   0x8   : > { %s14255_s14 = scalar_select %p204_p1, %s14164_s29, %s206_s12  }
   0x9   : > { %p14257_p5 = por %p217_p2, %p216_p0  ;;  %p14261_p6 = por %p223_p4, %p222_p3 }
   0xa   : > { %p10902_p7 = scmp.ge.s32.totalorder %s14168_s30, 1  ;;  %p275_p8 = scmp.lt.s32.totalorder %s14168_s30, 3 }
   0xc   : > { %p276_p9 = pnand %p10902_p7, %p275_p8 }
   0xe   : > { %279 = sbr.rel (%p276_p9) target bundleno = 1686 (0x696), region = 52 }
  0x15   : > { %v13809_v0 = vld [vmem:[%s18155_s2 + $0x40] sm:$0xff]   ;;  %p314_p10 = scmp.lt.s32.totalorder %s14240_s9, 1  ;;  %v13810_v1 = vld [vmem:[%s18155_s2 + $0x48] sm:$0xff]   ;;  %v13811_v2 = vld [vmem:[%s18155_s2 + $0x50] sm:$0xff]   ;;  %vm389_vm0 = vsmask.f32 3328 }
  0x16   : > { %12390 = vmatprep.subr.bf16.mxu0 %v13809_v0  ;;  %v13812_v3 = vld [vmem:[%s18155_s2 + $0x58] sm:$0xff]   ;;  %vm390_vm1 = vsmask.f32 7440  ;;  %v13813_v17 = vld [vmem:[%s18155_s2 + $0x60] sm:$0xff]   ;;  %v18272_v25 = vmov 0  ;;  %v13814_v36 = vld [vmem:[%s18155_s2 + $0x68] sm:$0xff]  }
  0x17   : > { %s14275_s21 = scalar_select %p314_p10, %s14240_s9, 1  ;;  %12391 = vmatpush3.bf16.msra.mxu0 %v13809_v0  ;;  %vm14316_vm2 = vmor %vm389_vm0, %vm390_vm1  ;;  %v13815_v56 = vld [vmem:[%s18155_s2 + $0x70] sm:$0xff]   ;;  %vm1419_vm3 = vcmask 1042432   ;;  %vm1420_vm4 = vcmask 1046532   ;;  %vm5718_vm6 = vcmask 1043456   ;;  %vm5725_vm10 = vcmask 1040384  }
  0x18   : > { %12392 = vmatprep.subr.bf16.mxu0 %v13810_v1  ;;  %v18273_v25 = vsel %vm14316_vm2, 4294967295, %v18272_v25  ;;  %vm14649_vm5 = vmor %vm1419_vm3, %vm1420_vm4  ;;  %vm5719_vm7 = vsmask.f32 7938  ;;  %vm5394_vm8 = vsmask.f32 256  ;;  %s311_s18 = sand.u32 1, %s14160_s28  }
  0x19   : > { %s13766_s24 = smul.u32 216, %s14275_s21  ;;  %18274 = vst [vmem:[#allocation6_spill] sm:$0xff] %v18273_v25  ;;  %vm5395_vm9 = vsmask.f32 4368  ;;  %vm16216_vm11 = vmand %vm5718_vm6, %vm5719_vm7  ;;  %s11924_s17 = sshll.u32 %s14275_s21, 8 }
  0x1a   : > { %vm16223_vm12 = vmor %vm5394_vm8, %vm5395_vm9  ;;  %s17962_s23 = scalar_lea.vmem %s18154_s1, %s11924_s17  ;;  %s10903_s21 = sshll.u32 %s311_s18, 8 }
  0x1b   : > { %s14284_s10 = scalar_lea.vmem %s18153_s0, %s13766_s24  ;;  %12393 = vmatpush3.bf16.msra.mxu0 %v13810_v1  ;;  %vm16229_vm13 = vmand %vm5725_vm10, %vm5394_vm8  ;;  %s17983_s26 = scalar_lea.vmem [#allocation3], %s10903_s21 }
  0x1c   : > { %12394 = vmatprep.subr.bf16.mxu0 %v13811_v2  ;;  %v14290_v4 = vld [vmem:[%s14284_s10] sm:$0xf]  ;;  %v14293_v5 = vld [vmem:[%s14284_s10 + $0x4] sm:$0xf]  ;;  %v373_v6 = vld [vmem:[%s14284_s10 + $0x8] sm:$0x1] }
  0x1d   : > { %v393_v7 = vshrl.u32 %v14290_v4, 16  ;;  %v396_v8 = vshll.u32 %v14290_v4, 16  ;;  %v402_v9 = vshll.u32 %v14293_v5, 16  ;;  %v406_v10 = vshrl.u32 %v14293_v5, 16  ;;  %v14301_v12 = vld [vmem:[%s14284_s10 + $0xc] sm:$0xf] }
  0x1e   : > { %v412_v11 = vshll.u32 %v373_v6, 16  ;;  %v14304_v15 = vld [vmem:[%s14284_s10 + $0x10] sm:$0xf]  ;;  %v374_v16 = vld [vmem:[%s14284_s10 + $0x14] sm:$0x1]  ;;  %v417_v20 = vshrl.u32 %v14301_v12, 16 }
  0x1f   : > { %12395 = vmatpush3.bf16.msra.mxu0 %v13811_v2  ;;  %v395_v13 = vrot.slane %v393_v7, 4  ;;  %v398_v14 = vrot.slane %v396_v8, 5  ;;  %v404_v18 = vrot.slane %v402_v9, 5  ;;  %v408_v19 = vrot.slane %v406_v10, 4  ;;  %v14321_v30 = vld [vmem:[%s14284_s10 + $0x18] sm:$0xf] }
  0x20   : > { %12396 = vmatprep.subr.bf16.mxu0 %v13812_v3  ;;  %v420_v22 = vshll.u32 %v14301_v12, 16  ;;  %v426_v23 = vshll.u32 %v14304_v15, 16  ;;  %v430_v24 = vshrl.u32 %v14304_v15, 16  ;;  %v414_v27 = vrot.slane %v412_v11, 5  ;;  %v14324_v35 = vld [vmem:[%s14284_s10 + $0x1c] sm:$0xf] }
  0x21   : > { %v399_v21 = vor.u32 %v398_v14, %v395_v13  ;;  %v409_v26 = vor.u32 %v408_v19, %v404_v18  ;;  %v419_v28 = vrot.slane %v417_v20, 4  ;;  %v436_v29 = vshll.u32 %v374_v16, 16  ;;  %v375_v44 = vld [vmem:[%s14284_s10 + $0x20] sm:$0x1]  ;;  %v14336_v46 = vld [vmem:[%s14284_s10 + $0x24] sm:$0xf] }
  0x22   : > { %v422_v32 = vrot.slane %v420_v22, 5  ;;  %v428_v33 = vrot.slane %v426_v23, 5  ;;  %v432_v34 = vrot.slane %v430_v24, 4  ;;  %v441_v39 = vshrl.u32 %v14321_v30, 16  ;;  %v14342_v51 = vld [vmem:[%s14284_s10 + $0x28] sm:$0xf] }
  0x23   : > { %12397 = vmatpush3.bf16.msra.mxu0 %v13812_v3  ;;  %v400_v31 = vrot.slane %v399_v21, 4  ;;  %v410_v37 = vrot.slane %v409_v26, 4  ;;  %v438_v38 = vrot.slane %v436_v29, 5  ;;  %v444_v40 = vshll.u32 %v14321_v30, 16  ;;  %v14353_v63 = vld [vmem:[%s14284_s10 + $0x2c] sm:$0x1] }
  0x24   : > { %12398 = vmatprep.subr.bf16.mxu0 %v13813_v17  ;;  %v423_v42 = vor.u32 %v422_v32, %v419_v28  ;;  %v433_v43 = vor.u32 %v432_v34, %v428_v33  ;;  %v450_v45 = vshll.u32 %v14324_v35, 16  ;;  %v443_v48 = vrot.slane %v441_v39, 4  ;;  %v14358_v2 = vld [vmem:[%s14284_s10 + $0x30] sm:$0xf]  ;;  %v14363_v9 = vld [vmem:[%s14284_s10 + $0x34] sm:$0xf] }
  0x25   : > { %v405_v41 = vsel %vm14316_vm2, %v400_v31, %v404_v18  ;;  %v415_v47 = vsel %vm14316_vm2, %v410_v37, %v414_v27  ;;  %v446_v49 = vrot.slane %v444_v40, 5  ;;  %v454_v50 = vshrl.u32 %v14324_v35, 16  ;;  %v14367_v16 = vld [vmem:[%s14284_s10 + $0x38] sm:$0x1]  ;;  %v14377_v22 = vld [vmem:[%s14284_s10 + $0x3c] sm:$0xf] }
  0x26   : > { %v10923_v52 = vcombine.low %v405_v41, %v415_v47  ;;  %v424_v53 = vrot.slane %v423_v42, 4  ;;  %v434_v54 = vrot.slane %v433_v43, 4  ;;  %v452_v55 = vrot.slane %v450_v45, 5  ;;  %v13817_v39 = vld [vmem:[%s18155_s2] sm:$0xff]   ;;  %s11957_s12 = sshll.u32 %s14240_s9, 12  ;;  %s10825_s13 = sshll.u32 %s17983_s26, 4  ;;  %s18105_s13 = int_to_ptr.vmem [resolvable:$true] %s10825_s13 }
  0x27   : > { %12399 = vmatpush3.bf16.msra.mxu0 %v13813_v17  ;;  %v447_v57 = vor.u32 %v446_v49, %v443_v48  ;;  %v456_v58 = vrot.slane %v454_v50, 4  ;;  %v460_v59 = vshll.u32 %v375_v44, 16  ;;  %v465_v60 = vshrl.u32 %v14336_v46, 16  ;;  %v13816_v17 = vld [vmem:[%s18155_s2 + $0x78] sm:$0xff]   ;;  %v14395_v48 = vld [vmem:[%s14284_s10 + $0x44] sm:$0x1]  ;;  %s18103_s20 = scalar_lea.hbm %s18161_s8, %s11957_s12 }
  0x28   : > { %12400 = vmatprep.subr.bf16.mxu0 %v13814_v36  ;;  %12406 = vmatprep.mubr.bf16.mxu0 %v10923_v52  ;;  %v429_v61 = vsel %vm14316_vm2, %v424_v53, %v428_v33  ;;  %v439_v62 = vsel %vm14316_vm2, %v434_v54, %v438_v38  ;;  %v468_v0 = vshll.u32 %v14336_v46, 16  ;;  %v474_v1 = vshll.u32 %v14342_v51, 16  ;;  %v14385_v38 = vld [vmem:[%s14284_s10 + $0x40] sm:$0xf]  ;;  %v14399_v50 = vld [vmem:[%s14284_s10 + $0x48] sm:$0xf] }
  0x29   : > { %v14360_v3 = vcombine.low %v429_v61, %v439_v62  ;;  %v448_v6 = vrot.slane %v447_v57, 4  ;;  %v457_v7 = vor.u32 %v456_v58, %v452_v55  ;;  %v462_v8 = vrot.slane %v460_v59, 5  ;;  %v13818_v62 = vld [vmem:[%s18155_s2 + $0x8] sm:$0xff]   ;;  %s18112_s9 = scalar_lea.sflag [#allocation4], %s311_s18  ;;  %s14171_s22 = smov [#allocation3]  }
  0x2a   : > { %v467_v10 = vrot.slane %v465_v60, 4  ;;  %v470_v11 = vrot.slane %v468_v0, 5  ;;  %v476_v13 = vrot.slane %v474_v1, 5  ;;  %v478_v14 = vshrl.u32 %v14342_v51, 16 }
  0x2b   : > { %12401 = vmatpush3.bf16.msra.mxu0 %v13814_v36  ;;  %v453_v18 = vsel %vm14316_vm2, %v448_v6, %v452_v55  ;;  %v458_v19 = vrot.slane %v457_v7, 4  ;;  %v484_v20 = vshll.u32 %v14353_v63, 16  ;;  %v489_v21 = vshrl.u32 %v14358_v2, 16 }
  0x2c   : > { %12402 = vmatprep.subr.bf16.mxu0 %v13815_v56  ;;  %v471_v23 = vor.u32 %v470_v11, %v467_v10  ;;  %v480_v24 = vrot.slane %v478_v14, 4  ;;  %v492_v26 = vshll.u32 %v14358_v2, 16  ;;  %v498_v27 = vshll.u32 %v14363_v9, 16  ;;  %v14415_v11 = vld [vmem:[%s14284_s10 + $0x50] sm:$0x1] }
  0x2d   : > { %v463_v28 = vsel %vm14316_vm2, %v458_v19, %v462_v8  ;;  %v486_v29 = vrot.slane %v484_v20, 5  ;;  %v491_v31 = vrot.slane %v489_v21, 4  ;;  %v502_v32 = vshrl.u32 %v14363_v9, 16  ;;  %v14424_v20 = vld [vmem:[%s14284_s10 + $0x54] sm:$0xf] }
  0x2e   : > { %v10925_v33 = vcombine.low %v453_v18, %v463_v28  ;;  %v472_v34 = vrot.slane %v471_v23, 4  ;;  %v481_v36 = vor.u32 %v480_v24, %v476_v13  ;;  %v494_v37 = vrot.slane %v492_v26, 5 }
  0x2f   : > { %12403 = vmatpush3.bf16.msra.mxu0 %v13815_v56  ;;  %v500_v40 = vrot.slane %v498_v27, 5  ;;  %v504_v41 = vrot.slane %v502_v32, 4  ;;  %v508_v42 = vshll.u32 %v14367_v16, 16  ;;  %v513_v43 = vshrl.u32 %v14377_v22, 16  ;;  %v14403_v56 = vld [vmem:[%s14284_s10 + $0x4c] sm:$0xf] }
  0x30   : > { %12404 = vmatprep.subr.bf16.mxu0 %v13816_v17  ;;  %v477_v44 = vsel %vm14316_vm2, %v472_v34, %v476_v13  ;;  %v482_v45 = vrot.slane %v481_v36, 4  ;;  %v495_v47 = vor.u32 %v494_v37, %v491_v31  ;;  %v516_v49 = vshll.u32 %v14377_v22, 16  ;;  %v14430_v27 = vld [vmem:[%s14284_s10 + $0x58] sm:$0xf]  ;;  %v14435_v34 = vld [vmem:[%s14284_s10 + $0x5c] sm:$0x1] }
  0x31   : > { %v505_v52 = vor.u32 %v504_v41, %v500_v40  ;;  %v510_v53 = vrot.slane %v508_v42, 5  ;;  %v515_v54 = vrot.slane %v513_v43, 4  ;;  %v522_v55 = vshll.u32 %v14385_v38, 16 }
  0x32   : > { %v487_v57 = vsel %vm14316_vm2, %v482_v45, %v486_v29  ;;  %v496_v58 = vrot.slane %v495_v47, 4  ;;  %v518_v59 = vrot.slane %v516_v49, 5  ;;  %v526_v60 = vshrl.u32 %v14385_v38, 16 }
  0x33   : > { %12405 = vmatpush3.bf16.msra.mxu0 %v13816_v17  ;;  %v10926_v61 = vcombine.low %v477_v44, %v487_v57  ;;  %v506_v0 = vrot.slane %v505_v52, 4  ;;  %v524_v1 = vrot.slane %v522_v55, 5  ;;  %v532_v6 = vshll.u32 %v14395_v48, 16 }
  0x34   : > { %12438 = vmatprep.subr.bf16.mxu0 %v13817_v39  ;;  %v501_v7 = vsel %vm14316_vm2, %v496_v58, %v500_v40  ;;  %v519_v8 = vor.u32 %v518_v59, %v515_v54  ;;  %v528_v10 = vrot.slane %v526_v60, 4  ;;  %v537_v13 = vshrl.u32 %v14399_v50, 16  ;;  %v13820_v59 = vld [vmem:[%s18155_s2 + $0x18] sm:$0xff]  }
  0x35   : > { %v511_v14 = vsel %vm14316_vm2, %v506_v0, %v510_v53  ;;  %v534_v17 = vrot.slane %v532_v6, 5  ;;  %v540_v18 = vshll.u32 %v14399_v50, 16  ;;  %v546_v19 = vshll.u32 %v14403_v56, 16  ;;  %v14449_v53 = vld [vmem:[%s14284_s10 + $0x64] sm:$0xf] }
  0x36   : > { %12407 = vmatmul.mubr.bf16.vlgmr.msra.gmra.mrb[0].mxu0 %v14360_v3  ;;  %v10927_v21 = vcombine.low %v501_v7, %v511_v14  ;;  %v520_v23 = vrot.slane %v519_v8, 4  ;;  %v529_v24 = vor.u32 %v528_v10, %v524_v1  ;;  %v13819_v3 = vld [vmem:[%s18155_s2 + $0x10] sm:$0xff]   ;;  %v539_v26 = vrot.slane %v537_v13, 4  ;;  %v14464_v14 = vld [vmem:[%s14284_s10 + $0x6c] sm:$0xf] }
  0x37   : > { %12439 = vmatpush3.bf16.msra.mxu0 %v13817_v39  ;;  %12410 = vmatprep.mubr.bf16.mxu0 %v10925_v33  ;;  %v542_v28 = vrot.slane %v540_v18, 5  ;;  %v548_v29 = vrot.slane %v546_v19, 5  ;;  %v550_v31 = vshrl.u32 %v14403_v56, 16  ;;  %v556_v32 = vshll.u32 %v14415_v11, 16  ;;  %v14438_v33 = vld [vmem:[%s14284_s10 + $0x60] sm:$0xf] }
  0x38   : > { %12440 = vmatprep.subr.bf16.mxu0 %v13818_v62  ;;  %v525_v36 = vsel %vm14316_vm2, %v520_v23, %v524_v1  ;;  %v530_v37 = vrot.slane %v529_v24, 4  ;;  %v561_v39 = vshrl.u32 %v14424_v20, 16  ;;  %v564_v40 = vshll.u32 %v14424_v20, 16  ;;  %v14456_v1 = vld [vmem:[%s14284_s10 + $0x68] sm:$0x1] }
  0x39   : > { %v543_v41 = vor.u32 %v542_v28, %v539_v26  ;;  %v552_v42 = vrot.slane %v550_v31, 4  ;;  %v558_v43 = vrot.slane %v556_v32, 5  ;;  %v570_v44 = vshll.u32 %v14430_v27, 16  ;;  %18275 = vst [vmem:[#allocation7_spill] sm:$0xff] %v14456_v1  ;;  %v14467_v24 = vld [vmem:[%s14284_s10 + $0x70] sm:$0xf] }
  0x3a   : > { %v535_v45 = vsel %vm14316_vm2, %v530_v37, %v534_v17  ;;  %v563_v47 = vrot.slane %v561_v39, 4  ;;  %v566_v49 = vrot.slane %v564_v40, 5  ;;  %v574_v52 = vshrl.u32 %v14430_v27, 16  ;;  %v14479_v40 = vld [vmem:[%s14284_s10 + $0x74] sm:$0x1] }
  0x3b   : > { %12441 = vmatpush3.bf16.msra.mxu0 %v13818_v62  ;;  %v10928_v54 = vcombine.low %v525_v36, %v535_v45  ;;  %v544_v55 = vrot.slane %v543_v41, 4  ;;  %v553_v57 = vor.u32 %v552_v42, %v548_v29  ;;  %v572_v58 = vrot.slane %v570_v44, 5  ;;  %18276 = vst [vmem:[#allocation8_spill] sm:$0xff] %v14479_v40 }
  0x3c   : > { %12442 = vmatprep.subr.bf16.mxu0 %v13819_v3  ;;  %v567_v60 = vor.u32 %v566_v49, %v563_v47  ;;  %v576_v62 = vrot.slane %v574_v52, 4  ;;  %v580_v0 = vshll.u32 %v14435_v34, 16  ;;  %v585_v6 = vshrl.u32 %v14438_v33, 16  ;;  %v14488_v49 = vld [vmem:[%s14284_s10 + $0x78] sm:$0xf] }
  0x3d   : > { %v549_v7 = vsel %vm14316_vm2, %v544_v55, %v548_v29  ;;  %v554_v8 = vrot.slane %v553_v57, 4  ;;  %v588_v10 = vshll.u32 %v14438_v33, 16  ;;  %v594_v13 = vshll.u32 %v14449_v53, 16 }
  0x3e   : > { %12411 = vmatmul.mubr.bf16.gmra.mrb[4].mxu0 %v10926_v61  ;;  %v568_v17 = vrot.slane %v567_v60, 4  ;;  %v577_v18 = vor.u32 %v576_v62, %v572_v58  ;;  %v582_v19 = vrot.slane %v580_v0, 5  ;;  %v587_v23 = vrot.slane %v585_v6, 4  ;;  %v14491_v60 = vld [vmem:[%s14284_s10 + $0x7c] sm:$0xf]  ;;  %v13822_v62 = vld [vmem:[%s18155_s2 + $0x28] sm:$0xff]  }
  0x3f   : > { %12414 = vmatprep.mubr.bf16.mxu0 %v10927_v21  ;;  %12443 = vmatpush3.bf16.msra.mxu0 %v13819_v3  ;;  %v559_v61 = vsel %vm14316_vm2, %v554_v8, %v558_v43  ;;  %v590_v26 = vrot.slane %v588_v10, 5  ;;  %v596_v28 = vrot.slane %v594_v13, 5  ;;  %v598_v29 = vshrl.u32 %v14449_v53, 16  ;;  %v13821_v21 = vld [vmem:[%s18155_s2 + $0x20] sm:$0xff]  }
  0x40   : > { %12444 = vmatprep.subr.bf16.mxu0 %v13820_v59  ;;  %v10929_v3 = vcombine.low %v549_v7, %v559_v61  ;;  %v573_v31 = vsel %vm14316_vm2, %v568_v17, %v572_v58  ;;  %v578_v32 = vrot.slane %v577_v18, 4  ;;  %v604_v36 = vshll.u32 %v14456_v1, 16  ;;  %v14498_v8 = vld [vmem:[%s14284_s10 + $0x80] sm:$0x1] }
  0x41   : > { %v591_v37 = vor.u32 %v590_v26, %v587_v23  ;;  %v600_v39 = vrot.slane %v598_v29, 4  ;;  %v609_v41 = vshrl.u32 %v14464_v14, 16  ;;  %v612_v42 = vshll.u32 %v14464_v14, 16  ;;  %18277 = vst [vmem:[#allocation9_spill] sm:$0xff] %v14498_v8  ;;  %v14506_v29 = vld [vmem:[%s14284_s10 + $0x84] sm:$0xf] }
  0x42   : > { %v583_v43 = vsel %vm14316_vm2, %v578_v32, %v582_v19  ;;  %v606_v44 = vrot.slane %v604_v36, 5  ;;  %v618_v45 = vshll.u32 %v14467_v24, 16  ;;  %v622_v47 = vshrl.u32 %v14467_v24, 16  ;;  %v14512_v36 = vld [vmem:[%s14284_s10 + $0x88] sm:$0xf] }
  0x43   : > { %12445 = vmatpush3.bf16.msra.mxu0 %v13820_v59  ;;  %v10930_v52 = vcombine.low %v573_v31, %v583_v43  ;;  %v592_v55 = vrot.slane %v591_v37, 4  ;;  %v601_v57 = vor.u32 %v600_v39, %v596_v28  ;;  %v611_v58 = vrot.slane %v609_v41, 4 }
  0x44   : > { %12446 = vmatprep.subr.bf16.mxu0 %v13821_v21  ;;  %v614_v59 = vrot.slane %v612_v42, 5  ;;  %v620_v0 = vrot.slane %v618_v45, 5  ;;  %v624_v6 = vrot.slane %v622_v47, 4  ;;  %v628_v7 = vshll.u32 %v14479_v40, 16  ;;  %v14519_v45 = vld [vmem:[%s14284_s10 + $0x8c] sm:$0x1] }
  0x45   : > { %v597_v10 = vsel %vm14316_vm2, %v592_v55, %v596_v28  ;;  %v602_v13 = vrot.slane %v601_v57, 4  ;;  %v633_v17 = vshrl.u32 %v14488_v49, 16  ;;  %v636_v18 = vshll.u32 %v14488_v49, 16  ;;  %18278 = vst [vmem:[#allocation10_spill] sm:$0xff] %v14519_v45  ;;  %v13824_v55 = vld [vmem:[%s18155_s2 + $0x38] sm:$0xff]  }
  0x46   : > { %12415 = vmatmul.mubr.bf16.gmra.mrb[8].mxu0 %v10928_v54  ;;  %v615_v19 = vor.u32 %v614_v59, %v611_v58  ;;  %v625_v23 = vor.u32 %v624_v6, %v620_v0  ;;  %v630_v61 = vrot.slane %v628_v7, 5  ;;  %v642_v26 = vshll.u32 %v14491_v60, 16  ;;  %v14532_v7 = vld [vmem:[%s14284_s10 + $0x90] sm:$0xf] }
  0x47   : > { %12418 = vmatprep.mubr.bf16.mxu0 %v10929_v3  ;;  %12447 = vmatpush3.bf16.msra.mxu0 %v13821_v21  ;;  %v607_v54 = vsel %vm14316_vm2, %v602_v13, %v606_v44  ;;  %v635_v31 = vrot.slane %v633_v17, 4  ;;  %v638_v28 = vrot.slane %v636_v18, 5  ;;  %v646_v32 = vshrl.u32 %v14491_v60, 16  ;;  %v13823_v3 = vld [vmem:[%s18155_s2 + $0x30] sm:$0xff]  }
  0x48   : > { %12448 = vmatprep.subr.bf16.mxu0 %v13822_v62  ;;  %v10931_v21 = vcombine.low %v597_v10, %v607_v54  ;;  %v616_v37 = vrot.slane %v615_v19, 4  ;;  %v626_v39 = vrot.slane %v625_v23, 4  ;;  %v644_v41 = vrot.slane %v642_v26, 5  ;;  %v14535_v10 = vld [vmem:[%s14284_s10 + $0x94] sm:$0xf] }
  0x49   : > { %v639_v42 = vor.u32 %v638_v28, %v635_v31  ;;  %v648_v43 = vrot.slane %v646_v32, 4  ;;  %v652_v44 = vshll.u32 %v14498_v8, 16  ;;  %v657_v47 = vshrl.u32 %v14506_v29, 16  ;;  %v14539_v54 = vld [vmem:[%s14284_s10 + $0x98] sm:$0x1] }
  0x4a   : > { %v621_v57 = vsel %vm14316_vm2, %v616_v37, %v620_v0  ;;  %v631_v58 = vsel %vm14316_vm2, %v626_v39, %v630_v61  ;;  %v660_v59 = vshll.u32 %v14506_v29, 16  ;;  %v666_v6 = vshll.u32 %v14512_v36, 16  ;;  %18279 = vst [vmem:[#allocation11_spill] sm:$0xff] %v14539_v54  ;;  %v14542_v31 = vld [vmem:[%s14284_s10 + $0x9c] sm:$0xf] }
  0x4b   : > { %12449 = vmatpush3.bf16.msra.mxu0 %v13822_v62  ;;  %v10932_v13 = vcombine.low %v621_v57, %v631_v58  ;;  %v640_v17 = vrot.slane %v639_v42, 4  ;;  %v649_v18 = vor.u32 %v648_v43, %v644_v41  ;;  %v654_v19 = vrot.slane %v652_v44, 5 }
  0x4c   : > { %12450 = vmatprep.subr.bf16.mxu0 %v13823_v3  ;;  %v659_v0 = vrot.slane %v657_v47, 4  ;;  %v662_v23 = vrot.slane %v660_v59, 5  ;;  %v668_v26 = vrot.slane %v666_v6, 5  ;;  %v670_v61 = vshrl.u32 %v14512_v36, 16  ;;  %v14551_v47 = vld [vmem:[%s14284_s10 + $0xa0] sm:$0xf] }
  0x4d   : > { %v645_v62 = vsel %vm14316_vm2, %v640_v17, %v644_v41  ;;  %v650_v28 = vrot.slane %v649_v18, 4  ;;  %v676_v32 = vshll.u32 %v14519_v45, 16  ;;  %v681_v37 = vshrl.u32 %v14532_v7, 16 }
  0x4e   : > { %12419 = vmatmul.mubr.bf16.gmra.mrb[12].mxu0 %v10930_v52  ;;  %v663_v39 = vor.u32 %v662_v23, %v659_v0  ;;  %v672_v42 = vrot.slane %v670_v61, 4  ;;  %v684_v43 = vshll.u32 %v14532_v7, 16  ;;  %v690_v44 = vshll.u32 %v14535_v10, 16 }
  0x4f   : > { %12422 = vmatprep.mubr.bf16.mxu0 %v10931_v21  ;;  %12451 = vmatpush3.bf16.msra.mxu0 %v13823_v3  ;;  %v655_v52 = vsel %vm14316_vm2, %v650_v28, %v654_v19  ;;  %v678_v41 = vrot.slane %v676_v32, 5  ;;  %v683_v57 = vrot.slane %v681_v37, 4  ;;  %v694_v58 = vshrl.u32 %v14535_v10, 16  ;;  %v14559_v21 = vld [vmem:[%s18155_s2 + $0x80] sm:$0xff]   ;;  %v14567_v28 = vld [vmem:[%s14284_s10 + $0xa8] sm:$0xf] }
  0x50   : > { %12452 = vmatprep.subr.bf16.mxu0 %v13824_v55  ;;  %18280 = vst [vmem:[#allocation12_spill] sm:$0xff] %v14559_v21  ;;  %v10933_v59 = vcombine.low %v645_v62, %v655_v52  ;;  %v664_v6 = vrot.slane %v663_v39, 4  ;;  %v673_v17 = vor.u32 %v672_v42, %v668_v26  ;;  %v686_v18 = vrot.slane %v684_v43, 5  ;;  %v14562_v3 = vld [vmem:[%s14284_s10 + $0xa4] sm:$0x1] }
  0x51   : > { %18281 = vst [vmem:[#allocation13_spill] sm:$0xff] %v14562_v3  ;;  %v692_v0 = vrot.slane %v690_v44, 5  ;;  %v696_v23 = vrot.slane %v694_v58, 4  ;;  %v700_v19 = vshll.u32 %v14539_v54, 16  ;;  %v705_v61 = vshrl.u32 %v14542_v31, 16 }
  0x52   : > { %v669_v32 = vsel %vm14316_vm2, %v664_v6, %v668_v26  ;;  %v674_v37 = vrot.slane %v673_v17, 4  ;;  %v687_v45 = vor.u32 %v686_v18, %v683_v57  ;;  %v708_v62 = vshll.u32 %v14542_v31, 16  ;;  %v14573_v39 = vld [vmem:[%s14284_s10 + $0xac] sm:$0xf]  ;;  %v14581_v6 = vld [vmem:[%s14284_s10 + $0xb0] sm:$0x1] }
  0x53   : > { %12453 = vmatpush3.bf16.msra.mxu0 %v13824_v55  ;;  %v697_v42 = vor.u32 %v696_v23, %v692_v0  ;;  %v702_v43 = vrot.slane %v700_v19, 5  ;;  %v707_v44 = vrot.slane %v705_v61, 4  ;;  %v714_v52 = vshll.u32 %v14551_v47, 16  ;;  %18282 = vst [vmem:[#allocation14_spill] sm:$0xff] %v14581_v6  ;;  %v14585_v23 = vld [vmem:[%s14284_s10 + $0xb4] sm:$0xf] }
  0x54   : > { %12486 = vmatprep.subr.bf16.mxu0 %v14559_v21  ;;  %v679_v58 = vsel %vm14316_vm2, %v674_v37, %v678_v41  ;;  %v688_v54 = vrot.slane %v687_v45, 4  ;;  %v710_v26 = vrot.slane %v708_v62, 5  ;;  %v718_v57 = vshrl.u32 %v14551_v47, 16 }
  0x55   : > { %v698_v17 = vrot.slane %v697_v42, 4  ;;  %v716_v55 = vrot.slane %v714_v52, 5  ;;  %v724_v18 = vshll.u32 %v14562_v3, 16  ;;  %v10934_v19 = vcombine.low %v669_v32, %v679_v58  ;;  %v14595_v42 = vld [vmem:[%s14284_s10 + $0xb8] sm:$0xf] }
  0x56   : > { %12423 = vmatmul.mubr.bf16.gmra.mrb[16].mxu0 %v10932_v13  ;;  %v711_v61 = vor.u32 %v710_v26, %v707_v44  ;;  %v720_v8 = vrot.slane %v718_v57, 4  ;;  %v729_v41 = vshrl.u32 %v14567_v28, 16  ;;  %v693_v45 = vsel %vm14316_vm2, %v688_v54, %v692_v0 }
  0x57   : > { %12426 = vmatprep.mubr.bf16.mxu0 %v10933_v59  ;;  %v703_v37 = vsel %vm14316_vm2, %v698_v17, %v702_v43  ;;  %v732_v13 = vshll.u32 %v14567_v28, 16  ;;  %v738_v62 = vshll.u32 %v14573_v39, 16  ;;  %v726_v32 = vrot.slane %v724_v18, 5 }
  0x58   : > { %v712_v52 = vrot.slane %v711_v61, 4  ;;  %v721_v59 = vor.u32 %v720_v8, %v716_v55  ;;  %v731_v44 = vrot.slane %v729_v41, 4  ;;  %v742_v57 = vshrl.u32 %v14573_v39, 16  ;;  %v14604_v8 = vld [vmem:[%s14284_s10 + $0xbc] sm:$0x1] }
  0x59   : > { %v734_v58 = vrot.slane %v732_v13, 5  ;;  %v740_v26 = vrot.slane %v738_v62, 5  ;;  %v748_v54 = vshll.u32 %v14581_v6, 16  ;;  %v10935_v0 = vcombine.low %v693_v45, %v703_v37 }
  0x5a   : > { %v722_v3 = vrot.slane %v721_v59, 4  ;;  %v753_v43 = vshrl.u32 %v14585_v23, 16  ;;  %v756_v17 = vshll.u32 %v14585_v23, 16  ;;  %v717_v21 = vsel %vm14316_vm2, %v712_v52, %v716_v55 }
  0x5b   : > { %v735_v40 = vor.u32 %v734_v58, %v731_v44  ;;  %v744_v61 = vrot.slane %v742_v57, 4  ;;  %v762_v18 = vshll.u32 %v14595_v42, 16  ;;  %v750_v41 = vrot.slane %v748_v54, 5  ;;  %v1386_v54 = vld [vmem:[%s14284_s10 + $0xb4] sm:$0xe] }
  0x5c   : > { %v755_v13 = vrot.slane %v753_v43, 4  ;;  %v758_v62 = vrot.slane %v756_v17, 5  ;;  %v766_v6 = vshrl.u32 %v14595_v42, 16  ;;  %v727_v45 = vsel %vm14316_vm2, %v722_v3, %v726_v32 }
  0x5d   : > { %v736_v37 = vrot.slane %v735_v40, 4  ;;  %v745_v59 = vor.u32 %v744_v61, %v740_v26  ;;  %v764_v1 = vrot.slane %v762_v18, 5  ;;  %v772_v44 = vshll.u32 %v14604_v8, 16 }
  0x5e   : > { %12427 = vmatmul.mubr.bf16.gmra.mrb[20].mxu0 %v10934_v19  ;;  %v759_v55 = vor.u32 %v758_v62, %v755_v13  ;;  %v768_v52 = vrot.slane %v766_v6, 4  ;;  %v10936_v43 = vcombine.low %v717_v21, %v727_v45  ;;  %v10949_v45 = vcombine.low %v14321_v30, %v14324_v35 }
  0x5f   : > { %12430 = vmatprep.mubr.bf16.mxu0 %v10935_v0  ;;  %v741_v58 = vsel %vm14316_vm2, %v736_v37, %v740_v26  ;;  %v746_v57 = vrot.slane %v745_v59, 4  ;;  %v774_v61 = vrot.slane %v772_v44, 5  ;;  %v1376_v59 = vld [vmem:[%s14284_s10 + $0x3c] sm:$0xe]  ;;  %v1462_v30 = vrot.slane %v14395_v48, 5  ;;  %v13830_v48 = vld [vmem:[%s18155_s2 + $0x88] sm:$0xff]  }
  0x60   : > { %v760_v19 = vrot.slane %v759_v55, 4  ;;  %v769_v17 = vor.u32 %v768_v52, %v764_v1  ;;  %v1374_v52 = vld [vmem:[%s14284_s10 + $0x24] sm:$0xe]  ;;  %v1508_v6 = vrot.slane %v14535_v10, 5  ;;  %v1522_v25 = vrot.slane %v14573_v39, 5 }
  0x61   : > { %v751_v3 = vsel %vm14316_vm2, %v746_v57, %v750_v41  ;;  %v10974_v57 = vrot.slane %v1374_v52, 9  ;;  %v1378_v52 = vld [vmem:[%s14284_s10 + $0x54] sm:$0xe] }
  0x62   : > { %v10937_v0 = vcombine.low %v741_v58, %v751_v3  ;;  %v770_v21 = vrot.slane %v769_v17, 4  ;;  %v765_v44 = vsel %vm14316_vm2, %v760_v19, %v764_v1  ;;  %v1445_v17 = vrot.slane %v14342_v51, 5  ;;  %v1375_v3 = vld [vmem:[%s14284_s10 + $0x30] sm:$0xe] }
  0x63   : > { %v10947_v1 = vcombine.low %v14290_v4, %v14293_v5  ;;  %v1455_v5 = vrot.slane %v14367_v16, 5  ;;  %v1466_v16 = vrot.slane %v14403_v56, 5 }
  0x64   : > { %v775_v58 = vsel %vm14316_vm2, %v770_v21, %v774_v61  ;;  %v14658_v19 = vsel %vm14649_vm5, %v10974_v57, %v1445_v17  ;;  %v1448_v21 = vrot.slane %v14353_v63, 5  ;;  %v10975_v61 = vrot.slane %v1375_v3, 9 }
  0x65   : > { %v10938_v37 = vcombine.low %v765_v44, %v775_v58  ;;  %v10948_v44 = vcombine.low %v14301_v12, %v14304_v15  ;;  %v1452_v58 = vrot.slane %v14363_v9, 5  ;;  %v10976_v57 = vrot.slane %v1376_v59, 9 }
  0x66   : > { %12431 = vmatmul.mubr.bf16.gmra.mrb[24].mxu0 %v10936_v43  ;;  %v1447_v43 = vrot.slane %v1445_v17, 4  ;;  %v1459_v17 = vrot.slane %v14385_v38, 5  ;;  %v1469_v59 = vrot.slane %v14415_v11, 5  ;;  %v1468_v11 = vrot.slane %v1466_v16, 4 }
  0x67   : > { %12434 = vmatprep.mubr.bf16.mxu0 %v10937_v0  ;;  %v1377_v0 = vld [vmem:[%s14284_s10 + $0x48] sm:$0xe]  ;;  %v14676_v12 = vsel %vm14649_vm5, %v10975_v61, %v1452_v58  ;;  %v1454_v15 = vrot.slane %v1452_v58, 4  ;;  %v10978_v61 = vrot.slane %v1378_v52, 9  ;;  %v1473_v58 = vrot.slane %v14430_v27, 5 }
  0x68   : > { %v14669_v4 = vsel %vm14649_vm5, %v1447_v43, %v1448_v21  ;;  %v10977_v35 = vrot.slane %v1377_v0, 9  ;;  %v14689_v43 = vsel %vm14649_vm5, %v10976_v57, %v1459_v17  ;;  %v1461_v21 = vrot.slane %v1459_v17, 4 }
  0x69   : > { %v14685_v3 = vsel %vm14649_vm5, %v1454_v15, %v1455_v5  ;;  %v1381_v5 = vld [vmem:[%s14284_s10 + $0x78] sm:$0xe]  ;;  %v1476_v57 = vrot.slane %v14435_v34, 5  ;;  %v1480_v17 = vrot.slane %v14449_v53, 5  ;;  %v1475_v34 = vrot.slane %v1473_v58, 4 }
  0x6a   : > { %v14696_v0 = vsel %vm14649_vm5, %v10977_v35, %v1466_v16  ;;  %v14702_v15 = vsel %vm14649_vm5, %v1461_v21, %v1462_v30  ;;  %v14713_v16 = vsel %vm14649_vm5, %v1468_v11, %v1469_v59  ;;  %v14717_v30 = vsel %vm14649_vm5, %v10978_v61, %v1473_v58  ;;  %v18285_v35 = vld [vmem:[#allocation7_spill] sm:$0xff]  ;;  %v18286_v58 = vld [vmem:[#allocation8_spill] sm:$0xff]  ;;  %v18288_v21 = vld [vmem:[#allocation9_spill] sm:$0xff] }
  0x6b   : > { %v1482_v62 = vrot.slane %v1480_v17, 4  ;;  %v1483_v41 = vrot.slane %v18285_v35, 5  ;;  %v14729_v59 = vsel %vm14649_vm5, %v1475_v34, %v1476_v57  ;;  %v1487_v11 = vrot.slane %v14467_v24, 5  ;;  %v1383_v57 = vld [vmem:[%s14284_s10 + $0x90] sm:$0xe]  ;;  %v18287_v34 = vld [vmem:[#allocation12_spill] sm:$0xff] }
  0x6c   : > { %v1490_v13 = vrot.slane %v18286_v58, 5  ;;  %v1494_v35 = vrot.slane %v14491_v60, 5  ;;  %v1497_v18 = vrot.slane %v18288_v21, 5  ;;  %v18289_v21 = vld [vmem:[#allocation10_spill] sm:$0xff]  ;;  %v10983_v32 = vrot.slane %v1383_v57, 9 }
  0x6d   : > { %v1489_v58 = vrot.slane %v1487_v11, 4  ;;  %v1504_v26 = vrot.slane %v18289_v21, 5  ;;  %v18291_v21 = vld [vmem:[#allocation11_spill] sm:$0xff] }
  0x6e   : > { %12435 = vmatmul.mubr.bf16.gmra.mrb[28].mxu0 %v10938_v37  ;;  %v1379_v37 = vld [vmem:[%s14284_s10 + $0x60] sm:$0xe]  ;;  %v14780_v57 = vsel %vm14649_vm5, %v10983_v32, %v1508_v6  ;;  %v1511_v40 = vrot.slane %v18291_v21, 5 }
  0x6f   : > { %12454 = vmatprep.mubr.bf16.mxu0 %v10947_v1  ;;  %v1380_v1 = vld [vmem:[%s14284_s10 + $0x6c] sm:$0xe]  ;;  %v10979_v52 = vrot.slane %v1379_v37, 9  ;;  %v1382_v37 = vld [vmem:[%s14284_s10 + $0x84] sm:$0xe] }
  0x70   : > { %v10980_v61 = vrot.slane %v1380_v1, 9  ;;  %v1501_v1 = vrot.slane %v14512_v36, 5 }
  0x71   : > { %v14724_v63 = vsel %vm14649_vm5, %v10979_v52, %v1480_v17  ;;  %v14737_v52 = vsel %vm14649_vm5, %v1482_v62, %v1483_v41  ;;  %v10981_v17 = vrot.slane %v1381_v5, 9  ;;  %v1384_v41 = vld [vmem:[%s14284_s10 + $0x9c] sm:$0xe]  ;;  %v13833_v62 = vld [vmem:[%s18155_s2 + $0x90] sm:$0xff]   ;;  %v1496_v5 = vrot.slane %v1494_v35, 4 }
  0x76   : > { %12455 = vmatmul.mubr.bf16.vlgmr.msra.gmra.mrb[0].mxu0 %v10948_v44  ;;  %v14746_v44 = vsel %vm14649_vm5, %v10980_v61, %v1487_v11  ;;  %v1385_v61 = vld [vmem:[%s14284_s10 + $0xa8] sm:$0xe]  ;;  %v14761_v11 = vsel %vm14649_vm5, %v1489_v58, %v1490_v13  ;;  %v1510_v58 = vrot.slane %v1508_v6, 4 }
  0x77   : > { %12487 = vmatpush3.bf16.msra.mxu0 %v18287_v34  ;;  %12458 = vmatprep.mubr.bf16.mxu0 %v10949_v45  ;;  %v14755_v45 = vsel %vm14649_vm5, %v10981_v17, %v1494_v35  ;;  %v10982_v34 = vrot.slane %v1382_v37, 9  ;;  %v14769_v17 = vsel %vm14649_vm5, %v1496_v5, %v1497_v18  ;;  %v1503_v35 = vrot.slane %v1501_v1, 4  ;;  %v13836_v18 = vld [vmem:[%s18155_s2 + $0x98] sm:$0xff]  }
  0x78   : > { %12488 = vmatprep.subr.bf16.mxu0 %v13830_v48  ;;  %18290 = vst [vmem:[#allocation7_spill] sm:$0xff] %v14769_v17  ;;  %v1515_v5 = vrot.slane %v14551_v47, 5  ;;  %v14796_v6 = vsel %vm14649_vm5, %v1510_v58, %v1511_v40  ;;  %v10985_v21 = vrot.slane %v1385_v61, 9  ;;  %v18293_v17 = vcombine.low %v14336_v46, %v14342_v51  ;;  %v13839_v58 = vld [vmem:[%s18155_s2 + $0xa0] sm:$0xff]  }
  0x79   : > { %v14773_v37 = vsel %vm14649_vm5, %v10982_v34, %v1501_v1  ;;  %v14788_v1 = vsel %vm14649_vm5, %v1503_v35, %v1504_v26  ;;  %v18292_v34 = vld [vmem:[#allocation13_spill] sm:$0xff]  ;;  %v11015_v26 = vcombine.low %v14780_v57, %v14796_v6  ;;  %v18295_v40 = vcombine.low %v14358_v2, %v14363_v9 }
  0x7a   : > { %v1518_v13 = vrot.slane %v18292_v34, 5  ;;  %v1517_v35 = vrot.slane %v1515_v5, 4  ;;  %v18294_v34 = vld [vmem:[#allocation14_spill] sm:$0xff]  ;;  %v14814_v61 = vsel %vm14649_vm5, %v10985_v21, %v1522_v25  ;;  %v1524_v46 = vrot.slane %v1522_v25, 4  ;;  %v13857_v57 = vld [vmem:[%s14284_s10 + $0xc] sm:$0xff]  }
  0x7b   : > { %12489 = vmatpush3.bf16.msra.mxu0 %v13830_v48  ;;  %v10984_v48 = vrot.slane %v1384_v41, 9  ;;  %v1525_v32 = vrot.slane %v18294_v34, 5  ;;  %v10986_v51 = vrot.slane %v1386_v54, 9  ;;  %v1532_v2 = vrot.slane %v14604_v8, 5  ;;  %v13848_v34 = vld [vmem:[%s18155_s2 + $0xb8] sm:$0xff]  }
  0x7c   : > { %12490 = vmatprep.subr.bf16.mxu0 %v13833_v62  ;;  %v18296_v21 = vcombine.low %v14377_v22, %v14385_v38  ;;  %v18298_v22 = vcombine.low %v14424_v20, %v14430_v27  ;;  %v18299_v38 = vcombine.low %v14438_v33, %v14449_v53  ;;  %v18301_v20 = vcombine.low %v14488_v49, %v14491_v60  ;;  %v14049_v27 = vld [vmem:[%s14284_s10 + $0x4] sm:$0xf]  ;;  %v1371_v53 = vld [vmem:[%s14284_s10] sm:$0xe]  ;;  %v1372_v60 = vld [vmem:[%s14284_s10 + $0xc] sm:$0xe] }
  0x7d   : > { %v14806_v41 = vsel %vm14649_vm5, %v10984_v48, %v1515_v5  ;;  %v14822_v48 = vsel %vm14649_vm5, %v1517_v35, %v1518_v13  ;;  %v14829_v25 = vsel %vm14649_vm5, %v1524_v46, %v1525_v32  ;;  %v13842_v5 = vld [vmem:[%s18155_s2 + $0xa8] sm:$0xff]   ;;  %v18297_v35 = vcombine.low %v14399_v50, %v14403_v56  ;;  %v13849_v50 = vld [vmem:[%s18155_s2 + $0xc0] sm:$0xff]  }
  0x7e   : > { %12459 = vmatmul.mubr.bf16.gmra.mrb[4].mxu0 %v18293_v17  ;;  %v1529_v17 = vrot.slane %v14595_v42, 5  ;;  %v11016_v9 = vcombine.low %v14806_v41, %v14822_v48  ;;  %v11017_v13 = vcombine.low %v14814_v61, %v14829_v25  ;;  %v18300_v56 = vcombine.low %v14464_v14, %v14467_v24  ;;  %v11104_v61 = vld [vmem:[%s14284_s10 + $0x20] sm:$0x1] }
  0x7f   : > { %12462 = vmatprep.mubr.bf16.mxu0 %v18295_v40  ;;  %12491 = vmatpush3.bf16.msra.mxu0 %v13833_v62  ;;  %v1424_v33 = vrot.slane %v14049_v27, 5  ;;  %v14050_v40 = vld [vmem:[%s14284_s10 + $0x8] sm:$0x1]  ;;  %v18303_v14 = vcombine.low %v14532_v7, %v14535_v10  ;;  %v10971_v24 = vrot.slane %v1371_v53, 9  ;;  %v18304_v49 = vcombine.low %v14542_v31, %v14551_v47 }
  0x80   : > { %12492 = vmatprep.subr.bf16.mxu0 %v13836_v18  ;;  %v14833_v54 = vsel %vm14649_vm5, %v10986_v51, %v1529_v17  ;;  %v1531_v62 = vrot.slane %v1529_v17, 4  ;;  %v1427_v46 = vrot.slane %v14050_v40, 5  ;;  %v18302_v51 = vcombine.low %v14506_v29, %v14512_v36  ;;  %v14052_v29 = vld [vmem:[%s14284_s10 + $0x1c] sm:$0xf] }
  0x81   : > { %v1426_v17 = vrot.slane %v1424_v33, 4  ;;  %v1438_v36 = vrot.slane %v14052_v29, 5  ;;  %v1425_v7 = vsel %vm14649_vm5, %v10971_v24, %v1424_v33  ;;  %v13854_v24 = vld [vmem:[%s18155_s2 + $0xe8] sm:$0xff]  }
  0x82   : > { %v14842_v8 = vsel %vm14649_vm5, %v1531_v62, %v1532_v2  ;;  %v14051_v2 = vld [vmem:[%s14284_s10 + $0x10] sm:$0xf] }
  0x83   : > { %12493 = vmatpush3.bf16.msra.mxu0 %v13836_v18  ;;  %v11018_v32 = vcombine.low %v14833_v54, %v14842_v8  ;;  %v13845_v18 = vld [vmem:[%s18155_s2 + $0xb0] sm:$0xff]   ;;  %v1431_v62 = vrot.slane %v14051_v2, 5  ;;  %v1428_v10 = vsel %vm14649_vm5, %v1426_v17, %v1427_v46  ;;  %v13852_v46 = vld [vmem:[%s18155_s2 + $0xd8] sm:$0xff]   ;;  %v2335_v54 = vshll.u32 %v11104_v61, 16  ;;  %v13862_v8 = vld [vmem:[%s18155_s2 + $0x108] sm:$0xff]  }
  0x84   : > { %12494 = vmatprep.subr.bf16.mxu0 %v13839_v58  ;;  %v11003_v47 = vcombine.low %v1425_v7, %v1428_v10  ;;  %v11101_v2 = vld [vmem:[%s14284_s10 + $0x14] sm:$0x1]  ;;  %v13858_v7 = vld [vmem:[%s14284_s10 + $0x18] sm:$0xff]   ;;  %v15063_v61 = vld [vmem:[%s14284_s10 + $0x68] sm:$0x1] }
  0x85   : > { %v2311_v10 = vshll.u32 %v11101_v2, 16  ;;  %v13877_v2 = vld [vmem:[%s18155_s2 + $0x130] sm:$0xff]  }
  0x86   : > { %12463 = vmatmul.mubr.bf16.gmra.mrb[8].mxu0 %v18296_v21  ;;  %v14053_v21 = vld [vmem:[%s14284_s10 + $0x14] sm:$0x1] }
  0x87   : > { %12466 = vmatprep.mubr.bf16.mxu0 %v18297_v35  ;;  %12495 = vmatpush3.bf16.msra.mxu0 %v13839_v58  ;;  %v18305_v58 = vcombine.low %v14567_v28, %v14573_v39  ;;  %v1434_v31 = vrot.slane %v14053_v21, 5  ;;  %v10972_v35 = vrot.slane %v1372_v60, 9  ;;  %v1440_v28 = vrot.slane %v1438_v36, 4  ;;  %v14054_v39 = vld [vmem:[%s14284_s10 + $0x20] sm:$0x1] }
  0x88   : > { %12496 = vmatprep.subr.bf16.mxu0 %v13842_v5 }
  0x8b   : > { %12497 = vmatpush3.bf16.msra.mxu0 %v13842_v5  ;;  %v1373_v5 = vld [vmem:[%s14284_s10 + $0x18] sm:$0xe] }
  0x8c   : > { %12498 = vmatprep.subr.bf16.mxu0 %v13845_v18 }
  0x8e   : > { %12467 = vmatmul.mubr.bf16.gmra.mrb[12].mxu0 %v18298_v22  ;;  %v1441_v22 = vrot.slane %v14054_v39, 5 }
  0x8f   : > { %12470 = vmatprep.mubr.bf16.mxu0 %v18299_v38  ;;  %12499 = vmatpush3.bf16.msra.mxu0 %v13845_v18  ;;  %v1433_v18 = vrot.slane %v1431_v62, 4  ;;  %v18306_v38 = vcombine.low %v14585_v23, %v14595_v42  ;;  %v13850_v23 = vld [vmem:[%s18155_s2 + $0xc8] sm:$0xff]   ;;  %v13851_v42 = vld [vmem:[%s18155_s2 + $0xd0] sm:$0xff]  }
  0x90   : > { %12500 = vmatprep.subr.bf16.mxu0 %v13848_v34  ;;  %v1442_v33 = vsel %vm14649_vm5, %v1440_v28, %v1441_v22  ;;  %v11106_v28 = vld [vmem:[%s14284_s10 + $0x28] sm:$0xf]  ;;  %v11108_v22 = vld [vmem:[%s14284_s10 + $0x30] sm:$0xf] }
  0x93   : > { %12501 = vmatpush3.bf16.msra.mxu0 %v13848_v34  ;;  %v10973_v34 = vrot.slane %v1373_v5, 9 }
  0x94   : > { %12534 = vmatprep.subr.bf16.mxu0 %v13849_v50 }
  0x95   : > { %v1439_v27 = vsel %vm14649_vm5, %v10973_v34, %v1438_v36  ;;  %v11105_v36 = vld [vmem:[%s14284_s10 + $0x24] sm:$0xf] }
  0x96   : > { %12471 = vmatmul.mubr.bf16.gmra.mrb[16].mxu0 %v18300_v56  ;;  %v1432_v56 = vsel %vm14649_vm5, %v10972_v35, %v1431_v62  ;;  %v11005_v40 = vcombine.low %v1439_v27, %v1442_v33  ;;  %v2343_v35 = vshll.u32 %v11105_v36, 16  ;;  %v15004_v33 = vrot.slane %v2335_v54, 5  ;;  %v13869_v54 = vld [vmem:[%s14284_s10 + $0x6c] sm:$0xff]  }
  0x97   : > { %12474 = vmatprep.mubr.bf16.mxu0 %v18301_v20  ;;  %v1435_v20 = vsel %vm14649_vm5, %v1433_v18, %v1434_v31  ;;  %v13860_v31 = vld [vmem:[%s14284_s10 + $0x24] sm:$0xff]  }
  0x98   : > { %v11004_v53 = vcombine.low %v1432_v56, %v1435_v20  ;;  %v15000_v20 = vrot.slane %v2311_v10, 5  ;;  %v13867_v10 = vld [vmem:[%s14284_s10 + $0x60] sm:$0xff]  }
  0x9e   : > { %12475 = vmatmul.mubr.bf16.gmra.mrb[20].mxu0 %v18302_v51  ;;  %v18307_v51 = vcombine.low %v14658_v19, %v14669_v4  ;;  %v18309_v19 = vcombine.low %v14689_v43, %v14702_v15  ;;  %v18310_v4 = vcombine.low %v14696_v0, %v14713_v16  ;;  %v18311_v43 = vcombine.low %v14717_v30, %v14729_v59  ;;  %v13859_v15 = vld [vmem:[%s18155_s2 + $0x100] sm:$0xff]  }
  0x9f   : > { %12478 = vmatprep.mubr.bf16.mxu0 %v18303_v14  ;;  %v18308_v14 = vcombine.low %v14676_v12, %v14685_v3  ;;  %v13855_v12 = vld [vmem:[%s18155_s2 + $0xf0] sm:$0xff]   ;;  %v13856_v3 = vld [vmem:[%s18155_s2 + $0xf8] sm:$0xff]   ;;  %v18312_v0 = vcombine.low %v14724_v63, %v14737_v52  ;;  %v18313_v16 = vcombine.low %v14746_v44, %v14761_v11  ;;  %v18314_v30 = vld [vmem:[#allocation7_spill] sm:$0xff]  ;;  %v18316_v59 = vcombine.low %v14773_v37, %v14788_v1 }
  0xa0   : > { %v18315_v63 = vcombine.low %v14755_v45, %v18314_v30  ;;  %v11099_v52 = vld [vmem:[%s14284_s10 + $0xc] sm:$0xf]  ;;  %v11100_v44 = vld [vmem:[%s14284_s10 + $0x10] sm:$0xf]  ;;  %v11102_v45 = vld [vmem:[%s14284_s10 + $0x18] sm:$0xf] }
  0xa1   : > { %v2292_v17 = vshrl.u32 %v11099_v52, 16  ;;  %v11103_v11 = vld [vmem:[%s14284_s10 + $0x1c] sm:$0xf]  ;;  %v2301_v6 = vshll.u32 %v11100_v44, 16  ;;  %v2316_v60 = vshrl.u32 %v11102_v45, 16 }
  0xa2   : > { %v2325_v41 = vshll.u32 %v11103_v11, 16  ;;  %v2329_v48 = vshrl.u32 %v11103_v11, 16 }
  0xa3   : > { %v2294_v37 = vrot.slane %v2292_v17, 4  ;;  %v14979_v25 = vrot.slane %v2301_v6, 5  ;;  %v2318_v62 = vrot.slane %v2316_v60, 4  ;;  %v13864_v17 = vld [vmem:[%s14284_s10 + $0x48] sm:$0xff]   ;;  %v15048_v60 = vld [vmem:[%s14284_s10 + $0x38] sm:$0x1] }
  0xa4   : > { %v14983_v5 = vrot.slane %v2325_v41, 5  ;;  %v2331_v21 = vrot.slane %v2329_v48, 4 }
  0xa6   : > { %12479 = vmatmul.mubr.bf16.gmra.mrb[24].mxu0 %v18304_v49  ;;  %v2295_v49 = vshll.u32 %v11099_v52, 16  ;;  %v2332_v39 = vor.u32 %v2331_v21, %v14983_v5 }
  0xa7   : > { %12482 = vmatprep.mubr.bf16.mxu0 %v18305_v58  ;;  %v2319_v58 = vshll.u32 %v11102_v45, 16  ;;  %v13866_v45 = vld [vmem:[%s14284_s10 + $0x54] sm:$0xff]  }
  0xa8   : > { %v2297_v1 = vrot.slane %v2295_v49, 5 }
  0xa9   : > { %v2321_v29 = vrot.slane %v2319_v58, 5 }
  0xab   : > { %v2322_v34 = vor.u32 %v2321_v29, %v2318_v62  ;;  %v11194_v29 = vld [vmem:[%s14284_s10 + $0x60] sm:$0xe] }
  0xad   : > { %v15002_v27 = vrot.slane %v2322_v34, 4 }
  0xae   : > { %12483 = vmatmul.mubr.bf16.gmra.mrb[28].mxu0 %v18306_v38  ;;  %v13865_v38 = vld [vmem:[%s18155_s2 + $0x110] sm:$0xff]  }
  0xaf   : > { %12502 = vmatprep.mubr.bf16.mxu0 %v11003_v47 }
  0xb6   : > { %12503 = vmatmul.mubr.bf16.vlgmr.msra.gmra.mrb[0].mxu0 %v11004_v53  ;;  %v13861_v53 = vld [vmem:[%s14284_s10 + $0x30] sm:$0xff]  }
  0xb7   : > { %12535 = vmatpush3.bf16.msra.mxu0 %v13849_v50  ;;  %12506 = vmatprep.mubr.bf16.mxu0 %v11005_v40  ;;  %v13853_v50 = vld [vmem:[%s18155_s2 + $0xe0] sm:$0xff]   ;;  %v15007_v40 = vrot.slane %v2332_v39, 4 }
  0xb8   : > { %12536 = vmatprep.subr.bf16.mxu0 %v13850_v23 }
  0xbb   : > { %12537 = vmatpush3.bf16.msra.mxu0 %v13850_v23 }
  0xbc   : > { %12538 = vmatprep.subr.bf16.mxu0 %v13851_v42 }
  0xbe   : > { %12507 = vmatmul.mubr.bf16.gmra.mrb[4].mxu0 %v18307_v51  ;;  %v13863_v51 = vld [vmem:[%s14284_s10 + $0x3c] sm:$0xff]  }
  0xbf   : > { %12510 = vmatprep.mubr.bf16.mxu0 %v18308_v14  ;;  %12539 = vmatpush3.bf16.msra.mxu0 %v13851_v42  ;;  %v2345_v42 = vrot.slane %v2343_v35, 5  ;;  %v2353_v14 = vshrl.u32 %v11106_v28, 16  ;;  %v13880_v35 = vld [vmem:[%s18155_s2 + $0x138] sm:$0xff]  }
  0xc0   : > { %12540 = vmatprep.subr.bf16.mxu0 %v13852_v46 }
  0xc3   : > { %12541 = vmatpush3.bf16.msra.mxu0 %v13852_v46  ;;  %v2349_v46 = vshll.u32 %v11106_v28, 16 }
  0xc4   : > { %12542 = vmatprep.subr.bf16.mxu0 %v13853_v50 }
  0xc6   : > { %12511 = vmatmul.mubr.bf16.gmra.mrb[8].mxu0 %v18309_v19  ;;  %v15014_v19 = vld [vmem:[%s14284_s10 + $0x34] sm:$0xf] }
  0xc7   : > { %12514 = vmatprep.mubr.bf16.mxu0 %v18310_v4  ;;  %12543 = vmatpush3.bf16.msra.mxu0 %v13853_v50  ;;  %v2364_v50 = vshrl.u32 %v11108_v22, 16  ;;  %v11107_v4 = vld [vmem:[%s14284_s10 + $0x2c] sm:$0x1]  ;;  %v2373_v30 = vshll.u32 %v15014_v19, 16  ;;  %v2377_v62 = vshrl.u32 %v15014_v19, 16 }
  0xc8   : > { %12544 = vmatprep.subr.bf16.mxu0 %v13854_v24  ;;  %v2359_v49 = vshll.u32 %v11107_v4, 16 }
  0xc9   : > { %v15034_v11 = vrot.slane %v2364_v50, 4  ;;  %v15057_v48 = vrot.slane %v2373_v30, 5 }
  0xca   : > { %v15072_v21 = vrot.slane %v2359_v49, 5  ;;  %v15135_v49 = vld [vmem:[%s14284_s10 + $0x94] sm:$0xf] }
  0xcb   : > { %12545 = vmatpush3.bf16.msra.mxu0 %v13854_v24  ;;  %v13868_v24 = vld [vmem:[%s18155_s2 + $0x118] sm:$0xff]  }
  0xcc   : > { %12546 = vmatprep.subr.bf16.mxu0 %v13855_v12 }
  0xce   : > { %12515 = vmatmul.mubr.bf16.gmra.mrb[12].mxu0 %v18311_v43  ;;  %v2367_v43 = vshll.u32 %v11108_v22, 16  ;;  %v15093_v22 = vld [vmem:[%s18155_s2 + $0x140] sm:$0xff]  }
  0xcf   : > { %12518 = vmatprep.mubr.bf16.mxu0 %v18312_v0  ;;  %12547 = vmatpush3.bf16.msra.mxu0 %v13855_v12  ;;  %v13871_v12 = vld [vmem:[%s18155_s2 + $0x120] sm:$0xff]   ;;  %v15023_v0 = vld [vmem:[%s14284_s10 + $0x4c] sm:$0xf] }
  0xd0   : > { %12548 = vmatprep.subr.bf16.mxu0 %v13856_v3  ;;  %v15055_v41 = vrot.slane %v2367_v43, 5 }
  0xd3   : > { %12549 = vmatpush3.bf16.msra.mxu0 %v13856_v3  ;;  %v15020_v3 = vrot.slane %v2349_v46, 5  ;;  %v15106_v46 = vrot.slane %v2377_v62, 4 }
  0xd4   : > { %12582 = vmatprep.subr.bf16.mxu0 %v13859_v15 }
  0xd6   : > { %12519 = vmatmul.mubr.bf16.gmra.mrb[16].mxu0 %v18313_v16  ;;  %v2355_v16 = vrot.slane %v2353_v14, 4 }
  0xd7   : > { %12522 = vmatprep.mubr.bf16.mxu0 %v18315_v63  ;;  %v11192_v63 = vld [vmem:[%s14284_s10 + $0x48] sm:$0xe] }
  0xd8   : > { %v2356_v34 = vor.u32 %v2355_v16, %v15020_v3 }
  0xde   : > { %12523 = vmatmul.mubr.bf16.gmra.mrb[20].mxu0 %v18316_v59  ;;  %v3098_v59 = vrot.slane %v15023_v0, 5 }
  0xdf   : > { %12526 = vmatprep.mubr.bf16.mxu0 %v11015_v26  ;;  %v2305_v26 = vshrl.u32 %v11100_v44, 16  ;;  %v11208_v44 = vrot.slane %v11192_v63, 9  ;;  %v15121_v63 = vld [vmem:[%s14284_s10 + $0x88] sm:$0xf] }
  0xe6   : > { %12527 = vmatmul.mubr.bf16.gmra.mrb[24].mxu0 %v11016_v9  ;;  %v2298_v9 = vor.u32 %v2297_v1, %v2294_v37  ;;  %v3100_v37 = vrot.slane %v3098_v59, 4  ;;  %v13874_v1 = vld [vmem:[%s18155_s2 + $0x128] sm:$0xff]  }
  0xe7   : > { %12530 = vmatprep.mubr.bf16.mxu0 %v11017_v13  ;;  %v2307_v13 = vrot.slane %v2305_v26, 4 }
  0xe8   : > { %v14986_v47 = vrot.slane %v2298_v9, 4  ;;  %v15060_v9 = vld [vmem:[%s14284_s10 + $0x64] sm:$0xf] }
  0xe9   : > { %v2308_v18 = vor.u32 %v2307_v13, %v14979_v25 }
  0xea   : > { %v2304_v58 = vsel %vm14316_vm2, %v14986_v47, %v14979_v25  ;;  %v11117_v25 = vld [vmem:[%s14284_s10 + $0x54] sm:$0xf] }
  0xeb   : > { %v14998_v56 = vrot.slane %v2308_v18, 4 }
  0xee   : > { %12531 = vmatmul.mubr.bf16.gmra.mrb[28].mxu0 %v11018_v32  ;;  %v2340_v32 = vshrl.u32 %v11105_v36, 16  ;;  %v3112_v36 = vrot.slane %v15060_v9, 5 }
  0xef   : > { %12550 = vmatprep.mubr.bf16.mxu0 %v13857_v57  ;;  %v15041_v57 = vsel %vm14649_vm5, %v11208_v44, %v3098_v59  ;;  %v15124_v59 = vld [vmem:[%s14284_s10 + $0x8c] sm:$0x1] }
  0xf0   : > { %v2342_v23 = vrot.slane %v2340_v32, 4  ;;  %v3114_v32 = vrot.slane %v3112_v36, 4 }
  0xf2   : > { %v2346_v6 = vor.u32 %v2345_v42, %v2342_v23  ;;  %v15102_v23 = vld [vmem:[%s14284_s10 + $0x80] sm:$0x1]  ;;  %v15104_v42 = vrot.slane %v2356_v34, 4 }
  0xf3   : > { %v3129_v50 = vrot.slane %v15102_v23, 5 }
  0xf4   : > { %v15065_v13 = vrot.slane %v2346_v6, 4  ;;  %v3136_v6 = vrot.slane %v15124_v59, 5 }
  0xf6   : > { %12551 = vmatmul.mubr.bf16.vlgmr.msra.gmra.mrb[0].mxu0 %v13858_v7  ;;  %v3115_v7 = vrot.slane %v15063_v61, 5 }
  0xf7   : > { %12583 = vmatpush3.bf16.msra.mxu0 %v13859_v15  ;;  %12554 = vmatprep.mubr.bf16.mxu0 %v13860_v31  ;;  %v15026_v15 = vld [vmem:[%s14284_s10 + $0x50] sm:$0x1]  ;;  %v11210_v31 = vrot.slane %v11194_v29, 9  ;;  %v11198_v29 = vld [vmem:[%s14284_s10 + $0x90] sm:$0xe] }
  0xf8   : > { %12584 = vmatprep.subr.bf16.mxu0 %v13862_v8  ;;  %v3101_v52 = vrot.slane %v15026_v15, 5  ;;  %v15086_v28 = vsel %vm14649_vm5, %v3114_v32, %v3115_v7 }
  0xf9   : > { %v15081_v18 = vsel %vm14649_vm5, %v11210_v31, %v3112_v36  ;;  %v3140_v36 = vrot.slane %v15135_v49, 5 }
  0xfa   : > { %v15045_v26 = vsel %vm14649_vm5, %v3100_v37, %v3101_v52  ;;  %v11197_v37 = vld [vmem:[%s14284_s10 + $0x84] sm:$0xe] }
  0xfb   : > { %12585 = vmatpush3.bf16.msra.mxu0 %v13862_v8  ;;  %v2383_v8 = vshll.u32 %v15048_v60, 16  ;;  %v11213_v62 = vrot.slane %v11197_v37, 9  ;;  %v3142_v34 = vrot.slane %v3140_v36, 4  ;;  %v15182_v37 = vld [vmem:[%s14284_s10 + $0xb0] sm:$0x1] }
  0xfc   : > { %12586 = vmatprep.subr.bf16.mxu0 %v13865_v38 }
  0xfd   : > { %v15112_v19 = vrot.slane %v2383_v8, 5  ;;  %v13875_v8 = vld [vmem:[%s14284_s10 + $0x9c] sm:$0xff]  }
  0xfe   : > { %12555 = vmatmul.mubr.bf16.gmra.mrb[4].mxu0 %v13861_v53  ;;  %v15099_v53 = vld [vmem:[%s14284_s10 + $0x7c] sm:$0xf] }
  0xff   : > { %12558 = vmatprep.mubr.bf16.mxu0 %v13863_v51  ;;  %12587 = vmatpush3.bf16.msra.mxu0 %v13865_v38  ;;  %v15096_v38 = vld [vmem:[%s14284_s10 + $0x3c] sm:$0xf]  ;;  %v11196_v51 = vld [vmem:[%s14284_s10 + $0x78] sm:$0xe]  ;;  %v3126_v14 = vrot.slane %v15099_v53, 5 }
 0x100   : > { %12588 = vmatprep.subr.bf16.mxu0 %v13868_v24  ;;  %v11212_v4 = vrot.slane %v11196_v51, 9  ;;  %v2388_v43 = vshrl.u32 %v15096_v38, 16 }
 0x101   : > { %v3128_v16 = vrot.slane %v3126_v14, 4 }
 0x102   : > { %v15118_v30 = vsel %vm14649_vm5, %v11212_v4, %v3126_v14  ;;  %v15165_v14 = vld [vmem:[%s14284_s10 + $0xa0] sm:$0xf]  ;;  %v15193_v44 = vrot.slane %v2388_v43, 4 }
 0x103   : > { %12589 = vmatpush3.bf16.msra.mxu0 %v13868_v24  ;;  %v13870_v24 = vld [vmem:[%s14284_s10 + $0x78] sm:$0xff]   ;;  %18317 = vst [vmem:[#allocation8_spill] sm:$0xff] %v15118_v30  ;;  %v15128_v52 = vsel %vm14649_vm5, %v3128_v16, %v3129_v50  ;;  %v15168_v50 = vld [vmem:[%s14284_s10 + $0xa4] sm:$0x1] }
 0x104   : > { %12590 = vmatprep.subr.bf16.mxu0 %v13871_v12  ;;  %18318 = vst [vmem:[#allocation12_spill] sm:$0xff] %v15128_v52 }
 0x106   : > { %12559 = vmatmul.mubr.bf16.gmra.mrb[8].mxu0 %v13864_v17  ;;  %v15132_v17 = vld [vmem:[%s14284_s10 + $0x40] sm:$0xf] }
 0x107   : > { %12562 = vmatprep.mubr.bf16.mxu0 %v13866_v45  ;;  %12591 = vmatpush3.bf16.msra.mxu0 %v13871_v12  ;;  %v13872_v12 = vld [vmem:[%s14284_s10 + $0x84] sm:$0xff]   ;;  %v15140_v45 = vld [vmem:[%s14284_s10 + $0x98] sm:$0x1]  ;;  %v2397_v32 = vshll.u32 %v15132_v17, 16 }
 0x108   : > { %12592 = vmatprep.subr.bf16.mxu0 %v13874_v1  ;;  %v3143_v7 = vrot.slane %v15140_v45, 5 }
 0x10a   : > { %v15174_v4 = vsel %vm14649_vm5, %v3142_v34, %v3143_v7  ;;  %v11200_v7 = vld [vmem:[%s14284_s10 + $0xa8] sm:$0xe] }
 0x10b   : > { %12593 = vmatpush3.bf16.msra.mxu0 %v13874_v1  ;;  %v3133_v1 = vrot.slane %v15121_v63, 5  ;;  %18322 = vst [vmem:[#allocation13_spill] sm:$0xff] %v15174_v4  ;;  %v13876_v34 = vld [vmem:[%s14284_s10 + $0xa8] sm:$0xff]   ;;  %v11216_v16 = vrot.slane %v11200_v7, 9  ;;  %v2314_v4 = vsel %vm14316_vm2, %v14998_v56, %v15000_v20  ;;  %v15225_v20 = vrot.slane %v2397_v32, 5 }
 0x10c   : > { %12594 = vmatprep.subr.bf16.mxu0 %v13877_v2  ;;  %v11114_v7 = vld [vmem:[%s14284_s10 + $0x48] sm:$0xf]  ;;  %v15240_v32 = vld [vmem:[%s14284_s10 + $0xb8] sm:$0xf] }
 0x10d   : > { %v3135_v31 = vrot.slane %v3133_v1, 4 }
 0x10e   : > { %12563 = vmatmul.mubr.bf16.gmra.mrb[12].mxu0 %v13867_v10  ;;  %v13873_v10 = vld [vmem:[%s14284_s10 + $0x90] sm:$0xff]  }
 0x10f   : > { %12566 = vmatprep.mubr.bf16.mxu0 %v13869_v54  ;;  %12595 = vmatpush3.bf16.msra.mxu0 %v13877_v2  ;;  %v2391_v2 = vshll.u32 %v15096_v38, 16  ;;  %v11214_v54 = vrot.slane %v11198_v29, 9  ;;  %v15158_v38 = vsel %vm14649_vm5, %v3135_v31, %v3136_v6  ;;  %v3147_v6 = vrot.slane %v15165_v14, 5 }
 0x110   : > { %12596 = vmatprep.subr.bf16.mxu0 %v13880_v35  ;;  %18320 = vst [vmem:[#allocation10_spill] sm:$0xff] %v15158_v38  ;;  %v2401_v29 = vshrl.u32 %v15132_v17, 16  ;;  %v13879_v38 = vld [vmem:[%s14284_s10 + $0xc0] sm:$0xff]  }
 0x111   : > { %v15162_v51 = vsel %vm14649_vm5, %v11214_v54, %v3140_v36  ;;  %v3157_v54 = vrot.slane %v15182_v37, 5  ;;  %v2393_v56 = vrot.slane %v2391_v2, 5  ;;  %v2370_v2 = vor.u32 %v15055_v41, %v15034_v11 }
 0x112   : > { %18321 = vst [vmem:[#allocation11_spill] sm:$0xff] %v15162_v51  ;;  %v3161_v11 = vrot.slane %v15240_v32, 5  ;;  %v2412_v41 = vshrl.u32 %v11114_v7, 16  ;;  %v15268_v51 = vld [vmem:[%s14284_s10 + $0x58] sm:$0xf] }
 0x113   : > { %12597 = vmatpush3.bf16.msra.mxu0 %v13880_v35  ;;  %v15154_v35 = vsel %vm14649_vm5, %v11213_v62, %v3133_v1  ;;  %v11199_v1 = vld [vmem:[%s14284_s10 + $0x9c] sm:$0xe]  ;;  %v3150_v62 = vrot.slane %v15168_v50, 5 }
 0x114   : > { %12630 = vmatprep.subr.bf16.mxu0 %v15093_v22  ;;  %18319 = vst [vmem:[#allocation9_spill] sm:$0xff] %v15154_v35  ;;  %v11215_v36 = vrot.slane %v11199_v1, 9  ;;  %v2421_v35 = vshll.u32 %v15023_v0, 16 }
 0x116   : > { %12567 = vmatmul.mubr.bf16.gmra.mrb[16].mxu0 %v13870_v24  ;;  %v13878_v24 = vld [vmem:[%s14284_s10 + $0xb4] sm:$0xff]   ;;  %v15197_v39 = vsel %vm14649_vm5, %v11215_v36, %v3147_v6  ;;  %v15217_v36 = vld [vmem:[%s14284_s10 + $0x44] sm:$0x1] }
 0x117   : > { %12570 = vmatprep.mubr.bf16.mxu0 %v13872_v12  ;;  %v15177_v12 = vld [vmem:[%s14284_s10 + $0xac] sm:$0xf]  ;;  %18323 = vst [vmem:[#allocation14_spill] sm:$0xff] %v15197_v39  ;;  %v2415_v39 = vshll.u32 %v11114_v7, 16 }
 0x118   : > { %v3154_v31 = vrot.slane %v15177_v12, 5 }
 0x11e   : > { %12571 = vmatmul.mubr.bf16.gmra.mrb[20].mxu0 %v13873_v10  ;;  %v3149_v10 = vrot.slane %v3147_v6, 4  ;;  %v15214_v6 = vsel %vm14649_vm5, %v11216_v16, %v3154_v31  ;;  %v11163_v16 = vcombine.low %v2304_v58, %v2314_v4 }
 0x11f   : > { %12574 = vmatprep.mubr.bf16.mxu0 %v13875_v8  ;;  %v3156_v8 = vrot.slane %v3154_v31, 4  ;;  %18326 = vst [vmem:[#allocation6_spill] sm:$0xff] %v15214_v6  ;;  %v2328_v31 = vsel %vm14316_vm2, %v15002_v27, %v14983_v5  ;;  %v2352_v5 = vsel %vm14316_vm2, %v15065_v13, %v15020_v3  ;;  %v2380_v27 = vor.u32 %v15106_v46, %v15057_v48 }
 0x120   : > { %v15210_v43 = vsel %vm14649_vm5, %v3149_v10, %v3150_v62  ;;  %v2403_v62 = vrot.slane %v2401_v29, 4  ;;  %v15243_v29 = vld [vmem:[%s14284_s10 + $0xbc] sm:$0x1]  ;;  %v2394_v13 = vor.u32 %v2393_v56, %v15193_v44  ;;  %v2407_v46 = vshll.u32 %v15217_v36, 16 }
 0x121   : > { %18325 = vst [vmem:[#allocation7_spill] sm:$0xff] %v15210_v43  ;;  %v15223_v47 = vsel %vm14649_vm5, %v3156_v8, %v3157_v54  ;;  %v2338_v54 = vsel %vm14316_vm2, %v15007_v40, %v15004_v33  ;;  %v15246_v8 = vld [vmem:[%s14284_s10 + $0xc4] sm:$0xf]  ;;  %v15255_v33 = vld [vmem:[%s14284_s10 + $0xc8] sm:$0x1]  ;;  %v3164_v58 = vrot.slane %v15243_v29, 5 }
 0x122   : > { %18327 = vst [vmem:[#allocation15_spill] sm:$0xff] %v15223_v47  ;;  %v11201_v40 = vld [vmem:[%s14284_s10 + $0xb4] sm:$0xe]  ;;  %v3168_v10 = vrot.slane %v15246_v8, 5  ;;  %v3171_v3 = vrot.slane %v15255_v33, 5  ;;  %v3163_v47 = vrot.slane %v3161_v11, 4  ;;  %v2404_v43 = vor.u32 %v2403_v62, %v15225_v20 }
 0x123   : > { %v11217_v4 = vrot.slane %v11201_v40, 9  ;;  %v2425_v44 = vshrl.u32 %v15023_v0, 16  ;;  %v2436_v62 = vshrl.u32 %v11117_v25, 16  ;;  %v2362_v0 = vsel %vm14316_vm2, %v15104_v42, %v15072_v21 }
 0x124   : > { %v3170_v40 = vrot.slane %v3168_v10, 4  ;;  %v15279_v56 = vsel %vm14649_vm5, %v3163_v47, %v3164_v58  ;;  %v15295_v47 = vrot.slane %v2370_v2, 4  ;;  %v2445_v58 = vshll.u32 %v15268_v51, 16 }
 0x125   : > { %18329 = vst [vmem:[#allocation17_spill] sm:$0xff] %v15279_v56  ;;  %v2395_v56 = vrot.slane %v2394_v13, 4  ;;  %v2417_v21 = vrot.slane %v2415_v39, 5  ;;  %v15306_v42 = vrot.slane %v2421_v35, 5  ;;  %v2427_v2 = vrot.slane %v2425_v44, 4 }
 0x126   : > { %12575 = vmatmul.mubr.bf16.gmra.mrb[24].mxu0 %v13876_v34  ;;  %v11202_v34 = vld [vmem:[%s14284_s10 + $0xc0] sm:$0xe]  ;;  %v15312_v52 = vrot.slane %v2445_v58, 5  ;;  %v2469_v35 = vshll.u32 %v15060_v9, 16 }
 0x127   : > { %12578 = vmatprep.mubr.bf16.mxu0 %v13878_v24  ;;  %v11218_v6 = vrot.slane %v11202_v34, 9  ;;  %v15272_v24 = vsel %vm14649_vm5, %v11217_v4, %v3161_v11  ;;  %v2439_v34 = vshll.u32 %v11117_v25, 16  ;;  %v15289_v4 = vsel %vm14649_vm5, %v3170_v40, %v3171_v3  ;;  %v11120_v40 = vld [vmem:[%s14284_s10 + $0x60] sm:$0xf] }
 0x128   : > { %18328 = vst [vmem:[#allocation16_spill] sm:$0xff] %v15272_v24  ;;  %18331 = vst [vmem:[#allocation19_spill] sm:$0xff] %v15289_v4  ;;  %v15300_v25 = vrot.slane %v2380_v27, 4  ;;  %v2414_v11 = vrot.slane %v2412_v41, 4  ;;  %v2449_v3 = vshrl.u32 %v15268_v51, 16  ;;  %v2405_v24 = vrot.slane %v2404_v43, 4 }
 0x129   : > { %v15283_v7 = vsel %vm14649_vm5, %v11218_v6, %v3168_v10  ;;  %v15302_v10 = vrot.slane %v2407_v46, 5  ;;  %v2431_v6 = vshll.u32 %v15026_v15, 16  ;;  %v2438_v27 = vrot.slane %v2436_v62, 4  ;;  %v15310_v41 = vld [vmem:[%s14284_s10 + $0x5c] sm:$0x1] }
 0x12a   : > { %18330 = vst [vmem:[#allocation18_spill] sm:$0xff] %v15283_v7  ;;  %v2441_v4 = vrot.slane %v2439_v34, 5  ;;  %v11164_v46 = vcombine.low %v2328_v31, %v2338_v54  ;;  %v11165_v7 = vcombine.low %v2352_v5, %v2362_v0  ;;  %v2460_v30 = vshrl.u32 %v11120_v40, 16  ;;  %v15328_v62 = vld [vmem:[%s14284_s10 + $0x70] sm:$0xf] }
 0x12b   : > { %v2451_v13 = vrot.slane %v2449_v3, 4  ;;  %v2463_v39 = vshll.u32 %v11120_v40, 16  ;;  %v2376_v15 = vsel %vm14316_vm2, %v15295_v47, %v15057_v48  ;;  %v2386_v43 = vsel %vm14316_vm2, %v15300_v25, %v15112_v19  ;;  %v13882_v48 = vld [vmem:[%s18155_s2 + $0x148] sm:$0xff]   ;;  %v11126_v40 = vld [vmem:[%s14284_s10 + $0x78] sm:$0xf] }
 0x12c   : > { %v2418_v31 = vor.u32 %v2417_v21, %v2414_v11  ;;  %v2428_v54 = vor.u32 %v2427_v2, %v15306_v42  ;;  %v2442_v5 = vor.u32 %v2441_v4, %v2438_v27  ;;  %v2455_v44 = vshll.u32 %v15310_v41, 16 }
 0x12d   : > { %v2400_v0 = vsel %vm14316_vm2, %v2395_v56, %v15225_v20  ;;  %v2410_v19 = vsel %vm14316_vm2, %v2405_v24, %v15302_v10  ;;  %v15339_v11 = vrot.slane %v2431_v6, 5  ;;  %v2462_v4 = vrot.slane %v2460_v30, 4  ;;  %v13883_v10 = vld [vmem:[%s18155_s2 + $0x150] sm:$0xff]  }
 0x12e   : > { %12579 = vmatmul.mubr.bf16.gmra.mrb[28].mxu0 %v13879_v38  ;;  %v11123_v38 = vld [vmem:[%s14284_s10 + $0x6c] sm:$0xf]  ;;  %v2452_v47 = vor.u32 %v2451_v13, %v15312_v52  ;;  %v2465_v58 = vrot.slane %v2463_v39, 5  ;;  %v15342_v25 = vrot.slane %v2469_v35, 5  ;;  %v2419_v21 = vrot.slane %v2418_v31, 4 }
 0x12f   : > { %12598 = vmatprep.mubr.bf16.mxu0 %v11163_v16  ;;  %v2473_v16 = vshrl.u32 %v15060_v9, 16  ;;  %v2484_v9 = vshrl.u32 %v11123_v38, 16  ;;  %v2487_v34 = vshll.u32 %v11123_v38, 16  ;;  %v2429_v2 = vrot.slane %v2428_v54, 4 }
 0x130   : > { %v2493_v27 = vshll.u32 %v15328_v62, 16  ;;  %v2497_v20 = vshrl.u32 %v15328_v62, 16  ;;  %v2443_v24 = vrot.slane %v2442_v5, 4  ;;  %v2457_v56 = vrot.slane %v2455_v44, 5 }
 0x131   : > { %v2475_v3 = vrot.slane %v2473_v16, 4  ;;  %v2486_v30 = vrot.slane %v2484_v9, 4  ;;  %v2489_v6 = vrot.slane %v2487_v34, 5  ;;  %v2508_v38 = vshrl.u32 %v11126_v40, 16 }
 0x132   : > { %v2517_v13 = vshll.u32 %v15099_v53, 16  ;;  %v2521_v39 = vshrl.u32 %v15099_v53, 16  ;;  %v2453_v35 = vrot.slane %v2452_v47, 4  ;;  %v2479_v16 = vshll.u32 %v15063_v61, 16 }
 0x133   : > { %v11166_v31 = vcombine.low %v2376_v15, %v2386_v43  ;;  %v11167_v54 = vcombine.low %v2400_v0, %v2410_v19  ;;  %v15355_v5 = vrot.slane %v2493_v27, 5  ;;  %v2499_v44 = vrot.slane %v2497_v20, 4  ;;  %v11129_v15 = vld [vmem:[%s14284_s10 + $0x84] sm:$0xf]  ;;  %v13884_v43 = vld [vmem:[%s18155_s2 + $0x158] sm:$0xff]  }
 0x134   : > { %v2424_v9 = vsel %vm14316_vm2, %v2419_v21, %v15306_v42  ;;  %v2434_v53 = vsel %vm14316_vm2, %v2429_v2, %v15339_v11  ;;  %v2448_v34 = vsel %vm14316_vm2, %v2443_v24, %v15312_v52  ;;  %v2490_v61 = vor.u32 %v2489_v6, %v2486_v30 }
 0x135   : > { %v15373_v42 = vrot.slane %v2517_v13, 5  ;;  %v2523_v19 = vrot.slane %v2521_v39, 4  ;;  %v2458_v11 = vsel %vm14316_vm2, %v2453_v35, %v2457_v56  ;;  %v2481_v52 = vrot.slane %v2479_v16, 5 }
 0x136   : > { %12599 = vmatmul.mubr.bf16.vlgmr.msra.gmra.mrb[0].mxu0 %v11164_v46  ;;  %v2511_v46 = vshll.u32 %v11126_v40, 16  ;;  %v2532_v21 = vshrl.u32 %v11129_v15, 16  ;;  %v2535_v2 = vshll.u32 %v11129_v15, 16  ;;  %v2541_v27 = vshll.u32 %v15121_v63, 16  ;;  %v13886_v15 = vld [vmem:[%s18155_s2 + $0x168] sm:$0xff]  }
 0x137   : > { %12631 = vmatpush3.bf16.msra.mxu0 %v15093_v22  ;;  %12602 = vmatprep.mubr.bf16.mxu0 %v11165_v7  ;;  %v2466_v22 = vor.u32 %v2465_v58, %v2462_v4  ;;  %v2476_v7 = vor.u32 %v2475_v3, %v15342_v25  ;;  %v15367_v4 = vld [vmem:[%s14284_s10 + $0x74] sm:$0x1]  ;;  %v2500_v3 = vor.u32 %v2499_v44, %v15355_v5  ;;  %v2545_v20 = vshrl.u32 %v15121_v63, 16 }
 0x138   : > { %12632 = vmatprep.subr.bf16.mxu0 %v13882_v48  ;;  %v2513_v0 = vrot.slane %v2511_v46, 5  ;;  %v2503_v40 = vshll.u32 %v15367_v4, 16  ;;  %v2491_v24 = vrot.slane %v2490_v61, 4  ;;  %v2524_v30 = vor.u32 %v2523_v19, %v15373_v42  ;;  %v11132_v46 = vld [vmem:[%s14284_s10 + $0x90] sm:$0xf] }
 0x139   : > { %v2467_v47 = vrot.slane %v2466_v22, 4  ;;  %v2477_v58 = vrot.slane %v2476_v7, 4  ;;  %v2527_v6 = vshll.u32 %v15102_v23, 16  ;;  %v11168_v13 = vcombine.low %v2424_v9, %v2434_v53 }
 0x13a   : > { %v11169_v39 = vcombine.low %v2448_v34, %v2458_v11  ;;  %v2501_v35 = vrot.slane %v2500_v3, 4  ;;  %v2505_v22 = vrot.slane %v2503_v40, 5  ;;  %v2534_v7 = vrot.slane %v2532_v21, 4 }
 0x13b   : > { %12633 = vmatpush3.bf16.msra.mxu0 %v13882_v48  ;;  %v2510_v48 = vrot.slane %v2508_v38, 4  ;;  %v13885_v38 = vld [vmem:[%s18155_s2 + $0x160] sm:$0xff]   ;;  %v2482_v63 = vsel %vm14316_vm2, %v2477_v58, %v2481_v52  ;;  %v2537_v16 = vrot.slane %v2535_v2, 5  ;;  %v15393_v23 = vrot.slane %v2541_v27, 5 }
 0x13c   : > { %12634 = vmatprep.subr.bf16.mxu0 %v13883_v10  ;;  %v2556_v44 = vshrl.u32 %v11132_v46, 16  ;;  %v2559_v61 = vshll.u32 %v11132_v46, 16  ;;  %v2496_v9 = vsel %vm14316_vm2, %v2491_v24, %v15355_v5  ;;  %v2529_v34 = vrot.slane %v2527_v6, 5 }
 0x13d   : > { %v2514_v56 = vor.u32 %v2513_v0, %v2510_v48  ;;  %v2565_v48 = vshll.u32 %v15135_v49, 16  ;;  %v2506_v11 = vsel %vm14316_vm2, %v2501_v35, %v2505_v22  ;;  %v2551_v5 = vshll.u32 %v15124_v59, 16  ;;  %v13888_v22 = vld [vmem:[%s18155_s2 + $0x178] sm:$0xff]  }
 0x13e   : > { %12603 = vmatmul.mubr.bf16.gmra.mrb[4].mxu0 %v11166_v31  ;;  %v11135_v31 = vld [vmem:[%s14284_s10 + $0x9c] sm:$0xf]  ;;  %v2593_v58 = vshrl.u32 %v15165_v14, 16  ;;  %v2538_v52 = vor.u32 %v2537_v16, %v2534_v7  ;;  %v2558_v40 = vrot.slane %v2556_v44, 4  ;;  %v11141_v44 = vld [vmem:[%s14284_s10 + $0xb4] sm:$0xf] }
 0x13f   : > { %12606 = vmatprep.mubr.bf16.mxu0 %v11167_v54  ;;  %12635 = vmatpush3.bf16.msra.mxu0 %v13883_v10  ;;  %v2472_v10 = vsel %vm14316_vm2, %v2467_v47, %v15342_v25  ;;  %v2547_v54 = vrot.slane %v2545_v20, 4  ;;  %v2515_v53 = vrot.slane %v2514_v56, 4  ;;  %v2525_v25 = vrot.slane %v2524_v30, 4 }
 0x140   : > { %12636 = vmatprep.subr.bf16.mxu0 %v13884_v43  ;;  %v2580_v0 = vshrl.u32 %v11135_v31, 16  ;;  %v2583_v19 = vshll.u32 %v11135_v31, 16  ;;  %v2589_v47 = vshll.u32 %v15165_v14, 16  ;;  %v11170_v21 = vcombine.low %v2472_v10, %v2482_v63  ;;  %v13887_v14 = vld [vmem:[%s18155_s2 + $0x170] sm:$0xff]  }
 0x141   : > { %v2548_v3 = vor.u32 %v2547_v54, %v15393_v23  ;;  %v2520_v2 = vsel %vm14316_vm2, %v2515_v53, %v15373_v42  ;;  %v2530_v59 = vsel %vm14316_vm2, %v2525_v25, %v2529_v34  ;;  %v15417_v27 = vrot.slane %v2565_v48, 5  ;;  %v11138_v42 = vld [vmem:[%s14284_s10 + $0xa8] sm:$0xf] }
 0x142   : > { %v2582_v24 = vrot.slane %v2580_v0, 4  ;;  %v2585_v56 = vrot.slane %v2583_v19, 5  ;;  %v11171_v30 = vcombine.low %v2496_v9, %v2506_v11  ;;  %v2553_v6 = vrot.slane %v2551_v5, 5 }
 0x143   : > { %12637 = vmatpush3.bf16.msra.mxu0 %v13884_v43  ;;  %v2569_v43 = vshrl.u32 %v15135_v49, 16  ;;  %v2561_v49 = vrot.slane %v2559_v61, 5  ;;  %v2595_v46 = vrot.slane %v2593_v58, 4  ;;  %v2575_v63 = vshll.u32 %v15140_v45, 16 }
 0x144   : > { %12638 = vmatprep.subr.bf16.mxu0 %v13885_v38  ;;  %v11172_v35 = vcombine.low %v2520_v2, %v2530_v59  ;;  %v2586_v16 = vor.u32 %v2585_v56, %v2582_v24  ;;  %v2599_v31 = vshll.u32 %v15168_v50, 16  ;;  %v2604_v54 = vshrl.u32 %v11138_v42, 16 }
 0x145   : > { %v2571_v20 = vrot.slane %v2569_v43, 4  ;;  %v2562_v10 = vor.u32 %v2561_v49, %v2558_v40  ;;  %v2607_v9 = vshll.u32 %v11138_v42, 16  ;;  %v2613_v45 = vshll.u32 %v15177_v12, 16 }
 0x146   : > { %12607 = vmatmul.mubr.bf16.gmra.mrb[8].mxu0 %v11168_v13  ;;  %v2539_v13 = vrot.slane %v2538_v52, 4  ;;  %v2617_v53 = vshrl.u32 %v15177_v12, 16  ;;  %v2577_v50 = vrot.slane %v2575_v63, 5  ;;  %v2628_v48 = vshrl.u32 %v11141_v44, 16  ;;  %v15442_v12 = vld [vmem:[%s18155_s2 + $0x180] sm:$0xff]  }
 0x147   : > { %12610 = vmatprep.mubr.bf16.mxu0 %v11169_v39  ;;  %12639 = vmatpush3.bf16.msra.mxu0 %v13885_v38  ;;  %v15419_v38 = vrot.slane %v2589_v47, 5  ;;  %v2549_v39 = vrot.slane %v2548_v3, 4  ;;  %v2572_v7 = vor.u32 %v2571_v20, %v15417_v27  ;;  %v2631_v43 = vshll.u32 %v11141_v44, 16 }
 0x148   : > { %12640 = vmatprep.subr.bf16.mxu0 %v13886_v15  ;;  %v2544_v25 = vsel %vm14316_vm2, %v2539_v13, %v15393_v23  ;;  %v2637_v0 = vshll.u32 %v15240_v32, 16  ;;  %v2641_v19 = vshrl.u32 %v15240_v32, 16  ;;  %v2587_v11 = vrot.slane %v2586_v16, 4 }
 0x149   : > { %v2596_v61 = vor.u32 %v2595_v46, %v15419_v38  ;;  %v2554_v34 = vsel %vm14316_vm2, %v2549_v39, %v2553_v6  ;;  %v2573_v23 = vrot.slane %v2572_v7, 4  ;;  %v2601_v5 = vrot.slane %v2599_v31, 5 }
 0x14a   : > { %v2606_v47 = vrot.slane %v2604_v54, 4  ;;  %v2609_v52 = vrot.slane %v2607_v9, 5  ;;  %v2615_v3 = vrot.slane %v2613_v45, 5  ;;  %v2619_v40 = vrot.slane %v2617_v53, 4 }
 0x14b   : > { %12641 = vmatpush3.bf16.msra.mxu0 %v13886_v15  ;;  %v2563_v15 = vrot.slane %v2562_v10, 4  ;;  %v2597_v58 = vrot.slane %v2596_v61, 4  ;;  %v11173_v49 = vcombine.low %v2544_v25, %v2554_v34  ;;  %v2633_v2 = vrot.slane %v2631_v43, 5 }
 0x14c   : > { %12642 = vmatprep.subr.bf16.mxu0 %v13887_v14  ;;  %v2639_v32 = vrot.slane %v2637_v0, 5  ;;  %v2643_v59 = vrot.slane %v2641_v19, 4  ;;  %v2578_v24 = vsel %vm14316_vm2, %v2573_v23, %v2577_v50  ;;  %v2623_v56 = vshll.u32 %v15182_v37, 16  ;;  %v14055_v0 = vld [vmem:[%s14284_s10 + $0x10] sm:$0xf] }
 0x14d   : > { %v2568_v20 = vsel %vm14316_vm2, %v2563_v15, %v15417_v27  ;;  %v2602_v6 = vsel %vm14316_vm2, %v2597_v58, %v2601_v5  ;;  %v2610_v46 = vor.u32 %v2609_v52, %v2606_v47  ;;  %v2620_v42 = vor.u32 %v2619_v40, %v2615_v3  ;;  %v11187_v23 = vld [vmem:[%s14284_s10 + $0xc] sm:$0xe]  ;;  %v14056_v40 = vld [vmem:[%s14284_s10 + $0x14] sm:$0x1] }
 0x14e   : > { %12611 = vmatmul.mubr.bf16.gmra.mrb[12].mxu0 %v11170_v21  ;;  %v2630_v21 = vrot.slane %v2628_v48, 4  ;;  %v2661_v27 = vshll.u32 %v15246_v8, 16  ;;  %v2665_v10 = vshrl.u32 %v15246_v8, 16  ;;  %v2647_v37 = vshll.u32 %v15243_v29, 16 }
 0x14f   : > { %12614 = vmatprep.mubr.bf16.mxu0 %v11171_v30  ;;  %12643 = vmatpush3.bf16.msra.mxu0 %v13887_v14  ;;  %v11144_v14 = vld [vmem:[%s14284_s10 + $0xc0] sm:$0xf]  ;;  %v2592_v30 = vsel %vm14316_vm2, %v2587_v11, %v15419_v38  ;;  %v2611_v16 = vrot.slane %v2610_v46, 4  ;;  %v2621_v38 = vrot.slane %v2620_v42, 4  ;;  %v2625_v31 = vrot.slane %v2623_v56, 5 }
 0x150   : > { %12644 = vmatprep.subr.bf16.mxu0 %v13888_v22  ;;  %v2652_v13 = vshrl.u32 %v11144_v14, 16  ;;  %v2655_v39 = vshll.u32 %v11144_v14, 16  ;;  %v2634_v63 = vor.u32 %v2633_v2, %v2630_v21  ;;  %v11175_v7 = vcombine.low %v2592_v30, %v2602_v6  ;;  %v14058_v56 = vld [vmem:[%s14284_s10 + $0x28] sm:$0xf]  ;;  %v11189_v6 = vld [vmem:[%s14284_s10 + $0x24] sm:$0xe] }
 0x151   : > { %v2663_v61 = vrot.slane %v2661_v27, 5  ;;  %v2667_v9 = vrot.slane %v2665_v10, 4  ;;  %v2649_v25 = vrot.slane %v2647_v37, 5  ;;  %v2616_v8 = vsel %vm14316_vm2, %v2611_v16, %v2615_v3  ;;  %v14059_v27 = vld [vmem:[%s14284_s10 + $0x20] sm:$0x1] }
 0x152   : > { %v2654_v54 = vrot.slane %v2652_v13, 4  ;;  %v2657_v44 = vrot.slane %v2655_v39, 5  ;;  %v2635_v45 = vrot.slane %v2634_v63, 4  ;;  %v2626_v29 = vsel %vm14316_vm2, %v2621_v38, %v2625_v31  ;;  %v14060_v37 = vld [vmem:[%s14284_s10 + $0x2c] sm:$0x1] }
 0x153   : > { %12645 = vmatpush3.bf16.msra.mxu0 %v13888_v22  ;;  %v2644_v22 = vor.u32 %v2643_v59, %v2639_v32  ;;  %v2668_v15 = vor.u32 %v2667_v9, %v2663_v61  ;;  %v2671_v50 = vshll.u32 %v15255_v33, 16  ;;  %v3063_v19 = vrot.slane %v14055_v0, 5  ;;  %v14061_v38 = vld [vmem:[%s14284_s10 + $0x34] sm:$0xf] }
 0x154   : > { %12678 = vmatprep.subr.bf16.mxu0 %v15442_v12  ;;  %v2658_v34 = vor.u32 %v2657_v44, %v2654_v54  ;;  %v2640_v48 = vsel %vm14316_vm2, %v2635_v45, %v2639_v32  ;;  %v11176_v11 = vcombine.low %v2616_v8, %v2626_v29  ;;  %v11203_v3 = vrot.slane %v11187_v23, 9  ;;  %v14057_v32 = vld [vmem:[%s14284_s10 + $0x1c] sm:$0xf]  ;;  %v11193_v23 = vld [vmem:[%s14284_s10 + $0x54] sm:$0xe] }
 0x155   : > { %v2645_v53 = vrot.slane %v2644_v22, 4  ;;  %v2669_v58 = vrot.slane %v2668_v15, 4  ;;  %v2673_v52 = vrot.slane %v2671_v50, 5  ;;  %v3065_v33 = vrot.slane %v3063_v19, 4  ;;  %v11191_v45 = vld [vmem:[%s14284_s10 + $0x3c] sm:$0xe] }
 0x156   : > { %12615 = vmatmul.mubr.bf16.gmra.mrb[16].mxu0 %v11172_v35  ;;  %v11174_v35 = vcombine.low %v2568_v20, %v2578_v24  ;;  %v2659_v47 = vrot.slane %v2658_v34, 4  ;;  %v3070_v59 = vrot.slane %v14057_v32, 5  ;;  %v3064_v14 = vsel %vm14649_vm5, %v11203_v3, %v3063_v19  ;;  %v11188_v24 = vld [vmem:[%s14284_s10 + $0x18] sm:$0xe]  ;;  %v13890_v15 = vld [vmem:[%s18155_s2 + $0x188] sm:$0xff]  }
 0x157   : > { %12618 = vmatprep.mubr.bf16.mxu0 %v11173_v49  ;;  %v2650_v43 = vsel %vm14316_vm2, %v2645_v53, %v2649_v25  ;;  %v3066_v49 = vrot.slane %v14056_v40, 5  ;;  %v2674_v2 = vsel %vm14316_vm2, %v2669_v58, %v2673_v52  ;;  %v3077_v30 = vrot.slane %v14058_v56, 5  ;;  %v13892_v3 = vld [vmem:[%s18155_s2 + $0x198] sm:$0xff]  }
 0x158   : > { %v11177_v5 = vcombine.low %v2640_v48, %v2650_v43  ;;  %v2664_v21 = vsel %vm14316_vm2, %v2659_v47, %v2663_v61  ;;  %v11204_v13 = vrot.slane %v11188_v24, 9  ;;  %v3072_v39 = vrot.slane %v3070_v59, 4  ;;  %v11190_v61 = vld [vmem:[%s14284_s10 + $0x30] sm:$0xe] }
 0x159   : > { %v3067_v20 = vsel %vm14649_vm5, %v3065_v33, %v3066_v49  ;;  %v11178_v46 = vcombine.low %v2664_v21, %v2674_v2  ;;  %v3073_v10 = vrot.slane %v14059_v27, 5  ;;  %v11205_v63 = vrot.slane %v11189_v6, 9  ;;  %v11195_v49 = vld [vmem:[%s14284_s10 + $0x6c] sm:$0xe] }
 0x15a   : > { %v11235_v42 = vcombine.low %v3064_v14, %v3067_v20  ;;  %v3079_v22 = vrot.slane %v3077_v30, 4  ;;  %v3084_v31 = vrot.slane %v14061_v38, 5  ;;  %v3091_v9 = vrot.slane %v15132_v17, 5  ;;  %v13894_v14 = vld [vmem:[%s18155_s2 + $0x1a8] sm:$0xff]  }
 0x15b   : > { %v3074_v16 = vsel %vm14649_vm5, %v3072_v39, %v3073_v10  ;;  %v3078_v54 = vsel %vm14649_vm5, %v11205_v63, %v3077_v30  ;;  %v11206_v8 = vrot.slane %v11190_v61, 9  ;;  %v3087_v34 = vrot.slane %v15048_v60, 5  ;;  %v13899_v30 = vld [vmem:[%s18155_s2 + $0x1c0] sm:$0xff]   ;;  %v18334_v6 = vld [vmem:[#allocation8_spill] sm:$0xff]  ;;  %v18338_v39 = vld [vmem:[#allocation10_spill] sm:$0xff] }
 0x15c   : > { %v3086_v29 = vrot.slane %v3084_v31, 4  ;;  %v11207_v50 = vrot.slane %v11191_v45, 9  ;;  %v3093_v48 = vrot.slane %v3091_v9, 4  ;;  %v3094_v43 = vrot.slane %v15217_v36, 5  ;;  %v13891_v36 = vld [vmem:[%s18155_s2 + $0x190] sm:$0xff]   ;;  %v18343_v63 = vld [vmem:[#allocation14_spill] sm:$0xff] }
 0x15d   : > { %v3085_v17 = vsel %vm14649_vm5, %v11206_v8, %v3084_v31  ;;  %v11209_v47 = vrot.slane %v11193_v23, 9  ;;  %v3108_v52 = vrot.slane %v15310_v41, 5  ;;  %v3119_v40 = vrot.slane %v15328_v62, 5  ;;  %v13893_v41 = vld [vmem:[%s18155_s2 + $0x1a0] sm:$0xff]   ;;  %v18349_v38 = vld [vmem:[#allocation16_spill] sm:$0xff]  ;;  %v18350_v31 = vld [vmem:[#allocation17_spill] sm:$0xff] }
 0x15e   : > { %12619 = vmatmul.mubr.bf16.gmra.mrb[20].mxu0 %v11174_v35  ;;  %v3080_v35 = vrot.slane %v14060_v37, 5  ;;  %v3088_v0 = vsel %vm14649_vm5, %v3086_v29, %v3087_v34  ;;  %v3092_v60 = vsel %vm14649_vm5, %v11207_v50, %v3091_v9  ;;  %v3095_v19 = vsel %vm14649_vm5, %v3093_v48, %v3094_v43  ;;  %v18352_v61 = vld [vmem:[#allocation18_spill] sm:$0xff]  ;;  %v18353_v9 = vld [vmem:[#allocation19_spill] sm:$0xff]  ;;  %v13902_v8 = vld [vmem:[%s18155_s2 + $0x1c8] sm:$0xff]  }
 0x15f   : > { %12622 = vmatprep.mubr.bf16.mxu0 %v11175_v7  ;;  %v3071_v7 = vsel %vm14649_vm5, %v11204_v13, %v3070_v59  ;;  %v11211_v2 = vrot.slane %v11195_v49, 9  ;;  %v3121_v32 = vrot.slane %v3119_v40, 4  ;;  %v3122_v59 = vrot.slane %v15367_v4, 5  ;;  %v13895_v4 = vld [vmem:[%s18155_s2 + $0x1b0] sm:$0xff]   ;;  %v13901_v34 = vld [vmem:[%s14284_s10 + $0x3c] sm:$0xff]  }
 0x160   : > { %v3081_v44 = vsel %vm14649_vm5, %v3079_v22, %v3080_v35  ;;  %v11236_v53 = vcombine.low %v3071_v7, %v3074_v16  ;;  %v18332_v20 = vcombine.low %v15041_v57, %v15045_v26  ;;  %v13896_v57 = vld [vmem:[%s18155_s2 + $0x1b8] sm:$0xff]   ;;  %v18333_v26 = vcombine.low %v15081_v18, %v15086_v28  ;;  %v18337_v13 = vld [vmem:[#allocation9_spill] sm:$0xff]  ;;  %v18340_v18 = vld [vmem:[#allocation11_spill] sm:$0xff] }
 0x161   : > { %v11237_v25 = vcombine.low %v3078_v54, %v3081_v44  ;;  %v3120_v62 = vsel %vm14649_vm5, %v11211_v2, %v3119_v40  ;;  %v3123_v24 = vsel %vm14649_vm5, %v3121_v32, %v3122_v59  ;;  %v18339_v27 = vcombine.low %v18337_v13, %v18338_v39  ;;  %v18341_v28 = vld [vmem:[#allocation13_spill] sm:$0xff]  ;;  %v18344_v22 = vld [vmem:[#allocation7_spill] sm:$0xff]  ;;  %v18346_v35 = vld [vmem:[#allocation6_spill] sm:$0xff] }
 0x162   : > { %v11243_v56 = vcombine.low %v3120_v62, %v3123_v24  ;;  %v18342_v10 = vcombine.low %v18340_v18, %v18341_v28  ;;  %v18345_v37 = vcombine.low %v18343_v63, %v18344_v22  ;;  %v18347_v7 = vld [vmem:[#allocation15_spill] sm:$0xff]  ;;  %v18351_v54 = vcombine.low %v18349_v38, %v18350_v31  ;;  %v13897_v44 = vld [vmem:[%s14284_s10 + $0x18] sm:$0xff]   ;;  %v13905_v29 = vld [vmem:[%s18155_s2 + $0x1d0] sm:$0xff]  }
 0x163   : > { %v18348_v16 = vcombine.low %v18346_v35, %v18347_v7  ;;  %v18354_v45 = vcombine.low %v18352_v61, %v18353_v9  ;;  %v13908_v50 = vld [vmem:[%s18155_s2 + $0x1d8] sm:$0xff]   ;;  %v15619_v40 = vld [vmem:[%s14284_s10 + $0x28] sm:$0xf]  ;;  %v15643_v18 = vld [vmem:[%s14284_s10 + $0x20] sm:$0x1] }
 0x164   : > { %v15589_v48 = vld [vmem:[%s14284_s10 + $0x58] sm:$0xf]  ;;  %v15592_v43 = vld [vmem:[%s14284_s10 + $0x5c] sm:$0x1]  ;;  %v3964_v62 = vshll.u32 %v15619_v40, 16  ;;  %v3968_v24 = vshrl.u32 %v15619_v40, 16 }
 0x165   : > { %v13909_v22 = vld [vmem:[%s14284_s10 + $0x78] sm:$0xff]   ;;  %v11337_v31 = vld [vmem:[%s14284_s10 + $0x30] sm:$0xf]  ;;  %v3950_v9 = vshll.u32 %v15643_v18, 16 }
 0x166   : > { %12623 = vmatmul.mubr.bf16.gmra.mrb[24].mxu0 %v11176_v11  ;;  %v11238_v11 = vcombine.low %v3085_v17, %v3088_v0  ;;  %v11424_v17 = vld [vmem:[%s14284_s10 + $0x54] sm:$0xe]  ;;  %v4737_v0 = vrot.slane %v15589_v48, 5  ;;  %v15653_v35 = vrot.slane %v3964_v62, 5  ;;  %v3970_v7 = vrot.slane %v3968_v24, 4  ;;  %v13920_v38 = vld [vmem:[%s18155_s2 + $0x1f8] sm:$0xff]  }
 0x167   : > { %12626 = vmatprep.mubr.bf16.mxu0 %v11177_v5  ;;  %v11239_v5 = vcombine.low %v3092_v60, %v3095_v19  ;;  %v4740_v60 = vrot.slane %v15592_v43, 5  ;;  %v13911_v19 = vld [vmem:[%s18155_s2 + $0x1e0] sm:$0xff]  }
 0x168   : > { %v4739_v23 = vrot.slane %v4737_v0, 4 }
 0x16e   : > { %12627 = vmatmul.mubr.bf16.gmra.mrb[28].mxu0 %v11178_v46  ;;  %v18335_v46 = vld [vmem:[#allocation12_spill] sm:$0xff] }
 0x16f   : > { %12646 = vmatprep.mubr.bf16.mxu0 %v11235_v42  ;;  %v18336_v42 = vcombine.low %v18334_v6, %v18335_v46 }
 0x176   : > { %12647 = vmatmul.mubr.bf16.vlgmr.msra.gmra.mrb[0].mxu0 %v11236_v53  ;;  %v13898_v53 = vld [vmem:[%s14284_s10 + $0x24] sm:$0xff]  }
 0x177   : > { %12679 = vmatpush3.bf16.msra.mxu0 %v15442_v12  ;;  %12650 = vmatprep.mubr.bf16.mxu0 %v11237_v25  ;;  %v3105_v12 = vrot.slane %v15268_v51, 5  ;;  %v13900_v25 = vld [vmem:[%s14284_s10 + $0x30] sm:$0xff]  }
 0x178   : > { %12680 = vmatprep.subr.bf16.mxu0 %v13890_v15 }
 0x179   : > { %v3107_v58 = vrot.slane %v3105_v12, 4  ;;  %v3106_v51 = vsel %vm14649_vm5, %v11209_v47, %v3105_v12  ;;  %v11331_v12 = vld [vmem:[%s14284_s10 + $0x18] sm:$0xf] }
 0x17a   : > { %v3934_v49 = vshll.u32 %v11331_v12, 16 }
 0x17b   : > { %12681 = vmatpush3.bf16.msra.mxu0 %v13890_v15  ;;  %v3109_v33 = vsel %vm14649_vm5, %v3107_v58, %v3108_v52  ;;  %v13903_v15 = vld [vmem:[%s14284_s10 + $0x48] sm:$0xff]   ;;  %v13906_v58 = vld [vmem:[%s14284_s10 + $0x60] sm:$0xff]  }
 0x17c   : > { %12682 = vmatprep.subr.bf16.mxu0 %v13891_v36  ;;  %v11241_v21 = vcombine.low %v3106_v51, %v3109_v33  ;;  %v11334_v52 = vld [vmem:[%s14284_s10 + $0x24] sm:$0xf]  ;;  %v13914_v51 = vld [vmem:[%s18155_s2 + $0x1e8] sm:$0xff]   ;;  %v3931_v33 = vshrl.u32 %v11331_v12, 16  ;;  %v3936_v46 = vrot.slane %v3934_v49, 5  ;;  %v3982_v49 = vshll.u32 %v11337_v31, 16 }
 0x17d   : > { %v3955_v32 = vshrl.u32 %v11334_v52, 16  ;;  %v3958_v59 = vshll.u32 %v11334_v52, 16  ;;  %v13910_v52 = vld [vmem:[%s14284_s10 + $0x84] sm:$0xff]  }
 0x17e   : > { %12651 = vmatmul.mubr.bf16.gmra.mrb[4].mxu0 %v11238_v11  ;;  %v13904_v11 = vld [vmem:[%s14284_s10 + $0x54] sm:$0xff]  }
 0x17f   : > { %12654 = vmatprep.mubr.bf16.mxu0 %v11239_v5  ;;  %12683 = vmatpush3.bf16.msra.mxu0 %v13891_v36  ;;  %v11440_v36 = vrot.slane %v11424_v17, 9  ;;  %v15603_v5 = vld [vmem:[%s14284_s10 + $0x1c] sm:$0xf]  ;;  %v3957_v28 = vrot.slane %v3955_v32, 4 }
 0x180   : > { %12684 = vmatprep.subr.bf16.mxu0 %v13892_v3  ;;  %v3944_v2 = vshrl.u32 %v15603_v5, 16 }
 0x181   : > { %v15607_v47 = vsel %vm14649_vm5, %v11440_v36, %v4737_v0  ;;  %v15681_v0 = vld [vmem:[%s18155_s2 + $0x200] sm:$0xff]  }
 0x182   : > { %18355 = vst [vmem:[#allocation8_spill] sm:$0xff] %v15607_v47  ;;  %v3946_v13 = vrot.slane %v3944_v2, 4  ;;  %v13912_v2 = vld [vmem:[%s14284_s10 + $0x90] sm:$0xff]  }
 0x183   : > { %12685 = vmatpush3.bf16.msra.mxu0 %v13892_v3  ;;  %v15613_v3 = vsel %vm14649_vm5, %v4739_v23, %v4740_v60  ;;  %v15684_v60 = vld [vmem:[%s14284_s10 + $0x34] sm:$0xf]  ;;  %v15690_v23 = vrot.slane %v3950_v9, 5  ;;  %v3984_v9 = vrot.slane %v3982_v49, 5  ;;  %v13919_v47 = vld [vmem:[%s14284_s10 + $0xcc] sm:$0xff]  }
 0x184   : > { %12686 = vmatprep.subr.bf16.mxu0 %v13893_v41  ;;  %18356 = vst [vmem:[#allocation12_spill] sm:$0xff] %v15613_v3  ;;  %v3988_v62 = vshll.u32 %v15684_v60, 16  ;;  %v15884_v3 = vld [vmem:[%s14284_s10 + $0x64] sm:$0xf] }
 0x185   : > { %18371 = vst [vmem:[#allocation22_spill] sm:$0xff] %v15884_v3 }
 0x186   : > { %12655 = vmatmul.mubr.bf16.gmra.mrb[8].mxu0 %v18332_v20  ;;  %v15629_v20 = vld [vmem:[%s14284_s10 + $0x74] sm:$0x1] }
 0x187   : > { %12658 = vmatprep.mubr.bf16.mxu0 %v11241_v21  ;;  %12687 = vmatpush3.bf16.msra.mxu0 %v13893_v41  ;;  %v3940_v21 = vshll.u32 %v15603_v5, 16  ;;  %v11432_v41 = vld [vmem:[%s14284_s10 + $0xb4] sm:$0xe] }
 0x188   : > { %12688 = vmatprep.subr.bf16.mxu0 %v13894_v14 }
 0x18b   : > { %12689 = vmatpush3.bf16.msra.mxu0 %v13894_v14  ;;  %v15626_v14 = vld [vmem:[%s14284_s10 + $0x70] sm:$0xf] }
 0x18c   : > { %12690 = vmatprep.subr.bf16.mxu0 %v13895_v4 }
 0x18e   : > { %12659 = vmatmul.mubr.bf16.gmra.mrb[12].mxu0 %v18333_v26  ;;  %v13917_v26 = vld [vmem:[%s18155_s2 + $0x1f0] sm:$0xff]  }
 0x18f   : > { %12662 = vmatprep.mubr.bf16.mxu0 %v11243_v56  ;;  %12691 = vmatpush3.bf16.msra.mxu0 %v13895_v4  ;;  %v11426_v4 = vld [vmem:[%s14284_s10 + $0x6c] sm:$0xe]  ;;  %v4751_v56 = vrot.slane %v15626_v14, 5 }
 0x190   : > { %12692 = vmatprep.subr.bf16.mxu0 %v13896_v57  ;;  %v11442_v6 = vrot.slane %v11426_v4, 9  ;;  %v3992_v4 = vshrl.u32 %v15684_v60, 16 }
 0x191   : > { %v4753_v39 = vrot.slane %v4751_v56, 4 }
 0x192   : > { %v15647_v63 = vsel %vm14649_vm5, %v11442_v6, %v4751_v56  ;;  %v15715_v56 = vld [vmem:[%s14284_s10 + $0x40] sm:$0xf]  ;;  %v15720_v6 = vld [vmem:[%s14284_s10 + $0x38] sm:$0x1] }
 0x193   : > { %12693 = vmatpush3.bf16.msra.mxu0 %v13896_v57  ;;  %v4754_v57 = vrot.slane %v15629_v20, 5  ;;  %18357 = vst [vmem:[#allocation9_spill] sm:$0xff] %v15647_v63 }
 0x194   : > { %12726 = vmatprep.subr.bf16.mxu0 %v13899_v30 }
 0x196   : > { %12663 = vmatmul.mubr.bf16.gmra.mrb[16].mxu0 %v18336_v42  ;;  %v15639_v42 = vrot.slane %v3940_v21, 5 }
 0x197   : > { %12666 = vmatprep.mubr.bf16.mxu0 %v18339_v27  ;;  %v13907_v27 = vld [vmem:[%s14284_s10 + $0x6c] sm:$0xff]  }
 0x198   : > { %v3947_v61 = vor.u32 %v3946_v13, %v15639_v42  ;;  %v15726_v13 = vld [vmem:[%s14284_s10 + $0x98] sm:$0x1] }
 0x19a   : > { %v15688_v12 = vrot.slane %v3947_v61, 4 }
 0x19e   : > { %12667 = vmatmul.mubr.bf16.gmra.mrb[20].mxu0 %v18342_v10  ;;  %v3960_v10 = vrot.slane %v3958_v59, 5 }
 0x19f   : > { %12670 = vmatprep.mubr.bf16.mxu0 %v18345_v37  ;;  %v15651_v37 = vld [vmem:[%s14284_s10 + $0x2c] sm:$0x1] }
 0x1a6   : > { %12671 = vmatmul.mubr.bf16.gmra.mrb[24].mxu0 %v18348_v16  ;;  %v15657_v16 = vsel %vm14649_vm5, %v4753_v39, %v4754_v57  ;;  %v15729_v39 = vld [vmem:[%s14284_s10 + $0xa0] sm:$0xf] }
 0x1a7   : > { %12674 = vmatprep.mubr.bf16.mxu0 %v18351_v54  ;;  %18358 = vst [vmem:[#allocation10_spill] sm:$0xff] %v15657_v16  ;;  %v11431_v54 = vld [vmem:[%s14284_s10 + $0xa8] sm:$0xe] }
 0x1ae   : > { %12675 = vmatmul.mubr.bf16.gmra.mrb[28].mxu0 %v18354_v45  ;;  %v3961_v45 = vor.u32 %v3960_v10, %v3957_v28  ;;  %v11429_v28 = vld [vmem:[%s14284_s10 + $0x90] sm:$0xe] }
 0x1af   : > { %12694 = vmatprep.mubr.bf16.mxu0 %v13897_v44 }
 0x1b6   : > { %12695 = vmatmul.mubr.bf16.vlgmr.msra.gmra.mrb[0].mxu0 %v13898_v53  ;;  %v3974_v53 = vshll.u32 %v15651_v37, 16 }
 0x1b7   : > { %12727 = vmatpush3.bf16.msra.mxu0 %v13899_v30  ;;  %12698 = vmatprep.mubr.bf16.mxu0 %v13900_v25  ;;  %v3933_v30 = vrot.slane %v3931_v33, 4  ;;  %v15669_v25 = vld [vmem:[%s14284_s10 + $0x88] sm:$0xf] }
 0x1b8   : > { %12728 = vmatprep.subr.bf16.mxu0 %v13902_v8  ;;  %v15696_v33 = vrot.slane %v3974_v53, 5 }
 0x1b9   : > { %v3937_v44 = vor.u32 %v3936_v46, %v3933_v30  ;;  %v15723_v46 = vld [vmem:[%s14284_s10 + $0x94] sm:$0xf]  ;;  %v15801_v30 = vld [vmem:[%s14284_s10 + $0xbc] sm:$0x1] }
 0x1ba   : > { %v4772_v10 = vrot.slane %v15723_v46, 5 }
 0x1bb   : > { %12729 = vmatpush3.bf16.msra.mxu0 %v13902_v8  ;;  %v15672_v8 = vld [vmem:[%s14284_s10 + $0x8c] sm:$0x1]  ;;  %v15686_v36 = vrot.slane %v3937_v44, 4  ;;  %v4779_v44 = vrot.slane %v15729_v39, 5 }
 0x1bc   : > { %12730 = vmatprep.subr.bf16.mxu0 %v13905_v29  ;;  %v4768_v17 = vrot.slane %v15672_v8, 5  ;;  %v4774_v53 = vrot.slane %v4772_v10, 4 }
 0x1be   : > { %12699 = vmatmul.mubr.bf16.gmra.mrb[4].mxu0 %v13901_v34  ;;  %v3979_v34 = vshrl.u32 %v11337_v31, 16  ;;  %v11430_v31 = vld [vmem:[%s14284_s10 + $0x9c] sm:$0xe] }
 0x1bf   : > { %12702 = vmatprep.mubr.bf16.mxu0 %v13903_v15  ;;  %12731 = vmatpush3.bf16.msra.mxu0 %v13905_v29  ;;  %v3971_v29 = vor.u32 %v3970_v7, %v15653_v35  ;;  %v11428_v15 = vld [vmem:[%s14284_s10 + $0x84] sm:$0xe]  ;;  %v4012_v7 = vshll.u32 %v15715_v56, 16 }
 0x1c0   : > { %12732 = vmatprep.subr.bf16.mxu0 %v13908_v50  ;;  %v15705_v59 = vrot.slane %v3979_v34, 4  ;;  %v3994_v34 = vrot.slane %v3992_v4, 4 }
 0x1c1   : > { %v15703_v32 = vrot.slane %v3971_v29, 4  ;;  %v11446_v29 = vrot.slane %v11430_v31, 9  ;;  %v15777_v31 = vld [vmem:[%s14284_s10 + $0x4c] sm:$0xf] }
 0x1c3   : > { %12733 = vmatpush3.bf16.msra.mxu0 %v13908_v50  ;;  %v4765_v50 = vrot.slane %v15669_v25, 5 }
 0x1c4   : > { %12734 = vmatprep.subr.bf16.mxu0 %v13911_v19 }
 0x1c6   : > { %12703 = vmatmul.mubr.bf16.gmra.mrb[8].mxu0 %v13904_v11  ;;  %v11340_v11 = vld [vmem:[%s14284_s10 + $0x3c] sm:$0xf] }
 0x1c7   : > { %12706 = vmatprep.mubr.bf16.mxu0 %v13906_v58  ;;  %12735 = vmatpush3.bf16.msra.mxu0 %v13911_v19  ;;  %v11444_v19 = vrot.slane %v11428_v15, 9  ;;  %v4767_v58 = vrot.slane %v4765_v50, 4  ;;  %v4003_v57 = vshrl.u32 %v11340_v11, 16  ;;  %v15744_v15 = vld [vmem:[%s14284_s10 + $0x44] sm:$0x1] }
 0x1c8   : > { %12736 = vmatprep.subr.bf16.mxu0 %v13914_v51  ;;  %18361 = vst [vmem:[#allocation14_spill] sm:$0xff] %v15744_v15 }
 0x1c9   : > { %v15700_v21 = vsel %vm14649_vm5, %v11444_v19, %v4765_v50  ;;  %v15710_v24 = vsel %vm14649_vm5, %v4767_v58, %v4768_v17  ;;  %v11343_v50 = vld [vmem:[%s14284_s10 + $0x48] sm:$0xf]  ;;  %v4781_v19 = vrot.slane %v4779_v44, 4  ;;  %v3998_v58 = vshll.u32 %v15720_v6, 16 }
 0x1ca   : > { %18359 = vst [vmem:[#allocation11_spill] sm:$0xff] %v15700_v21  ;;  %18360 = vst [vmem:[#allocation13_spill] sm:$0xff] %v15710_v24 }
 0x1cb   : > { %12737 = vmatpush3.bf16.msra.mxu0 %v13914_v51  ;;  %v15694_v51 = vrot.slane %v3961_v45, 4  ;;  %v15741_v45 = vrot.slane %v3988_v62, 5  ;;  %v13915_v62 = vld [vmem:[%s14284_s10 + $0xa8] sm:$0xff]  }
 0x1cc   : > { %12738 = vmatprep.subr.bf16.mxu0 %v13917_v26 }
 0x1ce   : > { %12707 = vmatmul.mubr.bf16.gmra.mrb[12].mxu0 %v13907_v27  ;;  %v15732_v27 = vld [vmem:[%s14284_s10 + $0xa4] sm:$0x1] }
 0x1cf   : > { %12710 = vmatprep.mubr.bf16.mxu0 %v13909_v22  ;;  %12739 = vmatpush3.bf16.msra.mxu0 %v13917_v26  ;;  %v4006_v26 = vshll.u32 %v11340_v11, 16  ;;  %v4775_v22 = vrot.slane %v15726_v13, 5  ;;  %v4782_v61 = vrot.slane %v15732_v27, 5  ;;  %v13913_v11 = vld [vmem:[%s14284_s10 + $0x9c] sm:$0xff]  }
 0x1d0   : > { %12740 = vmatprep.subr.bf16.mxu0 %v13920_v38 }
 0x1d1   : > { %v15757_v49 = vsel %vm14649_vm5, %v4774_v53, %v4775_v22  ;;  %v15764_v4 = vrot.slane %v4006_v26, 5  ;;  %v4016_v22 = vshrl.u32 %v15715_v56, 16  ;;  %v3985_v53 = vor.u32 %v3984_v9, %v15705_v59 }
 0x1d2   : > { %18363 = vst [vmem:[#allocation6_spill] sm:$0xff] %v15757_v49  ;;  %v3953_v26 = vsel %vm14316_vm2, %v15688_v12, %v15690_v23  ;;  %v4030_v59 = vshll.u32 %v11343_v50, 16  ;;  %v11447_v9 = vrot.slane %v11431_v54, 9  ;;  %v4036_v12 = vshll.u32 %v15777_v31, 16 }
 0x1d3   : > { %12741 = vmatpush3.bf16.msra.mxu0 %v13920_v38  ;;  %v11445_v38 = vrot.slane %v11429_v28, 9  ;;  %v15766_v28 = vrot.slane %v4012_v7, 5  ;;  %v3943_v7 = vsel %vm14316_vm2, %v15686_v36, %v15639_v42  ;;  %v4040_v23 = vshrl.u32 %v15777_v31, 16 }
 0x1d4   : > { %12774 = vmatprep.subr.bf16.mxu0 %v15681_v0  ;;  %v15811_v49 = vrot.slane %v3985_v53, 4  ;;  %v4018_v21 = vrot.slane %v4016_v22, 4 }
 0x1d5   : > { %v15749_v17 = vsel %vm14649_vm5, %v11445_v38, %v4772_v10  ;;  %v15772_v10 = vsel %vm14649_vm5, %v4781_v19, %v4782_v61  ;;  %v4022_v38 = vshll.u32 %v15744_v15, 16  ;;  %v15787_v61 = vld [vmem:[%s14284_s10 + $0xac] sm:$0xf]  ;;  %v15793_v19 = vld [vmem:[%s14284_s10 + $0xb8] sm:$0xf]  ;;  %v4060_v15 = vshll.u32 %v15589_v48, 16 }
 0x1d6   : > { %12711 = vmatmul.mubr.bf16.gmra.mrb[16].mxu0 %v13910_v52  ;;  %18362 = vst [vmem:[#allocation7_spill] sm:$0xff] %v15749_v17  ;;  %v15753_v52 = vrot.slane %v4003_v57, 4  ;;  %18365 = vst [vmem:[#allocation16_spill] sm:$0xff] %v15772_v10  ;;  %v3995_v57 = vor.u32 %v3994_v34, %v15741_v45  ;;  %v4786_v42 = vrot.slane %v15787_v61, 5  ;;  %v4796_v10 = vrot.slane %v15801_v30, 5 }
 0x1d7   : > { %12714 = vmatprep.mubr.bf16.mxu0 %v13912_v2  ;;  %v15761_v2 = vsel %vm14649_vm5, %v11446_v29, %v4779_v44  ;;  %v4027_v44 = vshrl.u32 %v11343_v50, 16  ;;  %v15790_v29 = vld [vmem:[%s14284_s10 + $0xb0] sm:$0x1]  ;;  %v15813_v17 = vrot.slane %v3998_v58, 5  ;;  %v13918_v58 = vld [vmem:[%s14284_s10 + $0xc0] sm:$0xff]   ;;  %v15831_v53 = vrot.slane %v4022_v38, 5 }
 0x1d8   : > { %18364 = vst [vmem:[#allocation15_spill] sm:$0xff] %v15761_v2  ;;  %v4789_v36 = vrot.slane %v15790_v29, 5  ;;  %v4788_v34 = vrot.slane %v4786_v42, 4  ;;  %v11448_v2 = vrot.slane %v11432_v41, 9  ;;  %v15817_v54 = vsel %vm14649_vm5, %v11447_v9, %v4786_v42  ;;  %v11346_v9 = vld [vmem:[%s14284_s10 + $0x54] sm:$0xf] }
 0x1d9   : > { %18366 = vst [vmem:[#allocation17_spill] sm:$0xff] %v15817_v54  ;;  %v15820_v24 = vrot.slane %v3995_v57, 4  ;;  %v4029_v42 = vrot.slane %v4027_v44, 4  ;;  %v11395_v44 = vcombine.low %v3943_v7, %v3953_v26  ;;  %v3967_v57 = vsel %vm14316_vm2, %v15694_v51, %v15653_v35  ;;  %v15872_v26 = vld [vmem:[%s14284_s10 + $0xd4] sm:$0x1] }
 0x1da   : > { %v15824_v16 = vsel %vm14649_vm5, %v4788_v34, %v4789_v36  ;;  %v15841_v36 = vld [vmem:[%s14284_s10 + $0x50] sm:$0x1]  ;;  %v4042_v34 = vrot.slane %v4040_v23, 4  ;;  %v15861_v23 = vld [vmem:[%s14284_s10 + $0xc8] sm:$0x1]  ;;  %v3991_v35 = vsel %vm14316_vm2, %v15811_v49, %v15741_v45  ;;  %v4019_v51 = vor.u32 %v4018_v21, %v15766_v28 }
 0x1db   : > { %18367 = vst [vmem:[#allocation18_spill] sm:$0xff] %v15824_v16  ;;  %18370 = vst [vmem:[#allocation21_spill] sm:$0xff] %v15841_v36  ;;  %v4046_v21 = vshll.u32 %v15841_v36, 16  ;;  %v11349_v49 = vld [vmem:[%s14284_s10 + $0x60] sm:$0xf]  ;;  %v4054_v63 = vshll.u32 %v11346_v9, 16 }
 0x1de   : > { %12715 = vmatmul.mubr.bf16.gmra.mrb[20].mxu0 %v13913_v11  ;;  %v4793_v11 = vrot.slane %v15793_v19, 5 }
 0x1df   : > { %12718 = vmatprep.mubr.bf16.mxu0 %v13915_v62  ;;  %v13916_v62 = vld [vmem:[%s14284_s10 + $0xb4] sm:$0xff]  }
 0x1e0   : > { %v4795_v50 = vrot.slane %v4793_v11, 4  ;;  %v15828_v41 = vsel %vm14649_vm5, %v11448_v2, %v4793_v11  ;;  %v4032_v2 = vrot.slane %v4030_v59, 5  ;;  %v15843_v11 = vrot.slane %v4036_v12, 5  ;;  %v15858_v12 = vld [vmem:[%s14284_s10 + $0xc4] sm:$0xf] }
 0x1e1   : > { %18368 = vst [vmem:[#allocation19_spill] sm:$0xff] %v15828_v41  ;;  %v4009_v59 = vor.u32 %v15764_v4, %v15753_v52  ;;  %v4803_v52 = vrot.slane %v15861_v23, 5  ;;  %v4051_v4 = vshrl.u32 %v11346_v9, 16 }
 0x1e2   : > { %v15838_v22 = vsel %vm14649_vm5, %v4795_v50, %v4796_v10  ;;  %v3977_v10 = vsel %vm14316_vm2, %v15703_v32, %v15696_v33  ;;  %v15864_v50 = vld [vmem:[%s14284_s10 + $0xd0] sm:$0xf]  ;;  %v11433_v33 = vld [vmem:[%s14284_s10 + $0xc0] sm:$0xe]  ;;  %v4800_v32 = vrot.slane %v15858_v12, 5  ;;  %v4033_v45 = vor.u32 %v4032_v2, %v4029_v42 }
 0x1e3   : > { %18369 = vst [vmem:[#allocation20_spill] sm:$0xff] %v15838_v22  ;;  %v11449_v7 = vrot.slane %v11433_v33, 9  ;;  %v4807_v38 = vrot.slane %v15864_v50, 5  ;;  %v4810_v22 = vrot.slane %v15872_v26, 5  ;;  %v4043_v54 = vor.u32 %v4042_v34, %v15843_v11 }
 0x1e4   : > { %v4802_v41 = vrot.slane %v4800_v32, 4  ;;  %v4064_v42 = vshrl.u32 %v15589_v48, 16  ;;  %v4075_v34 = vshrl.u32 %v11349_v49, 16  ;;  %v4001_v48 = vsel %vm14316_vm2, %v15820_v24, %v15813_v17 }
 0x1e5   : > { %v4809_v33 = vrot.slane %v4807_v38, 4  ;;  %v4056_v24 = vrot.slane %v4054_v63, 5  ;;  %v15922_v17 = vrot.slane %v4060_v15, 5  ;;  %v4108_v15 = vshll.u32 %v15626_v14, 16 }
 0x1e6   : > { %12719 = vmatmul.mubr.bf16.gmra.mrb[24].mxu0 %v13916_v62  ;;  %v11434_v62 = vld [vmem:[%s14284_s10 + $0xcc] sm:$0xe]  ;;  %v15895_v2 = vsel %vm14649_vm5, %v4802_v41, %v4803_v52  ;;  %v15911_v41 = vrot.slane %v4009_v59, 4  ;;  %v4084_v52 = vshll.u32 %v15884_v3, 16  ;;  %v4066_v59 = vrot.slane %v4064_v42, 4 }
 0x1e7   : > { %12722 = vmatprep.mubr.bf16.mxu0 %v13918_v58  ;;  %v11450_v16 = vrot.slane %v11434_v62, 9  ;;  %v15888_v58 = vsel %vm14649_vm5, %v11449_v7, %v4800_v32  ;;  %18373 = vst [vmem:[#allocation24_spill] sm:$0xff] %v15895_v2  ;;  %v4078_v62 = vshll.u32 %v11349_v49, 16  ;;  %v15905_v7 = vsel %vm14649_vm5, %v4809_v33, %v4810_v22  ;;  %v11352_v33 = vld [vmem:[%s14284_s10 + $0x6c] sm:$0xf] }
 0x1e8   : > { %18372 = vst [vmem:[#allocation23_spill] sm:$0xff] %v15888_v58  ;;  %18375 = vst [vmem:[#allocation26_spill] sm:$0xff] %v15905_v7  ;;  %v15918_v49 = vrot.slane %v4046_v21, 5  ;;  %v4053_v32 = vrot.slane %v4051_v4, 4  ;;  %v4088_v22 = vshrl.u32 %v15884_v3, 16  ;;  %v4034_v2 = vrot.slane %v4033_v45, 4 }
 0x1e9   : > { %v15899_v9 = vsel %vm14649_vm5, %v11450_v16, %v4807_v38  ;;  %v15916_v38 = vrot.slane %v4019_v51, 4  ;;  %v4044_v58 = vrot.slane %v4043_v54, 4  ;;  %v4070_v16 = vshll.u32 %v15592_v43, 16  ;;  %v15926_v4 = vld [vmem:[%s14284_s10 + $0x68] sm:$0x1] }
 0x1ea   : > { %18374 = vst [vmem:[#allocation25_spill] sm:$0xff] %v15899_v9  ;;  %v4077_v51 = vrot.slane %v4075_v34, 4  ;;  %v4080_v7 = vrot.slane %v4078_v62, 5  ;;  %v11396_v21 = vcombine.low %v3967_v57, %v3977_v10  ;;  %v11397_v9 = vcombine.low %v3991_v35, %v4001_v48  ;;  %v15944_v34 = vld [vmem:[%s14284_s10 + $0x7c] sm:$0xf] }
 0x1eb   : > { %v15928_v3 = vrot.slane %v4084_v52, 5  ;;  %v4099_v36 = vshrl.u32 %v11352_v33, 16  ;;  %v4090_v45 = vrot.slane %v4088_v22, 4  ;;  %v4102_v63 = vshll.u32 %v11352_v33, 16  ;;  %v11358_v33 = vld [vmem:[%s14284_s10 + $0x84] sm:$0xf] }
 0x1ec   : > { %v4015_v43 = vsel %vm14316_vm2, %v15911_v41, %v15766_v28  ;;  %v4025_v54 = vsel %vm14316_vm2, %v15916_v38, %v15831_v53  ;;  %v4057_v57 = vor.u32 %v4056_v24, %v4053_v32  ;;  %v4067_v10 = vor.u32 %v4066_v59, %v15922_v17  ;;  %v13922_v28 = vld [vmem:[%s18155_s2 + $0x208] sm:$0xff]  }
 0x1ed   : > { %v4081_v35 = vor.u32 %v4080_v7, %v4077_v51  ;;  %v4094_v42 = vshll.u32 %v15926_v4, 16  ;;  %v4039_v48 = vsel %vm14316_vm2, %v4034_v2, %v15843_v11  ;;  %v4049_v53 = vsel %vm14316_vm2, %v4044_v58, %v15918_v49  ;;  %v13923_v49 = vld [vmem:[%s18155_s2 + $0x210] sm:$0xff]  }
 0x1ee   : > { %12723 = vmatmul.mubr.bf16.gmra.mrb[28].mxu0 %v13919_v47  ;;  %v11355_v47 = vld [vmem:[%s14284_s10 + $0x78] sm:$0xf]  ;;  %v15955_v32 = vrot.slane %v4070_v16, 5  ;;  %v4101_v7 = vrot.slane %v4099_v36, 4  ;;  %v4091_v41 = vor.u32 %v4090_v45, %v15928_v3  ;;  %v4104_v52 = vrot.slane %v4102_v63, 5 }
 0x1ef   : > { %12742 = vmatprep.mubr.bf16.mxu0 %v11395_v44  ;;  %v4112_v44 = vshrl.u32 %v15626_v14, 16  ;;  %v4123_v14 = vshrl.u32 %v11355_v47, 16  ;;  %v4126_v62 = vshll.u32 %v11355_v47, 16  ;;  %v15958_v38 = vrot.slane %v4108_v15, 5 }
 0x1f0   : > { %v4058_v24 = vrot.slane %v4057_v57, 4  ;;  %v4068_v59 = vrot.slane %v4067_v10, 4  ;;  %v4132_v51 = vshll.u32 %v15944_v34, 16  ;;  %v4136_v11 = vshrl.u32 %v15944_v34, 16 }
 0x1f1   : > { %v4114_v22 = vrot.slane %v4112_v44, 4  ;;  %v4082_v58 = vrot.slane %v4081_v35, 4  ;;  %v4096_v2 = vrot.slane %v4094_v42, 5  ;;  %v4125_v36 = vrot.slane %v4123_v14, 4 }
 0x1f2   : > { %v4128_v16 = vrot.slane %v4126_v62, 5  ;;  %v4147_v47 = vshrl.u32 %v11358_v33, 16  ;;  %v4156_v45 = vshll.u32 %v15669_v25, 16  ;;  %v4160_v63 = vshrl.u32 %v15669_v25, 16 }
 0x1f3   : > { %v4092_v15 = vrot.slane %v4091_v41, 4  ;;  %v4118_v44 = vshll.u32 %v15629_v20, 16  ;;  %v11398_v57 = vcombine.low %v4015_v43, %v4025_v54  ;;  %v11399_v10 = vcombine.low %v4039_v48, %v4049_v53  ;;  %v11361_v43 = vld [vmem:[%s14284_s10 + $0x90] sm:$0xf]  ;;  %v13924_v54 = vld [vmem:[%s18155_s2 + $0x218] sm:$0xff]  }
 0x1f4   : > { %v15971_v35 = vrot.slane %v4132_v51, 5  ;;  %v4138_v42 = vrot.slane %v4136_v11, 4  ;;  %v4063_v14 = vsel %vm14316_vm2, %v4058_v24, %v15922_v17  ;;  %v4073_v25 = vsel %vm14316_vm2, %v4068_v59, %v15955_v32 }
 0x1f5   : > { %v4087_v62 = vsel %vm14316_vm2, %v4082_v58, %v15928_v3  ;;  %v4129_v20 = vor.u32 %v4128_v16, %v4125_v36  ;;  %v15989_v17 = vrot.slane %v4156_v45, 5  ;;  %v4162_v53 = vrot.slane %v4160_v63, 4 }
 0x1f6   : > { %12743 = vmatmul.mubr.bf16.vlgmr.msra.gmra.mrb[0].mxu0 %v11396_v21  ;;  %v4150_v21 = vshll.u32 %v11358_v33, 16  ;;  %v4097_v32 = vsel %vm14316_vm2, %v4092_v15, %v4096_v2  ;;  %v4120_v3 = vrot.slane %v4118_v44, 5  ;;  %v4171_v24 = vshrl.u32 %v11361_v43, 16 }
 0x1f7   : > { %12775 = vmatpush3.bf16.msra.mxu0 %v15681_v0  ;;  %12746 = vmatprep.mubr.bf16.mxu0 %v11397_v9  ;;  %v4105_v0 = vor.u32 %v4104_v52, %v4101_v7  ;;  %v4115_v9 = vor.u32 %v4114_v22, %v15958_v38  ;;  %v15983_v7 = vld [vmem:[%s14284_s10 + $0x80] sm:$0x1]  ;;  %v4139_v22 = vor.u32 %v4138_v42, %v15971_v35  ;;  %v4174_v59 = vshll.u32 %v11361_v43, 16  ;;  %v13926_v43 = vld [vmem:[%s18155_s2 + $0x228] sm:$0xff]  }
 0x1f8   : > { %12776 = vmatprep.subr.bf16.mxu0 %v13922_v28  ;;  %v4152_v48 = vrot.slane %v4150_v21, 5  ;;  %v4142_v33 = vshll.u32 %v15983_v7, 16  ;;  %v4180_v51 = vshll.u32 %v15723_v46, 16  ;;  %v4184_v11 = vshrl.u32 %v15723_v46, 16  ;;  %v11364_v21 = vld [vmem:[%s14284_s10 + $0x9c] sm:$0xf] }
 0x1f9   : > { %v4106_v41 = vrot.slane %v4105_v0, 4  ;;  %v4116_v52 = vrot.slane %v4115_v9, 4  ;;  %v4130_v58 = vrot.slane %v4129_v20, 4  ;;  %v4163_v36 = vor.u32 %v4162_v53, %v15989_v17 }
 0x1fa   : > { %v4166_v16 = vshll.u32 %v15672_v8, 16  ;;  %v11400_v45 = vcombine.low %v4063_v14, %v4073_v25  ;;  %v11401_v63 = vcombine.low %v4087_v62, %v4097_v32  ;;  %v4140_v15 = vrot.slane %v4139_v22, 4 }
 0x1fb   : > { %12777 = vmatpush3.bf16.msra.mxu0 %v13922_v28  ;;  %v4149_v28 = vrot.slane %v4147_v47, 4  ;;  %v13925_v47 = vld [vmem:[%s18155_s2 + $0x220] sm:$0xff]   ;;  %v4121_v46 = vsel %vm14316_vm2, %v4116_v52, %v4120_v3  ;;  %v4144_v0 = vrot.slane %v4142_v33, 5  ;;  %v4173_v9 = vrot.slane %v4171_v24, 4 }
 0x1fc   : > { %12778 = vmatprep.subr.bf16.mxu0 %v13923_v49  ;;  %v4176_v44 = vrot.slane %v4174_v59, 5  ;;  %v16009_v8 = vrot.slane %v4180_v51, 5  ;;  %v4195_v42 = vshrl.u32 %v11364_v21, 16  ;;  %v4198_v20 = vshll.u32 %v11364_v21, 16 }
 0x1fd   : > { %v4153_v2 = vor.u32 %v4152_v48, %v4149_v28  ;;  %v4135_v14 = vsel %vm14316_vm2, %v4130_v58, %v15971_v35  ;;  %v4168_v62 = vrot.slane %v4166_v16, 5  ;;  %v4204_v28 = vshll.u32 %v15729_v39, 16 }
 0x1fe   : > { %12747 = vmatmul.mubr.bf16.gmra.mrb[4].mxu0 %v11398_v57  ;;  %v11367_v57 = vld [vmem:[%s14284_s10 + $0xa8] sm:$0xf]  ;;  %v4145_v32 = vsel %vm14316_vm2, %v4140_v15, %v4144_v0  ;;  %v4190_v35 = vshll.u32 %v15726_v13, 16  ;;  %v4232_v52 = vshrl.u32 %v15787_v61, 16  ;;  %v4177_v3 = vor.u32 %v4176_v44, %v4173_v9  ;;  %v13928_v0 = vld [vmem:[%s18155_s2 + $0x238] sm:$0xff]  }
 0x1ff   : > { %12750 = vmatprep.mubr.bf16.mxu0 %v11399_v10  ;;  %12779 = vmatpush3.bf16.msra.mxu0 %v13923_v49  ;;  %v4111_v49 = vsel %vm14316_vm2, %v4106_v41, %v15958_v38  ;;  %v4186_v10 = vrot.slane %v4184_v11, 4  ;;  %v4154_v25 = vrot.slane %v4153_v2, 4  ;;  %v4164_v38 = vrot.slane %v4163_v36, 4 }
 0x200   : > { %12780 = vmatprep.subr.bf16.mxu0 %v13924_v54  ;;  %v4219_v48 = vshrl.u32 %v11367_v57, 16  ;;  %v4222_v53 = vshll.u32 %v11367_v57, 16  ;;  %v4228_v41 = vshll.u32 %v15787_v61, 16  ;;  %v4197_v33 = vrot.slane %v4195_v42, 4  ;;  %v13927_v61 = vld [vmem:[%s18155_s2 + $0x230] sm:$0xff]  }
 0x201   : > { %v4187_v22 = vor.u32 %v4186_v10, %v16009_v8  ;;  %v11402_v24 = vcombine.low %v4111_v49, %v4121_v46  ;;  %v4159_v59 = vsel %vm14316_vm2, %v4154_v25, %v15989_v17  ;;  %v4169_v13 = vsel %vm14316_vm2, %v4164_v38, %v4168_v62  ;;  %v11370_v17 = vld [vmem:[%s14284_s10 + $0xb4] sm:$0xf]  ;;  %v11373_v42 = vld [vmem:[%s14284_s10 + $0xc0] sm:$0xf] }
 0x202   : > { %v16033_v51 = vrot.slane %v4204_v28, 5  ;;  %v4221_v58 = vrot.slane %v4219_v48, 4  ;;  %v4224_v2 = vrot.slane %v4222_v53, 5  ;;  %v11403_v36 = vcombine.low %v4135_v14, %v4145_v32 }
 0x203   : > { %12781 = vmatpush3.bf16.msra.mxu0 %v13924_v54  ;;  %v4208_v54 = vshrl.u32 %v15729_v39, 16  ;;  %v4200_v39 = vrot.slane %v4198_v20, 5  ;;  %v4192_v16 = vrot.slane %v4190_v35, 5  ;;  %v4234_v21 = vrot.slane %v4232_v52, 4 }
 0x204   : > { %12782 = vmatprep.subr.bf16.mxu0 %v13925_v47  ;;  %v4214_v46 = vshll.u32 %v15732_v27, 16  ;;  %v11404_v15 = vcombine.low %v4159_v59, %v4169_v13  ;;  %v4225_v44 = vor.u32 %v4224_v2, %v4221_v58  ;;  %v4238_v57 = vshll.u32 %v15790_v29, 16 }
 0x205   : > { %v4210_v11 = vrot.slane %v4208_v54, 4  ;;  %v4201_v49 = vor.u32 %v4200_v39, %v4197_v33  ;;  %v4243_v10 = vshrl.u32 %v11370_v17, 16  ;;  %v4246_v14 = vshll.u32 %v11370_v17, 16 }
 0x206   : > { %12751 = vmatmul.mubr.bf16.gmra.mrb[8].mxu0 %v11400_v45  ;;  %v4178_v45 = vrot.slane %v4177_v3, 4  ;;  %v4252_v27 = vshll.u32 %v15793_v19, 16  ;;  %v4256_v25 = vshrl.u32 %v15793_v19, 16  ;;  %v4216_v29 = vrot.slane %v4214_v46, 5 }
 0x207   : > { %12754 = vmatprep.mubr.bf16.mxu0 %v11401_v63  ;;  %12783 = vmatpush3.bf16.msra.mxu0 %v13925_v47  ;;  %v16035_v47 = vrot.slane %v4228_v41, 5  ;;  %v4188_v63 = vrot.slane %v4187_v22, 4  ;;  %v4211_v9 = vor.u32 %v4210_v11, %v16033_v51  ;;  %v4267_v28 = vshrl.u32 %v11373_v42, 16 }
 0x208   : > { %12784 = vmatprep.subr.bf16.mxu0 %v13926_v43  ;;  %v4183_v38 = vsel %vm14316_vm2, %v4178_v45, %v16009_v8  ;;  %v4270_v54 = vshll.u32 %v11373_v42, 16  ;;  %v4276_v48 = vshll.u32 %v15858_v12, 16  ;;  %v4280_v53 = vshrl.u32 %v15858_v12, 16 }
 0x209   : > { %v4235_v20 = vor.u32 %v4234_v21, %v16035_v47  ;;  %v4193_v62 = vsel %vm14316_vm2, %v4188_v63, %v4192_v16  ;;  %v4212_v19 = vrot.slane %v4211_v9, 4  ;;  %v4226_v32 = vrot.slane %v4225_v44, 4 }
 0x20a   : > { %v4240_v35 = vrot.slane %v4238_v57, 5  ;;  %v4245_v41 = vrot.slane %v4243_v10, 4  ;;  %v4248_v8 = vrot.slane %v4246_v14, 5  ;;  %v4254_v3 = vrot.slane %v4252_v27, 5 }
 0x20b   : > { %12785 = vmatpush3.bf16.msra.mxu0 %v13926_v43  ;;  %v4202_v43 = vrot.slane %v4201_v49, 4  ;;  %v4236_v52 = vrot.slane %v4235_v20, 4  ;;  %v4258_v22 = vrot.slane %v4256_v25, 4  ;;  %v11405_v33 = vcombine.low %v4183_v38, %v4193_v62 }
 0x20c   : > { %12786 = vmatprep.subr.bf16.mxu0 %v13927_v61  ;;  %v4269_v39 = vrot.slane %v4267_v28, 4  ;;  %v4278_v59 = vrot.slane %v4276_v48, 5  ;;  %v4282_v13 = vrot.slane %v4280_v53, 4  ;;  %v4217_v11 = vsel %vm14316_vm2, %v4212_v19, %v4216_v29  ;;  %v11419_v48 = vld [vmem:[%s14284_s10 + $0x18] sm:$0xe] }
 0x20d   : > { %v4207_v12 = vsel %vm14316_vm2, %v4202_v43, %v16033_v51  ;;  %v4262_v58 = vshll.u32 %v15801_v30, 16  ;;  %v4231_v2 = vsel %vm14316_vm2, %v4226_v32, %v16035_v47  ;;  %v4249_v16 = vor.u32 %v4248_v8, %v4245_v41 }
 0x20e   : > { %12755 = vmatmul.mubr.bf16.gmra.mrb[12].mxu0 %v11402_v24  ;;  %v4272_v24 = vrot.slane %v4270_v54, 5  ;;  %v4259_v21 = vor.u32 %v4258_v22, %v4254_v3  ;;  %v4300_v51 = vshll.u32 %v15864_v50, 16  ;;  %v4304_v63 = vshrl.u32 %v15864_v50, 16 }
 0x20f   : > { %12758 = vmatprep.mubr.bf16.mxu0 %v11403_v36  ;;  %12787 = vmatpush3.bf16.msra.mxu0 %v13927_v61  ;;  %v11376_v61 = vld [vmem:[%s14284_s10 + $0xcc] sm:$0xf]  ;;  %v4241_v36 = vsel %vm14316_vm2, %v4236_v52, %v4240_v35  ;;  %v4283_v46 = vor.u32 %v4282_v13, %v4278_v59  ;;  %v4286_v30 = vshll.u32 %v15861_v23, 16  ;;  %v4250_v9 = vrot.slane %v4249_v16, 4 }
 0x210   : > { %12788 = vmatprep.subr.bf16.mxu0 %v13928_v0  ;;  %v4291_v17 = vshrl.u32 %v11376_v61, 16  ;;  %v4294_v45 = vshll.u32 %v11376_v61, 16  ;;  %v4273_v49 = vor.u32 %v4272_v24, %v4269_v39  ;;  %v4260_v47 = vrot.slane %v4259_v21, 4  ;;  %v11420_v24 = vld [vmem:[%s14284_s10 + $0x24] sm:$0xe] }
 0x211   : > { %v4264_v44 = vrot.slane %v4262_v58, 5  ;;  %v4302_v42 = vrot.slane %v4300_v51, 5  ;;  %v4306_v20 = vrot.slane %v4304_v63, 4  ;;  %v4284_v27 = vrot.slane %v4283_v46, 4 }
 0x212   : > { %v4293_v57 = vrot.slane %v4291_v17, 4  ;;  %v4296_v10 = vrot.slane %v4294_v45, 5  ;;  %v4274_v14 = vrot.slane %v4273_v49, 4  ;;  %v4288_v25 = vrot.slane %v4286_v30, 5  ;;  %v11422_v45 = vld [vmem:[%s14284_s10 + $0x3c] sm:$0xe] }
 0x213   : > { %12789 = vmatpush3.bf16.msra.mxu0 %v13928_v0  ;;  %v11407_v0 = vcombine.low %v4231_v2, %v4241_v36  ;;  %v4255_v50 = vsel %vm14316_vm2, %v4250_v9, %v4254_v3  ;;  %v4265_v23 = vsel %vm14316_vm2, %v4260_v47, %v4264_v44  ;;  %v4307_v62 = vor.u32 %v4306_v20, %v4302_v42  ;;  %v18378_v20 = vld [vmem:[#allocation22_spill] sm:$0xff] }
 0x214   : > { %v4297_v38 = vor.u32 %v4296_v10, %v4293_v57  ;;  %v4310_v43 = vshll.u32 %v15872_v26, 16  ;;  %v4279_v29 = vsel %vm14316_vm2, %v4274_v14, %v4278_v59  ;;  %v4289_v28 = vsel %vm14316_vm2, %v4284_v27, %v4288_v25  ;;  %v11425_v27 = vld [vmem:[%s14284_s10 + $0x60] sm:$0xe] }
 0x215   : > { %v4702_v54 = vrot.slane %v15603_v5, 5  ;;  %v11408_v53 = vcombine.low %v4255_v50, %v4265_v23  ;;  %v11409_v19 = vcombine.low %v4279_v29, %v4289_v28  ;;  %v4308_v35 = vrot.slane %v4307_v62, 4 }
 0x216   : > { %12759 = vmatmul.mubr.bf16.gmra.mrb[16].mxu0 %v11404_v15  ;;  %v11406_v15 = vcombine.low %v4207_v12, %v4217_v11  ;;  %v4298_v32 = vrot.slane %v4297_v38, 4  ;;  %v4312_v41 = vrot.slane %v4310_v43, 5  ;;  %v11435_v52 = vrot.slane %v11419_v48, 9 }
 0x217   : > { %12762 = vmatprep.mubr.bf16.mxu0 %v11405_v33  ;;  %v4704_v8 = vrot.slane %v4702_v54, 4  ;;  %v4705_v26 = vrot.slane %v15643_v18, 5  ;;  %v4709_v22 = vrot.slane %v15619_v40, 5  ;;  %v4716_v59 = vrot.slane %v15684_v60, 5  ;;  %v11421_v18 = vld [vmem:[%s14284_s10 + $0x30] sm:$0xe] }
 0x218   : > { %v4303_v3 = vsel %vm14316_vm2, %v4298_v32, %v4302_v42  ;;  %v4313_v5 = vsel %vm14316_vm2, %v4308_v35, %v4312_v41  ;;  %v4703_v33 = vsel %vm14649_vm5, %v11435_v52, %v4702_v54  ;;  %v11436_v12 = vrot.slane %v11420_v24, 9  ;;  %v11427_v54 = vld [vmem:[%s14284_s10 + $0x78] sm:$0xe]  ;;  %v18379_v35 = vld [vmem:[#allocation8_spill] sm:$0xff] }
 0x219   : > { %v4706_v39 = vsel %vm14649_vm5, %v4704_v8, %v4705_v26  ;;  %v11410_v13 = vcombine.low %v4303_v3, %v4313_v5  ;;  %v4711_v11 = vrot.slane %v4709_v22, 4  ;;  %v4712_v58 = vrot.slane %v15651_v37, 5  ;;  %v18380_v41 = vld [vmem:[#allocation12_spill] sm:$0xff]  ;;  %v18382_v3 = vld [vmem:[#allocation9_spill] sm:$0xff]  ;;  %v18389_v24 = vld [vmem:[#allocation6_spill] sm:$0xff] }
 0x21a   : > { %v11467_v61 = vcombine.low %v4703_v33, %v4706_v39  ;;  %v11437_v2 = vrot.slane %v11421_v18, 9  ;;  %v4718_v40 = vrot.slane %v4716_v59, 4  ;;  %v4719_v36 = vrot.slane %v15720_v6, 5  ;;  %v11423_v6 = vld [vmem:[%s14284_s10 + $0x48] sm:$0xe]  ;;  %v18386_v33 = vld [vmem:[#allocation13_spill] sm:$0xff] }
 0x21b   : > { %v4710_v16 = vsel %vm14649_vm5, %v11436_v12, %v4709_v22  ;;  %v4713_v60 = vsel %vm14649_vm5, %v4711_v11, %v4712_v58  ;;  %v4723_v21 = vrot.slane %v15715_v56, 5  ;;  %v4730_v51 = vrot.slane %v15777_v31, 5  ;;  %v18377_v56 = vld [vmem:[#allocation21_spill] sm:$0xff]  ;;  %v18385_v22 = vld [vmem:[#allocation11_spill] sm:$0xff]  ;;  %v18395_v11 = vld [vmem:[#allocation18_spill] sm:$0xff]  ;;  %s14106_s10 = scalar_lea.vmem %s18105_s13, 4096 }
 0x21c   : > { %v4717_v17 = vsel %vm14649_vm5, %v11437_v2, %v4716_v59  ;;  %v4720_v37 = vsel %vm14649_vm5, %v4718_v40, %v4719_v36  ;;  %v11468_v63 = vcombine.low %v4710_v16, %v4713_v60  ;;  %v11438_v46 = vrot.slane %v11422_v45, 9  ;;  %v18388_v39 = vld [vmem:[#allocation7_spill] sm:$0xff]  ;;  %v18394_v12 = vld [vmem:[#allocation17_spill] sm:$0xff]  ;;  %v18398_v40 = vld [vmem:[#allocation20_spill] sm:$0xff]  ;;  %p14107_p11 = scmp.ne.s32.totalorder %s18105_s13, %s14106_s10 }
 0x21d   : > { %v11469_v49 = vcombine.low %v4717_v17, %v4720_v37  ;;  %v4725_v30 = vrot.slane %v4723_v21, 4  ;;  %v11439_v9 = vrot.slane %v11423_v6, 9  ;;  %v4732_v47 = vrot.slane %v4730_v51, 4  ;;  %v18391_v18 = vld [vmem:[#allocation15_spill] sm:$0xff]  ;;  %v18401_v60 = vld [vmem:[#allocation24_spill] sm:$0xff]  ;;  %v18403_v17 = vld [vmem:[#allocation25_spill] sm:$0xff] }
 0x21e   : > { %12763 = vmatmul.mubr.bf16.gmra.mrb[20].mxu0 %v11406_v15  ;;  %v18376_v15 = vld [vmem:[#allocation14_spill] sm:$0xff]  ;;  %v4733_v44 = vrot.slane %v18377_v56, 5  ;;  %v4724_v57 = vsel %vm14649_vm5, %v11438_v46, %v4723_v21  ;;  %v4744_v14 = vrot.slane %v18378_v20, 5  ;;  %v11441_v23 = vrot.slane %v11425_v27, 9  ;;  %v18397_v2 = vld [vmem:[#allocation19_spill] sm:$0xff]  ;;  %p14108_p12 = pnand %p14107_p11, %p14257_p5 }
 0x21f   : > { %12766 = vmatprep.mubr.bf16.mxu0 %v11407_v0  ;;  %v4726_v0 = vrot.slane %v18376_v15, 5  ;;  %v4731_v10 = vsel %vm14649_vm5, %v11439_v9, %v4730_v51  ;;  %v4747_v62 = vrot.slane %v15926_v4, 5  ;;  %v4758_v28 = vrot.slane %v15944_v34, 5  ;;  %v18383_v34 = vld [vmem:[#allocation10_spill] sm:$0xff]  ;;  %v18400_v16 = vld [vmem:[#allocation23_spill] sm:$0xff]  ;;  %v13934_v15 = vld [vmem:[%s18158_s5 + $0x68] sm:$0xff]  }
 0x220   : > { %v4734_v42 = vsel %vm14649_vm5, %v4732_v47, %v4733_v44  ;;  %v4746_v38 = vrot.slane %v4744_v14, 4  ;;  %v4745_v43 = vsel %vm14649_vm5, %v11441_v23, %v4744_v14  ;;  %v4761_v32 = vrot.slane %v15983_v7, 5  ;;  %v18404_v37 = vld [vmem:[#allocation26_spill] sm:$0xff]  ;;  %v13929_v51 = vld [vmem:[%s18158_s5 + $0x40] sm:$0xff]   ;;  %p14109_p13 = pneg %p14108_p12 }
 0x221   : > { %v4727_v31 = vsel %vm14649_vm5, %v4725_v30, %v4726_v0  ;;  %v11471_v50 = vcombine.low %v4731_v10, %v4734_v42  ;;  %v18381_v52 = vcombine.low %v18379_v35, %v18380_v41  ;;  %v18384_v5 = vcombine.low %v18382_v3, %v18383_v34  ;;  %12822 = vmatprep.subr.bf16.mxu1 %v13929_v51  ;;  %v13932_v46 = vld [vmem:[%s18158_s5 + $0x58] sm:$0xff]   ;;  %v13933_v30 = vld [vmem:[%s18158_s5 + $0x60] sm:$0xff]   ;;  %v13935_v0 = vld [vmem:[%s18158_s5 + $0x70] sm:$0xff]  }
 0x222   : > { %v11470_v25 = vcombine.low %v4724_v57, %v4727_v31  ;;  %v4748_v29 = vsel %vm14649_vm5, %v4746_v38, %v4747_v62  ;;  %v18387_v7 = vcombine.low %v18385_v22, %v18386_v33  ;;  %v18390_v59 = vcombine.low %v18388_v39, %v18389_v24  ;;  %12823 = vmatpush3.bf16.msra.mxu1 %v13929_v51  ;;  %v13936_v38 = vld [vmem:[%s18158_s5 + $0x78] sm:$0xff]   ;;  %v16201_v35 = vld [vmem:[%s18157_s4] ss:$0 sm:$0xff] }
 0x223   : > { %v11473_v48 = vcombine.low %v4745_v43, %v4748_v29  ;;  %v18396_v58 = vcombine.low %v18394_v12, %v18395_v11  ;;  %v18399_v36 = vcombine.low %v18397_v2, %v18398_v40  ;;  %v18402_v21 = vcombine.low %v18400_v16, %v18401_v60 }
 0x224   : > { %v18405_v45 = vcombine.low %v18403_v17, %v18404_v37  ;;  %v14170_v6 = vmov 0  }
 0x225   : > { %5250 = vst [vmem:[#allocation2 + $0x18] sm:$0xf] %v14170_v6  ;;  %5244 = vst [vmem:[#allocation2] sm:$0xf] %v14170_v6 }
 0x226   : > { %12767 = vmatmul.mubr.bf16.gmra.mrb[24].mxu0 %v11408_v53  ;;  %v11443_v53 = vrot.slane %v11427_v54, 9  ;;  %5245 = vst [vmem:[#allocation2 + $0x4] sm:$0xf] %v14170_v6  ;;  %5246 = vst [vmem:[#allocation2 + $0x8] sm:$0x1] %v14170_v6 }
 0x227   : > { %12770 = vmatprep.mubr.bf16.mxu0 %v11409_v19  ;;  %v4760_v19 = vrot.slane %v4758_v28, 4  ;;  %5247 = vst [vmem:[#allocation2 + $0xc] sm:$0xf] %v14170_v6  ;;  %5248 = vst [vmem:[#allocation2 + $0x10] sm:$0xf] %v14170_v6 }
 0x228   : > { %v4759_v4 = vsel %vm14649_vm5, %v11443_v53, %v4758_v28  ;;  %5249 = vst [vmem:[#allocation2 + $0x14] sm:$0x1] %v14170_v6  ;;  %5251 = vst [vmem:[#allocation2 + $0x1c] sm:$0xf] %v14170_v6  ;;  %v16190_v53 = vld [vmem:[%s18158_s5] sm:$0xff]  }
 0x229   : > { %v4762_v8 = vsel %vm14649_vm5, %v4760_v19, %v4761_v32  ;;  %5252 = vst [vmem:[#allocation2 + $0x20] sm:$0x1] %v14170_v6  ;;  %5253 = vst [vmem:[#allocation2 + $0x24] sm:$0xf] %v14170_v6  ;;  %v16196_v19 = vld [vmem:[%s18156_s3] ss:$0 sm:$0xff] }
 0x22a   : > { %v11475_v26 = vcombine.low %v4759_v4, %v4762_v8  ;;  %5254 = vst [vmem:[#allocation2 + $0x28] sm:$0xf] %v14170_v6  ;;  %5255 = vst [vmem:[#allocation2 + $0x2c] sm:$0x1] %v14170_v6 }
 0x22b   : > { %5256 = vst [vmem:[#allocation2 + $0x30] sm:$0xf] %v14170_v6  ;;  %5257 = vst [vmem:[#allocation2 + $0x34] sm:$0xf] %v14170_v6 }
 0x22c   : > { %5258 = vst [vmem:[#allocation2 + $0x38] sm:$0x1] %v14170_v6  ;;  %5259 = vst [vmem:[#allocation2 + $0x3c] sm:$0xf] %v14170_v6  ;;  %v5835_v9 = vld [vmem:[#allocation2] sm:$0xf] }
 0x22d   : > { %5260 = vst [vmem:[#allocation2 + $0x40] sm:$0xf] %v14170_v6  ;;  %5261 = vst [vmem:[#allocation2 + $0x44] sm:$0x1] %v14170_v6  ;;  %v5836_v47 = vld [vmem:[#allocation2 + $0x4] sm:$0xf] }
 0x22e   : > { %12771 = vmatmul.mubr.bf16.gmra.mrb[28].mxu0 %v11410_v13  ;;  %v18392_v13 = vld [vmem:[#allocation16_spill] sm:$0xff]  ;;  %5262 = vst [vmem:[#allocation2 + $0x48] sm:$0xf] %v14170_v6  ;;  %5263 = vst [vmem:[#allocation2 + $0x4c] sm:$0xf] %v14170_v6  ;;  %v5900_v56 = vshrl.u32 %v5835_v9, 16 }
 0x22f   : > { %12790 = vmatprep.mubr.bf16.mxu0 %v11467_v61  ;;  %v18393_v61 = vcombine.low %v18391_v18, %v18392_v13  ;;  %5264 = vst [vmem:[#allocation2 + $0x50] sm:$0x1] %v14170_v6  ;;  %5265 = vst [vmem:[#allocation2 + $0x54] sm:$0xf] %v14170_v6  ;;  %v5903_v44 = vshll.u32 %v5835_v9, 16  ;;  %v5909_v57 = vshll.u32 %v5836_v47, 16 }
 0x230   : > { %5266 = vst [vmem:[#allocation2 + $0x58] sm:$0xf] %v14170_v6  ;;  %5267 = vst [vmem:[#allocation2 + $0x5c] sm:$0x1] %v14170_v6  ;;  %v5913_v31 = vshrl.u32 %v5836_v47, 16  ;;  %v5902_v10 = vrot.slane %v5900_v56, 4 }
 0x231   : > { %5268 = vst [vmem:[#allocation2 + $0x60] sm:$0xf] %v14170_v6  ;;  %5269 = vst [vmem:[#allocation2 + $0x64] sm:$0xf] %v14170_v6  ;;  %v5905_v42 = vrot.slane %v5903_v44, 5  ;;  %v5911_v20 = vrot.slane %v5909_v57, 5 }
 0x232   : > { %5270 = vst [vmem:[#allocation2 + $0x68] sm:$0x1] %v14170_v6  ;;  %5271 = vst [vmem:[#allocation2 + $0x6c] sm:$0xf] %v14170_v6  ;;  %v5915_v14 = vrot.slane %v5913_v31, 4 }
 0x233   : > { %5272 = vst [vmem:[#allocation2 + $0x70] sm:$0xf] %v14170_v6  ;;  %5273 = vst [vmem:[#allocation2 + $0x74] sm:$0x1] %v14170_v6  ;;  %v5883_v27 = vld [vmem:[#allocation2 + $0x8] sm:$0x1] }
 0x234   : > { %5274 = vst [vmem:[#allocation2 + $0x78] sm:$0xf] %v14170_v6  ;;  %5275 = vst [vmem:[#allocation2 + $0x7c] sm:$0xf] %v14170_v6  ;;  %v5919_v23 = vshll.u32 %v5883_v27, 16 }
 0x235   : > { %5276 = vst [vmem:[#allocation2 + $0x80] sm:$0x1] %v14170_v6  ;;  %5277 = vst [vmem:[#allocation2 + $0x84] sm:$0xf] %v14170_v6  ;;  %v5721_v57 = vld [vmem:[#allocation2 + $0xc] sm:$0xf] }
 0x236   : > { %12791 = vmatmul.mubr.bf16.vlgmr.msra.gmra.mrb[0].mxu0 %v11468_v63  ;;  %5278 = vst [vmem:[#allocation2 + $0x88] sm:$0xf] %v14170_v6  ;;  %5279 = vst [vmem:[#allocation2 + $0x8c] sm:$0x1] %v14170_v6  ;;  %v13930_v63 = vld [vmem:[%s18158_s5 + $0x48] sm:$0xff]   ;;  %v5921_v29 = vrot.slane %v5919_v23, 5 }
 0x237   : > { %12794 = vmatprep.mubr.bf16.mxu0 %v11469_v49  ;;  %5280 = vst [vmem:[#allocation2 + $0x90] sm:$0xf] %v14170_v6  ;;  %5281 = vst [vmem:[#allocation2 + $0x94] sm:$0xf] %v14170_v6  ;;  %12824 = vmatprep.subr.bf16.mxu1 %v13930_v63  ;;  %v13931_v49 = vld [vmem:[%s18158_s5 + $0x50] sm:$0xff]  }
 0x238   : > { %5282 = vst [vmem:[#allocation2 + $0x98] sm:$0x1] %v14170_v6  ;;  %5283 = vst [vmem:[#allocation2 + $0x9c] sm:$0xf] %v14170_v6  ;;  %12825 = vmatpush3.bf16.msra.mxu1 %v13930_v63 }
 0x239   : > { %5284 = vst [vmem:[#allocation2 + $0xa0] sm:$0xf] %v14170_v6  ;;  %5285 = vst [vmem:[#allocation2 + $0xa4] sm:$0x1] %v14170_v6  ;;  %12826 = vmatprep.subr.bf16.mxu1 %v13931_v49 }
 0x23a   : > { %5286 = vst [vmem:[#allocation2 + $0xa8] sm:$0xf] %v14170_v6  ;;  %5287 = vst [vmem:[#allocation2 + $0xac] sm:$0xf] %v14170_v6 }
 0x23b   : > { %5288 = vst [vmem:[#allocation2 + $0xb0] sm:$0x1] %v14170_v6  ;;  %5289 = vst [vmem:[#allocation2 + $0xb4] sm:$0xf] %v14170_v6 }
 0x23c   : > { %5290 = vst [vmem:[#allocation2 + $0xb8] sm:$0xf] %v14170_v6  ;;  %5291 = vst [vmem:[#allocation2 + $0xbc] sm:$0x1] %v14170_v6  ;;  %12827 = vmatpush3.bf16.msra.mxu1 %v13931_v49 }
 0x23d   : > { %5292 = vst [vmem:[#allocation2 + $0xc0] sm:$0xf] %v14170_v6  ;;  %5293 = vst [vmem:[#allocation2 + $0xc4] sm:$0xf] %v14170_v6  ;;  %12828 = vmatprep.subr.bf16.mxu1 %v13932_v46 }
 0x23e   : > { %12795 = vmatmul.mubr.bf16.gmra.mrb[4].mxu0 %v11470_v25  ;;  %5294 = vst [vmem:[#allocation2 + $0xc8] sm:$0x1] %v14170_v6  ;;  %5295 = vst [vmem:[#allocation2 + $0xcc] sm:$0xf] %v14170_v6  ;;  %v5906_v25 = vor.u32 %v5905_v42, %v5902_v10 }
 0x23f   : > { %12798 = vmatprep.mubr.bf16.mxu0 %v11471_v50  ;;  %5296 = vst [vmem:[#allocation2 + $0xd0] sm:$0xf] %v14170_v6  ;;  %5297 = vst [vmem:[#allocation2 + $0xd4] sm:$0x1] %v14170_v6  ;;  %v5916_v50 = vor.u32 %v5915_v14, %v5911_v20 }
 0x240   : > { %12829 = vmatpush3.bf16.msra.mxu1 %v13932_v46  ;;  %v5907_v62 = vrot.slane %v5906_v25, 4  ;;  %v5734_v25 = vld [vmem:[#allocation2 + $0x20] sm:$0x1] }
 0x241   : > { %12830 = vmatprep.subr.bf16.mxu1 %v13933_v30  ;;  %v5917_v43 = vrot.slane %v5916_v50, 4 }
 0x242   : > { %v5912_v28 = vsel %vm14316_vm2, %v5907_v62, %v5911_v20 }
 0x243   : > { %v5922_v54 = vsel %vm14316_vm2, %v5917_v43, %v5921_v29  ;;  %v5727_v29 = vld [vmem:[#allocation2 + $0x14] sm:$0x1] }
 0x244   : > { %12831 = vmatpush3.bf16.msra.mxu1 %v13933_v30  ;;  %v5730_v30 = vld [vmem:[#allocation2 + $0x18] sm:$0xf] }
 0x245   : > { %12832 = vmatprep.subr.bf16.mxu1 %v13934_v15 }
 0x246   : > { %12799 = vmatmul.mubr.bf16.gmra.mrb[8].mxu0 %v18381_v52 }
 0x247   : > { %12802 = vmatprep.mubr.bf16.mxu0 %v11473_v48  ;;  %v11541_v48 = vcombine.low %v5912_v28, %v5922_v54 }
 0x248   : > { %12833 = vmatpush3.bf16.msra.mxu1 %v13934_v15 }
 0x249   : > { %12834 = vmatprep.subr.bf16.mxu1 %v13935_v0  ;;  %12838 = vmatprep.mubr.bf16.mxu1 %v11541_v48 }
 0x24c   : > { %12835 = vmatpush3.bf16.msra.mxu1 %v13935_v0 }
 0x24d   : > { %12836 = vmatprep.subr.bf16.mxu1 %v13936_v38 }
 0x24e   : > { %12803 = vmatmul.mubr.bf16.gmra.mrb[12].mxu0 %v18384_v5 }
 0x24f   : > { %12806 = vmatprep.mubr.bf16.mxu0 %v11475_v26 }
 0x250   : > { %12837 = vmatpush3.bf16.msra.mxu1 %v13936_v38 }
 0x251   : > { %12870 = vmatprep.subr.bf16.mxu1 %v16190_v53 }
 0x256   : > { %12807 = vmatmul.mubr.bf16.gmra.mrb[16].mxu0 %v18387_v7 }
 0x257   : > { %12810 = vmatprep.mubr.bf16.mxu0 %v18390_v59 }
 0x25e   : > { %12811 = vmatmul.mubr.bf16.gmra.mrb[20].mxu0 %v18393_v61 }
 0x25f   : > { %12814 = vmatprep.mubr.bf16.mxu0 %v18396_v58 }
 0x266   : > { %12815 = vmatmul.mubr.bf16.gmra.mrb[24].mxu0 %v18399_v36 }
 0x267   : > { %12818 = vmatprep.mubr.bf16.mxu0 %v18402_v21 }
 0x26e   : > { %12819 = vmatmul.mubr.bf16.gmra.mrb[28].mxu0 %v18405_v45 }
 0x309   : > { %v12792_v32 = vpop.f32.mrb[0].mxu0 }
 0x30a   : > { %v5143_v41 = vmul.f32 %v12792_v32, %v16196_v19  ;;  %v4975_v52 = vpop.f32.mrb[1].mxu0 }
 0x30b   : > { %v5141_v4 = vmul.f32 %v16196_v19, %v4975_v52  ;;  %v12793_v8 = vpop.f32.mrb[2].mxu0 }
 0x30c   : > { %v5182_v26 = vadd.f32 %v16201_v35, %v5143_v41  ;;  %v5144_v3 = vmul.f32 %v12793_v8, %v16196_v19  ;;  %v4978_v34 = vpop.f32.mrb[3].mxu0 }
 0x30d   : > { %v5180_v5 = vadd.f32 %v16201_v35, %v5141_v4  ;;  %v5142_v22 = vmul.f32 %v16196_v19, %v4978_v34 }
 0x30e   : > { %v5214_v33 = vmax.f32 %v5182_v26, 0.0  ;;  %v5183_v7 = vadd.f32 %v16201_v35, %v5144_v3 }
 0x30f   : > { %v5212_v39 = vmax.f32 %v5180_v5, 0.0  ;;  %v5181_v24 = vadd.f32 %v16201_v35, %v5142_v22 }
 0x310   : > { %v11927_v59 = vpack.c.bf16 %v5214_v33, %v5214_v33  ;;  %v5215_v18 = vmax.f32 %v5183_v7, 0.0 }
 0x311   : > { %v11925_v13 = vpack.c.bf16 %v5212_v39, %v5212_v39  ;;  %v5213_v61 = vmax.f32 %v5181_v24, 0.0  ;;  %v12796_v12 = vpop.f32.mrb[4].mxu0 }
 0x312   : > { %v5415_v11 = vshrl.u32 %v11927_v59, 16  ;;  %v5418_v58 = vshll.u32 %v11927_v59, 16  ;;  %v11928_v2 = vpack.c.bf16 %v5215_v18, %v5215_v18  ;;  %v5147_v40 = vmul.f32 %v12796_v12, %v16196_v19  ;;  %v4991_v36 = vpop.f32.mrb[5].mxu0  ;;  %v5744_v12 = vld [vmem:[#allocation2 + $0x30] sm:$0xf] }
 0x313   : > { %v5398_v16 = vshrl.u32 %v11925_v13, 16  ;;  %v5401_v60 = vshll.u32 %v11925_v13, 16  ;;  %v11926_v21 = vpack.c.bf16 %v5213_v61, %v5213_v61  ;;  %v5145_v17 = vmul.f32 %v16196_v19, %v4991_v36  ;;  %v12797_v37 = vpop.f32.mrb[6].mxu0 }
 0x314   : > { %v5417_v45 = vrot.slane %v5415_v11, 7  ;;  %v5423_v51 = vshrl.u32 %v11928_v2, 16  ;;  %v5426_v6 = vshll.u32 %v11928_v2, 16  ;;  %v5186_v63 = vadd.f32 %v16201_v35, %v5147_v40  ;;  %v4994_v49 = vpop.f32.mrb[7].mxu0 }
 0x315   : > { %v5400_v15 = vrot.slane %v5398_v16, 7  ;;  %v5406_v0 = vshrl.u32 %v11926_v21, 16  ;;  %v5409_v9 = vshll.u32 %v11926_v21, 16  ;;  %v5184_v47 = vadd.f32 %v16201_v35, %v5145_v17 }
 0x316   : > { %v5420_v56 = vor.u32 %v5418_v58, %v5417_v45  ;;  %v5421_v44 = vrot.slane %v5417_v45, 4  ;;  %v5425_v10 = vrot.slane %v5423_v51, 7  ;;  %v5218_v42 = vmax.f32 %v5186_v63, 0.0 }
 0x317   : > { %v5403_v20 = vor.u32 %v5401_v60, %v5400_v15  ;;  %v5404_v14 = vrot.slane %v5400_v15, 4  ;;  %v5408_v50 = vrot.slane %v5406_v0, 7  ;;  %v5216_v23 = vmax.f32 %v5184_v47, 0.0  ;;  %v5737_v60 = vld [vmem:[#allocation2 + $0x24] sm:$0xf] }
 0x318   : > { %v5731_v38 = vsel %vm16216_vm11, %v5420_v56, %v5730_v30  ;;  %v5428_v62 = vor.u32 %v5426_v6, %v5425_v10  ;;  %v5430_v43 = vrot.slane %v5425_v10, 4  ;;  %v11931_v28 = vpack.c.bf16 %v5218_v42, %v5218_v42 }
 0x319   : > { %5732 = vst [vmem:[#allocation2 + $0x18] sm:$0xf] %v5731_v38  ;;  %v5722_v54 = vsel %vm16216_vm11, %v5403_v20, %v5721_v57  ;;  %v5411_v48 = vor.u32 %v5409_v9, %v5408_v50  ;;  %v5413_v32 = vrot.slane %v5408_v50, 4  ;;  %v11929_v41 = vpack.c.bf16 %v5216_v23, %v5216_v23  ;;  %v12800_v52 = vpop.f32.mrb[8].mxu0 }
 0x31a   : > { %5723 = vst [vmem:[#allocation2 + $0xc] sm:$0xf] %v5722_v54  ;;  %v5429_v4 = vsel %vm16223_vm12, %v5421_v44, %v5428_v62  ;;  %v5735_v8 = vsel %vm16229_vm13, %v5430_v43, %v5734_v25  ;;  %v5449_v26 = vshrl.u32 %v11931_v28, 16  ;;  %v5452_v3 = vshll.u32 %v11931_v28, 16  ;;  %v5007_v34 = vpop.f32.mrb[9].mxu0 }
 0x31b   : > { %5733 = vst [vmem:[#allocation2 + $0x1c] sm:$0xf] %v5429_v4  ;;  %5736 = vst [vmem:[#allocation2 + $0x20] sm:$0x1] %v5735_v8  ;;  %v5412_v5 = vsel %vm16223_vm12, %v5404_v14, %v5411_v48  ;;  %v5728_v22 = vsel %vm16229_vm13, %v5413_v32, %v5727_v29  ;;  %v5432_v33 = vshrl.u32 %v11929_v41, 16  ;;  %v5435_v7 = vshll.u32 %v11929_v41, 16 }
 0x31c   : > { %v12801_v39 = vpop.f32.mrb[10].mxu0  ;;  %5724 = vst [vmem:[#allocation2 + $0x10] sm:$0xf] %v5412_v5  ;;  %5729 = vst [vmem:[#allocation2 + $0x14] sm:$0x1] %v5728_v22  ;;  %v16245_v24 = vrot.slane %v5449_v26, 7  ;;  %v5148_v59 = vmul.f32 %v12797_v37, %v16196_v19  ;;  %v5146_v18 = vmul.f32 %v16196_v19, %v4994_v49  ;;  %v5151_v13 = vmul.f32 %v12800_v52, %v16196_v19 }
 0x31d   : > { %v5010_v61 = vpop.f32.mrb[11].mxu0  ;;  %v16250_v11 = vrot.slane %v5432_v33, 7  ;;  %v5149_v58 = vmul.f32 %v16196_v19, %v5007_v34  ;;  %v5152_v2 = vmul.f32 %v12801_v39, %v16196_v19  ;;  %v5748_v32 = vld [vmem:[#allocation2 + $0x38] sm:$0x1]  ;;  %v5741_v34 = vld [vmem:[#allocation2 + $0x2c] sm:$0x1] }
 0x31e   : > { %v5150_v40 = vmul.f32 %v16196_v19, %v5010_v61  ;;  %v5454_v36 = vor.u32 %v5452_v3, %v16245_v24  ;;  %v5455_v16 = vrot.slane %v16245_v24, 4  ;;  %v5187_v21 = vadd.f32 %v16201_v35, %v5148_v59 }
 0x31f   : > { %v5185_v17 = vadd.f32 %v16201_v35, %v5146_v18  ;;  %v5437_v37 = vor.u32 %v5435_v7, %v16250_v11  ;;  %v5438_v45 = vrot.slane %v16250_v11, 4  ;;  %v5190_v51 = vadd.f32 %v16201_v35, %v5151_v13  ;;  %v5751_v11 = vld [vmem:[#allocation2 + $0x3c] sm:$0xf] }
 0x320   : > { %v5188_v6 = vadd.f32 %v16201_v35, %v5149_v58  ;;  %v5745_v63 = vsel %vm16216_vm11, %v5454_v36, %v5744_v12  ;;  %v5219_v49 = vmax.f32 %v5187_v21, 0.0  ;;  %v5191_v15 = vadd.f32 %v16201_v35, %v5152_v2  ;;  %v5758_v12 = vld [vmem:[#allocation2 + $0x48] sm:$0xf] }
 0x321   : > { %v5217_v30 = vmax.f32 %v5185_v17, 0.0  ;;  %5746 = vst [vmem:[#allocation2 + $0x30] sm:$0xf] %v5745_v63  ;;  %v5738_v0 = vsel %vm16216_vm11, %v5437_v37, %v5737_v60  ;;  %v5222_v9 = vmax.f32 %v5190_v51, 0.0  ;;  %v5189_v56 = vadd.f32 %v16201_v35, %v5150_v40  ;;  %v12804_v44 = vpop.f32.mrb[12].mxu0 }
 0x322   : > { %v5220_v47 = vmax.f32 %v5188_v6, 0.0  ;;  %5739 = vst [vmem:[#allocation2 + $0x24] sm:$0xf] %v5738_v0  ;;  %v11932_v57 = vpack.c.bf16 %v5219_v49, %v5219_v49  ;;  %v5223_v42 = vmax.f32 %v5191_v15, 0.0  ;;  %v5155_v20 = vmul.f32 %v12804_v44, %v16196_v19  ;;  %v5023_v14 = vpop.f32.mrb[13].mxu0 }
 0x323   : > { %v11930_v10 = vpack.c.bf16 %v5217_v30, %v5217_v30  ;;  %v11935_v25 = vpack.c.bf16 %v5222_v9, %v5222_v9  ;;  %v5221_v23 = vmax.f32 %v5189_v56, 0.0  ;;  %v5153_v38 = vmul.f32 %v16196_v19, %v5023_v14  ;;  %v12805_v62 = vpop.f32.mrb[14].mxu0 }
 0x324   : > { %v11933_v50 = vpack.c.bf16 %v5220_v47, %v5220_v47  ;;  %v5457_v43 = vshrl.u32 %v11932_v57, 16  ;;  %v5460_v29 = vshll.u32 %v11932_v57, 16  ;;  %v5026_v48 = vpop.f32.mrb[15].mxu0  ;;  %v11936_v5 = vpack.c.bf16 %v5223_v42, %v5223_v42 }
 0x325   : > { %v5440_v28 = vshrl.u32 %v11930_v10, 16  ;;  %v5443_v54 = vshll.u32 %v11930_v10, 16  ;;  %v5483_v41 = vshrl.u32 %v11935_v25, 16  ;;  %v5486_v52 = vshll.u32 %v11935_v25, 16 }
 0x326   : > { %v5466_v4 = vshrl.u32 %v11933_v50, 16  ;;  %v5469_v8 = vshll.u32 %v11933_v50, 16  ;;  %v5459_v26 = vrot.slane %v5457_v43, 7  ;;  %v11934_v22 = vpack.c.bf16 %v5221_v23, %v5221_v23 }
 0x327   : > { %v5442_v3 = vrot.slane %v5440_v28, 7  ;;  %v5485_v33 = vrot.slane %v5483_v41, 7  ;;  %v5194_v39 = vadd.f32 %v16201_v35, %v5155_v20  ;;  %v5192_v24 = vadd.f32 %v16201_v35, %v5153_v38  ;;  %v5762_v20 = vld [vmem:[#allocation2 + $0x50] sm:$0x1] }
 0x328   : > { %v5468_v7 = vrot.slane %v5466_v4, 7  ;;  %v5462_v59 = vor.u32 %v5460_v29, %v5459_v26  ;;  %v5464_v18 = vrot.slane %v5459_v26, 4  ;;  %v5491_v49 = vshrl.u32 %v11936_v5, 16  ;;  %v5755_v29 = vld [vmem:[#allocation2 + $0x44] sm:$0x1] }
 0x329   : > { %v5445_v13 = vor.u32 %v5443_v54, %v5442_v3  ;;  %v5447_v61 = vrot.slane %v5442_v3, 4  ;;  %v5488_v58 = vor.u32 %v5486_v52, %v5485_v33  ;;  %v5489_v2 = vrot.slane %v5485_v33, 4  ;;  %v12808_v60 = vpop.f32.mrb[16].mxu0 }
 0x32a   : > { %v5471_v40 = vor.u32 %v5469_v8, %v5468_v7  ;;  %v5472_v36 = vrot.slane %v5468_v7, 4  ;;  %v5463_v21 = vsel %vm16223_vm12, %v5455_v16, %v5462_v59  ;;  %v5749_v17 = vsel %vm16229_vm13, %v5464_v18, %v5748_v32  ;;  %v5039_v6 = vpop.f32.mrb[17].mxu0 }
 0x32b   : > { %v5446_v37 = vsel %vm16223_vm12, %v5438_v45, %v5445_v13  ;;  %v5742_v51 = vsel %vm16229_vm13, %v5447_v61, %v5741_v34  ;;  %5747 = vst [vmem:[#allocation2 + $0x34] sm:$0xf] %v5463_v21  ;;  %5750 = vst [vmem:[#allocation2 + $0x38] sm:$0x1] %v5749_v17  ;;  %v5759_v63 = vsel %vm16216_vm11, %v5488_v58, %v5758_v12  ;;  %v5494_v30 = vshll.u32 %v11936_v5, 16  ;;  %v12809_v15 = vpop.f32.mrb[18].mxu0 }
 0x32c   : > { %5740 = vst [vmem:[#allocation2 + $0x28] sm:$0xf] %v5446_v37  ;;  %5743 = vst [vmem:[#allocation2 + $0x2c] sm:$0x1] %v5742_v51  ;;  %v5752_v16 = vsel %vm16216_vm11, %v5471_v40, %v5751_v11  ;;  %v5474_v45 = vshrl.u32 %v11934_v22, 16  ;;  %v5477_v0 = vshll.u32 %v11934_v22, 16  ;;  %v5156_v57 = vmul.f32 %v12805_v62, %v16196_v19 }
 0x32d   : > { %5760 = vst [vmem:[#allocation2 + $0x48] sm:$0xf] %v5759_v63  ;;  %5753 = vst [vmem:[#allocation2 + $0x3c] sm:$0xf] %v5752_v16  ;;  %v5226_v9 = vmax.f32 %v5194_v39, 0.0  ;;  %v5224_v47 = vmax.f32 %v5192_v24, 0.0  ;;  %v5154_v10 = vmul.f32 %v16196_v19, %v5026_v48  ;;  %v5159_v42 = vmul.f32 %v12808_v60, %v16196_v19 }
 0x32e   : > { %v16285_v56 = vpop.f32.mrb[19].mxu0  ;;  %v5493_v44 = vrot.slane %v5491_v49, 7  ;;  %v5476_v14 = vrot.slane %v5474_v45, 7  ;;  %v5157_v23 = vmul.f32 %v16196_v19, %v5039_v6  ;;  %v5195_v28 = vadd.f32 %v16201_v35, %v5156_v57  ;;  %v5772_v39 = vld [vmem:[#allocation2 + $0x60] sm:$0xf] }
 0x32f   : > { %v11939_v25 = vpack.c.bf16 %v5226_v9, %v5226_v9  ;;  %v11937_v50 = vpack.c.bf16 %v5224_v47, %v5224_v47  ;;  %v5193_v54 = vadd.f32 %v16201_v35, %v5154_v10  ;;  %v5198_v18 = vadd.f32 %v16201_v35, %v5159_v42  ;;  %v5765_v58 = vld [vmem:[#allocation2 + $0x54] sm:$0xf]  ;;  %v5837_v49 = vld [vmem:[#allocation2 + $0xc] sm:$0xf]  ;;  %v5776_v45 = vld [vmem:[#allocation2 + $0x68] sm:$0x1] }
 0x330   : > { %v5496_v38 = vor.u32 %v5494_v30, %v5493_v44  ;;  %v5498_v43 = vrot.slane %v5493_v44, 4  ;;  %v5479_v32 = vor.u32 %v5477_v0, %v5476_v14  ;;  %v5481_v41 = vrot.slane %v5476_v14, 4 }
 0x331   : > { %v5517_v62 = vshrl.u32 %v11939_v25, 16  ;;  %v5520_v52 = vshll.u32 %v11939_v25, 16  ;;  %v5500_v8 = vshrl.u32 %v11937_v50, 16  ;;  %v5503_v26 = vshll.u32 %v11937_v50, 16  ;;  %v16297_v3 = vpop.f32.mrb[20].mxu0 }
 0x332   : > { %v5497_v48 = vsel %vm16223_vm12, %v5489_v2, %v5496_v38  ;;  %v5763_v4 = vsel %vm16229_vm13, %v5498_v43, %v5762_v20  ;;  %v5480_v34 = vsel %vm16223_vm12, %v5472_v36, %v5479_v32  ;;  %v5756_v5 = vsel %vm16229_vm13, %v5481_v41, %v5755_v29  ;;  %v16303_v7 = vpop.f32.mrb[21].mxu0  ;;  %v5769_v43 = vld [vmem:[#allocation2 + $0x5c] sm:$0x1] }
 0x333   : > { %5761 = vst [vmem:[#allocation2 + $0x4c] sm:$0xf] %v5497_v48  ;;  %5764 = vst [vmem:[#allocation2 + $0x50] sm:$0x1] %v5763_v4  ;;  %v5519_v22 = vrot.slane %v5517_v62, 7  ;;  %v5227_v33 = vmax.f32 %v5195_v28, 0.0  ;;  %v5196_v13 = vadd.f32 %v16201_v35, %v5157_v23  ;;  %v5160_v40 = vmul.f32 %v12809_v15, %v16196_v19 }
 0x334   : > { %5754 = vst [vmem:[#allocation2 + $0x40] sm:$0xf] %v5480_v34  ;;  %5757 = vst [vmem:[#allocation2 + $0x44] sm:$0x1] %v5756_v5  ;;  %v5502_v24 = vrot.slane %v5500_v8, 7  ;;  %v5225_v59 = vmax.f32 %v5193_v54, 0.0  ;;  %v5158_v10 = vmul.f32 %v16196_v19, %v16285_v56 }
 0x335   : > { %v16307_v61 = vpop.f32.mrb[22].mxu0  ;;  %v5522_v12 = vor.u32 %v5520_v52, %v5519_v22  ;;  %v5523_v11 = vrot.slane %v5519_v22, 4  ;;  %v11940_v2 = vpack.c.bf16 %v5227_v33, %v5227_v33  ;;  %v5230_v37 = vmax.f32 %v5198_v18, 0.0  ;;  %v5786_v8 = vld [vmem:[#allocation2 + $0x78] sm:$0xf] }
 0x336   : > { %v16310_v36 = vpop.f32.mrb[23].mxu0  ;;  %v5505_v60 = vor.u32 %v5503_v26, %v5502_v24  ;;  %v5506_v21 = vrot.slane %v5502_v24, 4  ;;  %v11938_v17 = vpack.c.bf16 %v5225_v59, %v5225_v59  ;;  %v5228_v16 = vmax.f32 %v5196_v13, 0.0  ;;  %v5838_v5 = vld [vmem:[#allocation2 + $0x10] sm:$0xf] }
 0x337   : > { %v5773_v51 = vsel %vm16216_vm11, %v5522_v12, %v5772_v39  ;;  %v5525_v6 = vshrl.u32 %v11940_v2, 16  ;;  %v5528_v63 = vshll.u32 %v11940_v2, 16  ;;  %v11943_v9 = vpack.c.bf16 %v5230_v37, %v5230_v37  ;;  %v5779_v59 = vld [vmem:[#allocation2 + $0x6c] sm:$0xf] }
 0x338   : > { %5774 = vst [vmem:[#allocation2 + $0x60] sm:$0xf] %v5773_v51  ;;  %v5766_v30 = vsel %vm16216_vm11, %v5505_v60, %v5765_v58  ;;  %v5508_v0 = vshrl.u32 %v11938_v17, 16  ;;  %v5511_v15 = vshll.u32 %v11938_v17, 16  ;;  %v11941_v44 = vpack.c.bf16 %v5228_v16, %v5228_v16  ;;  %v5884_v58 = vld [vmem:[#allocation2 + $0x14] sm:$0x1] }
 0x339   : > { %5767 = vst [vmem:[#allocation2 + $0x54] sm:$0xf] %v5766_v30  ;;  %v5527_v47 = vrot.slane %v5525_v6, 7  ;;  %v5199_v57 = vadd.f32 %v16201_v35, %v5160_v40  ;;  %v5551_v20 = vshrl.u32 %v11943_v9, 16  ;;  %v5554_v14 = vshll.u32 %v11943_v9, 16  ;;  %v16319_v50 = vpop.f32.mrb[24].mxu0 }
 0x33a   : > { %v5510_v42 = vrot.slane %v5508_v0, 7  ;;  %v5924_v25 = vshrl.u32 %v5837_v49, 16  ;;  %v5534_v29 = vshrl.u32 %v11941_v44, 16  ;;  %v5537_v28 = vshll.u32 %v11941_v44, 16  ;;  %v16321_v54 = vpop.f32.mrb[25].mxu0 }
 0x33b   : > { %v5530_v23 = vor.u32 %v5528_v63, %v5527_v47  ;;  %v5532_v38 = vrot.slane %v5527_v47, 4  ;;  %v16323_v62 = vrot.slane %v5551_v20, 7  ;;  %v5231_v52 = vmax.f32 %v5199_v57, 0.0  ;;  %v16325_v48 = vpop.f32.mrb[26].mxu0  ;;  %v5839_v17 = vld [vmem:[#allocation2 + $0x18] sm:$0xf] }
 0x33c   : > { %v5513_v32 = vor.u32 %v5511_v15, %v5510_v42  ;;  %v5515_v41 = vrot.slane %v5510_v42, 4  ;;  %v16331_v26 = vrot.slane %v5534_v29, 7  ;;  %v5197_v34 = vadd.f32 %v16201_v35, %v5158_v10  ;;  %v16334_v22 = vpop.f32.mrb[27].mxu0  ;;  %v5840_v16 = vld [vmem:[#allocation2 + $0x1c] sm:$0xf] }
 0x33d   : > { %v5531_v56 = vsel %vm16223_vm12, %v5523_v11, %v5530_v23  ;;  %v5777_v4 = vsel %vm16229_vm13, %v5532_v38, %v5776_v45  ;;  %v5556_v24 = vor.u32 %v5554_v14, %v16323_v62  ;;  %v5557_v18 = vrot.slane %v16323_v62, 4  ;;  %v5790_v30 = vld [vmem:[#allocation2 + $0x80] sm:$0x1] }
 0x33e   : > { %5775 = vst [vmem:[#allocation2 + $0x64] sm:$0xf] %v5531_v56  ;;  %5778 = vst [vmem:[#allocation2 + $0x68] sm:$0x1] %v5777_v4  ;;  %v5514_v33 = vsel %vm16223_vm12, %v5506_v21, %v5513_v32  ;;  %v5770_v39 = vsel %vm16229_vm13, %v5515_v41, %v5769_v43  ;;  %v5539_v13 = vor.u32 %v5537_v28, %v16331_v26  ;;  %v5229_v11 = vmax.f32 %v5197_v34, 0.0 }
 0x33f   : > { %5768 = vst [vmem:[#allocation2 + $0x58] sm:$0xf] %v5514_v33  ;;  %5771 = vst [vmem:[#allocation2 + $0x5c] sm:$0x1] %v5770_v39  ;;  %v11944_v12 = vpack.c.bf16 %v5231_v52, %v5231_v52  ;;  %v5787_v2 = vsel %vm16216_vm11, %v5556_v24, %v5786_v8  ;;  %v5926_v40 = vrot.slane %v5924_v25, 4  ;;  %v5927_v60 = vshll.u32 %v5837_v49, 16 }
 0x340   : > { %v5933_v21 = vshll.u32 %v5838_v5, 16  ;;  %5788 = vst [vmem:[#allocation2 + $0x78] sm:$0xf] %v5787_v2  ;;  %v5540_v37 = vrot.slane %v16331_v26, 4  ;;  %v5780_v51 = vsel %vm16216_vm11, %v5539_v13, %v5779_v59  ;;  %v11942_v63 = vpack.c.bf16 %v5229_v11, %v5229_v11  ;;  %v5783_v32 = vld [vmem:[#allocation2 + $0x74] sm:$0x1] }
 0x341   : > { %v5559_v6 = vshrl.u32 %v11944_v12, 16  ;;  %5781 = vst [vmem:[#allocation2 + $0x6c] sm:$0xf] %v5780_v51  ;;  %v5929_v45 = vrot.slane %v5927_v60, 5  ;;  %v5937_v15 = vshrl.u32 %v5838_v5, 16  ;;  %v5943_v9 = vshll.u32 %v5884_v58, 16 }
 0x342   : > { %v5935_v0 = vrot.slane %v5933_v21, 5  ;;  %v16348_v47 = vpop.f32.mrb[28].mxu0  ;;  %v5562_v44 = vshll.u32 %v11944_v12, 16  ;;  %v5542_v57 = vshrl.u32 %v11942_v63, 16  ;;  %v5545_v10 = vshll.u32 %v11942_v63, 16 }
 0x343   : > { %v5561_v49 = vrot.slane %v5559_v6, 7  ;;  %v16350_v42 = vpop.f32.mrb[29].mxu0  ;;  %v5930_v20 = vor.u32 %v5929_v45, %v5926_v40  ;;  %v5939_v14 = vrot.slane %v5937_v15, 4  ;;  %v5945_v25 = vrot.slane %v5943_v9, 5  ;;  %v5885_v4 = vld [vmem:[#allocation2 + $0x20] sm:$0x1] }
 0x344   : > { %v5948_v23 = vshrl.u32 %v5839_v17, 16  ;;  %v16352_v38 = vpop.f32.mrb[30].mxu0  ;;  %v5544_v28 = vrot.slane %v5542_v57, 7  ;;  %v5951_v41 = vshll.u32 %v5839_v17, 16  ;;  %v5957_v26 = vshll.u32 %v5840_v16, 16 }
 0x345   : > { %v5564_v43 = vor.u32 %v5562_v44, %v5561_v49  ;;  %v5566_v29 = vrot.slane %v5561_v49, 4  ;;  %v16354_v62 = vpop.f32.mrb[31].mxu0  ;;  %v5931_v52 = vrot.slane %v5930_v20, 4  ;;  %v5940_v56 = vor.u32 %v5939_v14, %v5935_v0  ;;  %v5841_v51 = vld [vmem:[#allocation2 + $0x24] sm:$0xf] }
 0x346   : > { %v5950_v8 = vrot.slane %v5948_v23, 4  ;;  %v5547_v33 = vor.u32 %v5545_v10, %v5544_v28  ;;  %v5549_v39 = vrot.slane %v5544_v28, 4  ;;  %v5953_v13 = vrot.slane %v5951_v41, 5  ;;  %v5842_v49 = vld [vmem:[#allocation2 + $0x28] sm:$0xf] }
 0x347   : > { %v5565_v34 = vsel %vm16223_vm12, %v5557_v18, %v5564_v43  ;;  %v5791_v5 = vsel %vm16229_vm13, %v5566_v29, %v5790_v30  ;;  %v5936_v24 = vsel %vm14316_vm2, %v5931_v52, %v5935_v0  ;;  %v5941_v59 = vrot.slane %v5940_v56, 4  ;;  %v13939_v29 = vld [vmem:[%s18158_s5 + $0x10] sm:$0xff]  }
 0x348   : > { %5789 = vst [vmem:[#allocation2 + $0x7c] sm:$0xf] %v5565_v34  ;;  %5792 = vst [vmem:[#allocation2 + $0x80] sm:$0x1] %v5791_v5  ;;  %v5959_v12 = vrot.slane %v5957_v26, 5  ;;  %v5548_v11 = vsel %vm16223_vm12, %v5540_v37, %v5547_v33  ;;  %v5784_v58 = vsel %vm16229_vm13, %v5549_v39, %v5783_v32  ;;  %v5961_v18 = vshrl.u32 %v5840_v16, 16 }
 0x349   : > { %v5967_v2 = vshll.u32 %v5885_v4, 16  ;;  %5782 = vst [vmem:[#allocation2 + $0x70] sm:$0xf] %v5548_v11  ;;  %5785 = vst [vmem:[#allocation2 + $0x74] sm:$0x1] %v5784_v58  ;;  %v5946_v40 = vsel %vm14316_vm2, %v5941_v59, %v5945_v25  ;;  %v5954_v60 = vor.u32 %v5953_v13, %v5950_v8  ;;  %v5163_v21 = vmul.f32 %v16297_v3, %v16196_v19  ;;  %v13938_v37 = vld [vmem:[%s18158_s5 + $0x8] sm:$0xff]  }
 0x34a   : > { %v5161_v17 = vmul.f32 %v16196_v19, %v16303_v7  ;;  %v11542_v6 = vcombine.low %v5936_v24, %v5946_v40  ;;  %v5963_v63 = vrot.slane %v5961_v18, 4  ;;  %v5164_v30 = vmul.f32 %v16307_v61, %v16196_v19  ;;  %v5800_v39 = vld [vmem:[#allocation2 + $0x90] sm:$0xf]  ;;  %v13940_v11 = vld [vmem:[%s18158_s5 + $0x18] sm:$0xff]  }
 0x34b   : > { %v5969_v16 = vrot.slane %v5967_v2, 5  ;;  %v5955_v45 = vrot.slane %v5954_v60, 4  ;;  %v5202_v0 = vadd.f32 %v16201_v35, %v5163_v21  ;;  %v5162_v3 = vmul.f32 %v16196_v19, %v16310_v36  ;;  %v5793_v2 = vld [vmem:[#allocation2 + $0x84] sm:$0xf] }
 0x34c   : > { %v5200_v15 = vadd.f32 %v16201_v35, %v5161_v17  ;;  %12839 = vmatmul.mubr.bf16.vlgmr.msra.gmra.mrb[0].mxu1 %v11542_v6  ;;  %v5964_v7 = vor.u32 %v5963_v63, %v5959_v12  ;;  %v5203_v9 = vadd.f32 %v16201_v35, %v5164_v30  ;;  %v5972_v44 = vshrl.u32 %v5841_v51, 16 }
 0x34d   : > { %v5975_v57 = vshll.u32 %v5841_v51, 16  ;;  %v5960_v10 = vsel %vm14316_vm2, %v5955_v45, %v5959_v12  ;;  %12871 = vmatpush3.bf16.msra.mxu1 %v16190_v53  ;;  %v5234_v61 = vmax.f32 %v5202_v0, 0.0  ;;  %v5201_v14 = vadd.f32 %v16201_v35, %v5162_v3  ;;  %v5804_v0 = vld [vmem:[#allocation2 + $0x98] sm:$0x1] }
 0x34e   : > { %v5232_v20 = vmax.f32 %v5200_v15, 0.0  ;;  %v5965_v25 = vrot.slane %v5964_v7, 4  ;;  %v5235_v23 = vmax.f32 %v5203_v9, 0.0  ;;  %v5974_v43 = vrot.slane %v5972_v44, 4  ;;  %12872 = vmatprep.subr.bf16.mxu1 %v13938_v37  ;;  %v13941_v44 = vld [vmem:[%s18158_s5 + $0x20] sm:$0xff]  }
 0x34f   : > { %v5977_v36 = vrot.slane %v5975_v57, 5  ;;  %v11947_v28 = vpack.c.bf16 %v5234_v61, %v5234_v61  ;;  %v5233_v41 = vmax.f32 %v5201_v14, 0.0  ;;  %v5981_v52 = vshll.u32 %v5842_v49, 16  ;;  %v5797_v61 = vld [vmem:[#allocation2 + $0x8c] sm:$0x1] }
 0x350   : > { %v11945_v32 = vpack.c.bf16 %v5232_v20, %v5232_v20  ;;  %v5970_v53 = vsel %vm14316_vm2, %v5965_v25, %v5969_v16  ;;  %v11948_v56 = vpack.c.bf16 %v5235_v23, %v5235_v23  ;;  %v5985_v8 = vshrl.u32 %v5842_v49, 16  ;;  %v16396_v49 = vld [vmem:[#allocation2 + $0x30] sm:$0xf]  ;;  %v16405_v25 = vld [vmem:[#allocation2 + $0x34] sm:$0xf] }
 0x351   : > { %v5978_v4 = vor.u32 %v5977_v36, %v5974_v43  ;;  %v11543_v26 = vcombine.low %v5960_v10, %v5970_v53  ;;  %v5585_v34 = vshrl.u32 %v11947_v28, 16  ;;  %v5588_v5 = vshll.u32 %v11947_v28, 16  ;;  %12873 = vmatpush3.bf16.msra.mxu1 %v13938_v37  ;;  %v5886_v37 = vld [vmem:[#allocation2 + $0x2c] sm:$0x1]  ;;  %v5887_v28 = vld [vmem:[#allocation2 + $0x38] sm:$0x1] }
 0x352   : > { %v5568_v33 = vshrl.u32 %v11945_v32, 16  ;;  %v5571_v24 = vshll.u32 %v11945_v32, 16  ;;  %v5593_v59 = vshrl.u32 %v11948_v56, 16  ;;  %v5596_v13 = vshll.u32 %v11948_v56, 16  ;;  %12874 = vmatprep.subr.bf16.mxu1 %v13939_v29  ;;  %v13942_v56 = vld [vmem:[%s18158_s5 + $0x28] sm:$0xff]  }
 0x353   : > { %v11946_v12 = vpack.c.bf16 %v5233_v41, %v5233_v41  ;;  %12842 = vmatprep.mubr.bf16.mxu1 %v11543_v26  ;;  %v5587_v58 = vrot.slane %v5585_v34, 7  ;;  %v5979_v40 = vrot.slane %v5978_v4, 4  ;;  %v5983_v60 = vrot.slane %v5981_v52, 5 }
 0x354   : > { %v5570_v18 = vrot.slane %v5568_v33, 7  ;;  %v5595_v21 = vrot.slane %v5593_v59, 7  ;;  %v5987_v6 = vrot.slane %v5985_v8, 4  ;;  %v5991_v14 = vshll.u32 %v5886_v37, 16 }
 0x355   : > { %v5576_v17 = vshrl.u32 %v11946_v12, 16  ;;  %v5579_v51 = vshll.u32 %v11946_v12, 16  ;;  %v5590_v63 = vor.u32 %v5588_v5, %v5587_v58  ;;  %v5591_v16 = vrot.slane %v5587_v58, 4  ;;  %12875 = vmatpush3.bf16.msra.mxu1 %v13939_v29  ;;  %v16422_v5 = vld [vmem:[#allocation2 + $0x3c] sm:$0xf] }
 0x356   : > { %v5573_v30 = vor.u32 %v5571_v24, %v5570_v18  ;;  %v5574_v45 = vrot.slane %v5570_v18, 4  ;;  %v5598_v15 = vor.u32 %v5596_v13, %v5595_v21  ;;  %v5600_v3 = vrot.slane %v5595_v21, 4  ;;  %12876 = vmatprep.subr.bf16.mxu1 %v13940_v11 }
 0x357   : > { %v5578_v7 = vrot.slane %v5576_v17, 7  ;;  %v5984_v9 = vsel %vm14316_vm2, %v5979_v40, %v5983_v60  ;;  %v5801_v57 = vsel %vm16216_vm11, %v5590_v63, %v5800_v39  ;;  %v5988_v20 = vor.u32 %v5987_v6, %v5983_v60  ;;  %v16441_v63 = vld [vmem:[#allocation2 + $0x40] sm:$0xf] }
 0x358   : > { %v5794_v10 = vsel %vm16216_vm11, %v5573_v30, %v5793_v2  ;;  %5802 = vst [vmem:[#allocation2 + $0x90] sm:$0xf] %v5801_v57  ;;  %v5599_v23 = vsel %vm16223_vm12, %v5591_v16, %v5598_v15  ;;  %v5805_v43 = vsel %vm16229_vm13, %v5600_v3, %v5804_v0  ;;  %v5993_v41 = vrot.slane %v5991_v14, 5 }
 0x359   : > { %5795 = vst [vmem:[#allocation2 + $0x84] sm:$0xf] %v5794_v10  ;;  %v5581_v36 = vor.u32 %v5579_v51, %v5578_v7  ;;  %v5583_v29 = vrot.slane %v5578_v7, 4  ;;  %5803 = vst [vmem:[#allocation2 + $0x94] sm:$0xf] %v5599_v23  ;;  %v5989_v32 = vrot.slane %v5988_v20, 4  ;;  %12877 = vmatpush3.bf16.msra.mxu1 %v13940_v11  ;;  %v5167_v58 = vmul.f32 %v16319_v50, %v16196_v19 }
 0x35a   : > { %5806 = vst [vmem:[#allocation2 + $0x98] sm:$0x1] %v5805_v43  ;;  %v5996_v52 = vshrl.u32 %v16396_v49, 16  ;;  %v5999_v53 = vshll.u32 %v16396_v49, 16  ;;  %v6005_v26 = vshll.u32 %v16405_v25, 16  ;;  %v6009_v34 = vshrl.u32 %v16405_v25, 16  ;;  %12878 = vmatprep.subr.bf16.mxu1 %v13941_v44 }
 0x35b   : > { %v5582_v4 = vsel %vm16223_vm12, %v5574_v45, %v5581_v36  ;;  %v5798_v8 = vsel %vm16229_vm13, %v5583_v29, %v5797_v61  ;;  %v5994_v33 = vsel %vm14316_vm2, %v5989_v32, %v5993_v41  ;;  %v6015_v59 = vshll.u32 %v5887_v28, 16  ;;  %v13943_v50 = vld [vmem:[%s18158_s5 + $0x30] sm:$0xff]   ;;  %v5888_v23 = vld [vmem:[#allocation2 + $0x44] sm:$0x1] }
 0x35c   : > { %5796 = vst [vmem:[#allocation2 + $0x88] sm:$0xf] %v5582_v4  ;;  %5799 = vst [vmem:[#allocation2 + $0x8c] sm:$0x1] %v5798_v8  ;;  %v5998_v39 = vrot.slane %v5996_v52, 4  ;;  %v6001_v24 = vrot.slane %v5999_v53, 5  ;;  %v11544_v13 = vcombine.low %v5984_v9, %v5994_v33  ;;  %v5165_v40 = vmul.f32 %v16196_v19, %v16321_v54 }
 0x35d   : > { %v6007_v12 = vrot.slane %v6005_v26, 5  ;;  %v6011_v11 = vrot.slane %v6009_v34, 4  ;;  %v6017_v2 = vrot.slane %v6015_v59, 5  ;;  %v5168_v60 = vmul.f32 %v16325_v48, %v16196_v19  ;;  %12879 = vmatpush3.bf16.msra.mxu1 %v13941_v44  ;;  %v16458_v41 = vld [vmem:[%s18158_s5 + $0x80] sm:$0xff]  }
 0x35e   : > { %v6002_v18 = vor.u32 %v6001_v24, %v5998_v39  ;;  %12843 = vmatmul.mubr.bf16.gmra.mrb[4].mxu1 %v11544_v13  ;;  %v5206_v17 = vadd.f32 %v16201_v35, %v5167_v58  ;;  %v5166_v51 = vmul.f32 %v16196_v19, %v16334_v22  ;;  %v6020_v37 = vshrl.u32 %v16422_v5, 16  ;;  %12880 = vmatprep.subr.bf16.mxu1 %v13942_v56  ;;  %v5814_v39 = vld [vmem:[#allocation2 + $0xa8] sm:$0xf] }
 0x35f   : > { %v6012_v21 = vor.u32 %v6011_v11, %v6007_v12  ;;  %v5204_v54 = vadd.f32 %v16201_v35, %v5165_v40  ;;  %v5207_v48 = vadd.f32 %v16201_v35, %v5168_v60  ;;  %v6023_v16 = vshll.u32 %v16422_v5, 16 }
 0x360   : > { %v6003_v6 = vrot.slane %v6002_v18, 4  ;;  %v5238_v45 = vmax.f32 %v5206_v17, 0.0  ;;  %v5205_v19 = vadd.f32 %v16201_v35, %v5166_v51  ;;  %v6022_v22 = vrot.slane %v6020_v37, 4  ;;  %v13944_v35 = vld [vmem:[%s18158_s5 + $0x38] sm:$0xff]  }
 0x361   : > { %v6013_v30 = vrot.slane %v6012_v21, 4  ;;  %v5236_v15 = vmax.f32 %v5204_v54, 0.0  ;;  %v5239_v3 = vmax.f32 %v5207_v48, 0.0  ;;  %v6025_v7 = vrot.slane %v6023_v16, 5  ;;  %12881 = vmatpush3.bf16.msra.mxu1 %v13942_v56  ;;  %v5807_v18 = vld [vmem:[#allocation2 + $0x9c] sm:$0xf] }
 0x362   : > { %v6008_v0 = vsel %vm14316_vm2, %v6003_v6, %v6007_v12  ;;  %v11951_v44 = vpack.c.bf16 %v5238_v45, %v5238_v45  ;;  %v5237_v57 = vmax.f32 %v5205_v19, 0.0  ;;  %v6029_v10 = vshll.u32 %v16441_v63, 16  ;;  %12882 = vmatprep.subr.bf16.mxu1 %v13943_v50  ;;  %v16464_v6 = vld [vmem:[#allocation2 + $0x48] sm:$0xf]  ;;  %v16468_v45 = vld [vmem:[#allocation2 + $0x4c] sm:$0xf] }
 0x363   : > { %v6018_v9 = vsel %vm14316_vm2, %v6013_v30, %v6017_v2  ;;  %v11949_v20 = vpack.c.bf16 %v5236_v15, %v5236_v15  ;;  %v11952_v14 = vpack.c.bf16 %v5239_v3, %v5239_v3  ;;  %v6026_v43 = vor.u32 %v6025_v7, %v6022_v22  ;;  %v5818_v2 = vld [vmem:[#allocation2 + $0xb0] sm:$0x1] }
 0x364   : > { %v11545_v61 = vcombine.low %v6008_v0, %v6018_v9  ;;  %v5619_v36 = vshrl.u32 %v11951_v44, 16  ;;  %v5622_v29 = vshll.u32 %v11951_v44, 16  ;;  %v11950_v28 = vpack.c.bf16 %v5237_v57, %v5237_v57  ;;  %v16470_v19 = vld [vmem:[#allocation2 + $0x50] sm:$0x1] }
 0x365   : > { %v16453_v32 = vrot.slane %v6029_v10, 5  ;;  %v5602_v52 = vshrl.u32 %v11949_v20, 16  ;;  %v5605_v53 = vshll.u32 %v11949_v20, 16  ;;  %v5627_v56 = vshrl.u32 %v11952_v14, 16  ;;  %12883 = vmatpush3.bf16.msra.mxu1 %v13943_v50  ;;  %v5811_v50 = vld [vmem:[#allocation2 + $0xa4] sm:$0x1] }
 0x366   : > { %12846 = vmatprep.mubr.bf16.mxu1 %v11545_v61  ;;  %v5630_v4 = vshll.u32 %v11952_v14, 16  ;;  %v5621_v8 = vrot.slane %v5619_v36, 7  ;;  %v5610_v26 = vshrl.u32 %v11950_v28, 16  ;;  %v5613_v34 = vshll.u32 %v11950_v28, 16  ;;  %12884 = vmatprep.subr.bf16.mxu1 %v13944_v35 }
 0x367   : > { %v6027_v33 = vrot.slane %v6026_v43, 4  ;;  %v5604_v24 = vrot.slane %v5602_v52, 7  ;;  %v5629_v59 = vrot.slane %v5627_v56, 7  ;;  %v6033_v13 = vshrl.u32 %v16441_v63, 16  ;;  %v14062_v43 = vld [vmem:[%s18156_s3] ss:$0 sm:$0xff] }
 0x368   : > { %v6039_v12 = vshll.u32 %v5888_v23, 16  ;;  %v5624_v11 = vor.u32 %v5622_v29, %v5621_v8  ;;  %v5625_v58 = vrot.slane %v5621_v8, 4  ;;  %v5612_v40 = vrot.slane %v5610_v26, 7  ;;  %v16494_v56 = vld [vmem:[#allocation2 + $0x54] sm:$0xf] }
 0x369   : > { %v6032_v60 = vsel %vm14316_vm2, %v6027_v33, %v16453_v32  ;;  %v5607_v21 = vor.u32 %v5605_v53, %v5604_v24  ;;  %v5608_v17 = vrot.slane %v5604_v24, 4  ;;  %v5632_v51 = vor.u32 %v5630_v4, %v5629_v59  ;;  %12885 = vmatpush3.bf16.msra.mxu1 %v13944_v35  ;;  %v14063_v8 = vld [vmem:[%s18157_s4] ss:$0 sm:$0xff] }
 0x36a   : > { %v5634_v37 = vrot.slane %v5629_v59, 4  ;;  %v5815_v54 = vsel %vm16216_vm11, %v5624_v11, %v5814_v39  ;;  %v5615_v48 = vor.u32 %v5613_v34, %v5612_v40  ;;  %v5617_v16 = vrot.slane %v5612_v40, 4  ;;  %12918 = vmatprep.subr.bf16.mxu1 %v16458_v41 }
 0x36b   : > { %v6035_v30 = vrot.slane %v6033_v13, 4  ;;  %5816 = vst [vmem:[#allocation2 + $0xa8] sm:$0xf] %v5815_v54  ;;  %v5808_v22 = vsel %vm16216_vm11, %v5607_v21, %v5807_v18  ;;  %v5633_v0 = vsel %vm16223_vm12, %v5625_v58, %v5632_v51  ;;  %v6041_v3 = vrot.slane %v6039_v12, 5 }
 0x36c   : > { %v5819_v15 = vsel %vm16229_vm13, %v5634_v37, %v5818_v2  ;;  %5809 = vst [vmem:[#allocation2 + $0x9c] sm:$0xf] %v5808_v22  ;;  %5817 = vst [vmem:[#allocation2 + $0xac] sm:$0xf] %v5633_v0  ;;  %v5616_v7 = vsel %vm16223_vm12, %v5608_v17, %v5615_v48  ;;  %v5812_v9 = vsel %vm16229_vm13, %v5617_v16, %v5811_v50  ;;  %v6044_v57 = vshrl.u32 %v16464_v6, 16 }
 0x36d   : > { %5820 = vst [vmem:[#allocation2 + $0xb0] sm:$0x1] %v5819_v15  ;;  %v6036_v44 = vor.u32 %v6035_v30, %v16453_v32  ;;  %5810 = vst [vmem:[#allocation2 + $0xa0] sm:$0xf] %v5616_v7  ;;  %v6047_v10 = vshll.u32 %v16464_v6, 16  ;;  %v6053_v35 = vshll.u32 %v16468_v45, 16  ;;  %v5171_v36 = vmul.f32 %v14062_v43, %v16348_v47 }
 0x36e   : > { %5813 = vst [vmem:[#allocation2 + $0xa4] sm:$0x1] %v5812_v9  ;;  %v6057_v61 = vshrl.u32 %v16468_v45, 16  ;;  %v6063_v20 = vshll.u32 %v16470_v19, 16  ;;  %v6046_v23 = vrot.slane %v6044_v57, 4  ;;  %v5169_v29 = vmul.f32 %v14062_v43, %v16350_v42 }
 0x36f   : > { %v6037_v14 = vrot.slane %v6036_v44, 4  ;;  %v6049_v28 = vrot.slane %v6047_v10, 5  ;;  %v6055_v32 = vrot.slane %v6053_v35, 5  ;;  %v5210_v26 = vadd.f32 %v14063_v8, %v5171_v36  ;;  %v16509_v50 = vld [vmem:[#allocation2 + $0x58] sm:$0xf] }
 0x370   : > { %v6059_v52 = vrot.slane %v6057_v61, 4  ;;  %v6065_v53 = vrot.slane %v6063_v20, 5  ;;  %v5208_v34 = vadd.f32 %v14063_v8, %v5169_v29  ;;  %v5172_v33 = vmul.f32 %v14062_v43, %v16352_v38  ;;  %v5828_v0 = vld [vmem:[#allocation2 + $0xc0] sm:$0xf]  ;;  %v16513_v36 = vld [vmem:[#allocation2 + $0x5c] sm:$0x1] }
 0x371   : > { %v6042_v4 = vsel %vm14316_vm2, %v6037_v14, %v6041_v3  ;;  %v6050_v39 = vor.u32 %v6049_v28, %v6046_v23  ;;  %v5170_v24 = vmul.f32 %v14062_v43, %v16354_v62  ;;  %v5242_v59 = vmax.f32 %v5210_v26, 0.0  ;;  %v5821_v3 = vld [vmem:[#allocation2 + $0xb4] sm:$0xf] }
 0x372   : > { %v11546_v47 = vcombine.low %v6032_v60, %v6042_v4  ;;  %v6060_v42 = vor.u32 %v6059_v52, %v6055_v32  ;;  %v5240_v13 = vmax.f32 %v5208_v34, 0.0  ;;  %v5211_v12 = vadd.f32 %v14063_v8, %v5172_v33  ;;  %v16515_v33 = vld [vmem:[#allocation2 + $0x60] sm:$0xf] }
 0x373   : > { %v6068_v11 = vshrl.u32 %v16494_v56, 16  ;;  %v6051_v58 = vrot.slane %v6050_v39, 4  ;;  %v5209_v2 = vadd.f32 %v14063_v8, %v5170_v24  ;;  %v6071_v40 = vshll.u32 %v16494_v56, 16 }
 0x374   : > { %12847 = vmatmul.mubr.bf16.gmra.mrb[8].mxu1 %v11546_v47  ;;  %v6061_v18 = vrot.slane %v6060_v42, 4  ;;  %v11955_v21 = vpack.c.bf16 %v5242_v59, %v5242_v59  ;;  %v11953_v17 = vpack.c.bf16 %v5240_v13, %v5240_v13  ;;  %v5243_v51 = vmax.f32 %v5211_v12, 0.0  ;;  %v5825_v42 = vld [vmem:[#allocation2 + $0xbc] sm:$0x1]  ;;  %v16522_v13 = vld [vmem:[#allocation2 + $0x64] sm:$0xf] }
 0x375   : > { %v6070_v38 = vrot.slane %v6068_v11, 4  ;;  %v6056_v60 = vsel %vm14316_vm2, %v6051_v58, %v6055_v32  ;;  %v5241_v37 = vmax.f32 %v5209_v2, 0.0  ;;  %v6073_v54 = vrot.slane %v6071_v40, 5  ;;  %v16524_v2 = vld [vmem:[#allocation2 + $0x68] sm:$0x1] }
 0x376   : > { %v6066_v62 = vsel %vm14316_vm2, %v6061_v18, %v6065_v53  ;;  %v5653_v16 = vshrl.u32 %v11955_v21, 16  ;;  %v5656_v30 = vshll.u32 %v11955_v21, 16  ;;  %v5636_v22 = vshrl.u32 %v11953_v17, 16  ;;  %v5832_v53 = vld [vmem:[#allocation2 + $0xc8] sm:$0x1] }
 0x377   : > { %v11547_v48 = vcombine.low %v6056_v60, %v6066_v62  ;;  %v5639_v15 = vshll.u32 %v11953_v17, 16  ;;  %v11956_v7 = vpack.c.bf16 %v5243_v51, %v5243_v51  ;;  %v11954_v9 = vpack.c.bf16 %v5241_v37, %v5241_v37  ;;  %v16526_v40 = vld [vmem:[#allocation2 + $0x6c] sm:$0xf] }
 0x378   : > { %v6074_v44 = vor.u32 %v6073_v54, %v6070_v38  ;;  %v5655_v57 = vrot.slane %v5653_v16, 7  ;;  %v5638_v10 = vrot.slane %v5636_v22, 7  ;;  %v6077_v35 = vshll.u32 %v16509_v50, 16  ;;  %v16531_v38 = vld [vmem:[#allocation2 + $0x70] sm:$0xf] }
 0x379   : > { %12850 = vmatprep.mubr.bf16.mxu1 %v11547_v48  ;;  %v6081_v61 = vshrl.u32 %v16509_v50, 16  ;;  %v5661_v20 = vshrl.u32 %v11956_v7, 16  ;;  %v5664_v14 = vshll.u32 %v11956_v7, 16  ;;  %v5644_v23 = vshrl.u32 %v11954_v9, 16  ;;  %v16549_v7 = vld [vmem:[#allocation2 + $0x7c] sm:$0xf] }
 0x37a   : > { %v5647_v43 = vshll.u32 %v11954_v9, 16  ;;  %v5658_v29 = vor.u32 %v5656_v30, %v5655_v57  ;;  %v5659_v28 = vrot.slane %v5655_v57, 4  ;;  %v5641_v32 = vor.u32 %v5639_v15, %v5638_v10 }
 0x37b   : > { %v5642_v52 = vrot.slane %v5638_v10, 4  ;;  %v5663_v4 = vrot.slane %v5661_v20, 7  ;;  %v5646_v8 = vrot.slane %v5644_v23, 7  ;;  %v6075_v26 = vrot.slane %v6074_v44, 4  ;;  %v16553_v10 = vld [vmem:[#allocation2 + $0x74] sm:$0x1] }
 0x37c   : > { %v6079_v34 = vrot.slane %v6077_v35, 5  ;;  %v5829_v47 = vsel %vm16216_vm11, %v5658_v29, %v5828_v0  ;;  %v5822_v39 = vsel %vm16216_vm11, %v5641_v32, %v5821_v3  ;;  %v6083_v24 = vrot.slane %v6081_v61, 4  ;;  %v16543_v0 = vld [vmem:[#allocation2 + $0x78] sm:$0xf] }
 0x37d   : > { %v6087_v59 = vshll.u32 %v16513_v36, 16  ;;  %5830 = vst [vmem:[#allocation2 + $0xc0] sm:$0xf] %v5829_v47  ;;  %5823 = vst [vmem:[#allocation2 + $0xb4] sm:$0xf] %v5822_v39  ;;  %v5666_v12 = vor.u32 %v5664_v14, %v5663_v4  ;;  %v5668_v11 = vrot.slane %v5663_v4, 4  ;;  %v5649_v58 = vor.u32 %v5647_v43, %v5646_v8 }
 0x37e   : > { %v5651_v18 = vrot.slane %v5646_v8, 4  ;;  %v6080_v46 = vsel %vm14316_vm2, %v6075_v26, %v6079_v34  ;;  %v6084_v21 = vor.u32 %v6083_v24, %v6079_v34  ;;  %v6092_v51 = vshrl.u32 %v16515_v33, 16  ;;  %v16558_v4 = vld [vmem:[#allocation2 + $0x80] sm:$0x1] }
 0x37f   : > { %v6089_v17 = vrot.slane %v6087_v59, 5  ;;  %v5667_v60 = vsel %vm16223_vm12, %v5659_v28, %v5666_v12  ;;  %v5833_v62 = vsel %vm16229_vm13, %v5668_v11, %v5832_v53  ;;  %v5650_v37 = vsel %vm16223_vm12, %v5642_v52, %v5649_v58  ;;  %v16563_v58 = vld [vmem:[#allocation2 + $0x84] sm:$0xf] }
 0x380   : > { %v5826_v54 = vsel %vm16229_vm13, %v5651_v18, %v5825_v42  ;;  %5831 = vst [vmem:[#allocation2 + $0xc4] sm:$0xf] %v5667_v60  ;;  %5834 = vst [vmem:[#allocation2 + $0xc8] sm:$0x1] %v5833_v62  ;;  %v6085_v48 = vrot.slane %v6084_v21, 4  ;;  %v6094_v16 = vrot.slane %v6092_v51, 4 }
 0x381   : > { %5824 = vst [vmem:[#allocation2 + $0xb8] sm:$0xf] %v5650_v37  ;;  %5827 = vst [vmem:[#allocation2 + $0xbc] sm:$0x1] %v5826_v54  ;;  %v6095_v30 = vshll.u32 %v16515_v33, 16  ;;  %v6101_v22 = vshll.u32 %v16522_v13, 16 }
 0x382   : > { %v6105_v15 = vshrl.u32 %v16522_v13, 16  ;;  %v6111_v31 = vshll.u32 %v16524_v2, 16  ;;  %v6116_v3 = vshrl.u32 %v16526_v40, 16  ;;  %v6119_v27 = vshll.u32 %v16526_v40, 16  ;;  %v16571_v54 = vld [vmem:[#allocation2 + $0x88] sm:$0xf] }
 0x383   : > { %v6090_v9 = vsel %vm14316_vm2, %v6085_v48, %v6089_v17  ;;  %v6097_v44 = vrot.slane %v6095_v30, 5  ;;  %v6103_v57 = vrot.slane %v6101_v22, 5  ;;  %v6125_v35 = vshll.u32 %v16531_v38, 16 }
 0x384   : > { %v11548_v61 = vcombine.low %v6080_v46, %v6090_v9  ;;  %v6107_v20 = vrot.slane %v6105_v15, 4  ;;  %v6113_v14 = vrot.slane %v6111_v31, 5  ;;  %v6118_v23 = vrot.slane %v6116_v3, 4  ;;  %v16576_v15 = vld [vmem:[#allocation2 + $0x90] sm:$0xf] }
 0x385   : > { %v6098_v43 = vor.u32 %v6097_v44, %v6094_v16  ;;  %v6121_v29 = vrot.slane %v6119_v27, 5  ;;  %v6127_v28 = vrot.slane %v6125_v35, 5  ;;  %v6129_v32 = vshrl.u32 %v16531_v38, 16  ;;  %v16578_v9 = vld [vmem:[#allocation2 + $0x8c] sm:$0x1] }
 0x386   : > { %12851 = vmatmul.mubr.bf16.gmra.mrb[12].mxu1 %v11548_v61  ;;  %v6108_v52 = vor.u32 %v6107_v20, %v6103_v57  ;;  %v6135_v53 = vshll.u32 %v16553_v10, 16  ;;  %v6140_v8 = vshrl.u32 %v16543_v0, 16  ;;  %v6143_v26 = vshll.u32 %v16543_v0, 16 }
 0x387   : > { %v6099_v34 = vrot.slane %v6098_v43, 4  ;;  %v6122_v47 = vor.u32 %v6121_v29, %v6118_v23  ;;  %v6131_v39 = vrot.slane %v6129_v32, 4  ;;  %v6149_v42 = vshll.u32 %v16549_v7, 16 }
 0x388   : > { %v6109_v24 = vrot.slane %v6108_v52, 4  ;;  %v6137_v59 = vrot.slane %v6135_v53, 5  ;;  %v6142_v12 = vrot.slane %v6140_v8, 4  ;;  %v6145_v11 = vrot.slane %v6143_v26, 5  ;;  %v16590_v8 = vld [vmem:[#allocation2 + $0x98] sm:$0x1] }
 0x389   : > { %v6104_v18 = vsel %vm14316_vm2, %v6099_v34, %v6103_v57  ;;  %v6123_v46 = vrot.slane %v6122_v47, 4  ;;  %v6132_v21 = vor.u32 %v6131_v39, %v6127_v28  ;;  %v6151_v17 = vrot.slane %v6149_v42, 5 }
 0x38a   : > { %v6114_v51 = vsel %vm14316_vm2, %v6109_v24, %v6113_v14  ;;  %v6146_v60 = vor.u32 %v6145_v11, %v6142_v12  ;;  %v6153_v62 = vshrl.u32 %v16549_v7, 16  ;;  %v6159_v37 = vshll.u32 %v16558_v4, 16  ;;  %v16585_v14 = vld [vmem:[#allocation2 + $0x94] sm:$0xf]  ;;  %v16595_v24 = vld [vmem:[#allocation2 + $0x9c] sm:$0xf] }
 0x38b   : > { %v11549_v48 = vcombine.low %v6104_v18, %v6114_v51  ;;  %v6128_v16 = vsel %vm14316_vm2, %v6123_v46, %v6127_v28  ;;  %v6133_v30 = vrot.slane %v6132_v21, 4  ;;  %v6164_v22 = vshrl.u32 %v16563_v58, 16  ;;  %v16598_v46 = vld [vmem:[#allocation2 + $0xa0] sm:$0xf] }
 0x38c   : > { %v6147_v31 = vrot.slane %v6146_v60, 4  ;;  %v6155_v3 = vrot.slane %v6153_v62, 4  ;;  %v6161_v27 = vrot.slane %v6159_v37, 5  ;;  %v6167_v44 = vshll.u32 %v16563_v58, 16  ;;  %v16602_v62 = vld [vmem:[#allocation2 + $0xa4] sm:$0x1] }
 0x38d   : > { %12854 = vmatprep.mubr.bf16.mxu1 %v11549_v48  ;;  %v6138_v57 = vsel %vm14316_vm2, %v6133_v30, %v6137_v59  ;;  %v6166_v35 = vrot.slane %v6164_v22, 4  ;;  %v6173_v61 = vshll.u32 %v16571_v54, 16  ;;  %v6177_v20 = vshrl.u32 %v16571_v54, 16  ;;  %v16605_v22 = vld [vmem:[#allocation2 + $0xa8] sm:$0xf] }
 0x38e   : > { %v11550_v23 = vcombine.low %v6128_v16, %v6138_v57  ;;  %v6152_v43 = vsel %vm14316_vm2, %v6147_v31, %v6151_v17  ;;  %v6156_v29 = vor.u32 %v6155_v3, %v6151_v17  ;;  %v6169_v28 = vrot.slane %v6167_v44, 5 }
 0x38f   : > { %v6175_v32 = vrot.slane %v6173_v61, 5  ;;  %v6179_v52 = vrot.slane %v6177_v20, 4  ;;  %v6183_v53 = vshll.u32 %v16578_v9, 16  ;;  %v6188_v26 = vshrl.u32 %v16576_v15, 16 }
 0x390   : > { %12855 = vmatmul.mubr.bf16.gmra.mrb[16].mxu1 %v11550_v23  ;;  %v6157_v34 = vrot.slane %v6156_v29, 4  ;;  %v6170_v47 = vor.u32 %v6169_v28, %v6166_v35  ;;  %v6191_v39 = vshll.u32 %v16576_v15, 16  ;;  %v6197_v42 = vshll.u32 %v16585_v14, 16  ;;  %v16614_v23 = vld [vmem:[#allocation2 + $0xac] sm:$0xf] }
 0x391   : > { %v6180_v59 = vor.u32 %v6179_v52, %v6175_v32  ;;  %v6185_v12 = vrot.slane %v6183_v53, 5  ;;  %v6190_v11 = vrot.slane %v6188_v26, 4  ;;  %v6201_v18 = vshrl.u32 %v16585_v14, 16 }
 0x392   : > { %v6162_v21 = vsel %vm14316_vm2, %v6157_v34, %v6161_v27  ;;  %v6171_v17 = vrot.slane %v6170_v47, 4  ;;  %v6193_v51 = vrot.slane %v6191_v39, 5  ;;  %v6199_v60 = vrot.slane %v6197_v42, 5  ;;  %v16620_v39 = vld [vmem:[#allocation2 + $0xb4] sm:$0xf] }
 0x393   : > { %v11551_v37 = vcombine.low %v6152_v43, %v6162_v21  ;;  %v6181_v48 = vrot.slane %v6180_v59, 4  ;;  %v6203_v16 = vrot.slane %v6201_v18, 4  ;;  %v6207_v30 = vshll.u32 %v16590_v8, 16  ;;  %v16626_v18 = vld [vmem:[#allocation2 + $0xb8] sm:$0xf] }
 0x394   : > { %v6176_v31 = vsel %vm14316_vm2, %v6171_v17, %v6175_v32  ;;  %v6194_v3 = vor.u32 %v6193_v51, %v6190_v11  ;;  %v6212_v44 = vshrl.u32 %v16595_v24, 16  ;;  %v6215_v27 = vshll.u32 %v16595_v24, 16  ;;  %v16616_v32 = vld [vmem:[#allocation2 + $0xb0] sm:$0x1] }
 0x395   : > { %12858 = vmatprep.mubr.bf16.mxu1 %v11551_v37  ;;  %v6186_v57 = vsel %vm14316_vm2, %v6181_v48, %v6185_v12  ;;  %v6204_v35 = vor.u32 %v6203_v16, %v6199_v60  ;;  %v6209_v61 = vrot.slane %v6207_v30, 5  ;;  %v6221_v20 = vshll.u32 %v16598_v46, 16 }
 0x396   : > { %v11552_v43 = vcombine.low %v6176_v31, %v6186_v57  ;;  %v6195_v29 = vrot.slane %v6194_v3, 4  ;;  %v6214_v28 = vrot.slane %v6212_v44, 4  ;;  %v6217_v52 = vrot.slane %v6215_v27, 5  ;;  %v16631_v3 = vld [vmem:[#allocation2 + $0xbc] sm:$0x1] }
 0x397   : > { %v6205_v53 = vrot.slane %v6204_v35, 4  ;;  %v6223_v26 = vrot.slane %v6221_v20, 5  ;;  %v6225_v34 = vshrl.u32 %v16598_v46, 16  ;;  %v6231_v47 = vshll.u32 %v16602_v62, 16 }
 0x398   : > { %12859 = vmatmul.mubr.bf16.gmra.mrb[20].mxu1 %v11552_v43  ;;  %v6200_v42 = vsel %vm14316_vm2, %v6195_v29, %v6199_v60  ;;  %v6218_v59 = vor.u32 %v6217_v52, %v6214_v28  ;;  %v6236_v12 = vshrl.u32 %v16605_v22, 16  ;;  %v6239_v11 = vshll.u32 %v16605_v22, 16 }
 0x399   : > { %v6210_v21 = vsel %vm14316_vm2, %v6205_v53, %v6209_v61  ;;  %v6227_v17 = vrot.slane %v6225_v34, 4  ;;  %v6233_v51 = vrot.slane %v6231_v47, 5  ;;  %v6245_v37 = vshll.u32 %v16614_v23, 16 }
 0x39a   : > { %v11553_v48 = vcombine.low %v6200_v42, %v6210_v21  ;;  %v6219_v16 = vrot.slane %v6218_v59, 4  ;;  %v6238_v30 = vrot.slane %v6236_v12, 4  ;;  %v6241_v31 = vrot.slane %v6239_v11, 5 }
 0x39b   : > { %v6228_v60 = vor.u32 %v6227_v17, %v6223_v26  ;;  %v6247_v44 = vrot.slane %v6245_v37, 5  ;;  %v6249_v27 = vshrl.u32 %v16614_v23, 16  ;;  %v6255_v57 = vshll.u32 %v16616_v32, 16 }
 0x39c   : > { %12862 = vmatprep.mubr.bf16.mxu1 %v11553_v48  ;;  %v6242_v35 = vor.u32 %v6241_v31, %v6238_v30  ;;  %v6260_v61 = vshrl.u32 %v16620_v39, 16  ;;  %v6263_v20 = vshll.u32 %v16620_v39, 16  ;;  %v6224_v43 = vsel %vm14316_vm2, %v6219_v16, %v6223_v26 }
 0x39d   : > { %v6229_v29 = vrot.slane %v6228_v60, 4  ;;  %v6251_v28 = vrot.slane %v6249_v27, 4  ;;  %v6269_v52 = vshll.u32 %v16626_v18, 16  ;;  %v6273_v42 = vshrl.u32 %v16626_v18, 16 }
 0x39e   : > { %v6243_v53 = vrot.slane %v6242_v35, 4  ;;  %v6262_v34 = vrot.slane %v6260_v61, 4  ;;  %v6265_v47 = vrot.slane %v6263_v20, 5  ;;  %v6279_v21 = vshll.u32 %v16631_v3, 16 }
 0x39f   : > { %v6234_v59 = vsel %vm14316_vm2, %v6229_v29, %v6233_v51  ;;  %v6252_v12 = vor.u32 %v6251_v28, %v6247_v44  ;;  %v6271_v11 = vrot.slane %v6269_v52, 5  ;;  %v6275_v48 = vrot.slane %v6273_v42, 4 }
 0x3a0   : > { %v11554_v17 = vcombine.low %v6224_v43, %v6234_v59  ;;  %v6266_v37 = vor.u32 %v6265_v47, %v6262_v34  ;;  %v6257_v16 = vrot.slane %v6255_v57, 5  ;;  %v6248_v60 = vsel %vm14316_vm2, %v6243_v53, %v6247_v44  ;;  %v14064_v59 = vld [vmem:[#allocation2] sm:$0xf] }
 0x3a1   : > { %v6253_v26 = vrot.slane %v6252_v12, 4  ;;  %v6276_v31 = vor.u32 %v6275_v48, %v6271_v11  ;;  %v6281_v35 = vrot.slane %v6279_v21, 5  ;;  %v11572_v43 = vcombine.low %v16494_v56, %v16509_v50  ;;  %v16668_v12 = vld [vmem:[#allocation2 + $0x4] sm:$0xf] }
 0x3a2   : > { %12863 = vmatmul.mubr.bf16.gmra.mrb[24].mxu1 %v11554_v17  ;;  %v6267_v30 = vrot.slane %v6266_v37, 4  ;;  %v11573_v57 = vcombine.low %v16515_v33, %v16522_v13  ;;  %v11574_v29 = vcombine.low %v16526_v40, %v16531_v38  ;;  %v11575_v44 = vcombine.low %v16543_v0, %v16549_v7  ;;  %v14066_v17 = vld [vmem:[#allocation2 + $0xc] sm:$0xf]  ;;  %v16673_v37 = vld [vmem:[#allocation2 + $0x10] sm:$0xf] }
 0x3a3   : > { %v6258_v27 = vsel %vm14316_vm2, %v6253_v26, %v6257_v16  ;;  %v6277_v20 = vrot.slane %v6276_v31, 4  ;;  %v11566_v48 = vcombine.low %v14066_v17, %v16673_v37  ;;  %v13950_v26 = vld [vmem:[%s18158_s5 + $0x88] sm:$0xff]   ;;  %v6885_v16 = vld [vmem:[#allocation2 + $0x54] sm:$0xe]  ;;  %v16679_v31 = vld [vmem:[#allocation2 + $0x1c] sm:$0xf]  ;;  %v18412_v56 = vcombine.low %v16563_v58, %v16571_v54 }
 0x3a4   : > { %v11555_v51 = vcombine.low %v6248_v60, %v6258_v27  ;;  %v6272_v61 = vsel %vm14316_vm2, %v6267_v30, %v6271_v11  ;;  %v11565_v11 = vcombine.low %v14064_v59, %v16668_v12  ;;  %v14068_v30 = vld [vmem:[#allocation2 + $0x18] sm:$0xf]  ;;  %v6886_v27 = vld [vmem:[#allocation2 + $0x60] sm:$0xe]  ;;  %v6987_v21 = vrot.slane %v16524_v2, 5 }
 0x3a5   : > { %v6282_v52 = vsel %vm14316_vm2, %v6277_v20, %v6281_v35  ;;  %v11567_v60 = vcombine.low %v14068_v30, %v16679_v31  ;;  %v6977_v35 = vrot.slane %v16509_v50, 5  ;;  %v6887_v20 = vld [vmem:[#allocation2 + $0x6c] sm:$0xe]  ;;  %v11597_v30 = vrot.slane %v6886_v27, 9 }
 0x3a6   : > { %12866 = vmatprep.mubr.bf16.mxu1 %v11555_v51  ;;  %v11556_v42 = vcombine.low %v6272_v61, %v6282_v52  ;;  %v11596_v51 = vrot.slane %v6885_v16, 9  ;;  %v6984_v61 = vrot.slane %v16522_v13, 5  ;;  %v14070_v52 = vld [vmem:[#allocation2 + $0x24] sm:$0xf]  ;;  %v6991_v27 = vrot.slane %v16531_v38, 5 }
 0x3a7   : > { %v6979_v17 = vrot.slane %v6977_v35, 4  ;;  %v18413_v50 = vcombine.low %v16576_v15, %v16585_v14  ;;  %v6928_v33 = vrot.slane %v16668_v12, 5  ;;  %v6878_v13 = vld [vmem:[#allocation2] sm:$0xe]  ;;  %v18414_v38 = vcombine.low %v16595_v24, %v16598_v46  ;;  %v6880_v12 = vld [vmem:[#allocation2 + $0x18] sm:$0xe] }
 0x3a8   : > { %v16696_v16 = vsel %vm14649_vm5, %v11596_v51, %v6977_v35  ;;  %v16705_v34 = vsel %vm14649_vm5, %v11597_v30, %v6984_v61  ;;  %v6994_v35 = vrot.slane %v16553_v10, 5  ;;  %v6998_v51 = vrot.slane %v16549_v7, 5  ;;  %v6890_v30 = vld [vmem:[#allocation2 + $0x90] sm:$0xe] }
 0x3a9   : > { %v6930_v40 = vrot.slane %v6928_v33, 4  ;;  %v18415_v0 = vcombine.low %v16605_v22, %v16614_v23  ;;  %v6942_v15 = vrot.slane %v16679_v31, 5  ;;  %v18416_v24 = vcombine.low %v16620_v39, %v16626_v18  ;;  %v14073_v22 = vld [vmem:[#allocation2 + $0x14] sm:$0x1] }
 0x3aa   : > { %12867 = vmatmul.mubr.bf16.gmra.mrb[28].mxu1 %v11556_v42  ;;  %v16685_v42 = vld [vmem:[#allocation2 + $0x28] sm:$0xf]  ;;  %v7000_v10 = vrot.slane %v6998_v51, 4  ;;  %v14075_v39 = vld [vmem:[#allocation2 + $0x34] sm:$0xf] }
 0x3ab   : > { %12886 = vmatprep.mubr.bf16.mxu1 %v11565_v11  ;;  %v11568_v59 = vcombine.low %v14070_v52, %v16685_v42  ;;  %v13953_v11 = vld [vmem:[%s18158_s5 + $0x90] sm:$0xff]   ;;  %v6888_v52 = vld [vmem:[#allocation2 + $0x78] sm:$0xe]  ;;  %v6949_v31 = vrot.slane %v16685_v42, 5  ;;  %v6881_v42 = vld [vmem:[#allocation2 + $0x24] sm:$0xe] }
 0x3b2   : > { %12887 = vmatmul.mubr.bf16.vlgmr.msra.gmra.mrb[0].mxu1 %v11566_v48  ;;  %v6980_v48 = vrot.slane %v16513_v36, 5  ;;  %v11598_v36 = vrot.slane %v6887_v20, 9 }
 0x3b3   : > { %12890 = vmatprep.mubr.bf16.mxu1 %v11567_v60  ;;  %12919 = vmatpush3.bf16.msra.mxu1 %v16458_v41  ;;  %v11569_v41 = vcombine.low %v16396_v49, %v16405_v25  ;;  %v6986_v60 = vrot.slane %v6984_v61, 4  ;;  %v6889_v49 = vld [vmem:[#allocation2 + $0x84] sm:$0xe]  ;;  %v13956_v61 = vld [vmem:[%s18158_s5 + $0x98] sm:$0xff]   ;;  %v7005_v25 = vrot.slane %v16571_v54, 5  ;;  %v6935_v54 = vrot.slane %v16673_v37, 5 }
 0x3b4   : > { %12920 = vmatprep.subr.bf16.mxu1 %v13950_v26  ;;  %v16701_v47 = vsel %vm14649_vm5, %v6979_v17, %v6980_v48  ;;  %v11599_v17 = vrot.slane %v6888_v52, 9  ;;  %v7001_v48 = vrot.slane %v16558_v4, 5  ;;  %v7008_v4 = vrot.slane %v16578_v9, 5  ;;  %v13959_v9 = vld [vmem:[%s18158_s5 + $0xa0] sm:$0xff]  }
 0x3b5   : > { %v16712_v2 = vsel %vm14649_vm5, %v6986_v60, %v6987_v21  ;;  %v16724_v21 = vsel %vm14649_vm5, %v11598_v36, %v6991_v27  ;;  %v11600_v60 = vrot.slane %v6889_v49, 9  ;;  %v7012_v52 = vrot.slane %v16585_v14, 5 }
 0x3b6   : > { %v16733_v20 = vsel %vm14649_vm5, %v11599_v17, %v6998_v51  ;;  %v11601_v49 = vrot.slane %v6890_v30, 9  ;;  %v11570_v51 = vcombine.low %v16422_v5, %v16441_v63  ;;  %v6892_v17 = vld [vmem:[#allocation2 + $0xa8] sm:$0xe]  ;;  %v7019_v63 = vrot.slane %v16598_v46, 5  ;;  %v6879_v46 = vld [vmem:[#allocation2 + $0xc] sm:$0xe] }
 0x3b7   : > { %12921 = vmatpush3.bf16.msra.mxu1 %v13950_v26  ;;  %v6993_v26 = vrot.slane %v6991_v27, 4  ;;  %v7007_v27 = vrot.slane %v7005_v25, 4  ;;  %v11571_v36 = vcombine.low %v16464_v6, %v16468_v45 }
 0x3b8   : > { %12922 = vmatprep.subr.bf16.mxu1 %v13953_v11  ;;  %v16761_v5 = vsel %vm14649_vm5, %v11601_v49, %v7012_v52  ;;  %v11603_v49 = vrot.slane %v6892_v17, 9 }
 0x3b9   : > { %v16729_v53 = vsel %vm14649_vm5, %v6993_v26, %v6994_v35  ;;  %v6891_v35 = vld [vmem:[#allocation2 + $0x9c] sm:$0xe]  ;;  %v7015_v26 = vrot.slane %v16590_v8, 5  ;;  %v16757_v30 = vsel %vm14649_vm5, %v7007_v27, %v7008_v4  ;;  %v7021_v27 = vrot.slane %v7019_v63, 4 }
 0x3ba   : > { %12891 = vmatmul.mubr.bf16.gmra.mrb[4].mxu1 %v11568_v59  ;;  %v16741_v59 = vsel %vm14649_vm5, %v7000_v10, %v7001_v48  ;;  %v16753_v48 = vsel %vm14649_vm5, %v11600_v60, %v7005_v25  ;;  %v7026_v25 = vrot.slane %v16614_v23, 5  ;;  %v6893_v60 = vld [vmem:[#allocation2 + $0xb4] sm:$0xe]  ;;  %v6938_v23 = vrot.slane %v14073_v22, 5  ;;  %v6883_v22 = vld [vmem:[#allocation2 + $0x3c] sm:$0xe] }
 0x3bb   : > { %12894 = vmatprep.mubr.bf16.mxu1 %v11569_v41  ;;  %12923 = vmatpush3.bf16.msra.mxu1 %v13953_v11  ;;  %v7014_v41 = vrot.slane %v7012_v52, 4  ;;  %v11602_v11 = vrot.slane %v6891_v35, 9  ;;  %v7022_v52 = vrot.slane %v16602_v62, 5  ;;  %v11604_v17 = vrot.slane %v6893_v60, 9 }
 0x3bc   : > { %12924 = vmatprep.subr.bf16.mxu1 %v13956_v61  ;;  %v7028_v35 = vrot.slane %v7026_v25, 4  ;;  %v16791_v6 = vsel %vm14649_vm5, %v11603_v49, %v7026_v25  ;;  %v11590_v49 = vrot.slane %v6879_v46, 9 }
 0x3bd   : > { %v16768_v8 = vsel %vm14649_vm5, %v7014_v41, %v7015_v26  ;;  %v13962_v41 = vld [vmem:[%s18158_s5 + $0xa8] sm:$0xff]   ;;  %v7029_v26 = vrot.slane %v16616_v32, 5  ;;  %v16783_v4 = vsel %vm14649_vm5, %v11602_v11, %v7019_v63  ;;  %v16787_v62 = vsel %vm14649_vm5, %v7021_v27, %v7022_v52  ;;  %v14074_v27 = vld [vmem:[#allocation2 + $0x20] sm:$0x1] }
 0x3be   : > { %v7036_v11 = vrot.slane %v16631_v3, 5  ;;  %v6945_v52 = vrot.slane %v14074_v27, 5  ;;  %v6884_v27 = vld [vmem:[#allocation2 + $0x48] sm:$0xe]  ;;  %v7786_v63 = vld [vmem:[#allocation2 + $0xac] sm:$0xf] }
 0x3bf   : > { %12925 = vmatpush3.bf16.msra.mxu1 %v13956_v61  ;;  %v7033_v61 = vrot.slane %v16626_v18, 5  ;;  %v16797_v32 = vsel %vm14649_vm5, %v7028_v35, %v7029_v26  ;;  %v6956_v18 = vrot.slane %v14075_v39, 5  ;;  %v6936_v26 = vsel %vm14649_vm5, %v11590_v49, %v6935_v54  ;;  %v13973_v49 = vld [vmem:[%s18158_s5 + $0xe0] sm:$0xff]  }
 0x3c0   : > { %12926 = vmatprep.subr.bf16.mxu1 %v13959_v9 }
 0x3c1   : > { %v7035_v28 = vrot.slane %v7033_v61, 4  ;;  %v16807_v25 = vsel %vm14649_vm5, %v11604_v17, %v7033_v61 }
 0x3c2   : > { %12895 = vmatmul.mubr.bf16.gmra.mrb[8].mxu1 %v11570_v51  ;;  %v13965_v51 = vld [vmem:[%s18158_s5 + $0xb0] sm:$0xff]  }
 0x3c3   : > { %12898 = vmatprep.mubr.bf16.mxu1 %v11571_v36  ;;  %12927 = vmatpush3.bf16.msra.mxu1 %v13959_v9  ;;  %v16811_v60 = vsel %vm14649_vm5, %v7035_v28, %v7036_v11  ;;  %v13968_v36 = vld [vmem:[%s18158_s5 + $0xb8] sm:$0xff]   ;;  %v13969_v28 = vld [vmem:[%s18158_s5 + $0xc0] sm:$0xff]   ;;  %v11589_v9 = vrot.slane %v6878_v13, 9  ;;  %v13970_v11 = vld [vmem:[%s18158_s5 + $0xc8] sm:$0xff]  }
 0x3c4   : > { %12928 = vmatprep.subr.bf16.mxu1 %v13962_v41  ;;  %v6882_v13 = vld [vmem:[#allocation2 + $0x30] sm:$0xe] }
 0x3c5   : > { %v6929_v7 = vsel %vm14649_vm5, %v11589_v9, %v6928_v33  ;;  %v13971_v9 = vld [vmem:[%s18158_s5 + $0xd0] sm:$0xff]  }
 0x3c7   : > { %12929 = vmatpush3.bf16.msra.mxu1 %v13962_v41  ;;  %v11591_v41 = vrot.slane %v6880_v12, 9 }
 0x3c8   : > { %12930 = vmatprep.subr.bf16.mxu1 %v13965_v51 }
 0x3c9   : > { %v6943_v17 = vsel %vm14649_vm5, %v11591_v41, %v6942_v15  ;;  %v11595_v41 = vrot.slane %v6884_v27, 9  ;;  %v16949_v27 = vld [vmem:[#allocation2 + $0x64] sm:$0xf] }
 0x3ca   : > { %12899 = vmatmul.mubr.bf16.gmra.mrb[12].mxu1 %v11572_v43  ;;  %v14072_v43 = vld [vmem:[#allocation2 + $0x8] sm:$0x1] }
 0x3cb   : > { %12902 = vmatprep.mubr.bf16.mxu1 %v11573_v57  ;;  %12931 = vmatpush3.bf16.msra.mxu1 %v13965_v51  ;;  %v6931_v57 = vrot.slane %v14072_v43, 5  ;;  %v14077_v43 = vld [vmem:[#allocation2 + $0x38] sm:$0x1] }
 0x3cc   : > { %12932 = vmatprep.subr.bf16.mxu1 %v13968_v36 }
 0x3cd   : > { %v6932_v58 = vsel %vm14649_vm5, %v6930_v40, %v6931_v57  ;;  %v6959_v57 = vrot.slane %v14077_v43, 5  ;;  %v11592_v40 = vrot.slane %v6881_v42, 9  ;;  %v8502_v42 = vld [vmem:[#allocation2 + $0x24] sm:$0xe]  ;;  %v16914_v43 = vld [vmem:[#allocation2 + $0x44] sm:$0x1] }
 0x3ce   : > { %v11621_v14 = vcombine.low %v6929_v7, %v6932_v58  ;;  %v11593_v58 = vrot.slane %v6882_v13, 9 }
 0x3cf   : > { %12933 = vmatpush3.bf16.msra.mxu1 %v13968_v36  ;;  %v6951_v36 = vrot.slane %v6949_v31, 4 }
 0x3d0   : > { %12966 = vmatprep.subr.bf16.mxu1 %v13969_v28 }
 0x3d2   : > { %12903 = vmatmul.mubr.bf16.gmra.mrb[16].mxu1 %v11574_v29  ;;  %v6937_v29 = vrot.slane %v6935_v54, 4  ;;  %v6970_v54 = vrot.slane %v16468_v45, 5  ;;  %v14079_v45 = vld [vmem:[#allocation2 + $0x44] sm:$0x1] }
 0x3d3   : > { %12906 = vmatprep.mubr.bf16.mxu1 %v11575_v44  ;;  %v6944_v44 = vrot.slane %v6942_v15, 4  ;;  %v6950_v15 = vsel %vm14649_vm5, %v11592_v40, %v6949_v31  ;;  %v6966_v12 = vrot.slane %v14079_v45, 5  ;;  %v18417_v40 = vcombine.low %v16696_v16, %v16701_v47  ;;  %v16933_v47 = vld [vmem:[%s18158_s5 + $0x100] sm:$0xff]   ;;  %v16935_v16 = vld [vmem:[#allocation2 + $0x5c] sm:$0x1] }
 0x3d4   : > { %v6939_v37 = vsel %vm14649_vm5, %v6937_v29, %v6938_v23  ;;  %v6957_v29 = vsel %vm14649_vm5, %v11593_v58, %v6956_v18  ;;  %v6972_v23 = vrot.slane %v6970_v54, 4 }
 0x3d5   : > { %v6946_v35 = vsel %vm14649_vm5, %v6944_v44, %v6945_v52  ;;  %v11622_v61 = vcombine.low %v6936_v26, %v6939_v37  ;;  %v6973_v52 = vrot.slane %v16470_v19, 5  ;;  %v11594_v37 = vrot.slane %v6883_v22, 9  ;;  %v13974_v26 = vld [vmem:[%s18158_s5 + $0xe8] sm:$0xff]  }
 0x3d6   : > { %v11623_v51 = vcombine.low %v6943_v17, %v6946_v35  ;;  %v6971_v19 = vsel %vm14649_vm5, %v11595_v41, %v6970_v54  ;;  %v13975_v17 = vld [vmem:[%s18158_s5 + $0xf0] sm:$0xff]   ;;  %v18418_v54 = vcombine.low %v16705_v34, %v16712_v2 }
 0x3d7   : > { %v6974_v35 = vsel %vm14649_vm5, %v6972_v23, %v6973_v52 }
 0x3da   : > { %12907 = vmatmul.mubr.bf16.gmra.mrb[20].mxu1 %v18412_v56  ;;  %v6958_v56 = vrot.slane %v6956_v18, 4 }
 0x3db   : > { %12910 = vmatprep.mubr.bf16.mxu1 %v18413_v50  ;;  %v14076_v50 = vld [vmem:[#allocation2 + $0x2c] sm:$0x1] }
 0x3dc   : > { %v6952_v33 = vrot.slane %v14076_v50, 5  ;;  %v16909_v50 = vld [vmem:[#allocation2 + $0x38] sm:$0x1] }
 0x3e2   : > { %12911 = vmatmul.mubr.bf16.gmra.mrb[24].mxu1 %v18414_v38  ;;  %v6953_v38 = vsel %vm14649_vm5, %v6951_v36, %v6952_v33  ;;  %v16904_v36 = vld [vmem:[#allocation2 + $0x34] sm:$0xf]  ;;  %v16911_v33 = vld [vmem:[#allocation2 + $0x40] sm:$0xf] }
 0x3e3   : > { %12914 = vmatprep.mubr.bf16.mxu1 %v18415_v0  ;;  %v14078_v0 = vld [vmem:[#allocation2 + $0x40] sm:$0xf]  ;;  %v8594_v45 = vrot.slane %v16911_v33, 5 }
 0x3e4   : > { %v6963_v7 = vrot.slane %v14078_v0, 5  ;;  %v11727_v0 = vrot.slane %v8502_v42, 9 }
 0x3e6   : > { %v6965_v44 = vrot.slane %v6963_v7, 4  ;;  %v6964_v39 = vsel %vm14649_vm5, %v11594_v37, %v6963_v7 }
 0x3e8   : > { %v6967_v31 = vsel %vm14649_vm5, %v6965_v44, %v6966_v12  ;;  %v8506_v12 = vld [vmem:[#allocation2 + $0x54] sm:$0xe] }
 0x3e9   : > { %v11626_v18 = vcombine.low %v6964_v39, %v6967_v31  ;;  %v8596_v39 = vrot.slane %v8594_v45, 4  ;;  %v11731_v42 = vrot.slane %v8506_v12, 9 }
 0x3ea   : > { %12915 = vmatmul.mubr.bf16.gmra.mrb[28].mxu1 %v18416_v24  ;;  %v13972_v24 = vld [vmem:[%s18158_s5 + $0xd8] sm:$0xff]  }
 0x3eb   : > { %12934 = vmatprep.mubr.bf16.mxu1 %v11621_v14  ;;  %v11624_v14 = vcombine.low %v6950_v15, %v6953_v38  ;;  %v16921_v38 = vld [vmem:[#allocation2 + $0x50] sm:$0x1]  ;;  %v16927_v15 = vld [vmem:[#allocation2 + $0x58] sm:$0xf] }
 0x3f2   : > { %12935 = vmatmul.mubr.bf16.vlgmr.msra.gmra.mrb[0].mxu1 %v11622_v61  ;;  %v11627_v61 = vcombine.low %v6971_v19, %v6974_v35  ;;  %v8507_v19 = vld [vmem:[#allocation2 + $0x60] sm:$0xe] }
 0x3f3   : > { %12938 = vmatprep.mubr.bf16.mxu1 %v11623_v51  ;;  %12967 = vmatpush3.bf16.msra.mxu1 %v13969_v28  ;;  %v6960_v28 = vsel %vm14649_vm5, %v6958_v56, %v6959_v57  ;;  %v16902_v51 = vld [vmem:[#allocation2 + $0x2c] sm:$0x1]  ;;  %v13976_v56 = vld [vmem:[%s18158_s5 + $0xf8] sm:$0xff]  }
 0x3f4   : > { %12968 = vmatprep.subr.bf16.mxu1 %v13970_v11  ;;  %v11625_v46 = vcombine.low %v6957_v29, %v6960_v28  ;;  %v16916_v57 = vld [vmem:[#allocation2 + $0x4c] sm:$0xf]  ;;  %v8583_v58 = vrot.slane %v16902_v51, 5  ;;  %v8504_v28 = vld [vmem:[#allocation2 + $0x3c] sm:$0xe] }
 0x3f5   : > { %v8505_v29 = vld [vmem:[#allocation2 + $0x48] sm:$0xe]  ;;  %v11729_v23 = vrot.slane %v8504_v28, 9  ;;  %v8601_v31 = vrot.slane %v16916_v57, 5  ;;  %v18421_v28 = vcombine.low %v16724_v21, %v16729_v53  ;;  %v17000_v53 = vld [vmem:[#allocation2 + $0x80] sm:$0x1] }
 0x3f6   : > { %v11730_v37 = vrot.slane %v8505_v29, 9 }
 0x3f7   : > { %12969 = vmatpush3.bf16.msra.mxu1 %v13970_v11  ;;  %v16900_v11 = vld [vmem:[#allocation2 + $0x28] sm:$0xf]  ;;  %v16963_v35 = vsel %vm14649_vm5, %v11729_v23, %v8594_v45  ;;  %v18423_v23 = vcombine.low %v16733_v20, %v16741_v59  ;;  %v16998_v45 = vld [vmem:[#allocation2 + $0x74] sm:$0x1] }
 0x3f8   : > { %12970 = vmatprep.subr.bf16.mxu1 %v13971_v9  ;;  %v8580_v13 = vrot.slane %v16900_v11, 5  ;;  %v8625_v21 = vrot.slane %v16998_v45, 5 }
 0x3fa   : > { %12939 = vmatmul.mubr.bf16.gmra.mrb[4].mxu1 %v11624_v14  ;;  %v8582_v7 = vrot.slane %v8580_v13, 4  ;;  %v8587_v14 = vrot.slane %v16904_v36, 5 }
 0x3fb   : > { %12942 = vmatprep.mubr.bf16.mxu1 %v11625_v46  ;;  %12971 = vmatpush3.bf16.msra.mxu1 %v13971_v9  ;;  %v8503_v9 = vld [vmem:[#allocation2 + $0x30] sm:$0xe]  ;;  %v8590_v46 = vrot.slane %v16909_v50, 5 }
 0x3fc   : > { %12972 = vmatprep.subr.bf16.mxu1 %v13972_v24  ;;  %v16943_v34 = vsel %vm14649_vm5, %v8582_v7, %v8583_v58  ;;  %v11728_v2 = vrot.slane %v8503_v9, 9  ;;  %v8589_v22 = vrot.slane %v8587_v14, 4  ;;  %v8615_v7 = vrot.slane %v16949_v27, 5  ;;  %v8508_v58 = vld [vmem:[#allocation2 + $0x6c] sm:$0xe] }
 0x3fe   : > { %v16953_v52 = vsel %vm14649_vm5, %v11728_v2, %v8587_v14  ;;  %v16959_v41 = vsel %vm14649_vm5, %v8589_v22, %v8590_v46  ;;  %v11732_v46 = vrot.slane %v8507_v19, 9  ;;  %v8509_v22 = vld [vmem:[#allocation2 + $0x78] sm:$0xe]  ;;  %v17038_v14 = vld [vmem:[#allocation2 + $0xa0] sm:$0xf] }
 0x3ff   : > { %12973 = vmatpush3.bf16.msra.mxu1 %v13972_v24  ;;  %v16939_v24 = vsel %vm14649_vm5, %v11727_v0, %v8580_v13  ;;  %v16972_v13 = vld [vmem:[#allocation2 + $0x70] sm:$0xf]  ;;  %v8611_v0 = vrot.slane %v16935_v16, 5 }
 0x400   : > { %12974 = vmatprep.subr.bf16.mxu1 %v13973_v49  ;;  %v17019_v59 = vsel %vm14649_vm5, %v11732_v46, %v8615_v7  ;;  %v8622_v19 = vrot.slane %v16972_v13, 5 }
 0x401   : > { %18426 = vst [vmem:[#allocation9_spill] sm:$0xff] %v17019_v59  ;;  %v8512_v59 = vld [vmem:[#allocation2 + $0x9c] sm:$0xe] }
 0x402   : > { %12943 = vmatmul.mubr.bf16.gmra.mrb[8].mxu1 %v11626_v18  ;;  %v8604_v18 = vrot.slane %v16921_v38, 5  ;;  %v8624_v46 = vrot.slane %v8622_v19, 4 }
 0x403   : > { %12946 = vmatprep.mubr.bf16.mxu1 %v11627_v61  ;;  %12975 = vmatpush3.bf16.msra.mxu1 %v13973_v49  ;;  %v8597_v49 = vrot.slane %v16914_v43, 5 }
 0x404   : > { %12976 = vmatprep.subr.bf16.mxu1 %v13974_v26 }
 0x405   : > { %v16976_v9 = vsel %vm14649_vm5, %v8596_v39, %v8597_v49  ;;  %v8617_v49 = vrot.slane %v8615_v7, 4  ;;  %v17011_v39 = vld [vmem:[#allocation2 + $0x94] sm:$0xf]  ;;  %v7784_v7 = vld [vmem:[#allocation2 + $0xa4] sm:$0x1] }
 0x406   : > { %18419 = vst [vmem:[#allocation14_spill] sm:$0xff] %v16976_v9  ;;  %v8643_v3 = vrot.slane %v17011_v39, 5  ;;  %v9408_v9 = vld [vmem:[#allocation2 + $0x74] sm:$0x1] }
 0x407   : > { %12977 = vmatpush3.bf16.msra.mxu1 %v13974_v26  ;;  %v16967_v26 = vld [vmem:[#allocation2 + $0x68] sm:$0x1] }
 0x408   : > { %12978 = vmatprep.subr.bf16.mxu1 %v13975_v17 }
 0x40a   : > { %12947 = vmatmul.mubr.bf16.gmra.mrb[12].mxu1 %v18417_v40  ;;  %v16980_v40 = vsel %vm14649_vm5, %v11730_v37, %v8601_v31  ;;  %v8618_v37 = vrot.slane %v16967_v26, 5 }
 0x40b   : > { %12950 = vmatprep.mubr.bf16.mxu1 %v18418_v54  ;;  %12979 = vmatpush3.bf16.msra.mxu1 %v13975_v17  ;;  %v8603_v17 = vrot.slane %v8601_v31, 4  ;;  %18420 = vst [vmem:[#allocation21_spill] sm:$0xff] %v16980_v40  ;;  %v16987_v54 = vld [vmem:[#allocation2 + $0x7c] sm:$0xf]  ;;  %v17009_v31 = vld [vmem:[#allocation2 + $0x88] sm:$0xf] }
 0x40c   : > { %12980 = vmatprep.subr.bf16.mxu1 %v13976_v56  ;;  %v8636_v61 = vrot.slane %v17009_v31, 5  ;;  %v10146_v40 = vld [vmem:[#allocation2 + $0x6c] sm:$0xe] }
 0x40d   : > { %v16993_v29 = vsel %vm14649_vm5, %v8603_v17, %v8604_v18  ;;  %v11733_v18 = vrot.slane %v8508_v58, 9  ;;  %v17022_v17 = vld [vmem:[#allocation2 + $0x8c] sm:$0x1] }
 0x40e   : > { %18422 = vst [vmem:[#allocation22_spill] sm:$0xff] %v16993_v29  ;;  %v8639_v44 = vrot.slane %v17022_v17, 5  ;;  %v8638_v10 = vrot.slane %v8636_v61, 4  ;;  %v8513_v29 = vld [vmem:[#allocation2 + $0xa8] sm:$0xe] }
 0x40f   : > { %12981 = vmatpush3.bf16.msra.mxu1 %v13976_v56  ;;  %v8608_v56 = vrot.slane %v16927_v15, 5  ;;  %v17035_v58 = vsel %vm14649_vm5, %v11733_v18, %v8622_v19  ;;  %v17048_v18 = vsel %vm14649_vm5, %v8624_v46, %v8625_v21  ;;  %v18432_v21 = vcombine.low %v16753_v48, %v16757_v30  ;;  %v7793_v46 = vld [vmem:[#allocation2 + $0xc8] sm:$0x1] }
 0x410   : > { %13014 = vmatprep.subr.bf16.mxu1 %v16933_v47  ;;  %18428 = vst [vmem:[#allocation11_spill] sm:$0xff] %v17035_v58  ;;  %18430 = vst [vmem:[#allocation7_spill] sm:$0xff] %v17048_v18  ;;  %v17074_v48 = vsel %vm14649_vm5, %v8638_v10, %v8639_v44  ;;  %v17154_v10 = vld [vmem:[#allocation2 + $0x14] sm:$0x1]  ;;  %v13990_v18 = vld [vmem:[#allocation2 + $0x78] sm:$0xff]  }
 0x411   : > { %v8610_v2 = vrot.slane %v8608_v56, 4  ;;  %v17006_v12 = vsel %vm14649_vm5, %v11731_v42, %v8608_v56  ;;  %v17028_v56 = vsel %vm14649_vm5, %v8617_v49, %v8618_v37  ;;  %v8511_v42 = vld [vmem:[#allocation2 + $0x90] sm:$0xe]  ;;  %v8632_v37 = vrot.slane %v17000_v53, 5  ;;  %18435 = vst [vmem:[#allocation16_spill] sm:$0xff] %v17074_v48 }
 0x412   : > { %12951 = vmatmul.mubr.bf16.gmra.mrb[16].mxu1 %v18421_v28  ;;  %18424 = vst [vmem:[#allocation8_spill] sm:$0xff] %v17006_v12  ;;  %18427 = vst [vmem:[#allocation10_spill] sm:$0xff] %v17028_v56  ;;  %v11734_v28 = vrot.slane %v8509_v22, 9  ;;  %v11736_v56 = vrot.slane %v8511_v42, 9  ;;  %v17354_v58 = vld [vmem:[#allocation2 + $0x64] sm:$0xf] }
 0x413   : > { %12954 = vmatprep.mubr.bf16.mxu1 %v18423_v23  ;;  %v17015_v20 = vsel %vm14649_vm5, %v8610_v2, %v8611_v0  ;;  %v8629_v0 = vrot.slane %v16987_v54, 5  ;;  %v8510_v2 = vld [vmem:[#allocation2 + $0x84] sm:$0xe]  ;;  %v7781_v23 = vld [vmem:[#allocation2 + $0x98] sm:$0x1]  ;;  %18464 = vst [vmem:[#allocation44_spill] sm:$0xff] %v17354_v58 }
 0x414   : > { %18425 = vst [vmem:[#allocation12_spill] sm:$0xff] %v17015_v20  ;;  %v11735_v19 = vrot.slane %v8510_v2, 9  ;;  %v7787_v2 = vld [vmem:[#allocation2 + $0xb0] sm:$0x1]  ;;  %v8645_v20 = vrot.slane %v8643_v3, 4  ;;  %v8646_v12 = vrot.slane %v7781_v23, 5  ;;  %v17078_v30 = vsel %vm14649_vm5, %v11736_v56, %v8643_v3 }
 0x415   : > { %v17042_v22 = vsel %vm14649_vm5, %v11734_v28, %v8629_v0  ;;  %v8631_v49 = vrot.slane %v8629_v0, 4  ;;  %v18433_v28 = vcombine.low %v16761_v5, %v16768_v8  ;;  %18436 = vst [vmem:[#allocation17_spill] sm:$0xff] %v17078_v30  ;;  %v8650_v23 = vrot.slane %v17038_v14, 5 }
 0x416   : > { %18429 = vst [vmem:[#allocation13_spill] sm:$0xff] %v17042_v22  ;;  %v17070_v42 = vsel %vm14649_vm5, %v11735_v19, %v8636_v61  ;;  %v17085_v8 = vsel %vm14649_vm5, %v8645_v20, %v8646_v12  ;;  %v11737_v61 = vrot.slane %v8512_v59, 9  ;;  %v8657_v19 = vrot.slane %v7786_v63, 5  ;;  %v8515_v12 = vld [vmem:[#allocation2 + $0xc0] sm:$0xe] }
 0x417   : > { %v17056_v0 = vsel %vm14649_vm5, %v8631_v49, %v8632_v37  ;;  %v17066_v49 = vld [vmem:[#allocation2 + $0xb8] sm:$0xf]  ;;  %v7790_v37 = vld [vmem:[#allocation2 + $0xbc] sm:$0x1]  ;;  %18434 = vst [vmem:[#allocation15_spill] sm:$0xff] %v17070_v42  ;;  %18437 = vst [vmem:[#allocation18_spill] sm:$0xff] %v17085_v8 }
 0x418   : > { %18431 = vst [vmem:[#allocation6_spill] sm:$0xff] %v17056_v0  ;;  %v8652_v44 = vrot.slane %v8650_v23, 4  ;;  %v8653_v3 = vrot.slane %v7784_v7, 5  ;;  %v11738_v56 = vrot.slane %v8513_v29, 9  ;;  %v17091_v0 = vsel %vm14649_vm5, %v11737_v61, %v8650_v23  ;;  %v7752_v29 = vld [vmem:[#allocation2 + $0x24] sm:$0xf] }
 0x419   : > { %18438 = vst [vmem:[#allocation19_spill] sm:$0xff] %v17091_v0  ;;  %v8659_v22 = vrot.slane %v8657_v19, 4  ;;  %v8660_v5 = vrot.slane %v7787_v2, 5  ;;  %v8664_v48 = vrot.slane %v17066_v49, 5  ;;  %v8667_v61 = vrot.slane %v7790_v37, 5 }
 0x41a   : > { %12955 = vmatmul.mubr.bf16.gmra.mrb[20].mxu1 %v18432_v21  ;;  %v7792_v21 = vld [vmem:[#allocation2 + $0xc4] sm:$0xf]  ;;  %v17096_v63 = vsel %vm14649_vm5, %v8652_v44, %v8653_v3  ;;  %v17100_v20 = vsel %vm14649_vm5, %v11738_v56, %v8657_v19  ;;  %v11740_v44 = vrot.slane %v8515_v12, 9  ;;  %v8674_v8 = vrot.slane %v7793_v46, 5  ;;  %v7746_v12 = vld [vmem:[#allocation2 + $0xc] sm:$0xf] }
 0x41b   : > { %12958 = vmatprep.mubr.bf16.mxu1 %v18433_v28  ;;  %v8514_v28 = vld [vmem:[#allocation2 + $0xb4] sm:$0xe]  ;;  %18439 = vst [vmem:[#allocation20_spill] sm:$0xff] %v17096_v63  ;;  %18440 = vst [vmem:[#allocation23_spill] sm:$0xff] %v17100_v20  ;;  %v8671_v7 = vrot.slane %v7792_v21, 5  ;;  %v17106_v23 = vsel %vm14649_vm5, %v8659_v22, %v8660_v5  ;;  %v8666_v2 = vrot.slane %v8664_v48, 4  ;;  %v18442_v19 = vcombine.low %v16783_v4, %v16787_v62 }
 0x41c   : > { %v11739_v59 = vrot.slane %v8514_v28, 9  ;;  %18441 = vst [vmem:[#allocation24_spill] sm:$0xff] %v17106_v23  ;;  %v18445_v37 = vcombine.low %v16791_v6, %v16797_v32  ;;  %v18448_v28 = vcombine.low %v16807_v25, %v16811_v60  ;;  %v13978_v6 = vld [vmem:[#allocation2 + $0x18] sm:$0xff]   ;;  %v13982_v32 = vld [vmem:[%s18158_s5 + $0x108] sm:$0xff]   ;;  %v7795_v25 = vshrl.u32 %v7746_v12, 16 }
 0x41d   : > { %v8673_v3 = vrot.slane %v8671_v7, 4  ;;  %v17119_v22 = vsel %vm14649_vm5, %v8666_v2, %v8667_v61  ;;  %v17128_v46 = vsel %vm14649_vm5, %v11740_v44, %v8671_v7  ;;  %v13980_v56 = vld [vmem:[#allocation2 + $0x24] sm:$0xff]   ;;  %v7798_v60 = vshll.u32 %v7746_v12, 16  ;;  %v13981_v7 = vld [vmem:[#allocation2 + $0x30] sm:$0xff]   ;;  %v13983_v2 = vld [vmem:[#allocation2 + $0x3c] sm:$0xff]  }
 0x41e   : > { %v17115_v21 = vsel %vm14649_vm5, %v11739_v59, %v8664_v48  ;;  %18444 = vst [vmem:[#allocation26_spill] sm:$0xff] %v17119_v22  ;;  %18446 = vst [vmem:[#allocation27_spill] sm:$0xff] %v17128_v46  ;;  %v13977_v48 = vld [vmem:[#allocation2 + $0xc] sm:$0xff]   ;;  %v13988_v61 = vld [vmem:[%s18158_s5 + $0x118] sm:$0xff]   ;;  %v7880_v30 = vshrl.u32 %v16904_v36, 16 }
 0x41f   : > { %18443 = vst [vmem:[#allocation25_spill] sm:$0xff] %v17115_v21  ;;  %v17132_v4 = vsel %vm14649_vm5, %v8673_v3, %v8674_v8  ;;  %v13985_v8 = vld [vmem:[%s18158_s5 + $0x110] sm:$0xff]   ;;  %v7758_v20 = vld [vmem:[#allocation2 + $0x3c] sm:$0xf] }
 0x420   : > { %18447 = vst [vmem:[#allocation28_spill] sm:$0xff] %v17132_v4  ;;  %v7747_v59 = vld [vmem:[#allocation2 + $0x10] sm:$0xf]  ;;  %v7814_v4 = vshll.u32 %v17154_v10, 16 }
 0x421   : > { %v7804_v44 = vshll.u32 %v7747_v59, 16  ;;  %v7808_v3 = vshrl.u32 %v7747_v59, 16  ;;  %v13984_v59 = vld [vmem:[#allocation2 + $0x48] sm:$0xff]   ;;  %v7755_v46 = vld [vmem:[#allocation2 + $0x30] sm:$0xf] }
 0x422   : > { %12959 = vmatmul.mubr.bf16.gmra.mrb[24].mxu1 %v18442_v19  ;;  %v7750_v19 = vld [vmem:[#allocation2 + $0x1c] sm:$0xf]  ;;  %v7816_v23 = vrot.slane %v7814_v4, 5  ;;  %v7876_v4 = vshll.u32 %v16904_v36, 16  ;;  %v7924_v36 = vshll.u32 %v16916_v57, 16 }
 0x423   : > { %12962 = vmatprep.mubr.bf16.mxu1 %v18445_v37  ;;  %v7797_v37 = vrot.slane %v7795_v25, 4  ;;  %v17152_v12 = vrot.slane %v7804_v44, 5  ;;  %v7810_v62 = vrot.slane %v7808_v3, 4  ;;  %v7832_v5 = vshrl.u32 %v7750_v19, 16  ;;  %v17159_v25 = vld [vmem:[#allocation2 + $0x20] sm:$0x1] }
 0x424   : > { %v13986_v44 = vld [vmem:[#allocation2 + $0x54] sm:$0xff]  }
 0x425   : > { %v7811_v3 = vor.u32 %v7810_v62, %v17152_v12  ;;  %v7843_v62 = vshrl.u32 %v7752_v29, 16 }
 0x427   : > { %v7812_v22 = vrot.slane %v7811_v3, 4 }
 0x42a   : > { %12963 = vmatmul.mubr.bf16.gmra.mrb[28].mxu1 %v18448_v28  ;;  %v13991_v28 = vld [vmem:[%s18158_s5 + $0x120] sm:$0xff]  }
 0x42b   : > { %12982 = vmatprep.mubr.bf16.mxu1 %v13977_v48  ;;  %v7800_v48 = vrot.slane %v7798_v60, 5 }
 0x432   : > { %12983 = vmatmul.mubr.bf16.vlgmr.msra.gmra.mrb[0].mxu1 %v13978_v6 }
 0x433   : > { %12986 = vmatprep.mubr.bf16.mxu1 %v13980_v56  ;;  %13015 = vmatpush3.bf16.msra.mxu1 %v16933_v47  ;;  %v7749_v47 = vld [vmem:[#allocation2 + $0x18] sm:$0xf]  ;;  %v7828_v56 = vshll.u32 %v7750_v19, 16  ;;  %v7834_v19 = vrot.slane %v7832_v5, 4  ;;  %v7838_v5 = vshll.u32 %v17159_v25, 16 }
 0x434   : > { %13016 = vmatprep.subr.bf16.mxu1 %v13982_v32  ;;  %v7819_v6 = vshrl.u32 %v7749_v47, 16 }
 0x435   : > { %v7840_v3 = vrot.slane %v7838_v5, 5  ;;  %v7894_v5 = vshll.u32 %v7758_v20, 16 }
 0x436   : > { %v7821_v60 = vrot.slane %v7819_v6, 4  ;;  %v13997_v6 = vld [vmem:[%s18158_s5 + $0x130] sm:$0xff]  }
 0x437   : > { %13017 = vmatpush3.bf16.msra.mxu1 %v13982_v32  ;;  %v7822_v32 = vshll.u32 %v7749_v47, 16  ;;  %v17161_v47 = vrot.slane %v7828_v56, 5  ;;  %v7846_v56 = vshll.u32 %v7752_v29, 16  ;;  %v14000_v29 = vld [vmem:[%s18158_s5 + $0x138] sm:$0xff]  }
 0x438   : > { %13018 = vmatprep.subr.bf16.mxu1 %v13985_v8 }
 0x43a   : > { %12987 = vmatmul.mubr.bf16.gmra.mrb[4].mxu1 %v13981_v7  ;;  %v7801_v7 = vor.u32 %v7800_v48, %v7797_v37  ;;  %v7856_v37 = vshrl.u32 %v16900_v11, 16 }
 0x43b   : > { %12990 = vmatprep.mubr.bf16.mxu1 %v13983_v2  ;;  %13019 = vmatpush3.bf16.msra.mxu1 %v13985_v8  ;;  %v13994_v8 = vld [vmem:[%s18158_s5 + $0x128] sm:$0xff]   ;;  %v7824_v2 = vrot.slane %v7822_v32, 5 }
 0x43c   : > { %13020 = vmatprep.subr.bf16.mxu1 %v13988_v61  ;;  %v7802_v48 = vrot.slane %v7801_v7, 4  ;;  %v7867_v7 = vshrl.u32 %v7755_v46, 16 }
 0x43d   : > { %v7825_v32 = vor.u32 %v7824_v2, %v7821_v60  ;;  %v13987_v60 = vld [vmem:[#allocation2 + $0x60] sm:$0xff]  }
 0x43e   : > { %v7807_v21 = vsel %vm14316_vm2, %v7802_v48, %v17152_v12  ;;  %v7862_v12 = vshll.u32 %v16902_v51, 16  ;;  %v7869_v48 = vrot.slane %v7867_v7, 4  ;;  %v17193_v51 = vld [vmem:[%s18158_s5 + $0x140] sm:$0xff]   ;;  %v7764_v7 = vld [vmem:[#allocation2 + $0x54] sm:$0xf] }
 0x43f   : > { %13021 = vmatpush3.bf16.msra.mxu1 %v13988_v61  ;;  %v7852_v61 = vshll.u32 %v16900_v11, 16  ;;  %v7835_v11 = vor.u32 %v7834_v19, %v17161_v47  ;;  %v7826_v2 = vrot.slane %v7825_v32, 4  ;;  %v7845_v19 = vrot.slane %v7843_v62, 4 }
 0x440   : > { %13022 = vmatprep.subr.bf16.mxu1 %v13991_v28  ;;  %v7891_v32 = vshrl.u32 %v7758_v20, 16  ;;  %v7900_v62 = vshll.u32 %v16911_v33, 16 }
 0x441   : > { %v7831_v20 = vsel %vm14316_vm2, %v7826_v2, %v17161_v47  ;;  %v17207_v47 = vrot.slane %v7924_v36, 5 }
 0x442   : > { %12991 = vmatmul.mubr.bf16.gmra.mrb[8].mxu1 %v13984_v59  ;;  %v17172_v59 = vrot.slane %v7852_v61, 5  ;;  %v7848_v61 = vrot.slane %v7846_v56, 5  ;;  %v17204_v42 = vrot.slane %v7900_v62, 5 }
 0x443   : > { %12994 = vmatprep.mubr.bf16.mxu1 %v13986_v44  ;;  %13023 = vmatpush3.bf16.msra.mxu1 %v13991_v28  ;;  %v7858_v28 = vrot.slane %v7856_v37, 4  ;;  %v7870_v44 = vshll.u32 %v7755_v46, 16  ;;  %v13989_v37 = vld [vmem:[#allocation2 + $0x6c] sm:$0xff]   ;;  %v7817_v46 = vsel %vm14316_vm2, %v7812_v22, %v7816_v23  ;;  %v7904_v23 = vshrl.u32 %v16911_v33, 16  ;;  %v7761_v22 = vld [vmem:[#allocation2 + $0x48] sm:$0xf] }
 0x444   : > { %13024 = vmatprep.subr.bf16.mxu1 %v13994_v8  ;;  %v17188_v56 = vcombine.low %v7807_v21, %v7817_v46  ;;  %v17202_v21 = vrot.slane %v7876_v4, 5  ;;  %v7918_v46 = vshll.u32 %v7761_v22, 16 }
 0x445   : > { %v7859_v63 = vor.u32 %v7858_v28, %v17172_v59  ;;  %v7872_v0 = vrot.slane %v7870_v44, 5 }
 0x446   : > { %v7920_v62 = vrot.slane %v7918_v46, 5 }
 0x447   : > { %13025 = vmatpush3.bf16.msra.mxu1 %v13994_v8  ;;  %v7836_v8 = vrot.slane %v7835_v11, 4  ;;  %v7849_v11 = vor.u32 %v7848_v61, %v7845_v19  ;;  %v7860_v28 = vrot.slane %v7859_v63, 4  ;;  %v7873_v44 = vor.u32 %v7872_v0, %v7869_v48 }
 0x448   : > { %13026 = vmatprep.subr.bf16.mxu1 %v13997_v6  ;;  %v7893_v19 = vrot.slane %v7891_v32, 4  ;;  %v7896_v61 = vrot.slane %v7894_v5, 5  ;;  %v7939_v63 = vshrl.u32 %v7764_v7, 16  ;;  %v7864_v0 = vrot.slane %v7862_v12, 5 }
 0x449   : > { %v7841_v33 = vsel %vm14316_vm2, %v7836_v8, %v7840_v3  ;;  %v7942_v3 = vshll.u32 %v7764_v7, 16  ;;  %v13992_v8 = vld [vmem:[#allocation2 + $0x84] sm:$0xff]   ;;  %v7850_v4 = vrot.slane %v7849_v11, 4  ;;  %v7886_v32 = vshll.u32 %v16909_v50, 16 }
 0x44a   : > { %12995 = vmatmul.mubr.bf16.gmra.mrb[12].mxu1 %v13987_v60  ;;  %v7882_v60 = vrot.slane %v7880_v30, 4  ;;  %v7948_v30 = vshll.u32 %v16927_v15, 16  ;;  %v7897_v36 = vor.u32 %v7896_v61, %v7893_v19  ;;  %v7865_v12 = vsel %vm14316_vm2, %v7860_v28, %v7864_v0  ;;  %v13995_v0 = vld [vmem:[#allocation2 + $0x9c] sm:$0xff]  }
 0x44b   : > { %12998 = vmatprep.mubr.bf16.mxu1 %v13989_v37  ;;  %13027 = vmatpush3.bf16.msra.mxu1 %v13997_v6  ;;  %v7928_v6 = vshrl.u32 %v16916_v57, 16  ;;  %v7915_v37 = vshrl.u32 %v7761_v22, 16  ;;  %v7906_v57 = vrot.slane %v7904_v23, 4  ;;  %v17213_v23 = vcombine.low %v7831_v20, %v7841_v33  ;;  %v7767_v33 = vld [vmem:[#allocation2 + $0x60] sm:$0xf] }
 0x44c   : > { %13028 = vmatprep.subr.bf16.mxu1 %v14000_v29  ;;  %v7883_v48 = vor.u32 %v7882_v60, %v17202_v21  ;;  %v7874_v22 = vrot.slane %v7873_v44, 4  ;;  %v7855_v50 = vsel %vm14316_vm2, %v7850_v4, %v17172_v59  ;;  %v7910_v7 = vshll.u32 %v16914_v43, 16  ;;  %v13993_v59 = vld [vmem:[#allocation2 + $0x90] sm:$0xff]   ;;  %v7770_v4 = vld [vmem:[#allocation2 + $0x6c] sm:$0xf] }
 0x44d   : > { %v7930_v2 = vrot.slane %v7928_v6, 4  ;;  %v7917_v5 = vrot.slane %v7915_v37, 4  ;;  %v7907_v6 = vor.u32 %v7906_v57, %v17204_v42  ;;  %v17223_v60 = vrot.slane %v7948_v30, 5 }
 0x44e   : > { %v7884_v44 = vrot.slane %v7883_v48, 4  ;;  %v7888_v37 = vrot.slane %v7886_v32, 5  ;;  %v7934_v19 = vshll.u32 %v16921_v38, 16  ;;  %v17226_v28 = vcombine.low %v7855_v50, %v7865_v12 }
 0x44f   : > { %13029 = vmatpush3.bf16.msra.mxu1 %v14000_v29  ;;  %v7952_v29 = vshrl.u32 %v16927_v15, 16  ;;  %v7931_v11 = vor.u32 %v7930_v2, %v17207_v47  ;;  %v7941_v15 = vrot.slane %v7939_v63, 4  ;;  %v7921_v46 = vor.u32 %v7920_v62, %v7917_v5 }
 0x450   : > { %13062 = vmatprep.subr.bf16.mxu1 %v17193_v51  ;;  %v7879_v61 = vsel %vm14316_vm2, %v7874_v22, %v17202_v21  ;;  %v7898_v57 = vrot.slane %v7897_v36, 4  ;;  %v7908_v2 = vrot.slane %v7907_v6, 4  ;;  %v7912_v30 = vrot.slane %v7910_v7, 5 }
 0x451   : > { %v7954_v20 = vrot.slane %v7952_v29, 4  ;;  %v7932_v63 = vrot.slane %v7931_v11, 4  ;;  %v7972_v38 = vshll.u32 %v16949_v27, 16  ;;  %v7976_v48 = vshrl.u32 %v16949_v27, 16 }
 0x452   : > { %12999 = vmatmul.mubr.bf16.gmra.mrb[16].mxu1 %v13990_v18  ;;  %v7944_v18 = vrot.slane %v7942_v3, 5  ;;  %v7963_v3 = vshrl.u32 %v7767_v33, 16  ;;  %v7889_v21 = vsel %vm14316_vm2, %v7884_v44, %v7888_v37  ;;  %v7922_v32 = vrot.slane %v7921_v46, 4 }
 0x453   : > { %13002 = vmatprep.mubr.bf16.mxu1 %v13992_v8  ;;  %v7966_v8 = vshll.u32 %v7767_v33, 16  ;;  %v7955_v29 = vor.u32 %v7954_v20, %v17223_v60  ;;  %v7936_v5 = vrot.slane %v7934_v19, 5  ;;  %v7958_v62 = vshll.u32 %v16935_v16, 16  ;;  %v17250_v16 = vld [vmem:[#allocation2 + $0x78] sm:$0xf] }
 0x454   : > { %v7945_v43 = vor.u32 %v7944_v18, %v7941_v15  ;;  %v7903_v22 = vsel %vm14316_vm2, %v7898_v57, %v17204_v42  ;;  %v7913_v36 = vsel %vm14316_vm2, %v7908_v2, %v7912_v30  ;;  %v7987_v6 = vshrl.u32 %v7770_v4, 16  ;;  %v17259_v33 = vld [vmem:[#allocation2 + $0x1c] sm:$0xf]  ;;  %v17270_v57 = vld [vmem:[#allocation2 + $0x20] sm:$0x1] }
 0x455   : > { %v7990_v12 = vshll.u32 %v7770_v4, 16  ;;  %v7937_v27 = vsel %vm14316_vm2, %v7932_v63, %v7936_v5  ;;  %v17246_v15 = vrot.slane %v7963_v3, 4  ;;  %v17248_v18 = vrot.slane %v7966_v8, 5  ;;  %18449 = vst [vmem:[#allocation29_spill] sm:$0xff] %v17259_v33  ;;  %18450 = vst [vmem:[#allocation30_spill] sm:$0xff] %v17270_v57  ;;  %v13996_v8 = vld [vmem:[#allocation2 + $0xa8] sm:$0xff]  }
 0x456   : > { %v17244_v11 = vrot.slane %v7945_v43, 4  ;;  %v17252_v50 = vrot.slane %v7955_v29, 4  ;;  %v17254_v7 = vrot.slane %v7972_v38, 5  ;;  %v17256_v42 = vrot.slane %v7976_v48, 4  ;;  %v10139_v2 = vld [vmem:[#allocation2 + $0x18] sm:$0xe] }
 0x457   : > { %v7996_v20 = vshll.u32 %v16972_v13, 16  ;;  %v17261_v44 = vcombine.low %v7879_v61, %v7889_v21  ;;  %v17263_v37 = vcombine.low %v7903_v22, %v7913_v36  ;;  %v7927_v46 = vsel %vm14316_vm2, %v7922_v32, %v17207_v47  ;;  %v17279_v3 = vld [vmem:[#allocation2 + $0x28] sm:$0xf]  ;;  %v13998_v4 = vld [vmem:[#allocation2 + $0xb4] sm:$0xff]   ;;  %v10140_v38 = vld [vmem:[#allocation2 + $0x24] sm:$0xe] }
 0x458   : > { %v17268_v19 = vrot.slane %v7958_v62, 5  ;;  %v17274_v63 = vrot.slane %v7987_v6, 4  ;;  %v17276_v43 = vrot.slane %v7990_v12, 5  ;;  %v8000_v61 = vshrl.u32 %v16972_v13, 16  ;;  %18451 = vst [vmem:[#allocation31_spill] sm:$0xff] %v17279_v3 }
 0x459   : > { %v10205_v29 = vrot.slane %v17259_v33, 5  ;;  %v17295_v21 = vrot.slane %v7996_v20, 5  ;;  %v17298_v5 = vld [vmem:[#allocation2 + $0x2c] sm:$0x1]  ;;  %v17300_v62 = vld [vmem:[#allocation2 + $0x34] sm:$0xf] }
 0x45a   : > { %13003 = vmatmul.mubr.bf16.gmra.mrb[20].mxu1 %v13993_v59  ;;  %v17272_v59 = vcombine.low %v7927_v46, %v7937_v27  ;;  %18452 = vst [vmem:[#allocation32_spill] sm:$0xff] %v17298_v5  ;;  %18453 = vst [vmem:[#allocation33_spill] sm:$0xff] %v17300_v62  ;;  %v17302_v22 = vld [vmem:[#allocation2 + $0x38] sm:$0x1]  ;;  %v17304_v36 = vld [vmem:[#allocation2 + $0x40] sm:$0xf] }
 0x45b   : > { %13006 = vmatprep.mubr.bf16.mxu1 %v13995_v0  ;;  %18454 = vst [vmem:[#allocation34_spill] sm:$0xff] %v17302_v22  ;;  %18455 = vst [vmem:[#allocation35_spill] sm:$0xff] %v17304_v36  ;;  %v11861_v6 = vrot.slane %v10139_v2, 9  ;;  %v10207_v12 = vrot.slane %v10205_v29, 4  ;;  %v10208_v27 = vrot.slane %v17270_v57, 5  ;;  %v10212_v46 = vrot.slane %v17279_v3, 5 }
 0x45c   : > { %v17310_v30 = vrot.slane %v8000_v61, 4  ;;  %v11862_v13 = vrot.slane %v10140_v38, 9  ;;  %v17313_v48 = vld [vmem:[#allocation2 + $0x4c] sm:$0xf]  ;;  %v10215_v0 = vrot.slane %v17298_v5, 5  ;;  %v10226_v61 = vrot.slane %v17304_v36, 5 }
 0x45d   : > { %18456 = vst [vmem:[#allocation36_spill] sm:$0xff] %v17313_v48  ;;  %v17317_v2 = vsel %vm14649_vm5, %v11861_v6, %v10205_v29  ;;  %v17321_v32 = vsel %vm14649_vm5, %v10207_v12, %v10208_v27  ;;  %v10142_v20 = vld [vmem:[#allocation2 + $0x3c] sm:$0xe]  ;;  %v17326_v38 = vld [vmem:[#allocation2 + $0x44] sm:$0x1]  ;;  %v10219_v29 = vrot.slane %v17300_v62, 5 }
 0x45e   : > { %18457 = vst [vmem:[#allocation37_spill] sm:$0xff] %v17317_v2  ;;  %18458 = vst [vmem:[#allocation38_spill] sm:$0xff] %v17321_v32  ;;  %v9399_v6 = vld [vmem:[#allocation2 + $0x50] sm:$0x1]  ;;  %v17333_v12 = vsel %vm14649_vm5, %v11862_v13, %v10212_v46  ;;  %v10143_v47 = vld [vmem:[#allocation2 + $0x48] sm:$0xe] }
 0x45f   : > { %18459 = vst [vmem:[#allocation39_spill] sm:$0xff] %v17326_v38  ;;  %18460 = vst [vmem:[#allocation40_spill] sm:$0xff] %v17333_v12  ;;  %v13999_v3 = vld [vmem:[#allocation2 + $0xc0] sm:$0xff]   ;;  %v17340_v33 = vld [vmem:[#allocation2 + $0x58] sm:$0xf]  ;;  %v10221_v32 = vrot.slane %v10219_v29, 4 }
 0x460   : > { %v10222_v2 = vrot.slane %v17302_v22, 5  ;;  %v11864_v62 = vrot.slane %v10142_v20, 9  ;;  %v10144_v36 = vld [vmem:[#allocation2 + $0x54] sm:$0xe]  ;;  %v11865_v13 = vrot.slane %v10143_v47, 9 }
 0x461   : > { %v10145_v12 = vld [vmem:[#allocation2 + $0x60] sm:$0xe]  ;;  %v9410_v47 = vld [vmem:[#allocation2 + $0x7c] sm:$0xf] }
 0x462   : > { %13007 = vmatmul.mubr.bf16.gmra.mrb[24].mxu1 %v13996_v8  ;;  %v10141_v8 = vld [vmem:[#allocation2 + $0x30] sm:$0xe]  ;;  %v17358_v57 = vsel %vm14649_vm5, %v10221_v32, %v10222_v2  ;;  %v17362_v20 = vsel %vm14649_vm5, %v11864_v62, %v10226_v61  ;;  %v10236_v32 = vrot.slane %v9399_v6, 5  ;;  %v10240_v2 = vrot.slane %v17340_v33, 5 }
 0x463   : > { %13010 = vmatprep.mubr.bf16.mxu1 %v13998_v4  ;;  %v10214_v4 = vrot.slane %v10212_v46, 4  ;;  %v11863_v5 = vrot.slane %v10141_v8, 9  ;;  %v17347_v46 = vld [vmem:[#allocation2 + $0x5c] sm:$0x1]  ;;  %v10228_v8 = vrot.slane %v10226_v61, 4  ;;  %18465 = vst [vmem:[#allocation45_spill] sm:$0xff] %v17358_v57 }
 0x464   : > { %18462 = vst [vmem:[#allocation42_spill] sm:$0xff] %v17347_v46  ;;  %18466 = vst [vmem:[#allocation46_spill] sm:$0xff] %v17362_v20  ;;  %v11866_v61 = vrot.slane %v10144_v36, 9  ;;  %v11867_v6 = vrot.slane %v10145_v12, 9  ;;  %v9411_v57 = vld [vmem:[#allocation2 + $0x80] sm:$0x1] }
 0x465   : > { %v17337_v27 = vsel %vm14649_vm5, %v10214_v4, %v10215_v0  ;;  %v17351_v0 = vsel %vm14649_vm5, %v11863_v5, %v10219_v29  ;;  %v10229_v4 = vrot.slane %v17326_v38, 5  ;;  %v9405_v5 = vld [vmem:[#allocation2 + $0x68] sm:$0x1]  ;;  %v17365_v29 = vld [vmem:[#allocation2 + $0x70] sm:$0xf] }
 0x466   : > { %18461 = vst [vmem:[#allocation41_spill] sm:$0xff] %v17337_v27  ;;  %18463 = vst [vmem:[#allocation43_spill] sm:$0xff] %v17351_v0  ;;  %v10233_v27 = vrot.slane %v17313_v48, 5  ;;  %v10243_v48 = vrot.slane %v17347_v46, 5  ;;  %v17389_v36 = vsel %vm14649_vm5, %v11866_v61, %v10240_v2  ;;  %v10250_v62 = vrot.slane %v9405_v5, 5  ;;  %v14002_v12 = vld [vmem:[%s18158_s5 + $0x148] sm:$0xff]  }
 0x467   : > { %18467 = vst [vmem:[#allocation47_spill] sm:$0xff] %v17365_v29  ;;  %v17371_v22 = vsel %vm14649_vm5, %v10228_v8, %v10229_v4  ;;  %v10242_v8 = vrot.slane %v10240_v2, 4  ;;  %v10247_v4 = vrot.slane %v17354_v58, 5  ;;  %18471 = vst [vmem:[#allocation51_spill] sm:$0xff] %v17389_v36  ;;  %v10147_v20 = vld [vmem:[#allocation2 + $0x78] sm:$0xe] }
 0x468   : > { %18468 = vst [vmem:[#allocation48_spill] sm:$0xff] %v17371_v22  ;;  %v17380_v38 = vsel %vm14649_vm5, %v11865_v13, %v10233_v27  ;;  %v10254_v22 = vrot.slane %v17365_v29, 5  ;;  %v9413_v0 = vld [vmem:[#allocation2 + $0x88] sm:$0xf]  ;;  %v10257_v29 = vrot.slane %v9408_v9, 5  ;;  %v10261_v2 = vrot.slane %v9410_v47, 5 }
 0x469   : > { %18469 = vst [vmem:[#allocation49_spill] sm:$0xff] %v17380_v38  ;;  %v17396_v13 = vsel %vm14649_vm5, %v10242_v8, %v10243_v48  ;;  %v10249_v46 = vrot.slane %v10247_v4, 4  ;;  %v17402_v5 = vsel %vm14649_vm5, %v11867_v6, %v10247_v4  ;;  %v10148_v58 = vld [vmem:[#allocation2 + $0x84] sm:$0xe]  ;;  %v11869_v8 = vrot.slane %v10147_v20, 9 }
 0x46a   : > { %13011 = vmatmul.mubr.bf16.gmra.mrb[28].mxu1 %v13999_v3  ;;  %v10235_v3 = vrot.slane %v10233_v27, 4  ;;  %v9416_v27 = vld [vmem:[#allocation2 + $0x94] sm:$0xf]  ;;  %18472 = vst [vmem:[#allocation52_spill] sm:$0xff] %v17396_v13  ;;  %v10256_v61 = vrot.slane %v10254_v22, 4  ;;  %v10268_v38 = vrot.slane %v9413_v0, 5 }
 0x46b   : > { %13030 = vmatprep.mubr.bf16.mxu1 %v17188_v56  ;;  %v17409_v48 = vsel %vm14649_vm5, %v10249_v46, %v10250_v62  ;;  %v10149_v13 = vld [vmem:[#allocation2 + $0x90] sm:$0xe]  ;;  %v9417_v6 = vld [vmem:[#allocation2 + $0x98] sm:$0x1]  ;;  %v9419_v4 = vld [vmem:[#allocation2 + $0xa0] sm:$0xf] }
 0x46c   : > { %v17385_v56 = vsel %vm14649_vm5, %v10235_v3, %v10236_v32  ;;  %v11868_v32 = vrot.slane %v10146_v40, 9  ;;  %v9414_v3 = vld [vmem:[#allocation2 + $0x8c] sm:$0x1]  ;;  %18473 = vst [vmem:[#allocation53_spill] sm:$0xff] %v17409_v48  ;;  %v17419_v36 = vsel %vm14649_vm5, %v10256_v61, %v10257_v29  ;;  %v10263_v20 = vrot.slane %v10261_v2, 4  ;;  %v14003_v61 = vld [vmem:[%s18158_s5 + $0x150] sm:$0xff]  }
 0x46d   : > { %18470 = vst [vmem:[#allocation50_spill] sm:$0xff] %v17385_v56  ;;  %18475 = vst [vmem:[#allocation55_spill] sm:$0xff] %v17419_v36  ;;  %v10264_v56 = vrot.slane %v9411_v57, 5  ;;  %v9422_v46 = vld [vmem:[#allocation2 + $0xac] sm:$0xf]  ;;  %v11870_v47 = vrot.slane %v10148_v58, 9  ;;  %v17428_v29 = vsel %vm14649_vm5, %v11869_v8, %v10261_v2 }
 0x46e   : > { %v17413_v40 = vsel %vm14649_vm5, %v11868_v32, %v10254_v22  ;;  %v10271_v62 = vrot.slane %v9414_v3, 5  ;;  %v10150_v32 = vld [vmem:[#allocation2 + $0x9c] sm:$0xe]  ;;  %v9420_v9 = vld [vmem:[#allocation2 + $0xa4] sm:$0x1]  ;;  %v10270_v57 = vrot.slane %v10268_v38, 4 }
 0x46f   : > { %18474 = vst [vmem:[#allocation54_spill] sm:$0xff] %v17413_v40  ;;  %v11871_v0 = vrot.slane %v10149_v13, 9  ;;  %v9423_v58 = vld [vmem:[#allocation2 + $0xb0] sm:$0x1]  ;;  %v17435_v3 = vsel %vm14649_vm5, %v10263_v20, %v10264_v56  ;;  %v10282_v2 = vrot.slane %v9419_v4, 5  ;;  %v11872_v36 = vrot.slane %v10150_v32, 9 }
 0x470   : > { %18476 = vst [vmem:[#allocation56_spill] sm:$0xff] %v17435_v3  ;;  %v9425_v8 = vld [vmem:[#allocation2 + $0xb8] sm:$0xf]  ;;  %v17445_v13 = vsel %vm14649_vm5, %v10270_v57, %v10271_v62  ;;  %v10151_v40 = vld [vmem:[#allocation2 + $0xa8] sm:$0xe]  ;;  %v18479_v56 = vshll.u32 %v16987_v54, 16 }
 0x471   : > { %18478 = vst [vmem:[#allocation58_spill] sm:$0xff] %v17445_v13  ;;  %v10285_v4 = vrot.slane %v9420_v9, 5  ;;  %v9426_v48 = vld [vmem:[#allocation2 + $0xbc] sm:$0x1]  ;;  %v17463_v57 = vsel %vm14649_vm5, %v11872_v36, %v10282_v2 }
 0x472   : > { %13031 = vmatmul.mubr.bf16.vlgmr.msra.gmra.mrb[0].mxu1 %v17213_v23  ;;  %v10275_v23 = vrot.slane %v9416_v27, 5  ;;  %v17449_v20 = vrot.slane %v18479_v56, 5  ;;  %v9428_v27 = vld [vmem:[#allocation2 + $0xc4] sm:$0xf]  ;;  %v10289_v56 = vrot.slane %v9422_v46, 5 }
 0x473   : > { %13034 = vmatprep.mubr.bf16.mxu1 %v17226_v28  ;;  %13063 = vmatpush3.bf16.msra.mxu1 %v17193_v51  ;;  %v17439_v51 = vsel %vm14649_vm5, %v11870_v47, %v10268_v38  ;;  %v10278_v28 = vrot.slane %v9417_v6, 5  ;;  %v10284_v6 = vrot.slane %v10282_v2, 4  ;;  %v10152_v47 = vld [vmem:[#allocation2 + $0xb4] sm:$0xe]  ;;  %v9429_v38 = vld [vmem:[#allocation2 + $0xc8] sm:$0x1] }
 0x474   : > { %13064 = vmatprep.subr.bf16.mxu1 %v14002_v12  ;;  %18477 = vst [vmem:[#allocation57_spill] sm:$0xff] %v17439_v51  ;;  %v10277_v22 = vrot.slane %v10275_v23, 4  ;;  %v17455_v62 = vsel %vm14649_vm5, %v11871_v0, %v10275_v23  ;;  %v11873_v23 = vrot.slane %v10151_v40, 9  ;;  %v10291_v46 = vrot.slane %v10289_v56, 4 }
 0x475   : > { %18480 = vst [vmem:[#allocation59_spill] sm:$0xff] %v17455_v62  ;;  %v17472_v0 = vsel %vm14649_vm5, %v10284_v6, %v10285_v4  ;;  %v10292_v2 = vrot.slane %v9423_v58, 5  ;;  %v11874_v13 = vrot.slane %v10152_v47, 9  ;;  %v18482_v51 = vshrl.u32 %v16987_v54, 16 }
 0x476   : > { %v17459_v32 = vsel %vm14649_vm5, %v10277_v22, %v10278_v28  ;;  %v10296_v22 = vrot.slane %v9425_v8, 5  ;;  %v10153_v28 = vld [vmem:[#allocation2 + $0xc0] sm:$0xe]  ;;  %v11904_v36 = vcombine.low %v17463_v57, %v17472_v0  ;;  %v10303_v62 = vrot.slane %v9428_v27, 5  ;;  %v17967_v57 = vld [vmem:[%s18160_s7] ss:$0 sm:$0xff] }
 0x477   : > { %13065 = vmatpush3.bf16.msra.mxu1 %v14002_v12  ;;  %18481 = vst [vmem:[#allocation60_spill] sm:$0xff] %v17459_v32  ;;  %v14004_v12 = vld [vmem:[%s18158_s5 + $0x158] sm:$0xff]   ;;  %v8026_v3 = vrot.slane %v18482_v51, 4  ;;  %v10299_v32 = vrot.slane %v9426_v48, 5  ;;  %v17482_v40 = vsel %vm14649_vm5, %v11873_v23, %v10289_v56  ;;  %v17486_v8 = vsel %vm14649_vm5, %v10291_v46, %v10292_v2  ;;  %v14005_v48 = vld [vmem:[%s18158_s5 + $0x160] sm:$0xff]  }
 0x478   : > { %13066 = vmatprep.subr.bf16.mxu1 %v14003_v61  ;;  %v10298_v9 = vrot.slane %v10296_v22, 4  ;;  %v11875_v54 = vrot.slane %v10153_v28, 9  ;;  %v10305_v51 = vrot.slane %v10303_v62, 4  ;;  %v10306_v27 = vrot.slane %v9429_v38, 5 }
 0x479   : > { %v8006_v4 = vshll.u32 %v16998_v45, 16  ;;  %v18484_v47 = vshrl.u32 %v17250_v16, 16  ;;  %v8048_v28 = vshrl.u32 %v17009_v31, 16  ;;  %v18485_v45 = vshll.u32 %v17250_v16, 16 }
 0x47a   : > { %13035 = vmatmul.mubr.bf16.gmra.mrb[4].mxu1 %v17261_v44  ;;  %v17490_v44 = vsel %vm14649_vm5, %v11874_v13, %v10296_v22  ;;  %v17499_v58 = vsel %vm14649_vm5, %v10298_v9, %v10299_v32  ;;  %v18483_v13 = vor.u32 %v17248_v18, %v17246_v15  ;;  %v8044_v22 = vshll.u32 %v17009_v31, 16 }
 0x47b   : > { %13038 = vmatprep.mubr.bf16.mxu1 %v17263_v37  ;;  %13067 = vmatpush3.bf16.msra.mxu1 %v14003_v61  ;;  %v7776_v37 = vld [vmem:[#allocation2 + $0x84] sm:$0xf]  ;;  %v11905_v61 = vcombine.low %v17482_v40, %v17486_v8  ;;  %v8013_v56 = vrot.slane %v18484_v47, 4  ;;  %v11906_v23 = vcombine.low %v17490_v44, %v17499_v58  ;;  %v17513_v32 = vsel %vm14649_vm5, %v11875_v54, %v10303_v62  ;;  %v10717_v40 = vld [vmem:[%s17962_s23 + $0x10] sm:$0xff] }
 0x47c   : > { %13068 = vmatprep.subr.bf16.mxu1 %v14004_v12  ;;  %v7970_v6 = vrot.slane %v18483_v13, 4  ;;  %v17517_v15 = vsel %vm14649_vm5, %v10305_v51, %v10306_v27  ;;  %v8016_v18 = vrot.slane %v18485_v45, 5  ;;  %v8035_v38 = vshrl.u32 %v7776_v37, 16  ;;  %v10715_v58 = vld [vmem:[%s17962_s23] sm:$0xff] }
 0x47d   : > { %v8038_v9 = vshll.u32 %v7776_v37, 16  ;;  %v11907_v46 = vcombine.low %v17513_v32, %v17517_v15  ;;  %v18486_v31 = vor.u32 %v17256_v42, %v17254_v7  ;;  %v18487_v62 = vor.u32 %v17276_v43, %v17274_v63  ;;  %v14006_v37 = vld [vmem:[%s18158_s5 + $0x168] sm:$0xff]  }
 0x47e   : > { %v18488_v51 = vor.u32 %v17310_v30, %v17295_v21  ;;  %v8027_v16 = vor.u32 %v8026_v3, %v17449_v20  ;;  %v18489_v42 = vsel %vm14316_vm2, %v17252_v50, %v17268_v19  ;;  %v18490_v63 = vsel %vm14316_vm2, %v17244_v11, %v17223_v60 }
 0x47f   : > { %13069 = vmatpush3.bf16.msra.mxu1 %v14004_v12  ;;  %v7980_v2 = vrot.slane %v18486_v31, 4  ;;  %v7994_v54 = vrot.slane %v18487_v62, 4  ;;  %v11707_v43 = vcombine.low %v18490_v63, %v18489_v42  ;;  %v18491_v30 = vshll.u32 %v16967_v26, 16  ;;  %v7779_v31 = vld [vmem:[#allocation2 + $0x90] sm:$0xf]  ;;  %v14008_v63 = vld [vmem:[%s18158_s5 + $0x178] sm:$0xff]  }
 0x480   : > { %v8004_v12 = vrot.slane %v18488_v51, 4  ;;  %13070 = vmatprep.subr.bf16.mxu1 %v14005_v48  ;;  %v8008_v3 = vrot.slane %v8006_v4, 5  ;;  %v8030_v13 = vshll.u32 %v17000_v53, 16  ;;  %v17550_v47 = vrot.slane %v8044_v22, 5 }
 0x481   : > { %v7984_v27 = vrot.slane %v18491_v30, 5  ;;  %v8050_v45 = vrot.slane %v8048_v28, 4  ;;  %v7975_v50 = vsel %vm14316_vm2, %v7970_v6, %v17254_v7  ;;  %v8017_v19 = vor.u32 %v8016_v18, %v8013_v56  ;;  %v14007_v7 = vld [vmem:[%s18158_s5 + $0x170] sm:$0xff]   ;;  %v7782_v28 = vld [vmem:[#allocation2 + $0x9c] sm:$0xf] }
 0x482   : > { %13039 = vmatmul.mubr.bf16.gmra.mrb[8].mxu1 %v17272_v59  ;;  %v8037_v60 = vrot.slane %v8035_v38, 4  ;;  %v8040_v11 = vrot.slane %v8038_v9, 5  ;;  %v7999_v53 = vsel %vm14316_vm2, %v7994_v54, %v17295_v21  ;;  %v8009_v59 = vsel %vm14316_vm2, %v8004_v12, %v8008_v3 }
 0x483   : > { %13042 = vmatprep.mubr.bf16.mxu1 %v11707_v43  ;;  %13071 = vmatpush3.bf16.msra.mxu1 %v14005_v48  ;;  %v7985_v26 = vsel %vm14316_vm2, %v7980_v2, %v7984_v27  ;;  %v8028_v4 = vrot.slane %v8027_v16, 4  ;;  %v8059_v6 = vshrl.u32 %v7779_v31, 16  ;;  %v8062_v56 = vshll.u32 %v7779_v31, 16 }
 0x484   : > { %13072 = vmatprep.subr.bf16.mxu1 %v14006_v37  ;;  %v8068_v48 = vshll.u32 %v17011_v39, 16  ;;  %v8072_v22 = vshrl.u32 %v17011_v39, 16  ;;  %v8032_v18 = vrot.slane %v8030_v13, 5  ;;  %v8051_v38 = vor.u32 %v8050_v45, %v17550_v47 }
 0x485   : > { %v8092_v21 = vshll.u32 %v17038_v14, 16  ;;  %v8096_v9 = vshrl.u32 %v17038_v14, 16  ;;  %v11708_v2 = vcombine.low %v7975_v50, %v7985_v26  ;;  %v11709_v62 = vcombine.low %v7999_v53, %v8009_v59  ;;  %v17586_v26 = vld [vmem:[%s18158_s5 + $0x180] sm:$0xff]  }
 0x486   : > { %v8018_v54 = vrot.slane %v8017_v19, 4  ;;  %v8041_v51 = vor.u32 %v8040_v11, %v8037_v60  ;;  %v8033_v12 = vsel %vm14316_vm2, %v8028_v4, %v8032_v18  ;;  %v8054_v16 = vshll.u32 %v17022_v17, 16  ;;  %v7785_v11 = vld [vmem:[#allocation2 + $0xa8] sm:$0xf]  ;;  %v14080_v4 = vld [vmem:[#allocation2 + $0xac] sm:$0xf] }
 0x487   : > { %13073 = vmatpush3.bf16.msra.mxu1 %v14006_v37  ;;  %v8083_v42 = vshrl.u32 %v7782_v28, 16  ;;  %v8086_v39 = vshll.u32 %v7782_v28, 16  ;;  %v8061_v43 = vrot.slane %v8059_v6, 4  ;;  %v8064_v30 = vrot.slane %v8062_v56, 5 }
 0x488   : > { %13074 = vmatprep.subr.bf16.mxu1 %v14007_v7  ;;  %v17576_v14 = vrot.slane %v8068_v48, 5  ;;  %v8074_v27 = vrot.slane %v8072_v22, 4  ;;  %v8052_v3 = vrot.slane %v8051_v38, 4  ;;  %v17578_v37 = vrot.slane %v8092_v21, 5  ;;  %v14081_v38 = vld [vmem:[#allocation2 + $0x98] sm:$0x1] }
 0x489   : > { %v8098_v13 = vrot.slane %v8096_v9, 4  ;;  %v8023_v17 = vsel %vm14316_vm2, %v8018_v54, %v17449_v20  ;;  %v8042_v45 = vrot.slane %v8041_v51, 4  ;;  %v8056_v50 = vrot.slane %v8054_v16, 5  ;;  %v7788_v20 = vld [vmem:[#allocation2 + $0xb4] sm:$0xf] }
 0x48a   : > { %13043 = vmatmul.mubr.bf16.gmra.mrb[12].mxu1 %v11708_v2  ;;  %v11710_v31 = vcombine.low %v8023_v17, %v8033_v12  ;;  %v8085_v19 = vrot.slane %v8083_v42, 4  ;;  %v8088_v60 = vrot.slane %v8086_v39, 5  ;;  %v8065_v53 = vor.u32 %v8064_v30, %v8061_v43  ;;  %v14082_v54 = vld [vmem:[#allocation2 + $0xa4] sm:$0x1] }
 0x48b   : > { %13046 = vmatprep.mubr.bf16.mxu1 %v11709_v62  ;;  %13075 = vmatpush3.bf16.msra.mxu1 %v14007_v7  ;;  %v8075_v59 = vor.u32 %v8074_v27, %v17576_v14  ;;  %v8116_v6 = vshll.u32 %v14080_v4, 16  ;;  %v8120_v56 = vshrl.u32 %v14080_v4, 16  ;;  %v8057_v7 = vsel %vm14316_vm2, %v8052_v3, %v8056_v50 }
 0x48c   : > { %13076 = vmatprep.subr.bf16.mxu1 %v14008_v63  ;;  %v8099_v48 = vor.u32 %v8098_v13, %v17578_v37  ;;  %v8140_v22 = vshll.u32 %v17066_v49, 16  ;;  %v8144_v28 = vshrl.u32 %v17066_v49, 16  ;;  %v8047_v18 = vsel %vm14316_vm2, %v8042_v45, %v17550_v47 }
 0x48d   : > { %v8078_v21 = vshll.u32 %v14081_v38, 16  ;;  %v8107_v9 = vshrl.u32 %v7785_v11, 16  ;;  %v8110_v2 = vshll.u32 %v7785_v11, 16  ;;  %v8089_v62 = vor.u32 %v8088_v60, %v8085_v19  ;;  %v7791_v11 = vld [vmem:[#allocation2 + $0xc0] sm:$0xf] }
 0x48e   : > { %v8102_v51 = vshll.u32 %v14082_v54, 16  ;;  %v8131_v12 = vshrl.u32 %v7788_v20, 16  ;;  %v8134_v16 = vshll.u32 %v7788_v20, 16  ;;  %v11711_v42 = vcombine.low %v8047_v18, %v8057_v7 }
 0x48f   : > { %13077 = vmatpush3.bf16.msra.mxu1 %v14008_v63  ;;  %v8076_v39 = vrot.slane %v8075_v59, 4  ;;  %v8118_v43 = vrot.slane %v8116_v6, 5  ;;  %v8122_v49 = vrot.slane %v8120_v56, 4  ;;  %v8066_v30 = vrot.slane %v8065_v53, 4  ;;  %v14083_v6 = vld [vmem:[#allocation2 + $0xc4] sm:$0xf] }
 0x490   : > { %13110 = vmatprep.subr.bf16.mxu1 %v17586_v26  ;;  %v8100_v27 = vrot.slane %v8099_v48, 4  ;;  %v8142_v47 = vrot.slane %v8140_v22, 5  ;;  %v8146_v3 = vrot.slane %v8144_v28, 4  ;;  %v8080_v13 = vrot.slane %v8078_v21, 5  ;;  %v14084_v22 = vld [vmem:[#allocation2 + $0xb0] sm:$0x1] }
 0x491   : > { %v8109_v17 = vrot.slane %v8107_v9, 4  ;;  %v8112_v63 = vrot.slane %v8110_v2, 5  ;;  %v8090_v45 = vrot.slane %v8089_v62, 4  ;;  %v8104_v50 = vrot.slane %v8102_v51, 5  ;;  %v14085_v62 = vld [vmem:[#allocation2 + $0xbc] sm:$0x1] }
 0x492   : > { %13047 = vmatmul.mubr.bf16.gmra.mrb[16].mxu1 %v11710_v31  ;;  %v8133_v19 = vrot.slane %v8131_v12, 4  ;;  %v8136_v60 = vrot.slane %v8134_v16, 5  ;;  %v8081_v4 = vsel %vm14316_vm2, %v8076_v39, %v8080_v13  ;;  %v8123_v59 = vor.u32 %v8122_v49, %v8118_v43 }
 0x493   : > { %13050 = vmatprep.mubr.bf16.mxu1 %v11711_v42  ;;  %v8164_v56 = vshll.u32 %v14083_v6, 16  ;;  %v8168_v31 = vshrl.u32 %v14083_v6, 16  ;;  %v8071_v53 = vsel %vm14316_vm2, %v8066_v30, %v17576_v14  ;;  %v8105_v20 = vsel %vm14316_vm2, %v8100_v27, %v8104_v50 }
 0x494   : > { %v8147_v7 = vor.u32 %v8146_v3, %v8142_v47  ;;  %v8113_v48 = vor.u32 %v8112_v63, %v8109_v17  ;;  %v8126_v28 = vshll.u32 %v14084_v22, 16  ;;  %v8155_v18 = vshrl.u32 %v7791_v11, 16 }
 0x495   : > { %v8158_v38 = vshll.u32 %v7791_v11, 16  ;;  %v11712_v21 = vcombine.low %v8071_v53, %v8081_v4  ;;  %v8095_v9 = vsel %vm14316_vm2, %v8090_v45, %v17578_v37  ;;  %v8137_v2 = vor.u32 %v8136_v60, %v8133_v19  ;;  %v14086_v45 = vld [vmem:[#allocation2 + $0x10] sm:$0xf]  ;;  %v14087_v11 = vld [vmem:[#allocation2 + $0xc8] sm:$0x1] }
 0x496   : > { %v8150_v54 = vshll.u32 %v14085_v62, 16  ;;  %v11713_v51 = vcombine.low %v8095_v9, %v8105_v20  ;;  %v8124_v12 = vrot.slane %v8123_v59, 4  ;;  %v8166_v14 = vrot.slane %v8164_v56, 5 }
 0x497   : > { %v8170_v16 = vrot.slane %v8168_v31, 4  ;;  %v8148_v42 = vrot.slane %v8147_v7, 4  ;;  %v8114_v39 = vrot.slane %v8113_v48, 4  ;;  %v8128_v49 = vrot.slane %v8126_v28, 5  ;;  %v8500_v48 = vld [vmem:[#allocation2 + $0xc] sm:$0xe] }
 0x498   : > { %v8157_v30 = vrot.slane %v8155_v18, 4  ;;  %v8160_v27 = vrot.slane %v8158_v38, 5  ;;  %v8138_v3 = vrot.slane %v8137_v2, 4  ;;  %v8152_v13 = vrot.slane %v8150_v54, 5  ;;  %v14088_v28 = vld [vmem:[#allocation2 + $0x1c] sm:$0xf] }
 0x499   : > { %v8129_v17 = vsel %vm14316_vm2, %v8124_v12, %v8128_v49  ;;  %v8171_v37 = vor.u32 %v8170_v16, %v8166_v14  ;;  %v8566_v50 = vrot.slane %v14086_v45, 5  ;;  %v8119_v19 = vsel %vm14316_vm2, %v8114_v39, %v8118_v43  ;;  %v14016_v45 = vld [vmem:[%s18158_s5 + $0x1b8] sm:$0xff]  }
 0x49a   : > { %13051 = vmatmul.mubr.bf16.gmra.mrb[20].mxu1 %v11712_v21  ;;  %v8153_v63 = vsel %vm14316_vm2, %v8148_v42, %v8152_v13  ;;  %v8161_v60 = vor.u32 %v8160_v27, %v8157_v30  ;;  %v8174_v4 = vshll.u32 %v14087_v11, 16  ;;  %v11714_v59 = vcombine.low %v8119_v19, %v8129_v17  ;;  %v14012_v30 = vld [vmem:[%s18158_s5 + $0x198] sm:$0xff]   ;;  %v18496_v13 = vld [vmem:[#allocation21_spill] sm:$0xff]  ;;  %v18505_v11 = vld [vmem:[#allocation11_spill] sm:$0xff] }
 0x49b   : > { %13054 = vmatprep.mubr.bf16.mxu1 %v11713_v51  ;;  %v8143_v6 = vsel %vm14316_vm2, %v8138_v3, %v8142_v47  ;;  %v8172_v31 = vrot.slane %v8171_v37, 4  ;;  %v8568_v53 = vrot.slane %v8566_v50, 4  ;;  %v8569_v22 = vrot.slane %v17154_v10, 5  ;;  %v8501_v10 = vld [vmem:[#allocation2 + $0x18] sm:$0xe]  ;;  %v14014_v3 = vld [vmem:[%s18158_s5 + $0x1a8] sm:$0xff]  }
 0x49c   : > { %v11715_v56 = vcombine.low %v8143_v6, %v8153_v63  ;;  %v8162_v20 = vrot.slane %v8161_v60, 4  ;;  %v8176_v7 = vrot.slane %v8174_v4, 5  ;;  %v8573_v18 = vrot.slane %v14088_v28, 5  ;;  %v18497_v17 = vld [vmem:[#allocation22_spill] sm:$0xff]  ;;  %v18500_v37 = vld [vmem:[#allocation12_spill] sm:$0xff]  ;;  %v14015_v63 = vld [vmem:[%s18158_s5 + $0x1b0] sm:$0xff]  }
 0x49d   : > { %v11725_v38 = vrot.slane %v8500_v48, 9  ;;  %v8570_v21 = vsel %vm14649_vm5, %v8568_v53, %v8569_v22  ;;  %v8576_v51 = vrot.slane %v17159_v25, 5  ;;  %v11726_v12 = vrot.slane %v8501_v10, 9  ;;  %v14011_v25 = vld [vmem:[%s18158_s5 + $0x190] sm:$0xff]   ;;  %v18503_v19 = vld [vmem:[#allocation10_spill] sm:$0xff]  ;;  %v18506_v4 = vld [vmem:[#allocation7_spill] sm:$0xff] }
 0x49e   : > { %v8177_v43 = vsel %vm14316_vm2, %v8172_v31, %v8176_v7  ;;  %v8167_v47 = vsel %vm14316_vm2, %v8162_v20, %v8166_v14  ;;  %v8575_v54 = vrot.slane %v8573_v18, 4  ;;  %v14010_v14 = vld [vmem:[%s18158_s5 + $0x188] sm:$0xff]   ;;  %v18492_v49 = vcombine.low %v16939_v24, %v16943_v34  ;;  %v18494_v24 = vld [vmem:[#allocation14_spill] sm:$0xff]  ;;  %v14019_v6 = vld [vmem:[%s18158_s5 + $0x1c0] sm:$0xff]  }
 0x49f   : > { %v11716_v9 = vcombine.low %v8167_v47, %v8177_v43  ;;  %v8567_v2 = vsel %vm14649_vm5, %v11725_v38, %v8566_v50  ;;  %v8574_v42 = vsel %vm14649_vm5, %v11726_v12, %v8573_v18  ;;  %v18493_v27 = vcombine.low %v16953_v52, %v16959_v41  ;;  %v18499_v41 = vld [vmem:[#allocation8_spill] sm:$0xff]  ;;  %v18502_v50 = vld [vmem:[#allocation9_spill] sm:$0xff]  ;;  %v18509_v31 = vld [vmem:[#allocation6_spill] sm:$0xff] }
 0x4a0   : > { %v11757_v62 = vcombine.low %v8567_v2, %v8570_v21  ;;  %v8577_v16 = vsel %vm14649_vm5, %v8575_v54, %v8576_v51  ;;  %v18495_v34 = vcombine.low %v16963_v35, %v18494_v24  ;;  %v18498_v52 = vcombine.low %v18496_v13, %v18497_v17  ;;  %v18511_v20 = vld [vmem:[#allocation15_spill] sm:$0xff]  ;;  %v18512_v7 = vld [vmem:[#allocation16_spill] sm:$0xff]  ;;  %v18514_v22 = vld [vmem:[#allocation17_spill] sm:$0xff] }
 0x4a1   : > { %v11758_v39 = vcombine.low %v8574_v42, %v8577_v16  ;;  %v18501_v35 = vcombine.low %v18499_v41, %v18500_v37  ;;  %v18504_v60 = vcombine.low %v18502_v50, %v18503_v19  ;;  %v18513_v48 = vcombine.low %v18511_v20, %v18512_v7  ;;  %v18515_v43 = vld [vmem:[#allocation18_spill] sm:$0xff]  ;;  %v18517_v18 = vld [vmem:[#allocation19_spill] sm:$0xff]  ;;  %v18518_v38 = vld [vmem:[#allocation20_spill] sm:$0xff] }
 0x4a2   : > { %13055 = vmatmul.mubr.bf16.gmra.mrb[24].mxu1 %v11714_v59  ;;  %v18507_v59 = vcombine.low %v18505_v11, %v18506_v4  ;;  %v18516_v28 = vcombine.low %v18514_v22, %v18515_v43  ;;  %v18519_v21 = vcombine.low %v18517_v18, %v18518_v38  ;;  %v18520_v47 = vld [vmem:[#allocation23_spill] sm:$0xff]  ;;  %v18524_v54 = vld [vmem:[#allocation26_spill] sm:$0xff]  ;;  %v18527_v16 = vld [vmem:[#allocation28_spill] sm:$0xff] }
 0x4a3   : > { %13058 = vmatprep.mubr.bf16.mxu1 %v11715_v56  ;;  %v18508_v56 = vld [vmem:[#allocation13_spill] sm:$0xff]  ;;  %v14017_v51 = vld [vmem:[#allocation2 + $0x18] sm:$0xff]   ;;  %v18526_v12 = vld [vmem:[#allocation27_spill] sm:$0xff] }
 0x4a4   : > { %v18510_v53 = vcombine.low %v18508_v56, %v18509_v31  ;;  %v18528_v42 = vcombine.low %v18526_v12, %v18527_v16  ;;  %v14023_v24 = vld [vmem:[#allocation2 + $0x48] sm:$0xff]   ;;  %v14026_v13 = vld [vmem:[#allocation2 + $0x60] sm:$0xff]   ;;  %v14037_v17 = vld [vmem:[%s18158_s5 + $0x1f0] sm:$0xff]  }
 0x4a5   : > { %v14040_v41 = vld [vmem:[%s18158_s5 + $0x1f8] sm:$0xff]   ;;  %v14030_v11 = vld [vmem:[#allocation2 + $0x84] sm:$0xff]  }
 0x4a6   : > { %v14029_v37 = vld [vmem:[#allocation2 + $0x78] sm:$0xff]   ;;  %v18530_v22 = vld [vmem:[#allocation31_spill] sm:$0xff] }
 0x4a7   : > { %v9467_v43 = vshll.u32 %v18530_v22, 16 }
 0x4aa   : > { %13059 = vmatmul.mubr.bf16.gmra.mrb[28].mxu1 %v11716_v9  ;;  %v18521_v9 = vld [vmem:[#allocation24_spill] sm:$0xff] }
 0x4ab   : > { %13078 = vmatprep.mubr.bf16.mxu1 %v11757_v62  ;;  %v18522_v2 = vcombine.low %v18520_v47, %v18521_v9  ;;  %v18523_v62 = vld [vmem:[#allocation25_spill] sm:$0xff]  ;;  %v14033_v9 = vld [vmem:[#allocation2 + $0x9c] sm:$0xff]  }
 0x4ac   : > { %v18525_v10 = vcombine.low %v18523_v62, %v18524_v54  ;;  %v9391_v47 = vld [vmem:[#allocation2 + $0x30] sm:$0xf]  ;;  %v18531_v62 = vld [vmem:[#allocation30_spill] sm:$0xff] }
 0x4ad   : > { %v9453_v54 = vshll.u32 %v18531_v62, 16  ;;  %v9482_v12 = vshrl.u32 %v9391_v47, 16  ;;  %v10154_v62 = vld [vmem:[#allocation2 + $0xcc] sm:$0xe] }
 0x4b2   : > { %13079 = vmatmul.mubr.bf16.vlgmr.msra.gmra.mrb[0].mxu1 %v11758_v39  ;;  %v14018_v39 = vld [vmem:[#allocation2 + $0x24] sm:$0xff]  }
 0x4b3   : > { %13082 = vmatprep.mubr.bf16.mxu1 %v18492_v49  ;;  %13111 = vmatpush3.bf16.msra.mxu1 %v17586_v26  ;;  %v14013_v26 = vld [vmem:[%s18158_s5 + $0x1a0] sm:$0xff]   ;;  %v14020_v49 = vld [vmem:[#allocation2 + $0x30] sm:$0xff]  }
 0x4b4   : > { %13112 = vmatprep.subr.bf16.mxu1 %v14010_v14 }
 0x4b7   : > { %13113 = vmatpush3.bf16.msra.mxu1 %v14010_v14  ;;  %v14022_v14 = vld [vmem:[%s18158_s5 + $0x1c8] sm:$0xff]  }
 0x4b8   : > { %13114 = vmatprep.subr.bf16.mxu1 %v14011_v25 }
 0x4ba   : > { %13083 = vmatmul.mubr.bf16.gmra.mrb[4].mxu1 %v18493_v27  ;;  %v14028_v27 = vld [vmem:[%s18158_s5 + $0x1d8] sm:$0xff]  }
 0x4bb   : > { %13086 = vmatprep.mubr.bf16.mxu1 %v18495_v34  ;;  %13115 = vmatpush3.bf16.msra.mxu1 %v14011_v25  ;;  %v14025_v25 = vld [vmem:[%s18158_s5 + $0x1d0] sm:$0xff]   ;;  %v14031_v34 = vld [vmem:[%s18158_s5 + $0x1e0] sm:$0xff]  }
 0x4bc   : > { %13116 = vmatprep.subr.bf16.mxu1 %v14012_v30 }
 0x4bf   : > { %13117 = vmatpush3.bf16.msra.mxu1 %v14012_v30  ;;  %v14021_v30 = vld [vmem:[#allocation2 + $0x3c] sm:$0xff]  }
 0x4c0   : > { %13118 = vmatprep.subr.bf16.mxu1 %v14013_v26 }
 0x4c2   : > { %13087 = vmatmul.mubr.bf16.gmra.mrb[8].mxu1 %v18498_v52  ;;  %v14027_v52 = vld [vmem:[#allocation2 + $0x6c] sm:$0xff]  }
 0x4c3   : > { %13090 = vmatprep.mubr.bf16.mxu1 %v18501_v35  ;;  %13119 = vmatpush3.bf16.msra.mxu1 %v14013_v26  ;;  %v14024_v26 = vld [vmem:[#allocation2 + $0x54] sm:$0xff]   ;;  %v17721_v35 = vld [vmem:[%s18158_s5 + $0x200] sm:$0xff]  }
 0x4c4   : > { %13120 = vmatprep.subr.bf16.mxu1 %v14014_v3 }
 0x4c7   : > { %13121 = vmatpush3.bf16.msra.mxu1 %v14014_v3  ;;  %v14034_v3 = vld [vmem:[%s18158_s5 + $0x1e8] sm:$0xff]  }
 0x4c8   : > { %13122 = vmatprep.subr.bf16.mxu1 %v14015_v63 }
 0x4ca   : > { %13091 = vmatmul.mubr.bf16.gmra.mrb[12].mxu1 %v18504_v60  ;;  %v9388_v60 = vld [vmem:[#allocation2 + $0x24] sm:$0xf] }
 0x4cb   : > { %13094 = vmatprep.mubr.bf16.mxu1 %v18507_v59  ;;  %13123 = vmatpush3.bf16.msra.mxu1 %v14015_v63  ;;  %v9385_v63 = vld [vmem:[#allocation2 + $0x18] sm:$0xf]  ;;  %v9461_v20 = vshll.u32 %v9388_v60, 16 }
 0x4cc   : > { %13124 = vmatprep.subr.bf16.mxu1 %v14016_v45  ;;  %v9434_v4 = vshrl.u32 %v9385_v63, 16  ;;  %v9437_v59 = vshll.u32 %v9385_v63, 16 }
 0x4cd   : > { %v9463_v38 = vrot.slane %v9461_v20, 5  ;;  %v18535_v20 = vld [vmem:[#allocation35_spill] sm:$0xff] }
 0x4ce   : > { %v9436_v7 = vrot.slane %v9434_v4, 4 }
 0x4cf   : > { %13125 = vmatpush3.bf16.msra.mxu1 %v14016_v45  ;;  %v18529_v45 = vld [vmem:[#allocation29_spill] sm:$0xff] }
 0x4d0   : > { %13158 = vmatprep.subr.bf16.mxu1 %v14019_v6  ;;  %v9443_v50 = vshll.u32 %v18529_v45, 16  ;;  %v9447_v19 = vshrl.u32 %v18529_v45, 16 }
 0x4d2   : > { %13095 = vmatmul.mubr.bf16.gmra.mrb[16].mxu1 %v18510_v53  ;;  %v9445_v56 = vrot.slane %v9443_v50, 5  ;;  %v9449_v31 = vrot.slane %v9447_v19, 4  ;;  %v9458_v53 = vshrl.u32 %v9388_v60, 16  ;;  %v14036_v50 = vld [vmem:[#allocation2 + $0xb4] sm:$0xff]  }
 0x4d3   : > { %13098 = vmatprep.mubr.bf16.mxu1 %v18513_v48  ;;  %v9439_v48 = vrot.slane %v9437_v59, 5 }
 0x4d4   : > { %v9460_v18 = vrot.slane %v9458_v53, 4 }
 0x4da   : > { %13099 = vmatmul.mubr.bf16.gmra.mrb[20].mxu1 %v18516_v28  ;;  %v9450_v28 = vor.u32 %v9449_v31, %v9445_v56 }
 0x4db   : > { %13102 = vmatprep.mubr.bf16.mxu1 %v18519_v21  ;;  %v9471_v21 = vshrl.u32 %v18530_v22, 16  ;;  %v9397_v22 = vld [vmem:[#allocation2 + $0x48] sm:$0xf] }
 0x4dc   : > { %v9451_v16 = vrot.slane %v9450_v28, 4 }
 0x4e2   : > { %13103 = vmatmul.mubr.bf16.gmra.mrb[24].mxu1 %v18522_v2  ;;  %v9440_v2 = vor.u32 %v9439_v48, %v9436_v7  ;;  %v9515_v7 = vshll.u32 %v18535_v20, 16  ;;  %v9519_v48 = vshrl.u32 %v18535_v20, 16 }
 0x4e3   : > { %13106 = vmatprep.mubr.bf16.mxu1 %v18525_v10  ;;  %v14035_v10 = vld [vmem:[#allocation2 + $0xa8] sm:$0xff]  }
 0x4ea   : > { %13107 = vmatmul.mubr.bf16.gmra.mrb[28].mxu1 %v18528_v42  ;;  %v9464_v42 = vor.u32 %v9463_v38, %v9460_v18  ;;  %v18536_v18 = vld [vmem:[#allocation36_spill] sm:$0xff] }
 0x4eb   : > { %13126 = vmatprep.mubr.bf16.mxu1 %v14017_v51  ;;  %v17729_v51 = vrot.slane %v9467_v43, 5  ;;  %v9539_v38 = vshll.u32 %v18536_v18, 16 }
 0x4f2   : > { %13127 = vmatmul.mubr.bf16.vlgmr.msra.gmra.mrb[0].mxu1 %v14018_v39  ;;  %v9473_v39 = vrot.slane %v9471_v21, 4  ;;  %v17753_v21 = vld [vmem:[#allocation2 + $0xd0] sm:$0xf] }
 0x4f3   : > { %13130 = vmatprep.mubr.bf16.mxu1 %v14020_v49  ;;  %13159 = vmatpush3.bf16.msra.mxu1 %v14019_v6  ;;  %v14032_v6 = vld [vmem:[#allocation2 + $0x90] sm:$0xff]  }
 0x4f4   : > { %13160 = vmatprep.subr.bf16.mxu1 %v14022_v14  ;;  %v18532_v49 = vld [vmem:[#allocation33_spill] sm:$0xff] }
 0x4f7   : > { %13161 = vmatpush3.bf16.msra.mxu1 %v14022_v14  ;;  %v9485_v14 = vshll.u32 %v9391_v47, 16  ;;  %v17755_v47 = vld [vmem:[#allocation2 + $0xd4] sm:$0x1] }
 0x4f8   : > { %13162 = vmatprep.subr.bf16.mxu1 %v14025_v25 }
 0x4fa   : > { %13131 = vmatmul.mubr.bf16.gmra.mrb[4].mxu1 %v14021_v30  ;;  %v9495_v30 = vshrl.u32 %v18532_v49, 16 }
 0x4fb   : > { %13134 = vmatprep.mubr.bf16.mxu1 %v14023_v24  ;;  %13163 = vmatpush3.bf16.msra.mxu1 %v14025_v25  ;;  %v9491_v25 = vshll.u32 %v18532_v49, 16  ;;  %v9455_v24 = vrot.slane %v9453_v54, 5  ;;  %v10310_v54 = vrot.slane %v17753_v21, 5  ;;  %v17763_v49 = vrot.slane %v9515_v7, 5 }
 0x4fc   : > { %13164 = vmatprep.subr.bf16.mxu1 %v14028_v27  ;;  %v9497_v45 = vrot.slane %v9495_v30, 4 }
 0x4fd   : > { %v17739_v63 = vrot.slane %v9491_v25, 5  ;;  %v9521_v25 = vrot.slane %v9519_v48, 4  ;;  %v10312_v30 = vrot.slane %v10310_v54, 4 }
 0x4ff   : > { %13165 = vmatpush3.bf16.msra.mxu1 %v14028_v27  ;;  %v9441_v27 = vrot.slane %v9440_v2, 4  ;;  %v9543_v2 = vshrl.u32 %v18536_v18, 16  ;;  %v9522_v7 = vor.u32 %v9521_v25, %v17763_v49 }
 0x500   : > { %13166 = vmatprep.subr.bf16.mxu1 %v14031_v34 }
 0x501   : > { %v9446_v19 = vsel %vm14316_vm2, %v9441_v27, %v9445_v56  ;;  %v14039_v27 = vld [vmem:[#allocation2 + $0xcc] sm:$0xff]  }
 0x502   : > { %13135 = vmatmul.mubr.bf16.gmra.mrb[8].mxu1 %v14024_v26 }
 0x503   : > { %13138 = vmatprep.mubr.bf16.mxu1 %v14026_v13  ;;  %13167 = vmatpush3.bf16.msra.mxu1 %v14031_v34  ;;  %v18533_v34 = vld [vmem:[#allocation32_spill] sm:$0xff]  ;;  %v9394_v13 = vld [vmem:[#allocation2 + $0x3c] sm:$0xf] }
 0x504   : > { %13168 = vmatprep.subr.bf16.mxu1 %v14034_v3  ;;  %v9477_v26 = vshll.u32 %v18533_v34, 16  ;;  %v9506_v59 = vshrl.u32 %v9394_v13, 16  ;;  %v9509_v53 = vshll.u32 %v9394_v13, 16  ;;  %v9533_v34 = vshll.u32 %v9397_v22, 16 }
 0x505   : > { %v9545_v13 = vrot.slane %v9543_v2, 4 }
 0x506   : > { %v17743_v60 = vrot.slane %v9477_v26, 5  ;;  %v17765_v26 = vrot.slane %v9539_v38, 5  ;;  %v9535_v48 = vrot.slane %v9533_v34, 5 }
 0x507   : > { %13169 = vmatpush3.bf16.msra.mxu1 %v14034_v3  ;;  %v9484_v3 = vrot.slane %v9482_v12, 4  ;;  %v9508_v12 = vrot.slane %v9506_v59, 4 }
 0x508   : > { %13170 = vmatprep.subr.bf16.mxu1 %v14037_v17 }
 0x50a   : > { %13139 = vmatmul.mubr.bf16.gmra.mrb[12].mxu1 %v14027_v52  ;;  %v17736_v52 = vrot.slane %v9464_v42, 4  ;;  %v9567_v42 = vshrl.u32 %v17340_v33, 16 }
 0x50b   : > { %13142 = vmatprep.mubr.bf16.mxu1 %v14029_v37  ;;  %13171 = vmatpush3.bf16.msra.mxu1 %v14037_v17  ;;  %v9456_v17 = vsel %vm14316_vm2, %v9451_v16, %v9455_v24  ;;  %v9487_v37 = vrot.slane %v9485_v14, 5  ;;  %v9563_v16 = vshll.u32 %v17340_v33, 16  ;;  %v9511_v14 = vrot.slane %v9509_v53, 5  ;;  %v18537_v53 = vld [vmem:[#allocation39_spill] sm:$0xff] }
 0x50c   : > { %13172 = vmatprep.subr.bf16.mxu1 %v14040_v41  ;;  %v11837_v31 = vcombine.low %v9446_v19, %v9456_v17  ;;  %v9470_v43 = vsel %vm14316_vm2, %v17736_v52, %v17729_v51  ;;  %v9530_v24 = vshrl.u32 %v9397_v22, 16  ;;  %v9525_v20 = vshll.u32 %v18537_v53, 16 }
 0x50d   : > { %v9488_v28 = vor.u32 %v9487_v37, %v9484_v3  ;;  %v17775_v37 = vrot.slane %v9563_v16, 5  ;;  %v9512_v55 = vor.u32 %v9511_v14, %v9508_v12  ;;  %v9546_v22 = vor.u32 %v9545_v13, %v17765_v26  ;;  %v14089_v12 = vld [vmem:[#allocation2 + $0x50] sm:$0x1]  ;;  %v18539_v14 = vld [vmem:[#allocation42_spill] sm:$0xff]  ;;  %v9406_v13 = vld [vmem:[#allocation2 + $0x6c] sm:$0xf] }
 0x50e   : > { %v9573_v25 = vshll.u32 %v18539_v14, 16 }
 0x50f   : > { %13173 = vmatpush3.bf16.msra.mxu1 %v14040_v41  ;;  %v9474_v41 = vor.u32 %v9473_v39, %v17729_v51  ;;  %v9400_v51 = vld [vmem:[#allocation2 + $0x54] sm:$0xf]  ;;  %v11876_v39 = vrot.slane %v10154_v62, 9  ;;  %v9489_v59 = vrot.slane %v9488_v28, 4  ;;  %v9513_v16 = vrot.slane %v9512_v55, 4 }
 0x510   : > { %13206 = vmatprep.subr.bf16.mxu1 %v17721_v35  ;;  %v9554_v17 = vshrl.u32 %v9400_v51, 16  ;;  %v9557_v52 = vshll.u32 %v9400_v51, 16  ;;  %v9549_v51 = vshll.u32 %v14089_v12, 16  ;;  %v9602_v55 = vshrl.u32 %v9406_v13, 16 }
 0x511   : > { %v9475_v56 = vrot.slane %v9474_v41, 4  ;;  %v17769_v3 = vsel %vm14649_vm5, %v11876_v39, %v10310_v54  ;;  %v9527_v39 = vrot.slane %v9525_v20, 5  ;;  %v9518_v53 = vsel %vm14316_vm2, %v9513_v16, %v17763_v49  ;;  %v14043_v49 = vld [vmem:[%s18158_s5 + $0x210] sm:$0xff]  }
 0x512   : > { %13143 = vmatmul.mubr.bf16.gmra.mrb[16].mxu1 %v14030_v11  ;;  %v18534_v11 = vld [vmem:[#allocation34_spill] sm:$0xff]  ;;  %v9556_v18 = vrot.slane %v9554_v17, 4  ;;  %v9559_v38 = vrot.slane %v9557_v52, 5  ;;  %v9575_v20 = vrot.slane %v9573_v25, 5 }
 0x513   : > { %13146 = vmatprep.mubr.bf16.mxu1 %v14032_v6  ;;  %v9501_v4 = vshll.u32 %v18534_v11, 16  ;;  %v14038_v6 = vld [vmem:[#allocation2 + $0xc0] sm:$0xff]   ;;  %v9480_v11 = vsel %vm14316_vm2, %v9475_v56, %v17743_v60  ;;  %v18538_v60 = vld [vmem:[#allocation44_spill] sm:$0xff] }
 0x514   : > { %v9587_v56 = vshll.u32 %v18538_v60, 16  ;;  %v9591_v28 = vshrl.u32 %v18538_v60, 16 }
 0x515   : > { %v9503_v41 = vrot.slane %v9501_v4, 5  ;;  %v9532_v4 = vrot.slane %v9530_v24, 4  ;;  %v9560_v24 = vor.u32 %v9559_v38, %v9556_v18 }
 0x516   : > { %v17797_v52 = vrot.slane %v9587_v56, 5 }
 0x517   : > { %v9561_v38 = vrot.slane %v9560_v24, 4 }
 0x519   : > { %v9566_v25 = vsel %vm14316_vm2, %v9561_v38, %v17775_v37  ;;  %v14094_v38 = vld [vmem:[#allocation2 + $0x94] sm:$0xf] }
 0x51a   : > { %13147 = vmatmul.mubr.bf16.gmra.mrb[20].mxu1 %v14033_v9  ;;  %v9498_v9 = vor.u32 %v9497_v45, %v17739_v63  ;;  %v9569_v45 = vrot.slane %v9567_v42, 4  ;;  %v9523_v42 = vrot.slane %v9522_v7, 4  ;;  %v9605_v7 = vshll.u32 %v9406_v13, 16  ;;  %v14044_v13 = vld [vmem:[%s18158_s5 + $0x218] sm:$0xff]  }
 0x51b   : > { %13150 = vmatprep.mubr.bf16.mxu1 %v14035_v10  ;;  %v10313_v10 = vrot.slane %v17755_v47, 5 }
 0x51c   : > { %v9570_v62 = vor.u32 %v9569_v45, %v17775_v37  ;;  %v9607_v12 = vrot.slane %v9605_v7, 5 }
 0x51d   : > { %v17773_v33 = vsel %vm14649_vm5, %v10312_v30, %v10313_v10  ;;  %v9494_v10 = vsel %vm14316_vm2, %v9489_v59, %v17739_v63  ;;  %v9536_v30 = vor.u32 %v9535_v48, %v9532_v4  ;;  %v9409_v4 = vld [vmem:[#allocation2 + $0x78] sm:$0xf]  ;;  %v9528_v48 = vsel %vm14316_vm2, %v9523_v42, %v9527_v39 }
 0x51e   : > { %v11908_v19 = vcombine.low %v17769_v3, %v17773_v33  ;;  %v9571_v63 = vrot.slane %v9570_v62, 4  ;;  %v11840_v39 = vcombine.low %v9518_v53, %v9528_v48  ;;  %v14045_v48 = vld [vmem:[%s18158_s5 + $0x220] sm:$0xff]  }
 0x522   : > { %13151 = vmatmul.mubr.bf16.gmra.mrb[24].mxu1 %v14036_v50  ;;  %v9403_v50 = vld [vmem:[#allocation2 + $0x60] sm:$0xf] }
 0x523   : > { %13154 = vmatprep.mubr.bf16.mxu1 %v14038_v6  ;;  %v9499_v6 = vrot.slane %v9498_v9, 4  ;;  %v9578_v2 = vshrl.u32 %v9403_v50, 16  ;;  %v9581_v54 = vshll.u32 %v9403_v50, 16  ;;  %v11838_v9 = vcombine.low %v9470_v43, %v9480_v11  ;;  %v14042_v43 = vld [vmem:[%s18158_s5 + $0x208] sm:$0xff]   ;;  %v18540_v11 = vld [vmem:[#allocation47_spill] sm:$0xff] }
 0x524   : > { %v9551_v50 = vrot.slane %v9549_v51, 5  ;;  %v9611_v59 = vshll.u32 %v18540_v11, 16  ;;  %v14091_v51 = vld [vmem:[#allocation2 + $0x7c] sm:$0xf] }
 0x525   : > { %v9580_v34 = vrot.slane %v9578_v2, 4  ;;  %v9583_v17 = vrot.slane %v9581_v54, 5  ;;  %v9576_v2 = vsel %vm14316_vm2, %v9571_v63, %v9575_v20  ;;  %v9635_v16 = vshll.u32 %v14091_v51, 16  ;;  %v9412_v63 = vld [vmem:[#allocation2 + $0x84] sm:$0xf] }
 0x526   : > { %v17815_v56 = vrot.slane %v9611_v59, 5  ;;  %v9639_v42 = vshrl.u32 %v14091_v51, 16  ;;  %v9650_v53 = vshrl.u32 %v9412_v63, 16  ;;  %v9653_v20 = vshll.u32 %v9412_v63, 16 }
 0x527   : > { %v9584_v62 = vor.u32 %v9583_v17, %v9580_v34  ;;  %v17827_v59 = vrot.slane %v9635_v16, 5 }
 0x528   : > { %v9652_v51 = vrot.slane %v9650_v53, 4  ;;  %v9655_v16 = vrot.slane %v9653_v20, 5 }
 0x529   : > { %v9585_v24 = vrot.slane %v9584_v62, 4  ;;  %v9687_v62 = vshrl.u32 %v14094_v38, 16 }
 0x52a   : > { %13155 = vmatmul.mubr.bf16.gmra.mrb[28].mxu1 %v14039_v27  ;;  %v9547_v27 = vrot.slane %v9546_v22, 4  ;;  %v9537_v22 = vrot.slane %v9536_v30, 4 }
 0x52b   : > { %13174 = vmatprep.mubr.bf16.mxu1 %v11837_v31  ;;  %v9504_v31 = vsel %vm14316_vm2, %v9499_v6, %v9503_v41  ;;  %v9593_v41 = vrot.slane %v9591_v28, 4  ;;  %v9615_v6 = vshrl.u32 %v18540_v11, 16  ;;  %v14092_v11 = vld [vmem:[#allocation2 + $0x74] sm:$0x1] }
 0x52c   : > { %v11839_v45 = vcombine.low %v9494_v10, %v9504_v31  ;;  %v9552_v18 = vsel %vm14316_vm2, %v9547_v27, %v9551_v50  ;;  %v9629_v10 = vshll.u32 %v9409_v4, 16  ;;  %v9604_v31 = vrot.slane %v9602_v55, 4  ;;  %v14093_v55 = vld [vmem:[#allocation2 + $0x88] sm:$0xf] }
 0x52d   : > { %v9594_v54 = vor.u32 %v9593_v41, %v17797_v52  ;;  %v9617_v28 = vrot.slane %v9615_v6, 4  ;;  %v9542_v14 = vsel %vm14316_vm2, %v9537_v22, %v17765_v26  ;;  %v11842_v27 = vcombine.low %v9566_v25, %v9576_v2 }
 0x52e   : > { %v11841_v30 = vcombine.low %v9542_v14, %v9552_v18  ;;  %v9631_v26 = vrot.slane %v9629_v10, 5  ;;  %v9608_v50 = vor.u32 %v9607_v12, %v9604_v31  ;;  %v9621_v37 = vshll.u32 %v14092_v11, 16  ;;  %v14095_v31 = vld [vmem:[#allocation2 + $0x80] sm:$0x1]  ;;  %v9418_v14 = vld [vmem:[#allocation2 + $0x9c] sm:$0xf] }
 0x52f   : > { %v9595_v17 = vrot.slane %v9594_v54, 4  ;;  %v9618_v41 = vor.u32 %v9617_v28, %v17815_v56  ;;  %v9641_v6 = vrot.slane %v9639_v42, 4  ;;  %v9659_v7 = vshll.u32 %v14093_v55, 16 }
 0x530   : > { %v9683_v2 = vshll.u32 %v14094_v38, 16  ;;  %v9590_v54 = vsel %vm14316_vm2, %v9585_v24, %v17797_v52  ;;  %v9609_v28 = vrot.slane %v9608_v50, 4  ;;  %v9645_v12 = vshll.u32 %v14095_v31, 16 }
 0x531   : > { %v9642_v10 = vor.u32 %v9641_v6, %v17827_v59  ;;  %v17838_v42 = vrot.slane %v9659_v7, 5  ;;  %v9689_v24 = vrot.slane %v9687_v62, 4  ;;  %v9698_v50 = vshrl.u32 %v9418_v14, 16 }
 0x532   : > { %13175 = vmatmul.mubr.bf16.vlgmr.msra.gmra.mrb[0].mxu1 %v11838_v9  ;;  %v9626_v9 = vshrl.u32 %v9409_v4, 16  ;;  %v9663_v4 = vshrl.u32 %v14093_v55, 16  ;;  %v9701_v11 = vshll.u32 %v9418_v14, 16  ;;  %v9647_v6 = vrot.slane %v9645_v12, 5  ;;  %v14096_v55 = vld [vmem:[#allocation2 + $0x8c] sm:$0x1] }
 0x533   : > { %13178 = vmatprep.mubr.bf16.mxu1 %v11839_v45  ;;  %13207 = vmatpush3.bf16.msra.mxu1 %v17721_v35  ;;  %v14090_v35 = vld [vmem:[#allocation2 + $0x68] sm:$0x1]  ;;  %v9669_v7 = vshll.u32 %v14096_v55, 16 }
 0x534   : > { %13208 = vmatprep.subr.bf16.mxu1 %v14042_v43  ;;  %v9597_v60 = vshll.u32 %v14090_v35, 16  ;;  %v9628_v45 = vrot.slane %v9626_v9, 4  ;;  %v9619_v35 = vrot.slane %v9618_v41, 4  ;;  %v9623_v9 = vrot.slane %v9621_v37, 5 }
 0x535   : > { %v9614_v41 = vsel %vm14316_vm2, %v9609_v28, %v17815_v56  ;;  %v9671_v14 = vrot.slane %v9669_v7, 5  ;;  %v9427_v7 = vld [vmem:[#allocation2 + $0xc0] sm:$0xf] }
 0x536   : > { %v9599_v34 = vrot.slane %v9597_v60, 5  ;;  %v9632_v60 = vor.u32 %v9631_v26, %v9628_v45  ;;  %v9643_v45 = vrot.slane %v9642_v10, 4  ;;  %v9656_v26 = vor.u32 %v9655_v16, %v9652_v51  ;;  %v14048_v16 = vld [vmem:[%s18158_s5 + $0x238] sm:$0xff]  }
 0x537   : > { %13209 = vmatpush3.bf16.msra.mxu1 %v14042_v43  ;;  %v9415_v43 = vld [vmem:[#allocation2 + $0x90] sm:$0xf]  ;;  %v9703_v10 = vrot.slane %v9701_v11, 5 }
 0x538   : > { %13210 = vmatprep.subr.bf16.mxu1 %v14043_v49  ;;  %v9674_v22 = vshrl.u32 %v9415_v43, 16  ;;  %v9677_v18 = vshll.u32 %v9415_v43, 16  ;;  %v9648_v38 = vsel %vm14316_vm2, %v9643_v45, %v9647_v6 }
 0x53a   : > { %13179 = vmatmul.mubr.bf16.gmra.mrb[4].mxu1 %v11840_v39  ;;  %v9665_v39 = vrot.slane %v9663_v4, 4  ;;  %v9676_v52 = vrot.slane %v9674_v22, 4  ;;  %v9679_v25 = vrot.slane %v9677_v18, 5  ;;  %v14097_v4 = vld [vmem:[#allocation2 + $0xa0] sm:$0xf] }
 0x53b   : > { %13182 = vmatprep.mubr.bf16.mxu1 %v11841_v30  ;;  %13211 = vmatpush3.bf16.msra.mxu1 %v14043_v49  ;;  %v9600_v49 = vsel %vm14316_vm2, %v9595_v17, %v9599_v34  ;;  %v17840_v30 = vrot.slane %v9683_v2, 5  ;;  %v14046_v34 = vld [vmem:[%s18158_s5 + $0x228] sm:$0xff]   ;;  %v9633_v17 = vrot.slane %v9632_v60, 4  ;;  %v9711_v22 = vshrl.u32 %v14097_v4, 16  ;;  %v14098_v2 = vld [vmem:[#allocation2 + $0x98] sm:$0x1] }
 0x53c   : > { %13212 = vmatprep.subr.bf16.mxu1 %v14044_v13  ;;  %v11843_v63 = vcombine.low %v9590_v54, %v9600_v49  ;;  %v9666_v43 = vor.u32 %v9665_v39, %v17838_v42  ;;  %v9680_v53 = vor.u32 %v9679_v25, %v9676_v52  ;;  %v9421_v18 = vld [vmem:[#allocation2 + $0xa8] sm:$0xf]  ;;  %v9693_v62 = vshll.u32 %v14098_v2, 16  ;;  %v14099_v54 = vld [vmem:[#allocation2 + $0xac] sm:$0xf] }
 0x53d   : > { %v9690_v20 = vor.u32 %v9689_v24, %v17840_v30  ;;  %v9638_v56 = vsel %vm14316_vm2, %v9633_v17, %v17827_v59  ;;  %v9731_v49 = vshll.u32 %v14099_v54, 16  ;;  %v9657_v60 = vrot.slane %v9656_v26, 4  ;;  %v14100_v26 = vld [vmem:[#allocation2 + $0xa4] sm:$0x1] }
 0x53e   : > { %v9667_v28 = vrot.slane %v9666_v43, 4  ;;  %v9681_v59 = vrot.slane %v9680_v53, 4  ;;  %v9722_v12 = vshrl.u32 %v9421_v18, 16  ;;  %v9725_v51 = vshll.u32 %v9421_v18, 16 }
 0x53f   : > { %13213 = vmatpush3.bf16.msra.mxu1 %v14044_v13  ;;  %v9624_v13 = vsel %vm14316_vm2, %v9619_v35, %v9623_v9  ;;  %v9735_v35 = vshrl.u32 %v14099_v54, 16  ;;  %v9700_v9 = vrot.slane %v9698_v50, 4  ;;  %v9691_v31 = vrot.slane %v9690_v20, 4  ;;  %v14101_v20 = vld [vmem:[#allocation2 + $0xb8] sm:$0xf] }
 0x540   : > { %13214 = vmatprep.subr.bf16.mxu1 %v14045_v48  ;;  %v11844_v37 = vcombine.low %v9614_v41, %v9624_v13  ;;  %v11845_v39 = vcombine.low %v9638_v56, %v9648_v38  ;;  %v9713_v25 = vrot.slane %v9711_v22, 4  ;;  %v9695_v24 = vrot.slane %v9693_v62, 5 }
 0x541   : > { %v9737_v13 = vrot.slane %v9735_v35, 4  ;;  %v9662_v17 = vsel %vm14316_vm2, %v9657_v60, %v17838_v42  ;;  %v9672_v41 = vsel %vm14316_vm2, %v9667_v28, %v9671_v14  ;;  %v9704_v45 = vor.u32 %v9703_v10, %v9700_v9  ;;  %v9430_v9 = vld [vmem:[#allocation2 + $0xcc] sm:$0xf] }
 0x542   : > { %13183 = vmatmul.mubr.bf16.gmra.mrb[8].mxu1 %v11842_v27  ;;  %v14047_v27 = vld [vmem:[%s18158_s5 + $0x230] sm:$0xff]   ;;  %v9717_v43 = vshll.u32 %v14100_v26, 16  ;;  %v9686_v50 = vsel %vm14316_vm2, %v9681_v59, %v17840_v30  ;;  %v9696_v11 = vsel %vm14316_vm2, %v9691_v31, %v9695_v24  ;;  %v9727_v6 = vrot.slane %v9725_v51, 5 }
 0x543   : > { %13186 = vmatprep.mubr.bf16.mxu1 %v11843_v63  ;;  %13215 = vmatpush3.bf16.msra.mxu1 %v14045_v48  ;;  %v9707_v48 = vshll.u32 %v14097_v4, 16  ;;  %v17865_v63 = vrot.slane %v9731_v49, 5  ;;  %v9755_v56 = vshll.u32 %v14101_v20, 16  ;;  %v9759_v55 = vshrl.u32 %v14101_v20, 16  ;;  %v14103_v49 = vld [vmem:[#allocation2 + $0xb0] sm:$0x1] }
 0x544   : > { %13216 = vmatprep.subr.bf16.mxu1 %v14046_v34  ;;  %v11846_v30 = vcombine.low %v9662_v17, %v9672_v41  ;;  %v11847_v38 = vcombine.low %v9686_v50, %v9696_v11  ;;  %v9705_v2 = vrot.slane %v9704_v45, 4  ;;  %v9719_v62 = vrot.slane %v9717_v43, 5 }
 0x545   : > { %v17863_v52 = vrot.slane %v9707_v48, 5  ;;  %v9738_v4 = vor.u32 %v9737_v13, %v17865_v63  ;;  %v14102_v48 = vld [vmem:[#allocation2 + $0xc4] sm:$0xf]  ;;  %v9741_v35 = vshll.u32 %v14103_v49, 16  ;;  %v9770_v60 = vshrl.u32 %v9427_v7, 16 }
 0x546   : > { %v9779_v22 = vshll.u32 %v14102_v48, 16  ;;  %v9783_v18 = vshrl.u32 %v14102_v48, 16  ;;  %v9773_v28 = vshll.u32 %v9427_v7, 16  ;;  %v9757_v31 = vrot.slane %v9755_v56, 5  ;;  %v14105_v48 = vld [vmem:[#allocation2 + $0xc8] sm:$0x1] }
 0x547   : > { %13217 = vmatpush3.bf16.msra.mxu1 %v14046_v34  ;;  %v9424_v34 = vld [vmem:[#allocation2 + $0xb4] sm:$0xf]  ;;  %v9714_v53 = vor.u32 %v9713_v25, %v17863_v52  ;;  %v9739_v51 = vrot.slane %v9738_v4, 4  ;;  %v9794_v24 = vshrl.u32 %v9430_v9, 16  ;;  %v9797_v13 = vshll.u32 %v9430_v9, 16 }
 0x548   : > { %13218 = vmatprep.subr.bf16.mxu1 %v14047_v27  ;;  %v9746_v42 = vshrl.u32 %v9424_v34, 16  ;;  %v9781_v14 = vrot.slane %v9779_v22, 5  ;;  %v9785_v25 = vrot.slane %v9783_v18, 4  ;;  %v9743_v41 = vrot.slane %v9741_v35, 5 }
 0x549   : > { %v9715_v10 = vrot.slane %v9714_v53, 4  ;;  %v9772_v45 = vrot.slane %v9770_v60, 4  ;;  %v9775_v26 = vrot.slane %v9773_v28, 5  ;;  %v9710_v43 = vsel %vm14316_vm2, %v9705_v2, %v17863_v52  ;;  %v14104_v53 = vld [vmem:[#allocation2 + $0xbc] sm:$0x1] }
 0x54a   : > { %13187 = vmatmul.mubr.bf16.gmra.mrb[12].mxu1 %v11844_v37  ;;  %v9724_v37 = vrot.slane %v9722_v12, 4  ;;  %v9748_v59 = vrot.slane %v9746_v42, 4  ;;  %v9761_v12 = vrot.slane %v9759_v55, 4  ;;  %v9765_v42 = vshll.u32 %v14104_v53, 16  ;;  %v18554_v53 = vld [vmem:[#allocation50_spill] sm:$0xff] }
 0x54b   : > { %13190 = vmatprep.mubr.bf16.mxu1 %v11845_v39  ;;  %13219 = vmatpush3.bf16.msra.mxu1 %v14047_v27  ;;  %v9749_v27 = vshll.u32 %v9424_v34, 16  ;;  %v9807_v34 = vshrl.u32 %v17753_v21, 16  ;;  %v9720_v50 = vsel %vm14316_vm2, %v9715_v10, %v9719_v62  ;;  %v9786_v20 = vor.u32 %v9785_v25, %v9781_v14 }
 0x54c   : > { %13220 = vmatprep.subr.bf16.mxu1 %v14048_v16  ;;  %v9728_v54 = vor.u32 %v9727_v6, %v9724_v37  ;;  %v9762_v11 = vor.u32 %v9761_v12, %v9757_v31  ;;  %v9744_v37 = vsel %vm14316_vm2, %v9739_v51, %v9743_v41  ;;  %v9799_v56 = vrot.slane %v9797_v13, 5  ;;  %v18544_v41 = vld [vmem:[#allocation40_spill] sm:$0xff] }
 0x54d   : > { %v9751_v39 = vrot.slane %v9749_v27, 5  ;;  %v9809_v7 = vrot.slane %v9807_v34, 4  ;;  %v11848_v4 = vcombine.low %v9710_v43, %v9720_v50  ;;  %v9776_v27 = vor.u32 %v9775_v26, %v9772_v45  ;;  %v18541_v34 = vld [vmem:[#allocation37_spill] sm:$0xff] }
 0x54e   : > { %v9729_v17 = vrot.slane %v9728_v54, 4  ;;  %v9789_v22 = vshll.u32 %v14105_v48, 16  ;;  %v9787_v2 = vrot.slane %v9786_v20, 4  ;;  %v9813_v35 = vshll.u32 %v17755_v47, 16  ;;  %v18545_v45 = vld [vmem:[#allocation41_spill] sm:$0xff]  ;;  %v18556_v20 = vld [vmem:[#allocation51_spill] sm:$0xff] }
 0x54f   : > { %13221 = vmatpush3.bf16.msra.mxu1 %v14048_v16  ;;  %v9803_v16 = vshll.u32 %v17753_v21, 16  ;;  %v9752_v6 = vor.u32 %v9751_v39, %v9748_v59  ;;  %v9796_v21 = vrot.slane %v9794_v24, 4  ;;  %v9777_v60 = vrot.slane %v9776_v27, 4  ;;  %v18548_v43 = vld [vmem:[#allocation45_spill] sm:$0xff]  ;;  %v18564_v48 = vld [vmem:[#allocation56_spill] sm:$0xff] }
 0x550   : > { %v9734_v52 = vsel %vm14316_vm2, %v9729_v17, %v17865_v63  ;;  %v9791_v28 = vrot.slane %v9789_v22, 5  ;;  %v9815_v51 = vrot.slane %v9813_v35, 5  ;;  %v18546_v26 = vcombine.low %v18544_v41, %v18545_v45  ;;  %v10720_v45 = vld [vmem:[%s17962_s23 + $0x28] sm:$0xff] }
 0x551   : > { %v9805_v55 = vrot.slane %v9803_v16, 5  ;;  %v11849_v18 = vcombine.low %v9734_v52, %v9744_v37  ;;  %v9753_v62 = vrot.slane %v9752_v6, 4  ;;  %v9800_v54 = vor.u32 %v9799_v56, %v9796_v21  ;;  %v18551_v37 = vld [vmem:[#allocation48_spill] sm:$0xff]  ;;  %v18553_v6 = vld [vmem:[#allocation49_spill] sm:$0xff]  ;;  %v18562_v52 = vld [vmem:[#allocation55_spill] sm:$0xff] }
 0x552   : > { %13191 = vmatmul.mubr.bf16.gmra.mrb[16].mxu1 %v11846_v30  ;;  %v9763_v30 = vrot.slane %v9762_v11, 4  ;;  %v9792_v63 = vsel %vm14316_vm2, %v9787_v2, %v9791_v28  ;;  %v9782_v25 = vsel %vm14316_vm2, %v9777_v60, %v9781_v14  ;;  %v18547_v14 = vld [vmem:[#allocation43_spill] sm:$0xff]  ;;  %v18550_v11 = vld [vmem:[#allocation46_spill] sm:$0xff]  ;;  %v18557_v21 = vld [vmem:[#allocation52_spill] sm:$0xff]  ;;  %v18565_v22 = vcombine.low %v17428_v29, %v18564_v48 }
 0x553   : > { %13194 = vmatprep.mubr.bf16.mxu1 %v11847_v38  ;;  %v9767_v38 = vrot.slane %v9765_v42, 5  ;;  %v9810_v49 = vor.u32 %v9809_v7, %v9805_v55  ;;  %v9758_v10 = vsel %vm14316_vm2, %v9753_v62, %v9757_v31  ;;  %v9801_v59 = vrot.slane %v9800_v54, 4  ;;  %v18542_v31 = vld [vmem:[#allocation38_spill] sm:$0xff]  ;;  %v18569_v2 = vld [vmem:[#allocation59_spill] sm:$0xff]  ;;  %v18570_v62 = vld [vmem:[#allocation60_spill] sm:$0xff] }
 0x554   : > { %v11851_v24 = vcombine.low %v9782_v25, %v9792_v63  ;;  %v18543_v17 = vcombine.low %v18541_v34, %v18542_v31  ;;  %v18549_v50 = vcombine.low %v18547_v14, %v18548_v43  ;;  %v18552_v1 = vcombine.low %v18550_v11, %v18551_v37  ;;  %v10722_v34 = vld [vmem:[%s17962_s23 + $0x38] sm:$0xff] }
 0x555   : > { %v9768_v9 = vsel %vm14316_vm2, %v9763_v30, %v9767_v38  ;;  %v9811_v12 = vrot.slane %v9810_v49, 4  ;;  %v9806_v47 = vsel %vm14316_vm2, %v9801_v59, %v9805_v55  ;;  %v18555_v42 = vcombine.low %v18553_v6, %v18554_v53  ;;  %v18559_v55 = vld [vmem:[#allocation53_spill] sm:$0xff]  ;;  %v18567_v30 = vld [vmem:[#allocation58_spill] sm:$0xff]  ;;  %v10716_v49 = vld [vmem:[%s17962_s23 + $0x8] sm:$0xff] }
 0x556   : > { %v11850_v39 = vcombine.low %v9758_v10, %v9768_v9  ;;  %v18558_v56 = vcombine.low %v18556_v20, %v18557_v21  ;;  %v18560_v7 = vcombine.low %v17402_v5, %v18559_v55  ;;  %v18571_v54 = vcombine.low %v18569_v2, %v18570_v62  ;;  %v17957_v5 = vld [vmem:[%s18159_s6] ss:$0 sm:$0xff]  ;;  %v10725_v6 = vld [vmem:[%s17962_s23 + $0x50] sm:$0xff] }
 0x557   : > { %v9816_v13 = vsel %vm14316_vm2, %v9811_v12, %v9815_v51  ;;  %v10721_v12 = vld [vmem:[%s17962_s23 + $0x30] sm:$0xff]  ;;  %v10723_v21 = vld [vmem:[%s17962_s23 + $0x40] sm:$0xff] }
 0x558   : > { %v11852_v16 = vcombine.low %v9806_v47, %v9816_v13 }
 0x55a   : > { %13195 = vmatmul.mubr.bf16.gmra.mrb[20].mxu1 %v11848_v4  ;;  %v18561_v4 = vld [vmem:[#allocation54_spill] sm:$0xff] }
 0x55b   : > { %13198 = vmatprep.mubr.bf16.mxu1 %v11849_v18  ;;  %v18563_v27 = vcombine.low %v18561_v4, %v18562_v52  ;;  %v18566_v18 = vld [vmem:[#allocation57_spill] sm:$0xff]  ;;  %v10726_v4 = vld [vmem:[%s17962_s23 + $0x58] sm:$0xff] }
 0x55c   : > { %v18568_v38 = vcombine.low %v18566_v18, %v18567_v30 }
 0x562   : > { %13199 = vmatmul.mubr.bf16.gmra.mrb[24].mxu1 %v11850_v39 }
 0x563   : > { %13202 = vmatprep.mubr.bf16.mxu1 %v11851_v24  ;;  %v10719_v24 = vld [vmem:[%s17962_s23 + $0x20] sm:$0xff] }
 0x56a   : > { %13203 = vmatmul.mubr.bf16.gmra.mrb[28].mxu1 %v11852_v16 }
 0x56b   : > { %13222 = vmatprep.mubr.bf16.mxu1 %v18543_v17 }
 0x572   : > { %13223 = vmatmul.mubr.bf16.vlgmr.msra.gmra.mrb[0].mxu1 %v18546_v26 }
 0x573   : > { %13226 = vmatprep.mubr.bf16.mxu1 %v18549_v50 }
 0x57a   : > { %13227 = vmatmul.mubr.bf16.gmra.mrb[4].mxu1 %v18552_v1 }
 0x57b   : > { %13230 = vmatprep.mubr.bf16.mxu1 %v18555_v42 }
 0x582   : > { %13231 = vmatmul.mubr.bf16.gmra.mrb[8].mxu1 %v18558_v56 }
 0x583   : > { %13234 = vmatprep.mubr.bf16.mxu1 %v18560_v7 }
 0x58a   : > { %13235 = vmatmul.mubr.bf16.gmra.mrb[12].mxu1 %v18563_v27 }
 0x58b   : > { %13238 = vmatprep.mubr.bf16.mxu1 %v18565_v22  ;;  %v10724_v22 = vld [vmem:[%s17962_s23 + $0x48] sm:$0xff] }
 0x592   : > { %13239 = vmatmul.mubr.bf16.gmra.mrb[16].mxu1 %v18568_v38 }
 0x593   : > { %13242 = vmatprep.mubr.bf16.mxu1 %v18571_v54 }
 0x59a   : > { %13243 = vmatmul.mubr.bf16.gmra.mrb[20].mxu1 %v11904_v36 }
 0x59b   : > { %13246 = vmatprep.mubr.bf16.mxu1 %v11905_v61 }
 0x5a2   : > { %13247 = vmatmul.mubr.bf16.gmra.mrb[24].mxu1 %v11906_v23 }
 0x5a3   : > { %13250 = vmatprep.mubr.bf16.mxu1 %v11907_v46  ;;  %v10718_v46 = vld [vmem:[%s17962_s23 + $0x18] sm:$0xff] }
 0x5aa   : > { %13251 = vmatmul.mubr.bf16.gmra.mrb[28].mxu1 %v11908_v19 }
 0x645   : > { %v13224_v29 = vpop.f32.mrb[0].mxu1 }
 0x646   : > { %v10646_v0 = vmul.f32 %v13224_v29, %v17957_v5  ;;  %v10478_v36 = vpop.f32.mrb[1].mxu1 }
 0x647   : > { %v10644_v8 = vmul.f32 %v17957_v5, %v10478_v36  ;;  %v13225_v44 = vpop.f32.mrb[2].mxu1 }
 0x648   : > { %v10685_v61 = vadd.f32 %v17967_v57, %v10646_v0  ;;  %v10647_v23 = vmul.f32 %v13225_v44, %v17957_v5  ;;  %v10481_v32 = vpop.f32.mrb[3].mxu1  ;;  %v10729_v0 = vld [vmem:[%s17962_s23 + $0x70] sm:$0xff]  ;;  %v10727_v44 = vld [vmem:[%s17962_s23 + $0x60] sm:$0xff] }
 0x649   : > { %v10683_v15 = vadd.f32 %v17967_v57, %v10644_v8  ;;  %v10645_v3 = vmul.f32 %v17957_v5, %v10481_v32  ;;  %v10730_v32 = vld [vmem:[%s17962_s23 + $0x78] sm:$0xff] }
 0x64a   : > { %v10749_v33 = vadd.f32 %v10717_v40, %v10685_v61  ;;  %v10686_v19 = vadd.f32 %v17967_v57, %v10647_v23 }
 0x64b   : > { %v10747_v35 = vadd.f32 %v10715_v58, %v10683_v15  ;;  %v10684_v60 = vadd.f32 %v17967_v57, %v10645_v3 }
 0x64c   : > { %10781 = vst [vmem:[%s17983_s26 + $0x10] sm:$0xff] %v10749_v33  ;;  %v10750_v28 = vadd.f32 %v10718_v46, %v10686_v19  ;;  %v10728_v33 = vld [vmem:[%s17962_s23 + $0x68] sm:$0xff] }
 0x64d   : > { %10779 = vst [vmem:[%s17983_s26] sm:$0xff] %v10747_v35  ;;  %v10748_v9 = vadd.f32 %v10716_v49, %v10684_v60  ;;  %v13228_v63 = vpop.f32.mrb[4].mxu1 }
 0x64e   : > { %10782 = vst [vmem:[%s17983_s26 + $0x18] sm:$0xff] %v10750_v28  ;;  %v10650_v10 = vmul.f32 %v13228_v63, %v17957_v5  ;;  %v10494_v59 = vpop.f32.mrb[5].mxu1 }
 0x64f   : > { %10780 = vst [vmem:[%s17983_s26 + $0x8] sm:$0xff] %v10748_v9  ;;  %v10648_v51 = vmul.f32 %v17957_v5, %v10494_v59  ;;  %v13229_v39 = vpop.f32.mrb[6].mxu1 }
 0x650   : > { %v10689_v25 = vadd.f32 %v17967_v57, %v10650_v10  ;;  %v10651_v47 = vmul.f32 %v13229_v39, %v17957_v5  ;;  %v10497_v13 = vpop.f32.mrb[7].mxu1  ;;  %v10733_v10 = vld [vmem:[%s17962_s23 + $0x90] sm:$0xff]  ;;  %v10731_v39 = vld [vmem:[%s17962_s23 + $0x80] sm:$0xff] }
 0x651   : > { %v10687_v16 = vadd.f32 %v17967_v57, %v10648_v51  ;;  %v10649_v31 = vmul.f32 %v17957_v5, %v10497_v13  ;;  %v10734_v13 = vld [vmem:[%s17962_s23 + $0x98] sm:$0xff] }
 0x652   : > { %v10753_v17 = vadd.f32 %v10721_v12, %v10689_v25  ;;  %v10690_v41 = vadd.f32 %v17967_v57, %v10651_v47 }
 0x653   : > { %v10751_v26 = vadd.f32 %v10719_v24, %v10687_v16  ;;  %v10688_v14 = vadd.f32 %v17967_v57, %v10649_v31 }
 0x654   : > { %10785 = vst [vmem:[%s17983_s26 + $0x30] sm:$0xff] %v10753_v17  ;;  %v10754_v43 = vadd.f32 %v10722_v34, %v10690_v41  ;;  %v10732_v17 = vld [vmem:[%s17962_s23 + $0x88] sm:$0xff] }
 0x655   : > { %10783 = vst [vmem:[%s17983_s26 + $0x20] sm:$0xff] %v10751_v26  ;;  %v10752_v50 = vadd.f32 %v10720_v45, %v10688_v14  ;;  %v13232_v11 = vpop.f32.mrb[8].mxu1 }
 0x656   : > { %10786 = vst [vmem:[%s17983_s26 + $0x38] sm:$0xff] %v10754_v43  ;;  %v10654_v37 = vmul.f32 %v13232_v11, %v17957_v5  ;;  %v10510_v1 = vpop.f32.mrb[9].mxu1 }
 0x657   : > { %10784 = vst [vmem:[%s17983_s26 + $0x28] sm:$0xff] %v10752_v50  ;;  %v10652_v53 = vmul.f32 %v17957_v5, %v10510_v1  ;;  %v13233_v42 = vpop.f32.mrb[10].mxu1 }
 0x658   : > { %v10693_v20 = vadd.f32 %v17967_v57, %v10654_v37  ;;  %v10655_v56 = vmul.f32 %v13233_v42, %v17957_v5  ;;  %v10513_v55 = vpop.f32.mrb[11].mxu1  ;;  %v10737_v37 = vld [vmem:[%s17962_s23 + $0xb0] sm:$0xff]  ;;  %v10735_v42 = vld [vmem:[%s17962_s23 + $0xa0] sm:$0xff] }
 0x659   : > { %v10691_v7 = vadd.f32 %v17967_v57, %v10652_v53  ;;  %v10653_v52 = vmul.f32 %v17957_v5, %v10513_v55  ;;  %v10738_v55 = vld [vmem:[%s17962_s23 + $0xb8] sm:$0xff] }
 0x65a   : > { %v10757_v27 = vadd.f32 %v10725_v6, %v10693_v20  ;;  %v10694_v48 = vadd.f32 %v17967_v57, %v10655_v56 }
 0x65b   : > { %v10755_v18 = vadd.f32 %v10723_v21, %v10691_v7  ;;  %v10692_v30 = vadd.f32 %v17967_v57, %v10653_v52 }
 0x65c   : > { %10789 = vst [vmem:[%s17983_s26 + $0x50] sm:$0xff] %v10757_v27  ;;  %v10758_v38 = vadd.f32 %v10726_v4, %v10694_v48  ;;  %v10736_v27 = vld [vmem:[%s17962_s23 + $0xa8] sm:$0xff] }
 0x65d   : > { %10787 = vst [vmem:[%s17983_s26 + $0x40] sm:$0xff] %v10755_v18  ;;  %v10756_v2 = vadd.f32 %v10724_v22, %v10692_v30  ;;  %v13236_v62 = vpop.f32.mrb[12].mxu1 }
 0x65e   : > { %10790 = vst [vmem:[%s17983_s26 + $0x58] sm:$0xff] %v10758_v38  ;;  %v10658_v54 = vmul.f32 %v13236_v62, %v17957_v5  ;;  %v10526_v29 = vpop.f32.mrb[13].mxu1 }
 0x65f   : > { %10788 = vst [vmem:[%s17983_s26 + $0x48] sm:$0xff] %v10756_v2  ;;  %v10656_v36 = vmul.f32 %v17957_v5, %v10526_v29  ;;  %v13237_v40 = vpop.f32.mrb[14].mxu1 }
 0x660   : > { %v10697_v8 = vadd.f32 %v17967_v57, %v10658_v54  ;;  %v10659_v61 = vmul.f32 %v13237_v40, %v17957_v5  ;;  %v10529_v58 = vpop.f32.mrb[15].mxu1  ;;  %v10741_v54 = vld [vmem:[%s17962_s23 + $0xd0] sm:$0xff]  ;;  %v10739_v40 = vld [vmem:[%s17962_s23 + $0xc0] sm:$0xff] }
 0x661   : > { %v10695_v23 = vadd.f32 %v17967_v57, %v10656_v36  ;;  %v10657_v15 = vmul.f32 %v17957_v5, %v10529_v58  ;;  %v10742_v58 = vld [vmem:[%s17962_s23 + $0xd8] sm:$0xff] }
 0x662   : > { %v10761_v46 = vadd.f32 %v10729_v0, %v10697_v8  ;;  %v10698_v3 = vadd.f32 %v17967_v57, %v10659_v61 }
 0x663   : > { %v10759_v19 = vadd.f32 %v10727_v44, %v10695_v23  ;;  %v10696_v49 = vadd.f32 %v17967_v57, %v10657_v15 }
 0x664   : > { %10793 = vst [vmem:[%s17983_s26 + $0x70] sm:$0xff] %v10761_v46  ;;  %v10762_v35 = vadd.f32 %v10730_v32, %v10698_v3  ;;  %v10740_v46 = vld [vmem:[%s17962_s23 + $0xc8] sm:$0xff] }
 0x665   : > { %10791 = vst [vmem:[%s17983_s26 + $0x60] sm:$0xff] %v10759_v19  ;;  %v10760_v60 = vadd.f32 %v10728_v33, %v10696_v49  ;;  %v13240_v28 = vpop.f32.mrb[16].mxu1 }
 0x666   : > { %10794 = vst [vmem:[%s17983_s26 + $0x78] sm:$0xff] %v10762_v35  ;;  %v10662_v9 = vmul.f32 %v13240_v28, %v17957_v5  ;;  %v10542_v63 = vpop.f32.mrb[17].mxu1 }
 0x667   : > { %10792 = vst [vmem:[%s17983_s26 + $0x68] sm:$0xff] %v10760_v60  ;;  %v10660_v59 = vmul.f32 %v17957_v5, %v10542_v63  ;;  %v13241_v12 = vpop.f32.mrb[18].mxu1 }
 0x668   : > { %v10701_v51 = vadd.f32 %v17967_v57, %v10662_v9  ;;  %v10663_v25 = vmul.f32 %v13241_v12, %v17957_v5  ;;  %v10545_v24 = vpop.f32.mrb[19].mxu1  ;;  %v10745_v9 = vld [vmem:[%s17962_s23 + $0xf0] sm:$0xff]  ;;  %v10743_v12 = vld [vmem:[%s17962_s23 + $0xe0] sm:$0xff] }
 0x669   : > { %v10699_v47 = vadd.f32 %v17967_v57, %v10660_v59  ;;  %v10661_v16 = vmul.f32 %v17957_v5, %v10545_v24  ;;  %v10746_v24 = vld [vmem:[%s17962_s23 + $0xf8] sm:$0xff] }
 0x66a   : > { %v10765_v34 = vadd.f32 %v10733_v10, %v10701_v51  ;;  %v10702_v31 = vadd.f32 %v17967_v57, %v10663_v25 }
 0x66b   : > { %v10763_v41 = vadd.f32 %v10731_v39, %v10699_v47  ;;  %v10700_v45 = vadd.f32 %v17967_v57, %v10661_v16 }
 0x66c   : > { %10797 = vst [vmem:[%s17983_s26 + $0x90] sm:$0xff] %v10765_v34  ;;  %v10766_v26 = vadd.f32 %v10734_v13, %v10702_v31  ;;  %v10744_v34 = vld [vmem:[%s17962_s23 + $0xe8] sm:$0xff]  ;;  %s14110_s23 = sshll.u32 %s14171_s22, 4  ;;  %s14111_s23 = int_to_ptr.vmem [resolvable:$false] %s14110_s23 }
 0x66d   : > { %10795 = vst [vmem:[%s17983_s26 + $0x80] sm:$0xff] %v10763_v41  ;;  %v10764_v14 = vadd.f32 %v10732_v17, %v10700_v45  ;;  %v13244_v43 = vpop.f32.mrb[20].mxu1  ;;  %s14112_s24 = scalar_lea.vmem %s14111_s23, 8192  ;;  %p14113_p0 = scmp.lt.s32.totalorder %s18105_s13, %s14111_s23 }
 0x66e   : > { %10798 = vst [vmem:[%s17983_s26 + $0x98] sm:$0xff] %v10766_v26  ;;  %v10666_v50 = vmul.f32 %v13244_v43, %v17957_v5  ;;  %v10558_v11 = vpop.f32.mrb[21].mxu1  ;;  %p14114_p1 = scmp.lt.s32.totalorder %s14112_s24, %s14106_s10 }
 0x66f   : > { %10796 = vst [vmem:[%s17983_s26 + $0x88] sm:$0xff] %v10764_v14  ;;  %v10664_v1 = vmul.f32 %v17957_v5, %v10558_v11  ;;  %v13245_v6 = vpop.f32.mrb[22].mxu1 }
 0x670   : > { %v10705_v53 = vadd.f32 %v17967_v57, %v10666_v50  ;;  %v10667_v20 = vmul.f32 %v13245_v6, %v17957_v5  ;;  %v10561_v21 = vpop.f32.mrb[23].mxu1  ;;  %p14115_p2 = por %p14114_p1, %p14113_p0 }
 0x671   : > { %v10703_v56 = vadd.f32 %v17967_v57, %v10664_v1  ;;  %v10665_v7 = vmul.f32 %v17957_v5, %v10561_v21 }
 0x672   : > { %v10769_v4 = vadd.f32 %v10737_v37, %v10705_v53  ;;  %v10706_v52 = vadd.f32 %v17967_v57, %v10667_v20  ;;  %p14116_p3 = pnand %p14115_p2, %p14109_p13 }
 0x673   : > { %v10767_v48 = vadd.f32 %v10735_v42, %v10703_v56  ;;  %v10704_v22 = vadd.f32 %v17967_v57, %v10665_v7 }
 0x674   : > { %10801 = vst [vmem:[%s17983_s26 + $0xb0] sm:$0xff] %v10769_v4  ;;  %v10770_v18 = vadd.f32 %v10738_v55, %v10706_v52 }
 0x675   : > { %10799 = vst [vmem:[%s17983_s26 + $0xa0] sm:$0xff] %v10767_v48  ;;  %v10768_v30 = vadd.f32 %v10736_v27, %v10704_v22  ;;  %v13248_v38 = vpop.f32.mrb[24].mxu1 }
 0x676   : > { %10802 = vst [vmem:[%s17983_s26 + $0xb8] sm:$0xff] %v10770_v18  ;;  %v10670_v2 = vmul.f32 %v13248_v38, %v17957_v5  ;;  %v10574_v62 = vpop.f32.mrb[25].mxu1 }
 0x677   : > { %10800 = vst [vmem:[%s17983_s26 + $0xa8] sm:$0xff] %v10768_v30  ;;  %v10668_v29 = vmul.f32 %v17957_v5, %v10574_v62  ;;  %v13249_v0 = vpop.f32.mrb[26].mxu1 }
 0x678   : > { %v10709_v36 = vadd.f32 %v17967_v57, %v10670_v2  ;;  %v10671_v8 = vmul.f32 %v13249_v0, %v17957_v5  ;;  %v10577_v44 = vpop.f32.mrb[27].mxu1 }
 0x679   : > { %v10707_v61 = vadd.f32 %v17967_v57, %v10668_v29  ;;  %v10669_v23 = vmul.f32 %v17957_v5, %v10577_v44 }
 0x67a   : > { %v10773_v32 = vadd.f32 %v10741_v54, %v10709_v36  ;;  %v10710_v15 = vadd.f32 %v17967_v57, %v10671_v8 }
 0x67b   : > { %v10771_v3 = vadd.f32 %v10739_v40, %v10707_v61  ;;  %v10708_v33 = vadd.f32 %v17967_v57, %v10669_v23 }
 0x67c   : > { %10805 = vst [vmem:[%s17983_s26 + $0xd0] sm:$0xff] %v10773_v32  ;;  %v10774_v19 = vadd.f32 %v10742_v58, %v10710_v15 }
 0x67d   : > { %10803 = vst [vmem:[%s17983_s26 + $0xc0] sm:$0xff] %v10771_v3  ;;  %v10772_v49 = vadd.f32 %v10740_v46, %v10708_v33  ;;  %v13252_v35 = vpop.f32.mrb[28].mxu1 }
 0x67e   : > { %10806 = vst [vmem:[%s17983_s26 + $0xd8] sm:$0xff] %v10774_v19  ;;  %v10674_v60 = vmul.f32 %v13252_v35, %v17957_v5  ;;  %v10590_v28 = vpop.f32.mrb[29].mxu1 }
 0x67f   : > { %10804 = vst [vmem:[%s17983_s26 + $0xc8] sm:$0xff] %v10772_v49  ;;  %v10672_v63 = vmul.f32 %v17957_v5, %v10590_v28  ;;  %v13253_v10 = vpop.f32.mrb[30].mxu1 }
 0x680   : > { %v10713_v59 = vadd.f32 %v17967_v57, %v10674_v60  ;;  %v10675_v51 = vmul.f32 %v13253_v10, %v17957_v5  ;;  %v10593_v39 = vpop.f32.mrb[31].mxu1 }
 0x681   : > { %v10711_v25 = vadd.f32 %v17967_v57, %v10672_v63  ;;  %v10673_v47 = vmul.f32 %v17957_v5, %v10593_v39 }
 0x682   : > { %v10777_v13 = vadd.f32 %v10745_v9, %v10713_v59  ;;  %v10714_v16 = vadd.f32 %v17967_v57, %v10675_v51 }
 0x683   : > { %v10775_v31 = vadd.f32 %v10743_v12, %v10711_v25  ;;  %v10712_v17 = vadd.f32 %v17967_v57, %v10673_v47 }
 0x684   : > { %10809 = vst [vmem:[%s17983_s26 + $0xf0] sm:$0xff] %v10777_v13  ;;  %v10778_v41 = vadd.f32 %v10746_v24, %v10714_v16 }
 0x685   : > { %10807 = vst [vmem:[%s17983_s26 + $0xe0] sm:$0xff] %v10775_v31  ;;  %v10776_v5 = vadd.f32 %v10744_v34, %v10712_v17 }
 0x686   : > { %10810 = vst [vmem:[%s17983_s26 + $0xf8] sm:$0xff] %v10778_v41 }
 0x687   : > { %10808 = vst [vmem:[%s17983_s26 + $0xe8] sm:$0xff] %v10776_v5 }
 0x688   : > { %14119 = shalt.err (!%p14116_p3)
}
 0x689   : > { %s14120_s18 = scalar_lea.hbm %s18103_s20, 4096  ;;  %s14124_s26 = scalar_lea.hbm %s18161_s8, 8192 }
 0x68a   : > { %p14121_p4 = scmp.ne.s32.totalorder %s18103_s20, %s14120_s18  ;;  %p14125_p9 = scmp.lt.u32.totalorder %s18103_s20, %s18161_s8 }
 0x68b   : > { %p14126_p10 = scmp.lt.u32.totalorder %s14124_s26, %s14120_s18  ;;  %p14128_p12 = scmp.lt.u32.totalorder %s14120_s18, %s18103_s20 }
 0x68c   : > { %p14122_p7 = pnand %p14121_p4, %p14257_p5 }
 0x68d   : > { %p14127_p11 = por %p14126_p10, %p14125_p9 }
 0x68e   : > { %p14123_p8 = pneg %p14122_p7 }
 0x68f   : > { %p14129_p13 = por %p14128_p12, %p14127_p11 }
 0x691   : > { %p14130_p0 = pnand %p14129_p13, %p14123_p8 }
 0x693   : > { %14133 = shalt.err (!%p14130_p0)
}
 0x694   : > { %s14172_s19 = smov 128   ;;  %s14173_s10 = smov 8  }
 0x695   : > { %13767 = dma.vmem_to_hbm [thread:$0]  (%p14257_p5), %s18105_s13, 4096, %s18103_s20, %s18112_s9, %s14172_s19, %s14172_s19, %s14173_s10  }
 0x696 PF: > { %p13773_p1 = scmp.ge.s32.totalorder %s14168_s30, 2  ;;  %s10840_s22 = sand.u32 1, %s14156_s27  }
 0x697   : > { %s10841_s23 = scalar_lea.sflag [#allocation4], %s10840_s22 }
 0x698   : > { %p13770_p2 = pnand %p13773_p1, %p14261_p6 }
 0x69a   : > { %14151 = dma.done.wait (!%p13770_p2), %s10841_s23, 4096  }
 0x69b   : > { %14153 = vsyncadd (!%p13770_p2), %s10841_s23, 4294963200  ;;  %p18_p3 = scmp.ge.s32.totalorder %s14244_s11, 4   ;;  %s18572_s27 = smov %s14160_s28 }
 0x69c   : > { %s18573_s28 = smov %s14164_s29  ;;  %s18574_s29 = smov %s14255_s14 }
 0x69d   : > { %s18575_s30 = smov %s14244_s11  ;;  %20 = sbr.rel (!%p18_p3) target bundleno = 3 (0x3), region = 110 }
 0x6a4   :  { %10846 = vsyncpa [#allocation4], 1 }
 0x6a5   :  { %10848 = vsyncpa [#allocation4 + $0x1], 1 }

</bundles_post_ra>
